<compile_context>
chip_gen: v7x
topology: tpu7x:2x2x1
jax: 0.10.0
libtpu: 0.0.40
codegen_flags: <defaults>
</compile_context>

<pallas_src>
import functools

import jax
import jax.numpy as jnp
import numpy as np
from jax.experimental import pallas as pl
from jax.experimental.pallas import tpu as pltpu

_EPS = 1e-5                          # nn.BatchNorm2d default eps
_VMEM_LIMIT = 48 * 1024 * 1024       # <= v7x 64 MiB physical; fine on v5e/v6e
_TM_CAP = 512                        # M tile cap for the 1x1 (matmul) path
_TN_CAP = 512                        # Cout tile cap


def _round_up(x, m):
    return (x + m - 1) // m * m


def _pick_tn(npad):
    """Cout tile: full if <=512, else a 256-friendly divisor (lane-dense, MXU aligned)."""
    if npad <= _TN_CAP:
        return npad
    for c in (512, 256, 128):
        if npad % c == 0:
            return c
    return 128


def _pick_tm(m):
    """M tile that divides M exactly when possible (avoids pad/slice HBM round trips)."""
    if m <= _TM_CAP:
        return _round_up(m, 8)
    for cand in range(_TM_CAP, _TM_CAP // 2, -8):
        if m % cand == 0:
            return cand
    return _TM_CAP


def _pick_tho(ho):
    """Output-row tile for the spatial conv kernel (<=16 rows, divides Ho)."""
    for cand in range(min(ho, 16), 0, -1):
        if ho % cand == 0:
            return cand
    return 1


# --------------------------- Pallas kernels -------------------------------- #

def _mm_kernel(x_ref, w_ref, b_ref, o_ref, *, relu):
    """Weight-resident 1x1-conv matmul: (tm,K)@(K,tn) + bias (+ReLU)."""
    out = jnp.dot(x_ref[...], w_ref[...], preferred_element_type=jnp.float32)
    out = out + b_ref[...]
    if relu:
        out = jnp.maximum(out, 0.0)
    o_ref[...] = out.astype(o_ref.dtype)


def _mm_res_kernel(x_ref, w_ref, b_ref, r_ref, o_ref, *, relu):
    """Same as _mm_kernel, fusing the bottleneck residual add (quant_func.add)."""
    out = jnp.dot(x_ref[...], w_ref[...], preferred_element_type=jnp.float32)
    out = out + b_ref[...] + r_ref[...].astype(jnp.float32)
    if relu:
        out = jnp.maximum(out, 0.0)
    o_ref[...] = out.astype(o_ref.dtype)


def _conv_kernel(x_ref, w_ref, b_ref, o_ref, *, kk, stride, phases, relu):
    """KxK conv with in-kernel im2col.

    x_ref : (HpP, Wq, Cin)  padded activation slab of one image (bf16).  For stride 2
            the W axis is phase-split at the JAX level: row index = ih * phases + ph.
    w_ref : (kk*kk, Cin, tn) BN-folded weights (bf16), tap-major.
    b_ref : (1, tn) folded BN bias (f32).
    o_ref : (tho, wo, tn) output row tile (bf16).
    """
    tho, wo, tn = o_ref.shape
    r = pl.program_id(2)                     # output-row tile index
    bias = b_ref[...]                        # (1, tn) f32

    for local in range(tho):                 # tho <= 16: fully static unroll
        oh = r * tho + local
        acc = jnp.zeros((wo, tn), jnp.float32)
        for di in range(kk):
            for dj in range(kk):
                ph = dj % phases
                off = dj // phases
                t = di * kk + dj
                row = x_ref[(stride * oh + di) * phases + ph]   # (Wq, Cin)
                lhs = row[off:off + wo, :]                      # (wo, Cin)
                acc = acc + jnp.dot(lhs, w_ref[t],
                                    preferred_element_type=jnp.float32)
        out = acc + bias
        if relu:
            out = jnp.maximum(out, 0.0)
        o_ref[local] = out.astype(o_ref.dtype)


# ------------------------------ wrappers ------------------------------------ #

def _fused_matmul(x2d, w2d, bias, res2d, relu):
    """Fused 1x1-conv matmul: x2d (M,K) bf16 @ w2d (K,Np) bf16 + bias (+res) (+ReLU)."""
    m, k = x2d.shape
    npad = w2d.shape[1]
    x2d = x2d.astype(jnp.bfloat16)

    tm = _pick_tm(m)
    mp = _round_up(m, tm)
    if mp != m:                              # rare: only when no divisor tile exists
        x2d = jnp.pad(x2d, ((0, mp - m), (0, 0)))
        if res2d is not None:
            res2d = jnp.pad(res2d, ((0, mp - m), (0, 0)))
    tn = _pick_tn(npad)

    inputs = [x2d, w2d, bias]
    in_specs = [
        pl.BlockSpec((tm, k), lambda i, j: (i, 0)),      # activations: M-tiled, full K
        pl.BlockSpec((k, tn), lambda i, j: (0, j)),      # weights: resident full-K block
        pl.BlockSpec((1, tn), lambda i, j: (0, j)),      # folded BN bias
    ]
    if res2d is None:
        kernel = functools.partial(_mm_kernel, relu=relu)
    else:
        inputs.append(res2d)
        in_specs.append(pl.BlockSpec((tm, tn), lambda i, j: (i, j)))
        kernel = functools.partial(_mm_res_kernel, relu=relu)

    out = pl.pallas_call(
        kernel,
        out_shape=jax.ShapeDtypeStruct((mp, npad), jnp.bfloat16),
        grid_spec=pltpu.PrefetchScalarGridSpec(
            num_scalar_prefetch=0,
            grid=(mp // tm, npad // tn),
            in_specs=in_specs,
            out_specs=pl.BlockSpec((tm, tn), lambda i, j: (i, j)),
        ),
        compiler_params=pltpu.CompilerParams(
            dimension_semantics=("parallel", "parallel"),
            vmem_limit_bytes=_VMEM_LIMIT,
        ),
    )(*inputs)
    if mp != m:
        out = out[:m]
    return out


def conv1x1_bn(x, wp, *, relu, stride=1, residual=None):
    """1x1 ConvBN(+ReLU)(+residual) on NHWC bf16 activations via the matmul kernel."""
    if stride > 1:
        # TODO(synk): fold the stride into a strided index_map instead of a JAX slice.
        x = x[:, ::stride, ::stride, :]
    n, h, w, c = x.shape
    cols = x.reshape(n * h * w, c)                       # free reshape (row-major)
    res2d = None if residual is None else residual.reshape(n * h * w, -1)
    out = _fused_matmul(cols, wp["w"], wp["b"], res2d, relu)
    return out.reshape(n, h, w, -1)


def _prep_conv3x3_input(x, stride):
    """Spatial pad (pad=1) and, for stride 2, split W into even/odd phases so the
    in-kernel per-tap windows are unit-stride.  Returns (x_r, phases):
      stride 1: x_r (N, H+2, W+2, C),              row index = ih
      stride 2: x_r (N, 2*(H+2), (W+2)//2, C),     row index = ih*2 + w_phase
    """
    n, h, w, c = x.shape
    xp = jnp.pad(x, ((0, 0), (1, 1), (1, 1), (0, 0)))
    if stride == 1:
        return xp, 1
    assert stride == 2 and (w + 2) % 2 == 0, "stride-2 conv requires even W"
    hp, wp = h + 2, w + 2
    x_r = xp.reshape(n, hp, wp // 2, 2, c).transpose(0, 1, 3, 2, 4)
    return x_r.reshape(n, hp * 2, wp // 2, c), 2


def conv3x3_bn(x, wp, *, stride, relu):
    """3x3 ConvBN(+ReLU), pad=1, stride in {1,2}: in-kernel im2col, no HBM expansion."""
    n, h, w, c = x.shape
    ho = (h - 1) // stride + 1
    wo = (w - 1) // stride + 1
    x_r, phases = _prep_conv3x3_input(x.astype(jnp.bfloat16), stride)
    hpp, wq = x_r.shape[1], x_r.shape[2]
    coutp = wp["w"].shape[-1]
    tn = _pick_tn(coutp)
    tho = _pick_tho(ho)

    kernel = functools.partial(_conv_kernel, kk=3, stride=stride,
                               phases=phases, relu=relu)
    # TODO(synk): for production stems (huge spatial, tiny Cin) tile H / pack channels
    # to bound the lane-padded VMEM slab; and pack several output rows per MXU matmul.
    return pl.pallas_call(
        kernel,
        out_shape=jax.ShapeDtypeStruct((n, ho, wo, coutp), jnp.bfloat16),
        grid_spec=pltpu.PrefetchScalarGridSpec(
            num_scalar_prefetch=0,
            grid=(n, coutp // tn, ho // tho),            # row axis innermost: weights
            in_specs=[                                   # fetched once per (image, j)
                pl.BlockSpec((None, hpp, wq, c), lambda b, j, r: (b, 0, 0, 0)),
                pl.BlockSpec((9, c, tn), lambda b, j, r: (0, 0, j)),
                pl.BlockSpec((1, tn), lambda b, j, r: (0, j)),
            ],
            out_specs=pl.BlockSpec((None, tho, wo, tn), lambda b, j, r: (b, r, 0, j)),
        ),
        compiler_params=pltpu.CompilerParams(
            dimension_semantics=("parallel", "parallel", "parallel"),
            vmem_limit_bytes=_VMEM_LIMIT,
        ),
    )(x_r, wp["w"], wp["b"])


# --------------------------- parameter building ----------------------------- #

def build_params(key, layers, channels_ls, strides, in_channels,
                 base_width=32, groups=1):
    """Mirror resnet_backbone.__init__ (block='bottleneck') raw parameter creation."""
    n_convs = 2 + 4 * sum(layers)
    keys = iter(jax.random.split(key, n_convs + 4))

    def conv_param(cin, cout, k):
        # kaiming_normal_(mode='fan_out', nonlinearity='relu'): std = sqrt(2/(k*k*cout))
        std = (2.0 / (k * k * cout)) ** 0.5
        w = jax.random.normal(next(keys), (cout, cin, k, k), jnp.float32) * std
        return dict(
            w=w,
            gamma=jnp.ones((cout,), jnp.float32),
            beta=jnp.zeros((cout,), jnp.float32),
            mean=jnp.zeros((cout,), jnp.float32),
            var=jnp.ones((cout,), jnp.float32),
        )

    expansion = 4
    inplanes = channels_ls[0]
    params = dict(
        stem0=conv_param(in_channels, inplanes // 2, 3),   # ConvBNReLU k=3 s=2 p=1
        stem1=conv_param(inplanes // 2, inplanes, 3),      # ConvBNReLU k=3 s=2 p=1
        blocks=[],
    )
    for channel, num, stride in zip(channels_ls[1:], layers, strides):
        for b in range(num):
            s = stride if b == 0 else 1
            width = int(channel * (base_width / 32.0)) * groups
            blk = dict(
                stride=s,
                cbr1=conv_param(inplanes, width, 1),             # 1x1 ConvBNReLU
                cbr2=conv_param(width, width, 3),                # 3x3 ConvBNReLU
                cb1=conv_param(width, channel * expansion, 1),   # 1x1 ConvBN
                downsample=None,
            )
            if b == 0 and (stride != 1 or inplanes != channel * expansion):
                blk["downsample"] = conv_param(inplanes, channel * expansion, 1)
            params["blocks"].append(blk)
            inplanes = channel * expansion
    params["out_channels"] = inplanes
    return params


def prepare_params(raw, in_channels):
    """One-time weight prep: BN fold, layout transpose, channel padding, bf16 cast."""
    def fold(p, c_act):
        w = p["w"]                                           # (Cout, Cin, k, k)
        cout, cin, k, _ = w.shape
        coutp = _round_up(cout, 128)
        inv = p["gamma"] / jnp.sqrt(p["var"] + _EPS)
        wm = jnp.transpose(w, (2, 3, 1, 0)) * inv            # (k,k,Cin,Cout), BN folded
        wm = jnp.pad(wm, ((0, 0), (0, 0), (0, c_act - cin), (0, coutp - cout)))
        bias = jnp.pad((p["beta"] - p["mean"] * inv)[None, :],
                       ((0, 0), (0, coutp - cout))).astype(jnp.float32)
        wq = wm.reshape(c_act, coutp) if k == 1 else wm.reshape(k * k, c_act, coutp)
        return dict(w=wq.astype(jnp.bfloat16), b=bias, coutp=coutp)

    prep = {}
    c = in_channels
    prep["stem0"] = fold(raw["stem0"], c); c = prep["stem0"]["coutp"]
    prep["stem1"] = fold(raw["stem1"], c); c = prep["stem1"]["coutp"]
    blocks = []
    for blk in raw["blocks"]:
        b = dict(stride=blk["stride"])
        b["cbr1"] = fold(blk["cbr1"], c)
        b["cbr2"] = fold(blk["cbr2"], b["cbr1"]["coutp"])
        b["cb1"] = fold(blk["cb1"], b["cbr2"]["coutp"])
        b["downsample"] = None if blk["downsample"] is None else fold(blk["downsample"], c)
        blocks.append(b)
        c = b["cb1"]["coutp"]
    prep["blocks"] = blocks
    prep["out_channels"] = raw["out_channels"]
    return prep


# -------------------------------- forward ----------------------------------- #

def resnet_backbone_forward(x_nchw, prep):
    x = jnp.transpose(x_nchw, (0, 2, 3, 1)).astype(jnp.bfloat16)   # NCHW -> NHWC
    x = conv3x3_bn(x, prep["stem0"], stride=2, relu=True)
    x = conv3x3_bn(x, prep["stem1"], stride=2, relu=True)
    for blk in prep["blocks"]:
        identity = x
        out = conv1x1_bn(x, blk["cbr1"], relu=True)
        out = conv3x3_bn(out, blk["cbr2"], stride=blk["stride"], relu=True)
        if blk["downsample"] is not None:
            identity = conv1x1_bn(x, blk["downsample"], relu=False, stride=blk["stride"])
        # Bottleneck.forward returns quant_func.add(out, identity) -- no post-add ReLU.
        out = conv1x1_bn(out, blk["cb1"], relu=False, residual=identity)
        x = out
    x = x[..., :prep["out_channels"]]                               # drop channel pad
    return jnp.transpose(x, (0, 3, 1, 2)).astype(jnp.float32)       # NHWC -> NCHW


# ------------------------- pure-JAX reference (check) ------------------------ #

def _ref_forward(x_nchw, raw):
    def conv(x, p, stride, pad, relu, residual=None):
        xq = x.astype(jnp.bfloat16).astype(jnp.float32)
        inv = p["gamma"] / jnp.sqrt(p["var"] + _EPS)
        wm = (jnp.transpose(p["w"], (2, 3, 1, 0)) * inv
              ).astype(jnp.bfloat16).astype(jnp.float32)
        y = jax.lax.conv_general_dilated(
            xq, wm, (stride, stride), ((pad, pad), (pad, pad)),
            dimension_numbers=("NHWC", "HWIO", "NHWC"))
        y = y + (p["beta"] - p["mean"] * inv)
        if residual is not None:
            y = y + residual.astype(jnp.bfloat16).astype(jnp.float32)
        if relu:
            y = jnp.maximum(y, 0.0)
        return y.astype(jnp.bfloat16).astype(jnp.float32)

    x = jnp.transpose(x_nchw, (0, 2, 3, 1))
    x = conv(x, raw["stem0"], 2, 1, True)
    x = conv(x, raw["stem1"], 2, 1, True)
    for blk in raw["blocks"]:
        identity = x
        out = conv(x, blk["cbr1"], 1, 0, True)
        out = conv(out, blk["cbr2"], blk["stride"], 1, True)
        if blk["downsample"] is not None:
            identity = conv(x, blk["downsample"], blk["stride"], 0, False)
        out = conv(out, blk["cb1"], 1, 0, False, residual=identity)
        x = out
    return jnp.transpose(x, (0, 3, 1, 2))


# ---------------------------------- main ------------------------------------ #

if __name__ == "__main__":
    key = jax.random.PRNGKey(0)
    kp, kx = jax.random.split(key)

    # Small config: resnet_backbone(layers=[1], channels_ls=[8, 8], strides=[2],
    #                               in_channels=4, block='bottleneck')
    layers = [1]
    channels_ls = [8, 8]
    strides = [2]
    in_channels = 4

    raw = build_params(kp, layers, channels_ls, strides, in_channels)
    prep = prepare_params(raw, in_channels)                 # one-time weight prep
    x = jax.random.normal(kx, (2, in_channels, 16, 16), jnp.float32)   # NCHW

    fwd = jax.jit(lambda xx: resnet_backbone_forward(xx, prep))
    y = fwd(x)
    jax.block_until_ready(y)

    # 16 -> /2 -> 8 -> /2 -> 4 -> stride-2 bottleneck -> 2 ; channels = 8 * expansion(4)
    assert y.shape == (2, channels_ls[-1] * 4, 2, 2), y.shape
    assert y.dtype == jnp.float32

    # Correctness check against a pure-JAX (lax.conv) reference with matching bf16
    # quantization of inputs/weights/inter-layer activations.
    y_ref = jax.jit(lambda xx: _ref_forward(xx, raw))(x)
    jax.block_until_ready(y_ref)
    np.testing.assert_allclose(np.asarray(y), np.asarray(y_ref), rtol=0.1, atol=0.1)

    print("KERNEL_OK")
</pallas_src>

<mosaic_0001>
module attributes {stable_mosaic.version = 11 : i64} {
  func.func @_conv_kernel(%arg0: i32, %arg1: i32, %arg2: i32, %arg3: memref<1x36x9x4xbf16, #tpu.memory_space<vmem>>, %arg4: memref<9x4x128xbf16, #tpu.memory_space<vmem>>, %arg5: memref<1x128xf32, #tpu.memory_space<vmem>>, %arg6: memref<1x8x8x128xbf16, #tpu.memory_space<vmem>>) attributes {dimension_semantics = [#tpu.dimension_semantics<parallel>, #tpu.dimension_semantics<parallel>, #tpu.dimension_semantics<parallel>], iteration_bounds = array<i64: 2, 1, 1>, scalar_prefetch = 0 : i64, scratch_operands = 0 : i64, tpu.core_type = #tpu.core_type<tc>, window_params = [{transform_indices = @transform_0, window_bounds = array<i64: 1, 36, 9, 4>}, {transform_indices = @transform_1, window_bounds = array<i64: 9, 4, 128>}, {transform_indices = @transform_2, window_bounds = array<i64: 1, 128>}, {transform_indices = @transform_3, window_bounds = array<i64: 1, 8, 8, 128>}]} {
    %c0 = arith.constant 0 : index
    %c0_0 = arith.constant 0 : index
    %0 = vector.load %arg5[%c0, %c0_0] : memref<1x128xf32, #tpu.memory_space<vmem>>, vector<1x128xf32>
    %c8_i32 = arith.constant 8 : i32
    %1 = arith.muli %arg2, %c8_i32 : i32
    %c0_i32 = arith.constant 0 : i32
    %2 = arith.addi %1, %c0_i32 : i32
    %cst = arith.constant 0.000000e+00 : f32
    %3 = vector.broadcast %cst : f32 to vector<8x128xf32>
    %c2_i32 = arith.constant 2 : i32
    %4 = arith.muli %c2_i32, %2 : i32
    %c0_i32_1 = arith.constant 0 : i32
    %5 = arith.addi %4, %c0_i32_1 : i32
    %c2_i32_2 = arith.constant 2 : i32
    %6 = arith.muli %5, %c2_i32_2 : i32
    %c0_i32_3 = arith.constant 0 : i32
    %7 = arith.addi %6, %c0_i32_3 : i32
    %c0_4 = arith.constant 0 : index
    %8 = arith.index_cast %7 : i32 to index
    %c0_5 = arith.constant 0 : index
    %c0_6 = arith.constant 0 : index
    %9 = vector.load %arg3[%c0_4, %8, %c0_5, %c0_6] : memref<1x36x9x4xbf16, #tpu.memory_space<vmem>>, vector<1x1x9x4xbf16>
    %10 = vector.shape_cast %9 : vector<1x1x9x4xbf16> to vector<9x4xbf16>
    %11 = vector.extract_strided_slice %10 {offsets = [0, 0], sizes = [8, 4], strides = [1, 1]} : vector<9x4xbf16> to vector<8x4xbf16>
    %c0_7 = arith.constant 0 : index
    %c0_8 = arith.constant 0 : index
    %c0_9 = arith.constant 0 : index
    %12 = vector.load %arg4[%c0_7, %c0_8, %c0_9] : memref<9x4x128xbf16, #tpu.memory_space<vmem>>, vector<1x4x128xbf16>
    %13 = vector.shape_cast %12 : vector<1x4x128xbf16> to vector<4x128xbf16>
    %cst_10 = arith.constant dense<0.000000e+00> : vector<8x128xf32>
    %14 = tpu.matmul %11, %13, %cst_10 {dimension_numbers = #tpu.dot_dimension_numbers<[1], [0], [0], [1], [0, 0, 1, 1], [], []>} : vector<8x4xbf16>, vector<4x128xbf16>, vector<8x128xf32> -> vector<8x128xf32>
    %15 = arith.addf %3, %14 : vector<8x128xf32>
    %c2_i32_11 = arith.constant 2 : i32
    %16 = arith.muli %c2_i32_11, %2 : i32
    %c0_i32_12 = arith.constant 0 : i32
    %17 = arith.addi %16, %c0_i32_12 : i32
    %c2_i32_13 = arith.constant 2 : i32
    %18 = arith.muli %17, %c2_i32_13 : i32
    %c1_i32 = arith.constant 1 : i32
    %19 = arith.addi %18, %c1_i32 : i32
    %c0_14 = arith.constant 0 : index
    %20 = arith.index_cast %19 : i32 to index
    %c0_15 = arith.constant 0 : index
    %c0_16 = arith.constant 0 : index
    %21 = vector.load %arg3[%c0_14, %20, %c0_15, %c0_16] : memref<1x36x9x4xbf16, #tpu.memory_space<vmem>>, vector<1x1x9x4xbf16>
    %22 = vector.shape_cast %21 : vector<1x1x9x4xbf16> to vector<9x4xbf16>
    %23 = vector.extract_strided_slice %22 {offsets = [0, 0], sizes = [8, 4], strides = [1, 1]} : vector<9x4xbf16> to vector<8x4xbf16>
    %c1 = arith.constant 1 : index
    %c0_17 = arith.constant 0 : index
    %c0_18 = arith.constant 0 : index
    %24 = vector.load %arg4[%c1, %c0_17, %c0_18] : memref<9x4x128xbf16, #tpu.memory_space<vmem>>, vector<1x4x128xbf16>
    %25 = vector.shape_cast %24 : vector<1x4x128xbf16> to vector<4x128xbf16>
    %cst_19 = arith.constant dense<0.000000e+00> : vector<8x128xf32>
    %26 = tpu.matmul %23, %25, %cst_19 {dimension_numbers = #tpu.dot_dimension_numbers<[1], [0], [0], [1], [0, 0, 1, 1], [], []>} : vector<8x4xbf16>, vector<4x128xbf16>, vector<8x128xf32> -> vector<8x128xf32>
    %27 = arith.addf %15, %26 : vector<8x128xf32>
    %c2_i32_20 = arith.constant 2 : i32
    %28 = arith.muli %c2_i32_20, %2 : i32
    %c0_i32_21 = arith.constant 0 : i32
    %29 = arith.addi %28, %c0_i32_21 : i32
    %c2_i32_22 = arith.constant 2 : i32
    %30 = arith.muli %29, %c2_i32_22 : i32
    %c0_i32_23 = arith.constant 0 : i32
    %31 = arith.addi %30, %c0_i32_23 : i32
    %c0_24 = arith.constant 0 : index
    %32 = arith.index_cast %31 : i32 to index
    %c0_25 = arith.constant 0 : index
    %c0_26 = arith.constant 0 : index
    %33 = vector.load %arg3[%c0_24, %32, %c0_25, %c0_26] : memref<1x36x9x4xbf16, #tpu.memory_space<vmem>>, vector<1x1x9x4xbf16>
    %34 = vector.shape_cast %33 : vector<1x1x9x4xbf16> to vector<9x4xbf16>
    %35 = vector.extract_strided_slice %34 {offsets = [1, 0], sizes = [8, 4], strides = [1, 1]} : vector<9x4xbf16> to vector<8x4xbf16>
    %c2 = arith.constant 2 : index
    %c0_27 = arith.constant 0 : index
    %c0_28 = arith.constant 0 : index
    %36 = vector.load %arg4[%c2, %c0_27, %c0_28] : memref<9x4x128xbf16, #tpu.memory_space<vmem>>, vector<1x4x128xbf16>
    %37 = vector.shape_cast %36 : vector<1x4x128xbf16> to vector<4x128xbf16>
    %cst_29 = arith.constant dense<0.000000e+00> : vector<8x128xf32>
    %38 = tpu.matmul %35, %37, %cst_29 {dimension_numbers = #tpu.dot_dimension_numbers<[1], [0], [0], [1], [0, 0, 1, 1], [], []>} : vector<8x4xbf16>, vector<4x128xbf16>, vector<8x128xf32> -> vector<8x128xf32>
    %39 = arith.addf %27, %38 : vector<8x128xf32>
    %c2_i32_30 = arith.constant 2 : i32
    %40 = arith.muli %c2_i32_30, %2 : i32
    %c1_i32_31 = arith.constant 1 : i32
    %41 = arith.addi %40, %c1_i32_31 : i32
    %c2_i32_32 = arith.constant 2 : i32
    %42 = arith.muli %41, %c2_i32_32 : i32
    %c0_i32_33 = arith.constant 0 : i32
    %43 = arith.addi %42, %c0_i32_33 : i32
    %c0_34 = arith.constant 0 : index
    %44 = arith.index_cast %43 : i32 to index
    %c0_35 = arith.constant 0 : index
    %c0_36 = arith.constant 0 : index
    %45 = vector.load %arg3[%c0_34, %44, %c0_35, %c0_36] : memref<1x36x9x4xbf16, #tpu.memory_space<vmem>>, vector<1x1x9x4xbf16>
    %46 = vector.shape_cast %45 : vector<1x1x9x4xbf16> to vector<9x4xbf16>
    %47 = vector.extract_strided_slice %46 {offsets = [0, 0], sizes = [8, 4], strides = [1, 1]} : vector<9x4xbf16> to vector<8x4xbf16>
    %c3 = arith.constant 3 : index
    %c0_37 = arith.constant 0 : index
    %c0_38 = arith.constant 0 : index
    %48 = vector.load %arg4[%c3, %c0_37, %c0_38] : memref<9x4x128xbf16, #tpu.memory_space<vmem>>, vector<1x4x128xbf16>
    %49 = vector.shape_cast %48 : vector<1x4x128xbf16> to vector<4x128xbf16>
    %cst_39 = arith.constant dense<0.000000e+00> : vector<8x128xf32>
    %50 = tpu.matmul %47, %49, %cst_39 {dimension_numbers = #tpu.dot_dimension_numbers<[1], [0], [0], [1], [0, 0, 1, 1], [], []>} : vector<8x4xbf16>, vector<4x128xbf16>, vector<8x128xf32> -> vector<8x128xf32>
    %51 = arith.addf %39, %50 : vector<8x128xf32>
    %c2_i32_40 = arith.constant 2 : i32
    %52 = arith.muli %c2_i32_40, %2 : i32
    %c1_i32_41 = arith.constant 1 : i32
    %53 = arith.addi %52, %c1_i32_41 : i32
    %c2_i32_42 = arith.constant 2 : i32
    %54 = arith.muli %53, %c2_i32_42 : i32
    %c1_i32_43 = arith.constant 1 : i32
    %55 = arith.addi %54, %c1_i32_43 : i32
    %c0_44 = arith.constant 0 : index
    %56 = arith.index_cast %55 : i32 to index
    %c0_45 = arith.constant 0 : index
    %c0_46 = arith.constant 0 : index
    %57 = vector.load %arg3[%c0_44, %56, %c0_45, %c0_46] : memref<1x36x9x4xbf16, #tpu.memory_space<vmem>>, vector<1x1x9x4xbf16>
    %58 = vector.shape_cast %57 : vector<1x1x9x4xbf16> to vector<9x4xbf16>
    %59 = vector.extract_strided_slice %58 {offsets = [0, 0], sizes = [8, 4], strides = [1, 1]} : vector<9x4xbf16> to vector<8x4xbf16>
    %c4 = arith.constant 4 : index
    %c0_47 = arith.constant 0 : index
    %c0_48 = arith.constant 0 : index
    %60 = vector.load %arg4[%c4, %c0_47, %c0_48] : memref<9x4x128xbf16, #tpu.memory_space<vmem>>, vector<1x4x128xbf16>
    %61 = vector.shape_cast %60 : vector<1x4x128xbf16> to vector<4x128xbf16>
    %cst_49 = arith.constant dense<0.000000e+00> : vector<8x128xf32>
    %62 = tpu.matmul %59, %61, %cst_49 {dimension_numbers = #tpu.dot_dimension_numbers<[1], [0], [0], [1], [0, 0, 1, 1], [], []>} : vector<8x4xbf16>, vector<4x128xbf16>, vector<8x128xf32> -> vector<8x128xf32>
    %63 = arith.addf %51, %62 : vector<8x128xf32>
    %c2_i32_50 = arith.constant 2 : i32
    %64 = arith.muli %c2_i32_50, %2 : i32
    %c1_i32_51 = arith.constant 1 : i32
    %65 = arith.addi %64, %c1_i32_51 : i32
    %c2_i32_52 = arith.constant 2 : i32
    %66 = arith.muli %65, %c2_i32_52 : i32
    %c0_i32_53 = arith.constant 0 : i32
    %67 = arith.addi %66, %c0_i32_53 : i32
    %c0_54 = arith.constant 0 : index
    %68 = arith.index_cast %67 : i32 to index
    %c0_55 = arith.constant 0 : index
    %c0_56 = arith.constant 0 : index
    %69 = vector.load %arg3[%c0_54, %68, %c0_55, %c0_56] : memref<1x36x9x4xbf16, #tpu.memory_space<vmem>>, vector<1x1x9x4xbf16>
    %70 = vector.shape_cast %69 : vector<1x1x9x4xbf16> to vector<9x4xbf16>
    %71 = vector.extract_strided_slice %70 {offsets = [1, 0], sizes = [8, 4], strides = [1, 1]} : vector<9x4xbf16> to vector<8x4xbf16>
    %c5 = arith.constant 5 : index
    %c0_57 = arith.constant 0 : index
    %c0_58 = arith.constant 0 : index
    %72 = vector.load %arg4[%c5, %c0_57, %c0_58] : memref<9x4x128xbf16, #tpu.memory_space<vmem>>, vector<1x4x128xbf16>
    %73 = vector.shape_cast %72 : vector<1x4x128xbf16> to vector<4x128xbf16>
    %cst_59 = arith.constant dense<0.000000e+00> : vector<8x128xf32>
    %74 = tpu.matmul %71, %73, %cst_59 {dimension_numbers = #tpu.dot_dimension_numbers<[1], [0], [0], [1], [0, 0, 1, 1], [], []>} : vector<8x4xbf16>, vector<4x128xbf16>, vector<8x128xf32> -> vector<8x128xf32>
    %75 = arith.addf %63, %74 : vector<8x128xf32>
    %c2_i32_60 = arith.constant 2 : i32
    %76 = arith.muli %c2_i32_60, %2 : i32
    %c2_i32_61 = arith.constant 2 : i32
    %77 = arith.addi %76, %c2_i32_61 : i32
    %c2_i32_62 = arith.constant 2 : i32
    %78 = arith.muli %77, %c2_i32_62 : i32
    %c0_i32_63 = arith.constant 0 : i32
    %79 = arith.addi %78, %c0_i32_63 : i32
    %c0_64 = arith.constant 0 : index
    %80 = arith.index_cast %79 : i32 to index
    %c0_65 = arith.constant 0 : index
    %c0_66 = arith.constant 0 : index
    %81 = vector.load %arg3[%c0_64, %80, %c0_65, %c0_66] : memref<1x36x9x4xbf16, #tpu.memory_space<vmem>>, vector<1x1x9x4xbf16>
    %82 = vector.shape_cast %81 : vector<1x1x9x4xbf16> to vector<9x4xbf16>
    %83 = vector.extract_strided_slice %82 {offsets = [0, 0], sizes = [8, 4], strides = [1, 1]} : vector<9x4xbf16> to vector<8x4xbf16>
    %c6 = arith.constant 6 : index
    %c0_67 = arith.constant 0 : index
    %c0_68 = arith.constant 0 : index
    %84 = vector.load %arg4[%c6, %c0_67, %c0_68] : memref<9x4x128xbf16, #tpu.memory_space<vmem>>, vector<1x4x128xbf16>
    %85 = vector.shape_cast %84 : vector<1x4x128xbf16> to vector<4x128xbf16>
    %cst_69 = arith.constant dense<0.000000e+00> : vector<8x128xf32>
    %86 = tpu.matmul %83, %85, %cst_69 {dimension_numbers = #tpu.dot_dimension_numbers<[1], [0], [0], [1], [0, 0, 1, 1], [], []>} : vector<8x4xbf16>, vector<4x128xbf16>, vector<8x128xf32> -> vector<8x128xf32>
    %87 = arith.addf %75, %86 : vector<8x128xf32>
    %c2_i32_70 = arith.constant 2 : i32
    %88 = arith.muli %c2_i32_70, %2 : i32
    %c2_i32_71 = arith.constant 2 : i32
    %89 = arith.addi %88, %c2_i32_71 : i32
    %c2_i32_72 = arith.constant 2 : i32
    %90 = arith.muli %89, %c2_i32_72 : i32
    %c1_i32_73 = arith.constant 1 : i32
    %91 = arith.addi %90, %c1_i32_73 : i32
    %c0_74 = arith.constant 0 : index
    %92 = arith.index_cast %91 : i32 to index
    %c0_75 = arith.constant 0 : index
    %c0_76 = arith.constant 0 : index
    %93 = vector.load %arg3[%c0_74, %92, %c0_75, %c0_76] : memref<1x36x9x4xbf16, #tpu.memory_space<vmem>>, vector<1x1x9x4xbf16>
    %94 = vector.shape_cast %93 : vector<1x1x9x4xbf16> to vector<9x4xbf16>
    %95 = vector.extract_strided_slice %94 {offsets = [0, 0], sizes = [8, 4], strides = [1, 1]} : vector<9x4xbf16> to vector<8x4xbf16>
    %c7 = arith.constant 7 : index
    %c0_77 = arith.constant 0 : index
    %c0_78 = arith.constant 0 : index
    %96 = vector.load %arg4[%c7, %c0_77, %c0_78] : memref<9x4x128xbf16, #tpu.memory_space<vmem>>, vector<1x4x128xbf16>
    %97 = vector.shape_cast %96 : vector<1x4x128xbf16> to vector<4x128xbf16>
    %cst_79 = arith.constant dense<0.000000e+00> : vector<8x128xf32>
    %98 = tpu.matmul %95, %97, %cst_79 {dimension_numbers = #tpu.dot_dimension_numbers<[1], [0], [0], [1], [0, 0, 1, 1], [], []>} : vector<8x4xbf16>, vector<4x128xbf16>, vector<8x128xf32> -> vector<8x128xf32>
    %99 = arith.addf %87, %98 : vector<8x128xf32>
    %c2_i32_80 = arith.constant 2 : i32
    %100 = arith.muli %c2_i32_80, %2 : i32
    %c2_i32_81 = arith.constant 2 : i32
    %101 = arith.addi %100, %c2_i32_81 : i32
    %c2_i32_82 = arith.constant 2 : i32
    %102 = arith.muli %101, %c2_i32_82 : i32
    %c0_i32_83 = arith.constant 0 : i32
    %103 = arith.addi %102, %c0_i32_83 : i32
    %c0_84 = arith.constant 0 : index
    %104 = arith.index_cast %103 : i32 to index
    %c0_85 = arith.constant 0 : index
    %c0_86 = arith.constant 0 : index
    %105 = vector.load %arg3[%c0_84, %104, %c0_85, %c0_86] : memref<1x36x9x4xbf16, #tpu.memory_space<vmem>>, vector<1x1x9x4xbf16>
    %106 = vector.shape_cast %105 : vector<1x1x9x4xbf16> to vector<9x4xbf16>
    %107 = vector.extract_strided_slice %106 {offsets = [1, 0], sizes = [8, 4], strides = [1, 1]} : vector<9x4xbf16> to vector<8x4xbf16>
    %c8 = arith.constant 8 : index
    %c0_87 = arith.constant 0 : index
    %c0_88 = arith.constant 0 : index
    %108 = vector.load %arg4[%c8, %c0_87, %c0_88] : memref<9x4x128xbf16, #tpu.memory_space<vmem>>, vector<1x4x128xbf16>
    %109 = vector.shape_cast %108 : vector<1x4x128xbf16> to vector<4x128xbf16>
    %cst_89 = arith.constant dense<0.000000e+00> : vector<8x128xf32>
    %110 = tpu.matmul %107, %109, %cst_89 {dimension_numbers = #tpu.dot_dimension_numbers<[1], [0], [0], [1], [0, 0, 1, 1], [], []>} : vector<8x4xbf16>, vector<4x128xbf16>, vector<8x128xf32> -> vector<8x128xf32>
    %111 = arith.addf %99, %110 : vector<8x128xf32>
    %112 = vector.broadcast %0 : vector<1x128xf32> to vector<8x128xf32>
    %113 = arith.addf %111, %112 : vector<8x128xf32>
    %cst_90 = arith.constant 0.000000e+00 : f32
    %114 = vector.broadcast %cst_90 : f32 to vector<8x128xf32>
    %115 = arith.maximumf %113, %114 : vector<8x128xf32>
    %116 = arith.truncf %115 : vector<8x128xf32> to vector<8x128xbf16>
    %c0_91 = arith.constant 0 : index
    %c0_92 = arith.constant 0 : index
    %c0_93 = arith.constant 0 : index
    %c0_94 = arith.constant 0 : index
    %117 = vector.load %arg6[%c0_91, %c0_92, %c0_93, %c0_94] : memref<1x8x8x128xbf16, #tpu.memory_space<vmem>>, vector<1x1x8x128xbf16>
    %118 = vector.shape_cast %117 : vector<1x1x8x128xbf16> to vector<8x128xbf16>
    %119 = vector.shape_cast %116 : vector<8x128xbf16> to vector<1x1x8x128xbf16>
    tpu.vector_store %arg6[%c0_91, %c0_92, %c0_93, %c0_94], %119 {strides = array<i32>} : memref<1x8x8x128xbf16, #tpu.memory_space<vmem>>, vector<1x1x8x128xbf16>,
    %c8_i32_95 = arith.constant 8 : i32
    %120 = arith.muli %arg2, %c8_i32_95 : i32
    %c1_i32_96 = arith.constant 1 : i32
    %121 = arith.addi %120, %c1_i32_96 : i32
    %cst_97 = arith.constant 0.000000e+00 : f32
    %122 = vector.broadcast %cst_97 : f32 to vector<8x128xf32>
    %c2_i32_98 = arith.constant 2 : i32
    %123 = arith.muli %c2_i32_98, %121 : i32
    %c0_i32_99 = arith.constant 0 : i32
    %124 = arith.addi %123, %c0_i32_99 : i32
    %c2_i32_100 = arith.constant 2 : i32
    %125 = arith.muli %124, %c2_i32_100 : i32
    %c0_i32_101 = arith.constant 0 : i32
    %126 = arith.addi %125, %c0_i32_101 : i32
    %c0_102 = arith.constant 0 : index
    %127 = arith.index_cast %126 : i32 to index
    %c0_103 = arith.constant 0 : index
    %c0_104 = arith.constant 0 : index
    %128 = vector.load %arg3[%c0_102, %127, %c0_103, %c0_104] : memref<1x36x9x4xbf16, #tpu.memory_space<vmem>>, vector<1x1x9x4xbf16>
    %129 = vector.shape_cast %128 : vector<1x1x9x4xbf16> to vector<9x4xbf16>
    %130 = vector.extract_strided_slice %129 {offsets = [0, 0], sizes = [8, 4], strides = [1, 1]} : vector<9x4xbf16> to vector<8x4xbf16>
    %c0_105 = arith.constant 0 : index
    %c0_106 = arith.constant 0 : index
    %c0_107 = arith.constant 0 : index
    %131 = vector.load %arg4[%c0_105, %c0_106, %c0_107] : memref<9x4x128xbf16, #tpu.memory_space<vmem>>, vector<1x4x128xbf16>
    %132 = vector.shape_cast %131 : vector<1x4x128xbf16> to vector<4x128xbf16>
    %cst_108 = arith.constant dense<0.000000e+00> : vector<8x128xf32>
    %133 = tpu.matmul %130, %132, %cst_108 {dimension_numbers = #tpu.dot_dimension_numbers<[1], [0], [0], [1], [0, 0, 1, 1], [], []>} : vector<8x4xbf16>, vector<4x128xbf16>, vector<8x128xf32> -> vector<8x128xf32>
    %134 = arith.addf %122, %133 : vector<8x128xf32>
    %c2_i32_109 = arith.constant 2 : i32
    %135 = arith.muli %c2_i32_109, %121 : i32
    %c0_i32_110 = arith.constant 0 : i32
    %136 = arith.addi %135, %c0_i32_110 : i32
    %c2_i32_111 = arith.constant 2 : i32
    %137 = arith.muli %136, %c2_i32_111 : i32
    %c1_i32_112 = arith.constant 1 : i32
    %138 = arith.addi %137, %c1_i32_112 : i32
    %c0_113 = arith.constant 0 : index
    %139 = arith.index_cast %138 : i32 to index
    %c0_114 = arith.constant 0 : index
    %c0_115 = arith.constant 0 : index
    %140 = vector.load %arg3[%c0_113, %139, %c0_114, %c0_115] : memref<1x36x9x4xbf16, #tpu.memory_space<vmem>>, vector<1x1x9x4xbf16>
    %141 = vector.shape_cast %140 : vector<1x1x9x4xbf16> to vector<9x4xbf16>
    %142 = vector.extract_strided_slice %141 {offsets = [0, 0], sizes = [8, 4], strides = [1, 1]} : vector<9x4xbf16> to vector<8x4xbf16>
    %c1_116 = arith.constant 1 : index
    %c0_117 = arith.constant 0 : index
    %c0_118 = arith.constant 0 : index
    %143 = vector.load %arg4[%c1_116, %c0_117, %c0_118] : memref<9x4x128xbf16, #tpu.memory_space<vmem>>, vector<1x4x128xbf16>
    %144 = vector.shape_cast %143 : vector<1x4x128xbf16> to vector<4x128xbf16>
    %cst_119 = arith.constant dense<0.000000e+00> : vector<8x128xf32>
    %145 = tpu.matmul %142, %144, %cst_119 {dimension_numbers = #tpu.dot_dimension_numbers<[1], [0], [0], [1], [0, 0, 1, 1], [], []>} : vector<8x4xbf16>, vector<4x128xbf16>, vector<8x128xf32> -> vector<8x128xf32>
    %146 = arith.addf %134, %145 : vector<8x128xf32>
    %c2_i32_120 = arith.constant 2 : i32
    %147 = arith.muli %c2_i32_120, %121 : i32
    %c0_i32_121 = arith.constant 0 : i32
    %148 = arith.addi %147, %c0_i32_121 : i32
    %c2_i32_122 = arith.constant 2 : i32
    %149 = arith.muli %148, %c2_i32_122 : i32
    %c0_i32_123 = arith.constant 0 : i32
    %150 = arith.addi %149, %c0_i32_123 : i32
    %c0_124 = arith.constant 0 : index
    %151 = arith.index_cast %150 : i32 to index
    %c0_125 = arith.constant 0 : index
    %c0_126 = arith.constant 0 : index
    %152 = vector.load %arg3[%c0_124, %151, %c0_125, %c0_126] : memref<1x36x9x4xbf16, #tpu.memory_space<vmem>>, vector<1x1x9x4xbf16>
    %153 = vector.shape_cast %152 : vector<1x1x9x4xbf16> to vector<9x4xbf16>
    %154 = vector.extract_strided_slice %153 {offsets = [1, 0], sizes = [8, 4], strides = [1, 1]} : vector<9x4xbf16> to vector<8x4xbf16>
    %c2_127 = arith.constant 2 : index
    %c0_128 = arith.constant 0 : index
    %c0_129 = arith.constant 0 : index
    %155 = vector.load %arg4[%c2_127, %c0_128, %c0_129] : memref<9x4x128xbf16, #tpu.memory_space<vmem>>, vector<1x4x128xbf16>
    %156 = vector.shape_cast %155 : vector<1x4x128xbf16> to vector<4x128xbf16>
    %cst_130 = arith.constant dense<0.000000e+00> : vector<8x128xf32>
    %157 = tpu.matmul %154, %156, %cst_130 {dimension_numbers = #tpu.dot_dimension_numbers<[1], [0], [0], [1], [0, 0, 1, 1], [], []>} : vector<8x4xbf16>, vector<4x128xbf16>, vector<8x128xf32> -> vector<8x128xf32>
    %158 = arith.addf %146, %157 : vector<8x128xf32>
    %c2_i32_131 = arith.constant 2 : i32
    %159 = arith.muli %c2_i32_131, %121 : i32
    %c1_i32_132 = arith.constant 1 : i32
    %160 = arith.addi %159, %c1_i32_132 : i32
    %c2_i32_133 = arith.constant 2 : i32
    %161 = arith.muli %160, %c2_i32_133 : i32
    %c0_i32_134 = arith.constant 0 : i32
    %162 = arith.addi %161, %c0_i32_134 : i32
    %c0_135 = arith.constant 0 : index
    %163 = arith.index_cast %162 : i32 to index
    %c0_136 = arith.constant 0 : index
    %c0_137 = arith.constant 0 : index
    %164 = vector.load %arg3[%c0_135, %163, %c0_136, %c0_137] : memref<1x36x9x4xbf16, #tpu.memory_space<vmem>>, vector<1x1x9x4xbf16>
    %165 = vector.shape_cast %164 : vector<1x1x9x4xbf16> to vector<9x4xbf16>
    %166 = vector.extract_strided_slice %165 {offsets = [0, 0], sizes = [8, 4], strides = [1, 1]} : vector<9x4xbf16> to vector<8x4xbf16>
    %c3_138 = arith.constant 3 : index
    %c0_139 = arith.constant 0 : index
    %c0_140 = arith.constant 0 : index
    %167 = vector.load %arg4[%c3_138, %c0_139, %c0_140] : memref<9x4x128xbf16, #tpu.memory_space<vmem>>, vector<1x4x128xbf16>
    %168 = vector.shape_cast %167 : vector<1x4x128xbf16> to vector<4x128xbf16>
    %cst_141 = arith.constant dense<0.000000e+00> : vector<8x128xf32>
    %169 = tpu.matmul %166, %168, %cst_141 {dimension_numbers = #tpu.dot_dimension_numbers<[1], [0], [0], [1], [0, 0, 1, 1], [], []>} : vector<8x4xbf16>, vector<4x128xbf16>, vector<8x128xf32> -> vector<8x128xf32>
    %170 = arith.addf %158, %169 : vector<8x128xf32>
    %c2_i32_142 = arith.constant 2 : i32
    %171 = arith.muli %c2_i32_142, %121 : i32
    %c1_i32_143 = arith.constant 1 : i32
    %172 = arith.addi %171, %c1_i32_143 : i32
    %c2_i32_144 = arith.constant 2 : i32
    %173 = arith.muli %172, %c2_i32_144 : i32
    %c1_i32_145 = arith.constant 1 : i32
    %174 = arith.addi %173, %c1_i32_145 : i32
    %c0_146 = arith.constant 0 : index
    %175 = arith.index_cast %174 : i32 to index
    %c0_147 = arith.constant 0 : index
    %c0_148 = arith.constant 0 : index
    %176 = vector.load %arg3[%c0_146, %175, %c0_147, %c0_148] : memref<1x36x9x4xbf16, #tpu.memory_space<vmem>>, vector<1x1x9x4xbf16>
    %177 = vector.shape_cast %176 : vector<1x1x9x4xbf16> to vector<9x4xbf16>
    %178 = vector.extract_strided_slice %177 {offsets = [0, 0], sizes = [8, 4], strides = [1, 1]} : vector<9x4xbf16> to vector<8x4xbf16>
    %c4_149 = arith.constant 4 : index
    %c0_150 = arith.constant 0 : index
    %c0_151 = arith.constant 0 : index
    %179 = vector.load %arg4[%c4_149, %c0_150, %c0_151] : memref<9x4x128xbf16, #tpu.memory_space<vmem>>, vector<1x4x128xbf16>
    %180 = vector.shape_cast %179 : vector<1x4x128xbf16> to vector<4x128xbf16>
    %cst_152 = arith.constant dense<0.000000e+00> : vector<8x128xf32>
    %181 = tpu.matmul %178, %180, %cst_152 {dimension_numbers = #tpu.dot_dimension_numbers<[1], [0], [0], [1], [0, 0, 1, 1], [], []>} : vector<8x4xbf16>, vector<4x128xbf16>, vector<8x128xf32> -> vector<8x128xf32>
    %182 = arith.addf %170, %181 : vector<8x128xf32>
    %c2_i32_153 = arith.constant 2 : i32
    %183 = arith.muli %c2_i32_153, %121 : i32
    %c1_i32_154 = arith.constant 1 : i32
    %184 = arith.addi %183, %c1_i32_154 : i32
    %c2_i32_155 = arith.constant 2 : i32
    %185 = arith.muli %184, %c2_i32_155 : i32
    %c0_i32_156 = arith.constant 0 : i32
    %186 = arith.addi %185, %c0_i32_156 : i32
    %c0_157 = arith.constant 0 : index
    %187 = arith.index_cast %186 : i32 to index
    %c0_158 = arith.constant 0 : index
    %c0_159 = arith.constant 0 : index
    %188 = vector.load %arg3[%c0_157, %187, %c0_158, %c0_159] : memref<1x36x9x4xbf16, #tpu.memory_space<vmem>>, vector<1x1x9x4xbf16>
    %189 = vector.shape_cast %188 : vector<1x1x9x4xbf16> to vector<9x4xbf16>
    %190 = vector.extract_strided_slice %189 {offsets = [1, 0], sizes = [8, 4], strides = [1, 1]} : vector<9x4xbf16> to vector<8x4xbf16>
    %c5_160 = arith.constant 5 : index
    %c0_161 = arith.constant 0 : index
    %c0_162 = arith.constant 0 : index
    %191 = vector.load %arg4[%c5_160, %c0_161, %c0_162] : memref<9x4x128xbf16, #tpu.memory_space<vmem>>, vector<1x4x128xbf16>
    %192 = vector.shape_cast %191 : vector<1x4x128xbf16> to vector<4x128xbf16>
    %cst_163 = arith.constant dense<0.000000e+00> : vector<8x128xf32>
    %193 = tpu.matmul %190, %192, %cst_163 {dimension_numbers = #tpu.dot_dimension_numbers<[1], [0], [0], [1], [0, 0, 1, 1], [], []>} : vector<8x4xbf16>, vector<4x128xbf16>, vector<8x128xf32> -> vector<8x128xf32>
    %194 = arith.addf %182, %193 : vector<8x128xf32>
    %c2_i32_164 = arith.constant 2 : i32
    %195 = arith.muli %c2_i32_164, %121 : i32
    %c2_i32_165 = arith.constant 2 : i32
    %196 = arith.addi %195, %c2_i32_165 : i32
    %c2_i32_166 = arith.constant 2 : i32
    %197 = arith.muli %196, %c2_i32_166 : i32
    %c0_i32_167 = arith.constant 0 : i32
    %198 = arith.addi %197, %c0_i32_167 : i32
    %c0_168 = arith.constant 0 : index
    %199 = arith.index_cast %198 : i32 to index
    %c0_169 = arith.constant 0 : index
    %c0_170 = arith.constant 0 : index
    %200 = vector.load %arg3[%c0_168, %199, %c0_169, %c0_170] : memref<1x36x9x4xbf16, #tpu.memory_space<vmem>>, vector<1x1x9x4xbf16>
    %201 = vector.shape_cast %200 : vector<1x1x9x4xbf16> to vector<9x4xbf16>
    %202 = vector.extract_strided_slice %201 {offsets = [0, 0], sizes = [8, 4], strides = [1, 1]} : vector<9x4xbf16> to vector<8x4xbf16>
    %c6_171 = arith.constant 6 : index
    %c0_172 = arith.constant 0 : index
    %c0_173 = arith.constant 0 : index
    %203 = vector.load %arg4[%c6_171, %c0_172, %c0_173] : memref<9x4x128xbf16, #tpu.memory_space<vmem>>, vector<1x4x128xbf16>
    %204 = vector.shape_cast %203 : vector<1x4x128xbf16> to vector<4x128xbf16>
    %cst_174 = arith.constant dense<0.000000e+00> : vector<8x128xf32>
    %205 = tpu.matmul %202, %204, %cst_174 {dimension_numbers = #tpu.dot_dimension_numbers<[1], [0], [0], [1], [0, 0, 1, 1], [], []>} : vector<8x4xbf16>, vector<4x128xbf16>, vector<8x128xf32> -> vector<8x128xf32>
    %206 = arith.addf %194, %205 : vector<8x128xf32>
    %c2_i32_175 = arith.constant 2 : i32
    %207 = arith.muli %c2_i32_175, %121 : i32
    %c2_i32_176 = arith.constant 2 : i32
    %208 = arith.addi %207, %c2_i32_176 : i32
    %c2_i32_177 = arith.constant 2 : i32
    %209 = arith.muli %208, %c2_i32_177 : i32
    %c1_i32_178 = arith.constant 1 : i32
    %210 = arith.addi %209, %c1_i32_178 : i32
    %c0_179 = arith.constant 0 : index
    %211 = arith.index_cast %210 : i32 to index
    %c0_180 = arith.constant 0 : index
    %c0_181 = arith.constant 0 : index
    %212 = vector.load %arg3[%c0_179, %211, %c0_180, %c0_181] : memref<1x36x9x4xbf16, #tpu.memory_space<vmem>>, vector<1x1x9x4xbf16>
    %213 = vector.shape_cast %212 : vector<1x1x9x4xbf16> to vector<9x4xbf16>
    %214 = vector.extract_strided_slice %213 {offsets = [0, 0], sizes = [8, 4], strides = [1, 1]} : vector<9x4xbf16> to vector<8x4xbf16>
    %c7_182 = arith.constant 7 : index
    %c0_183 = arith.constant 0 : index
    %c0_184 = arith.constant 0 : index
    %215 = vector.load %arg4[%c7_182, %c0_183, %c0_184] : memref<9x4x128xbf16, #tpu.memory_space<vmem>>, vector<1x4x128xbf16>
    %216 = vector.shape_cast %215 : vector<1x4x128xbf16> to vector<4x128xbf16>
    %cst_185 = arith.constant dense<0.000000e+00> : vector<8x128xf32>
    %217 = tpu.matmul %214, %216, %cst_185 {dimension_numbers = #tpu.dot_dimension_numbers<[1], [0], [0], [1], [0, 0, 1, 1], [], []>} : vector<8x4xbf16>, vector<4x128xbf16>, vector<8x128xf32> -> vector<8x128xf32>
    %218 = arith.addf %206, %217 : vector<8x128xf32>
    %c2_i32_186 = arith.constant 2 : i32
    %219 = arith.muli %c2_i32_186, %121 : i32
    %c2_i32_187 = arith.constant 2 : i32
    %220 = arith.addi %219, %c2_i32_187 : i32
    %c2_i32_188 = arith.constant 2 : i32
    %221 = arith.muli %220, %c2_i32_188 : i32
    %c0_i32_189 = arith.constant 0 : i32
    %222 = arith.addi %221, %c0_i32_189 : i32
    %c0_190 = arith.constant 0 : index
    %223 = arith.index_cast %222 : i32 to index
    %c0_191 = arith.constant 0 : index
    %c0_192 = arith.constant 0 : index
    %224 = vector.load %arg3[%c0_190, %223, %c0_191, %c0_192] : memref<1x36x9x4xbf16, #tpu.memory_space<vmem>>, vector<1x1x9x4xbf16>
    %225 = vector.shape_cast %224 : vector<1x1x9x4xbf16> to vector<9x4xbf16>
    %226 = vector.extract_strided_slice %225 {offsets = [1, 0], sizes = [8, 4], strides = [1, 1]} : vector<9x4xbf16> to vector<8x4xbf16>
    %c8_193 = arith.constant 8 : index
    %c0_194 = arith.constant 0 : index
    %c0_195 = arith.constant 0 : index
    %227 = vector.load %arg4[%c8_193, %c0_194, %c0_195] : memref<9x4x128xbf16, #tpu.memory_space<vmem>>, vector<1x4x128xbf16>
    %228 = vector.shape_cast %227 : vector<1x4x128xbf16> to vector<4x128xbf16>
    %cst_196 = arith.constant dense<0.000000e+00> : vector<8x128xf32>
    %229 = tpu.matmul %226, %228, %cst_196 {dimension_numbers = #tpu.dot_dimension_numbers<[1], [0], [0], [1], [0, 0, 1, 1], [], []>} : vector<8x4xbf16>, vector<4x128xbf16>, vector<8x128xf32> -> vector<8x128xf32>
    %230 = arith.addf %218, %229 : vector<8x128xf32>
    %231 = vector.broadcast %0 : vector<1x128xf32> to vector<8x128xf32>
    %232 = arith.addf %230, %231 : vector<8x128xf32>
    %cst_197 = arith.constant 0.000000e+00 : f32
    %233 = vector.broadcast %cst_197 : f32 to vector<8x128xf32>
    %234 = arith.maximumf %232, %233 : vector<8x128xf32>
    %235 = arith.truncf %234 : vector<8x128xf32> to vector<8x128xbf16>
    %c0_198 = arith.constant 0 : index
    %c1_199 = arith.constant 1 : index
    %c0_200 = arith.constant 0 : index
    %c0_201 = arith.constant 0 : index
    %236 = vector.load %arg6[%c0_198, %c1_199, %c0_200, %c0_201] : memref<1x8x8x128xbf16, #tpu.memory_space<vmem>>, vector<1x1x8x128xbf16>
    %237 = vector.shape_cast %236 : vector<1x1x8x128xbf16> to vector<8x128xbf16>
    %238 = vector.shape_cast %235 : vector<8x128xbf16> to vector<1x1x8x128xbf16>
    tpu.vector_store %arg6[%c0_198, %c1_199, %c0_200, %c0_201], %238 {strides = array<i32>} : memref<1x8x8x128xbf16, #tpu.memory_space<vmem>>, vector<1x1x8x128xbf16>,
    %c8_i32_202 = arith.constant 8 : i32
    %239 = arith.muli %arg2, %c8_i32_202 : i32
    %c2_i32_203 = arith.constant 2 : i32
    %240 = arith.addi %239, %c2_i32_203 : i32
    %cst_204 = arith.constant 0.000000e+00 : f32
    %241 = vector.broadcast %cst_204 : f32 to vector<8x128xf32>
    %c2_i32_205 = arith.constant 2 : i32
    %242 = arith.muli %c2_i32_205, %240 : i32
    %c0_i32_206 = arith.constant 0 : i32
    %243 = arith.addi %242, %c0_i32_206 : i32
    %c2_i32_207 = arith.constant 2 : i32
    %244 = arith.muli %243, %c2_i32_207 : i32
    %c0_i32_208 = arith.constant 0 : i32
    %245 = arith.addi %244, %c0_i32_208 : i32
    %c0_209 = arith.constant 0 : index
    %246 = arith.index_cast %245 : i32 to index
    %c0_210 = arith.constant 0 : index
    %c0_211 = arith.constant 0 : index
    %247 = vector.load %arg3[%c0_209, %246, %c0_210, %c0_211] : memref<1x36x9x4xbf16, #tpu.memory_space<vmem>>, vector<1x1x9x4xbf16>
    %248 = vector.shape_cast %247 : vector<1x1x9x4xbf16> to vector<9x4xbf16>
    %249 = vector.extract_strided_slice %248 {offsets = [0, 0], sizes = [8, 4], strides = [1, 1]} : vector<9x4xbf16> to vector<8x4xbf16>
    %c0_212 = arith.constant 0 : index
    %c0_213 = arith.constant 0 : index
    %c0_214 = arith.constant 0 : index
    %250 = vector.load %arg4[%c0_212, %c0_213, %c0_214] : memref<9x4x128xbf16, #tpu.memory_space<vmem>>, vector<1x4x128xbf16>
    %251 = vector.shape_cast %250 : vector<1x4x128xbf16> to vector<4x128xbf16>
    %cst_215 = arith.constant dense<0.000000e+00> : vector<8x128xf32>
    %252 = tpu.matmul %249, %251, %cst_215 {dimension_numbers = #tpu.dot_dimension_numbers<[1], [0], [0], [1], [0, 0, 1, 1], [], []>} : vector<8x4xbf16>, vector<4x128xbf16>, vector<8x128xf32> -> vector<8x128xf32>
    %253 = arith.addf %241, %252 : vector<8x128xf32>
    %c2_i32_216 = arith.constant 2 : i32
    %254 = arith.muli %c2_i32_216, %240 : i32
    %c0_i32_217 = arith.constant 0 : i32
    %255 = arith.addi %254, %c0_i32_217 : i32
    %c2_i32_218 = arith.constant 2 : i32
    %256 = arith.muli %255, %c2_i32_218 : i32
    %c1_i32_219 = arith.constant 1 : i32
    %257 = arith.addi %256, %c1_i32_219 : i32
    %c0_220 = arith.constant 0 : index
    %258 = arith.index_cast %257 : i32 to index
    %c0_221 = arith.constant 0 : index
    %c0_222 = arith.constant 0 : index
    %259 = vector.load %arg3[%c0_220, %258, %c0_221, %c0_222] : memref<1x36x9x4xbf16, #tpu.memory_space<vmem>>, vector<1x1x9x4xbf16>
    %260 = vector.shape_cast %259 : vector<1x1x9x4xbf16> to vector<9x4xbf16>
    %261 = vector.extract_strided_slice %260 {offsets = [0, 0], sizes = [8, 4], strides = [1, 1]} : vector<9x4xbf16> to vector<8x4xbf16>
    %c1_223 = arith.constant 1 : index
    %c0_224 = arith.constant 0 : index
    %c0_225 = arith.constant 0 : index
    %262 = vector.load %arg4[%c1_223, %c0_224, %c0_225] : memref<9x4x128xbf16, #tpu.memory_space<vmem>>, vector<1x4x128xbf16>
    %263 = vector.shape_cast %262 : vector<1x4x128xbf16> to vector<4x128xbf16>
    %cst_226 = arith.constant dense<0.000000e+00> : vector<8x128xf32>
    %264 = tpu.matmul %261, %263, %cst_226 {dimension_numbers = #tpu.dot_dimension_numbers<[1], [0], [0], [1], [0, 0, 1, 1], [], []>} : vector<8x4xbf16>, vector<4x128xbf16>, vector<8x128xf32> -> vector<8x128xf32>
    %265 = arith.addf %253, %264 : vector<8x128xf32>
    %c2_i32_227 = arith.constant 2 : i32
    %266 = arith.muli %c2_i32_227, %240 : i32
    %c0_i32_228 = arith.constant 0 : i32
    %267 = arith.addi %266, %c0_i32_228 : i32
    %c2_i32_229 = arith.constant 2 : i32
    %268 = arith.muli %267, %c2_i32_229 : i32
    %c0_i32_230 = arith.constant 0 : i32
    %269 = arith.addi %268, %c0_i32_230 : i32
    %c0_231 = arith.constant 0 : index
    %270 = arith.index_cast %269 : i32 to index
    %c0_232 = arith.constant 0 : index
    %c0_233 = arith.constant 0 : index
    %271 = vector.load %arg3[%c0_231, %270, %c0_232, %c0_233] : memref<1x36x9x4xbf16, #tpu.memory_space<vmem>>, vector<1x1x9x4xbf16>
    %272 = vector.shape_cast %271 : vector<1x1x9x4xbf16> to vector<9x4xbf16>
    %273 = vector.extract_strided_slice %272 {offsets = [1, 0], sizes = [8, 4], strides = [1, 1]} : vector<9x4xbf16> to vector<8x4xbf16>
    %c2_234 = arith.constant 2 : index
    %c0_235 = arith.constant 0 : index
    %c0_236 = arith.constant 0 : index
    %274 = vector.load %arg4[%c2_234, %c0_235, %c0_236] : memref<9x4x128xbf16, #tpu.memory_space<vmem>>, vector<1x4x128xbf16>
    %275 = vector.shape_cast %274 : vector<1x4x128xbf16> to vector<4x128xbf16>
    %cst_237 = arith.constant dense<0.000000e+00> : vector<8x128xf32>
    %276 = tpu.matmul %273, %275, %cst_237 {dimension_numbers = #tpu.dot_dimension_numbers<[1], [0], [0], [1], [0, 0, 1, 1], [], []>} : vector<8x4xbf16>, vector<4x128xbf16>, vector<8x128xf32> -> vector<8x128xf32>
    %277 = arith.addf %265, %276 : vector<8x128xf32>
    %c2_i32_238 = arith.constant 2 : i32
    %278 = arith.muli %c2_i32_238, %240 : i32
    %c1_i32_239 = arith.constant 1 : i32
    %279 = arith.addi %278, %c1_i32_239 : i32
    %c2_i32_240 = arith.constant 2 : i32
    %280 = arith.muli %279, %c2_i32_240 : i32
    %c0_i32_241 = arith.constant 0 : i32
    %281 = arith.addi %280, %c0_i32_241 : i32
    %c0_242 = arith.constant 0 : index
    %282 = arith.index_cast %281 : i32 to index
    %c0_243 = arith.constant 0 : index
    %c0_244 = arith.constant 0 : index
    %283 = vector.load %arg3[%c0_242, %282, %c0_243, %c0_244] : memref<1x36x9x4xbf16, #tpu.memory_space<vmem>>, vector<1x1x9x4xbf16>
    %284 = vector.shape_cast %283 : vector<1x1x9x4xbf16> to vector<9x4xbf16>
    %285 = vector.extract_strided_slice %284 {offsets = [0, 0], sizes = [8, 4], strides = [1, 1]} : vector<9x4xbf16> to vector<8x4xbf16>
    %c3_245 = arith.constant 3 : index
    %c0_246 = arith.constant 0 : index
    %c0_247 = arith.constant 0 : index
    %286 = vector.load %arg4[%c3_245, %c0_246, %c0_247] : memref<9x4x128xbf16, #tpu.memory_space<vmem>>, vector<1x4x128xbf16>
    %287 = vector.shape_cast %286 : vector<1x4x128xbf16> to vector<4x128xbf16>
    %cst_248 = arith.constant dense<0.000000e+00> : vector<8x128xf32>
    %288 = tpu.matmul %285, %287, %cst_248 {dimension_numbers = #tpu.dot_dimension_numbers<[1], [0], [0], [1], [0, 0, 1, 1], [], []>} : vector<8x4xbf16>, vector<4x128xbf16>, vector<8x128xf32> -> vector<8x128xf32>
    %289 = arith.addf %277, %288 : vector<8x128xf32>
    %c2_i32_249 = arith.constant 2 : i32
    %290 = arith.muli %c2_i32_249, %240 : i32
    %c1_i32_250 = arith.constant 1 : i32
    %291 = arith.addi %290, %c1_i32_250 : i32
    %c2_i32_251 = arith.constant 2 : i32
    %292 = arith.muli %291, %c2_i32_251 : i32
    %c1_i32_252 = arith.constant 1 : i32
    %293 = arith.addi %292, %c1_i32_252 : i32
    %c0_253 = arith.constant 0 : index
    %294 = arith.index_cast %293 : i32 to index
    %c0_254 = arith.constant 0 : index
    %c0_255 = arith.constant 0 : index
    %295 = vector.load %arg3[%c0_253, %294, %c0_254, %c0_255] : memref<1x36x9x4xbf16, #tpu.memory_space<vmem>>, vector<1x1x9x4xbf16>
    %296 = vector.shape_cast %295 : vector<1x1x9x4xbf16> to vector<9x4xbf16>
    %297 = vector.extract_strided_slice %296 {offsets = [0, 0], sizes = [8, 4], strides = [1, 1]} : vector<9x4xbf16> to vector<8x4xbf16>
    %c4_256 = arith.constant 4 : index
    %c0_257 = arith.constant 0 : index
    %c0_258 = arith.constant 0 : index
    %298 = vector.load %arg4[%c4_256, %c0_257, %c0_258] : memref<9x4x128xbf16, #tpu.memory_space<vmem>>, vector<1x4x128xbf16>
    %299 = vector.shape_cast %298 : vector<1x4x128xbf16> to vector<4x128xbf16>
    %cst_259 = arith.constant dense<0.000000e+00> : vector<8x128xf32>
    %300 = tpu.matmul %297, %299, %cst_259 {dimension_numbers = #tpu.dot_dimension_numbers<[1], [0], [0], [1], [0, 0, 1, 1], [], []>} : vector<8x4xbf16>, vector<4x128xbf16>, vector<8x128xf32> -> vector<8x128xf32>
    %301 = arith.addf %289, %300 : vector<8x128xf32>
    %c2_i32_260 = arith.constant 2 : i32
    %302 = arith.muli %c2_i32_260, %240 : i32
    %c1_i32_261 = arith.constant 1 : i32
    %303 = arith.addi %302, %c1_i32_261 : i32
    %c2_i32_262 = arith.constant 2 : i32
    %304 = arith.muli %303, %c2_i32_262 : i32
    %c0_i32_263 = arith.constant 0 : i32
    %305 = arith.addi %304, %c0_i32_263 : i32
    %c0_264 = arith.constant 0 : index
    %306 = arith.index_cast %305 : i32 to index
    %c0_265 = arith.constant 0 : index
    %c0_266 = arith.constant 0 : index
    %307 = vector.load %arg3[%c0_264, %306, %c0_265, %c0_266] : memref<1x36x9x4xbf16, #tpu.memory_space<vmem>>, vector<1x1x9x4xbf16>
    %308 = vector.shape_cast %307 : vector<1x1x9x4xbf16> to vector<9x4xbf16>
    %309 = vector.extract_strided_slice %308 {offsets = [1, 0], sizes = [8, 4], strides = [1, 1]} : vector<9x4xbf16> to vector<8x4xbf16>
    %c5_267 = arith.constant 5 : index
    %c0_268 = arith.constant 0 : index
    %c0_269 = arith.constant 0 : index
    %310 = vector.load %arg4[%c5_267, %c0_268, %c0_269] : memref<9x4x128xbf16, #tpu.memory_space<vmem>>, vector<1x4x128xbf16>
    %311 = vector.shape_cast %310 : vector<1x4x128xbf16> to vector<4x128xbf16>
    %cst_270 = arith.constant dense<0.000000e+00> : vector<8x128xf32>
    %312 = tpu.matmul %309, %311, %cst_270 {dimension_numbers = #tpu.dot_dimension_numbers<[1], [0], [0], [1], [0, 0, 1, 1], [], []>} : vector<8x4xbf16>, vector<4x128xbf16>, vector<8x128xf32> -> vector<8x128xf32>
    %313 = arith.addf %301, %312 : vector<8x128xf32>
    %c2_i32_271 = arith.constant 2 : i32
    %314 = arith.muli %c2_i32_271, %240 : i32
    %c2_i32_272 = arith.constant 2 : i32
    %315 = arith.addi %314, %c2_i32_272 : i32
    %c2_i32_273 = arith.constant 2 : i32
    %316 = arith.muli %315, %c2_i32_273 : i32
    %c0_i32_274 = arith.constant 0 : i32
    %317 = arith.addi %316, %c0_i32_274 : i32
    %c0_275 = arith.constant 0 : index
    %318 = arith.index_cast %317 : i32 to index
    %c0_276 = arith.constant 0 : index
    %c0_277 = arith.constant 0 : index
    %319 = vector.load %arg3[%c0_275, %318, %c0_276, %c0_277] : memref<1x36x9x4xbf16, #tpu.memory_space<vmem>>, vector<1x1x9x4xbf16>
    %320 = vector.shape_cast %319 : vector<1x1x9x4xbf16> to vector<9x4xbf16>
    %321 = vector.extract_strided_slice %320 {offsets = [0, 0], sizes = [8, 4], strides = [1, 1]} : vector<9x4xbf16> to vector<8x4xbf16>
    %c6_278 = arith.constant 6 : index
    %c0_279 = arith.constant 0 : index
    %c0_280 = arith.constant 0 : index
    %322 = vector.load %arg4[%c6_278, %c0_279, %c0_280] : memref<9x4x128xbf16, #tpu.memory_space<vmem>>, vector<1x4x128xbf16>
    %323 = vector.shape_cast %322 : vector<1x4x128xbf16> to vector<4x128xbf16>
    %cst_281 = arith.constant dense<0.000000e+00> : vector<8x128xf32>
    %324 = tpu.matmul %321, %323, %cst_281 {dimension_numbers = #tpu.dot_dimension_numbers<[1], [0], [0], [1], [0, 0, 1, 1], [], []>} : vector<8x4xbf16>, vector<4x128xbf16>, vector<8x128xf32> -> vector<8x128xf32>
    %325 = arith.addf %313, %324 : vector<8x128xf32>
    %c2_i32_282 = arith.constant 2 : i32
    %326 = arith.muli %c2_i32_282, %240 : i32
    %c2_i32_283 = arith.constant 2 : i32
    %327 = arith.addi %326, %c2_i32_283 : i32
    %c2_i32_284 = arith.constant 2 : i32
    %328 = arith.muli %327, %c2_i32_284 : i32
    %c1_i32_285 = arith.constant 1 : i32
    %329 = arith.addi %328, %c1_i32_285 : i32
    %c0_286 = arith.constant 0 : index
    %330 = arith.index_cast %329 : i32 to index
    %c0_287 = arith.constant 0 : index
    %c0_288 = arith.constant 0 : index
    %331 = vector.load %arg3[%c0_286, %330, %c0_287, %c0_288] : memref<1x36x9x4xbf16, #tpu.memory_space<vmem>>, vector<1x1x9x4xbf16>
    %332 = vector.shape_cast %331 : vector<1x1x9x4xbf16> to vector<9x4xbf16>
    %333 = vector.extract_strided_slice %332 {offsets = [0, 0], sizes = [8, 4], strides = [1, 1]} : vector<9x4xbf16> to vector<8x4xbf16>
    %c7_289 = arith.constant 7 : index
    %c0_290 = arith.constant 0 : index
    %c0_291 = arith.constant 0 : index
    %334 = vector.load %arg4[%c7_289, %c0_290, %c0_291] : memref<9x4x128xbf16, #tpu.memory_space<vmem>>, vector<1x4x128xbf16>
    %335 = vector.shape_cast %334 : vector<1x4x128xbf16> to vector<4x128xbf16>
    %cst_292 = arith.constant dense<0.000000e+00> : vector<8x128xf32>
    %336 = tpu.matmul %333, %335, %cst_292 {dimension_numbers = #tpu.dot_dimension_numbers<[1], [0], [0], [1], [0, 0, 1, 1], [], []>} : vector<8x4xbf16>, vector<4x128xbf16>, vector<8x128xf32> -> vector<8x128xf32>
    %337 = arith.addf %325, %336 : vector<8x128xf32>
    %c2_i32_293 = arith.constant 2 : i32
    %338 = arith.muli %c2_i32_293, %240 : i32
    %c2_i32_294 = arith.constant 2 : i32
    %339 = arith.addi %338, %c2_i32_294 : i32
    %c2_i32_295 = arith.constant 2 : i32
    %340 = arith.muli %339, %c2_i32_295 : i32
    %c0_i32_296 = arith.constant 0 : i32
    %341 = arith.addi %340, %c0_i32_296 : i32
    %c0_297 = arith.constant 0 : index
    %342 = arith.index_cast %341 : i32 to index
    %c0_298 = arith.constant 0 : index
    %c0_299 = arith.constant 0 : index
    %343 = vector.load %arg3[%c0_297, %342, %c0_298, %c0_299] : memref<1x36x9x4xbf16, #tpu.memory_space<vmem>>, vector<1x1x9x4xbf16>
    %344 = vector.shape_cast %343 : vector<1x1x9x4xbf16> to vector<9x4xbf16>
    %345 = vector.extract_strided_slice %344 {offsets = [1, 0], sizes = [8, 4], strides = [1, 1]} : vector<9x4xbf16> to vector<8x4xbf16>
    %c8_300 = arith.constant 8 : index
    %c0_301 = arith.constant 0 : index
    %c0_302 = arith.constant 0 : index
    %346 = vector.load %arg4[%c8_300, %c0_301, %c0_302] : memref<9x4x128xbf16, #tpu.memory_space<vmem>>, vector<1x4x128xbf16>
    %347 = vector.shape_cast %346 : vector<1x4x128xbf16> to vector<4x128xbf16>
    %cst_303 = arith.constant dense<0.000000e+00> : vector<8x128xf32>
    %348 = tpu.matmul %345, %347, %cst_303 {dimension_numbers = #tpu.dot_dimension_numbers<[1], [0], [0], [1], [0, 0, 1, 1], [], []>} : vector<8x4xbf16>, vector<4x128xbf16>, vector<8x128xf32> -> vector<8x128xf32>
    %349 = arith.addf %337, %348 : vector<8x128xf32>
    %350 = vector.broadcast %0 : vector<1x128xf32> to vector<8x128xf32>
    %351 = arith.addf %349, %350 : vector<8x128xf32>
    %cst_304 = arith.constant 0.000000e+00 : f32
    %352 = vector.broadcast %cst_304 : f32 to vector<8x128xf32>
    %353 = arith.maximumf %351, %352 : vector<8x128xf32>
    %354 = arith.truncf %353 : vector<8x128xf32> to vector<8x128xbf16>
    %c0_305 = arith.constant 0 : index
    %c2_306 = arith.constant 2 : index
    %c0_307 = arith.constant 0 : index
    %c0_308 = arith.constant 0 : index
    %355 = vector.load %arg6[%c0_305, %c2_306, %c0_307, %c0_308] : memref<1x8x8x128xbf16, #tpu.memory_space<vmem>>, vector<1x1x8x128xbf16>
    %356 = vector.shape_cast %355 : vector<1x1x8x128xbf16> to vector<8x128xbf16>
    %357 = vector.shape_cast %354 : vector<8x128xbf16> to vector<1x1x8x128xbf16>
    tpu.vector_store %arg6[%c0_305, %c2_306, %c0_307, %c0_308], %357 {strides = array<i32>} : memref<1x8x8x128xbf16, #tpu.memory_space<vmem>>, vector<1x1x8x128xbf16>,
    %c8_i32_309 = arith.constant 8 : i32
    %358 = arith.muli %arg2, %c8_i32_309 : i32
    %c3_i32 = arith.constant 3 : i32
    %359 = arith.addi %358, %c3_i32 : i32
    %cst_310 = arith.constant 0.000000e+00 : f32
    %360 = vector.broadcast %cst_310 : f32 to vector<8x128xf32>
    %c2_i32_311 = arith.constant 2 : i32
    %361 = arith.muli %c2_i32_311, %359 : i32
    %c0_i32_312 = arith.constant 0 : i32
    %362 = arith.addi %361, %c0_i32_312 : i32
    %c2_i32_313 = arith.constant 2 : i32
    %363 = arith.muli %362, %c2_i32_313 : i32
    %c0_i32_314 = arith.constant 0 : i32
    %364 = arith.addi %363, %c0_i32_314 : i32
    %c0_315 = arith.constant 0 : index
    %365 = arith.index_cast %364 : i32 to index
    %c0_316 = arith.constant 0 : index
    %c0_317 = arith.constant 0 : index
    %366 = vector.load %arg3[%c0_315, %365, %c0_316, %c0_317] : memref<1x36x9x4xbf16, #tpu.memory_space<vmem>>, vector<1x1x9x4xbf16>
    %367 = vector.shape_cast %366 : vector<1x1x9x4xbf16> to vector<9x4xbf16>
    %368 = vector.extract_strided_slice %367 {offsets = [0, 0], sizes = [8, 4], strides = [1, 1]} : vector<9x4xbf16> to vector<8x4xbf16>
    %c0_318 = arith.constant 0 : index
    %c0_319 = arith.constant 0 : index
    %c0_320 = arith.constant 0 : index
    %369 = vector.load %arg4[%c0_318, %c0_319, %c0_320] : memref<9x4x128xbf16, #tpu.memory_space<vmem>>, vector<1x4x128xbf16>
    %370 = vector.shape_cast %369 : vector<1x4x128xbf16> to vector<4x128xbf16>
    %cst_321 = arith.constant dense<0.000000e+00> : vector<8x128xf32>
    %371 = tpu.matmul %368, %370, %cst_321 {dimension_numbers = #tpu.dot_dimension_numbers<[1], [0], [0], [1], [0, 0, 1, 1], [], []>} : vector<8x4xbf16>, vector<4x128xbf16>, vector<8x128xf32> -> vector<8x128xf32>
    %372 = arith.addf %360, %371 : vector<8x128xf32>
    %c2_i32_322 = arith.constant 2 : i32
    %373 = arith.muli %c2_i32_322, %359 : i32
    %c0_i32_323 = arith.constant 0 : i32
    %374 = arith.addi %373, %c0_i32_323 : i32
    %c2_i32_324 = arith.constant 2 : i32
    %375 = arith.muli %374, %c2_i32_324 : i32
    %c1_i32_325 = arith.constant 1 : i32
    %376 = arith.addi %375, %c1_i32_325 : i32
    %c0_326 = arith.constant 0 : index
    %377 = arith.index_cast %376 : i32 to index
    %c0_327 = arith.constant 0 : index
    %c0_328 = arith.constant 0 : index
    %378 = vector.load %arg3[%c0_326, %377, %c0_327, %c0_328] : memref<1x36x9x4xbf16, #tpu.memory_space<vmem>>, vector<1x1x9x4xbf16>
    %379 = vector.shape_cast %378 : vector<1x1x9x4xbf16> to vector<9x4xbf16>
    %380 = vector.extract_strided_slice %379 {offsets = [0, 0], sizes = [8, 4], strides = [1, 1]} : vector<9x4xbf16> to vector<8x4xbf16>
    %c1_329 = arith.constant 1 : index
    %c0_330 = arith.constant 0 : index
    %c0_331 = arith.constant 0 : index
    %381 = vector.load %arg4[%c1_329, %c0_330, %c0_331] : memref<9x4x128xbf16, #tpu.memory_space<vmem>>, vector<1x4x128xbf16>
    %382 = vector.shape_cast %381 : vector<1x4x128xbf16> to vector<4x128xbf16>
    %cst_332 = arith.constant dense<0.000000e+00> : vector<8x128xf32>
    %383 = tpu.matmul %380, %382, %cst_332 {dimension_numbers = #tpu.dot_dimension_numbers<[1], [0], [0], [1], [0, 0, 1, 1], [], []>} : vector<8x4xbf16>, vector<4x128xbf16>, vector<8x128xf32> -> vector<8x128xf32>
    %384 = arith.addf %372, %383 : vector<8x128xf32>
    %c2_i32_333 = arith.constant 2 : i32
    %385 = arith.muli %c2_i32_333, %359 : i32
    %c0_i32_334 = arith.constant 0 : i32
    %386 = arith.addi %385, %c0_i32_334 : i32
    %c2_i32_335 = arith.constant 2 : i32
    %387 = arith.muli %386, %c2_i32_335 : i32
    %c0_i32_336 = arith.constant 0 : i32
    %388 = arith.addi %387, %c0_i32_336 : i32
    %c0_337 = arith.constant 0 : index
    %389 = arith.index_cast %388 : i32 to index
    %c0_338 = arith.constant 0 : index
    %c0_339 = arith.constant 0 : index
    %390 = vector.load %arg3[%c0_337, %389, %c0_338, %c0_339] : memref<1x36x9x4xbf16, #tpu.memory_space<vmem>>, vector<1x1x9x4xbf16>
    %391 = vector.shape_cast %390 : vector<1x1x9x4xbf16> to vector<9x4xbf16>
    %392 = vector.extract_strided_slice %391 {offsets = [1, 0], sizes = [8, 4], strides = [1, 1]} : vector<9x4xbf16> to vector<8x4xbf16>
    %c2_340 = arith.constant 2 : index
    %c0_341 = arith.constant 0 : index
    %c0_342 = arith.constant 0 : index
    %393 = vector.load %arg4[%c2_340, %c0_341, %c0_342] : memref<9x4x128xbf16, #tpu.memory_space<vmem>>, vector<1x4x128xbf16>
    %394 = vector.shape_cast %393 : vector<1x4x128xbf16> to vector<4x128xbf16>
    %cst_343 = arith.constant dense<0.000000e+00> : vector<8x128xf32>
    %395 = tpu.matmul %392, %394, %cst_343 {dimension_numbers = #tpu.dot_dimension_numbers<[1], [0], [0], [1], [0, 0, 1, 1], [], []>} : vector<8x4xbf16>, vector<4x128xbf16>, vector<8x128xf32> -> vector<8x128xf32>
    %396 = arith.addf %384, %395 : vector<8x128xf32>
    %c2_i32_344 = arith.constant 2 : i32
    %397 = arith.muli %c2_i32_344, %359 : i32
    %c1_i32_345 = arith.constant 1 : i32
    %398 = arith.addi %397, %c1_i32_345 : i32
    %c2_i32_346 = arith.constant 2 : i32
    %399 = arith.muli %398, %c2_i32_346 : i32
    %c0_i32_347 = arith.constant 0 : i32
    %400 = arith.addi %399, %c0_i32_347 : i32
    %c0_348 = arith.constant 0 : index
    %401 = arith.index_cast %400 : i32 to index
    %c0_349 = arith.constant 0 : index
    %c0_350 = arith.constant 0 : index
    %402 = vector.load %arg3[%c0_348, %401, %c0_349, %c0_350] : memref<1x36x9x4xbf16, #tpu.memory_space<vmem>>, vector<1x1x9x4xbf16>
    %403 = vector.shape_cast %402 : vector<1x1x9x4xbf16> to vector<9x4xbf16>
    %404 = vector.extract_strided_slice %403 {offsets = [0, 0], sizes = [8, 4], strides = [1, 1]} : vector<9x4xbf16> to vector<8x4xbf16>
    %c3_351 = arith.constant 3 : index
    %c0_352 = arith.constant 0 : index
    %c0_353 = arith.constant 0 : index
    %405 = vector.load %arg4[%c3_351, %c0_352, %c0_353] : memref<9x4x128xbf16, #tpu.memory_space<vmem>>, vector<1x4x128xbf16>
    %406 = vector.shape_cast %405 : vector<1x4x128xbf16> to vector<4x128xbf16>
    %cst_354 = arith.constant dense<0.000000e+00> : vector<8x128xf32>
    %407 = tpu.matmul %404, %406, %cst_354 {dimension_numbers = #tpu.dot_dimension_numbers<[1], [0], [0], [1], [0, 0, 1, 1], [], []>} : vector<8x4xbf16>, vector<4x128xbf16>, vector<8x128xf32> -> vector<8x128xf32>
    %408 = arith.addf %396, %407 : vector<8x128xf32>
    %c2_i32_355 = arith.constant 2 : i32
    %409 = arith.muli %c2_i32_355, %359 : i32
    %c1_i32_356 = arith.constant 1 : i32
    %410 = arith.addi %409, %c1_i32_356 : i32
    %c2_i32_357 = arith.constant 2 : i32
    %411 = arith.muli %410, %c2_i32_357 : i32
    %c1_i32_358 = arith.constant 1 : i32
    %412 = arith.addi %411, %c1_i32_358 : i32
    %c0_359 = arith.constant 0 : index
    %413 = arith.index_cast %412 : i32 to index
    %c0_360 = arith.constant 0 : index
    %c0_361 = arith.constant 0 : index
    %414 = vector.load %arg3[%c0_359, %413, %c0_360, %c0_361] : memref<1x36x9x4xbf16, #tpu.memory_space<vmem>>, vector<1x1x9x4xbf16>
    %415 = vector.shape_cast %414 : vector<1x1x9x4xbf16> to vector<9x4xbf16>
    %416 = vector.extract_strided_slice %415 {offsets = [0, 0], sizes = [8, 4], strides = [1, 1]} : vector<9x4xbf16> to vector<8x4xbf16>
    %c4_362 = arith.constant 4 : index
    %c0_363 = arith.constant 0 : index
    %c0_364 = arith.constant 0 : index
    %417 = vector.load %arg4[%c4_362, %c0_363, %c0_364] : memref<9x4x128xbf16, #tpu.memory_space<vmem>>, vector<1x4x128xbf16>
    %418 = vector.shape_cast %417 : vector<1x4x128xbf16> to vector<4x128xbf16>
    %cst_365 = arith.constant dense<0.000000e+00> : vector<8x128xf32>
    %419 = tpu.matmul %416, %418, %cst_365 {dimension_numbers = #tpu.dot_dimension_numbers<[1], [0], [0], [1], [0, 0, 1, 1], [], []>} : vector<8x4xbf16>, vector<4x128xbf16>, vector<8x128xf32> -> vector<8x128xf32>
    %420 = arith.addf %408, %419 : vector<8x128xf32>
    %c2_i32_366 = arith.constant 2 : i32
    %421 = arith.muli %c2_i32_366, %359 : i32
    %c1_i32_367 = arith.constant 1 : i32
    %422 = arith.addi %421, %c1_i32_367 : i32
    %c2_i32_368 = arith.constant 2 : i32
    %423 = arith.muli %422, %c2_i32_368 : i32
    %c0_i32_369 = arith.constant 0 : i32
    %424 = arith.addi %423, %c0_i32_369 : i32
    %c0_370 = arith.constant 0 : index
    %425 = arith.index_cast %424 : i32 to index
    %c0_371 = arith.constant 0 : index
    %c0_372 = arith.constant 0 : index
    %426 = vector.load %arg3[%c0_370, %425, %c0_371, %c0_372] : memref<1x36x9x4xbf16, #tpu.memory_space<vmem>>, vector<1x1x9x4xbf16>
    %427 = vector.shape_cast %426 : vector<1x1x9x4xbf16> to vector<9x4xbf16>
    %428 = vector.extract_strided_slice %427 {offsets = [1, 0], sizes = [8, 4], strides = [1, 1]} : vector<9x4xbf16> to vector<8x4xbf16>
    %c5_373 = arith.constant 5 : index
    %c0_374 = arith.constant 0 : index
    %c0_375 = arith.constant 0 : index
    %429 = vector.load %arg4[%c5_373, %c0_374, %c0_375] : memref<9x4x128xbf16, #tpu.memory_space<vmem>>, vector<1x4x128xbf16>
    %430 = vector.shape_cast %429 : vector<1x4x128xbf16> to vector<4x128xbf16>
    %cst_376 = arith.constant dense<0.000000e+00> : vector<8x128xf32>
    %431 = tpu.matmul %428, %430, %cst_376 {dimension_numbers = #tpu.dot_dimension_numbers<[1], [0], [0], [1], [0, 0, 1, 1], [], []>} : vector<8x4xbf16>, vector<4x128xbf16>, vector<8x128xf32> -> vector<8x128xf32>
    %432 = arith.addf %420, %431 : vector<8x128xf32>
    %c2_i32_377 = arith.constant 2 : i32
    %433 = arith.muli %c2_i32_377, %359 : i32
    %c2_i32_378 = arith.constant 2 : i32
    %434 = arith.addi %433, %c2_i32_378 : i32
    %c2_i32_379 = arith.constant 2 : i32
    %435 = arith.muli %434, %c2_i32_379 : i32
    %c0_i32_380 = arith.constant 0 : i32
    %436 = arith.addi %435, %c0_i32_380 : i32
    %c0_381 = arith.constant 0 : index
    %437 = arith.index_cast %436 : i32 to index
    %c0_382 = arith.constant 0 : index
    %c0_383 = arith.constant 0 : index
    %438 = vector.load %arg3[%c0_381, %437, %c0_382, %c0_383] : memref<1x36x9x4xbf16, #tpu.memory_space<vmem>>, vector<1x1x9x4xbf16>
    %439 = vector.shape_cast %438 : vector<1x1x9x4xbf16> to vector<9x4xbf16>
    %440 = vector.extract_strided_slice %439 {offsets = [0, 0], sizes = [8, 4], strides = [1, 1]} : vector<9x4xbf16> to vector<8x4xbf16>
    %c6_384 = arith.constant 6 : index
    %c0_385 = arith.constant 0 : index
    %c0_386 = arith.constant 0 : index
    %441 = vector.load %arg4[%c6_384, %c0_385, %c0_386] : memref<9x4x128xbf16, #tpu.memory_space<vmem>>, vector<1x4x128xbf16>
    %442 = vector.shape_cast %441 : vector<1x4x128xbf16> to vector<4x128xbf16>
    %cst_387 = arith.constant dense<0.000000e+00> : vector<8x128xf32>
    %443 = tpu.matmul %440, %442, %cst_387 {dimension_numbers = #tpu.dot_dimension_numbers<[1], [0], [0], [1], [0, 0, 1, 1], [], []>} : vector<8x4xbf16>, vector<4x128xbf16>, vector<8x128xf32> -> vector<8x128xf32>
    %444 = arith.addf %432, %443 : vector<8x128xf32>
    %c2_i32_388 = arith.constant 2 : i32
    %445 = arith.muli %c2_i32_388, %359 : i32
    %c2_i32_389 = arith.constant 2 : i32
    %446 = arith.addi %445, %c2_i32_389 : i32
    %c2_i32_390 = arith.constant 2 : i32
    %447 = arith.muli %446, %c2_i32_390 : i32
    %c1_i32_391 = arith.constant 1 : i32
    %448 = arith.addi %447, %c1_i32_391 : i32
    %c0_392 = arith.constant 0 : index
    %449 = arith.index_cast %448 : i32 to index
    %c0_393 = arith.constant 0 : index
    %c0_394 = arith.constant 0 : index
    %450 = vector.load %arg3[%c0_392, %449, %c0_393, %c0_394] : memref<1x36x9x4xbf16, #tpu.memory_space<vmem>>, vector<1x1x9x4xbf16>
    %451 = vector.shape_cast %450 : vector<1x1x9x4xbf16> to vector<9x4xbf16>
    %452 = vector.extract_strided_slice %451 {offsets = [0, 0], sizes = [8, 4], strides = [1, 1]} : vector<9x4xbf16> to vector<8x4xbf16>
    %c7_395 = arith.constant 7 : index
    %c0_396 = arith.constant 0 : index
    %c0_397 = arith.constant 0 : index
    %453 = vector.load %arg4[%c7_395, %c0_396, %c0_397] : memref<9x4x128xbf16, #tpu.memory_space<vmem>>, vector<1x4x128xbf16>
    %454 = vector.shape_cast %453 : vector<1x4x128xbf16> to vector<4x128xbf16>
    %cst_398 = arith.constant dense<0.000000e+00> : vector<8x128xf32>
    %455 = tpu.matmul %452, %454, %cst_398 {dimension_numbers = #tpu.dot_dimension_numbers<[1], [0], [0], [1], [0, 0, 1, 1], [], []>} : vector<8x4xbf16>, vector<4x128xbf16>, vector<8x128xf32> -> vector<8x128xf32>
    %456 = arith.addf %444, %455 : vector<8x128xf32>
    %c2_i32_399 = arith.constant 2 : i32
    %457 = arith.muli %c2_i32_399, %359 : i32
    %c2_i32_400 = arith.constant 2 : i32
    %458 = arith.addi %457, %c2_i32_400 : i32
    %c2_i32_401 = arith.constant 2 : i32
    %459 = arith.muli %458, %c2_i32_401 : i32
    %c0_i32_402 = arith.constant 0 : i32
    %460 = arith.addi %459, %c0_i32_402 : i32
    %c0_403 = arith.constant 0 : index
    %461 = arith.index_cast %460 : i32 to index
    %c0_404 = arith.constant 0 : index
    %c0_405 = arith.constant 0 : index
    %462 = vector.load %arg3[%c0_403, %461, %c0_404, %c0_405] : memref<1x36x9x4xbf16, #tpu.memory_space<vmem>>, vector<1x1x9x4xbf16>
    %463 = vector.shape_cast %462 : vector<1x1x9x4xbf16> to vector<9x4xbf16>
    %464 = vector.extract_strided_slice %463 {offsets = [1, 0], sizes = [8, 4], strides = [1, 1]} : vector<9x4xbf16> to vector<8x4xbf16>
    %c8_406 = arith.constant 8 : index
    %c0_407 = arith.constant 0 : index
    %c0_408 = arith.constant 0 : index
    %465 = vector.load %arg4[%c8_406, %c0_407, %c0_408] : memref<9x4x128xbf16, #tpu.memory_space<vmem>>, vector<1x4x128xbf16>
    %466 = vector.shape_cast %465 : vector<1x4x128xbf16> to vector<4x128xbf16>
    %cst_409 = arith.constant dense<0.000000e+00> : vector<8x128xf32>
    %467 = tpu.matmul %464, %466, %cst_409 {dimension_numbers = #tpu.dot_dimension_numbers<[1], [0], [0], [1], [0, 0, 1, 1], [], []>} : vector<8x4xbf16>, vector<4x128xbf16>, vector<8x128xf32> -> vector<8x128xf32>
    %468 = arith.addf %456, %467 : vector<8x128xf32>
    %469 = vector.broadcast %0 : vector<1x128xf32> to vector<8x128xf32>
    %470 = arith.addf %468, %469 : vector<8x128xf32>
    %cst_410 = arith.constant 0.000000e+00 : f32
    %471 = vector.broadcast %cst_410 : f32 to vector<8x128xf32>
    %472 = arith.maximumf %470, %471 : vector<8x128xf32>
    %473 = arith.truncf %472 : vector<8x128xf32> to vector<8x128xbf16>
    %c0_411 = arith.constant 0 : index
    %c3_412 = arith.constant 3 : index
    %c0_413 = arith.constant 0 : index
    %c0_414 = arith.constant 0 : index
    %474 = vector.load %arg6[%c0_411, %c3_412, %c0_413, %c0_414] : memref<1x8x8x128xbf16, #tpu.memory_space<vmem>>, vector<1x1x8x128xbf16>
    %475 = vector.shape_cast %474 : vector<1x1x8x128xbf16> to vector<8x128xbf16>
    %476 = vector.shape_cast %473 : vector<8x128xbf16> to vector<1x1x8x128xbf16>
    tpu.vector_store %arg6[%c0_411, %c3_412, %c0_413, %c0_414], %476 {strides = array<i32>} : memref<1x8x8x128xbf16, #tpu.memory_space<vmem>>, vector<1x1x8x128xbf16>,
    %c8_i32_415 = arith.constant 8 : i32
    %477 = arith.muli %arg2, %c8_i32_415 : i32
    %c4_i32 = arith.constant 4 : i32
    %478 = arith.addi %477, %c4_i32 : i32
    %cst_416 = arith.constant 0.000000e+00 : f32
    %479 = vector.broadcast %cst_416 : f32 to vector<8x128xf32>
    %c2_i32_417 = arith.constant 2 : i32
    %480 = arith.muli %c2_i32_417, %478 : i32
    %c0_i32_418 = arith.constant 0 : i32
    %481 = arith.addi %480, %c0_i32_418 : i32
    %c2_i32_419 = arith.constant 2 : i32
    %482 = arith.muli %481, %c2_i32_419 : i32
    %c0_i32_420 = arith.constant 0 : i32
    %483 = arith.addi %482, %c0_i32_420 : i32
    %c0_421 = arith.constant 0 : index
    %484 = arith.index_cast %483 : i32 to index
    %c0_422 = arith.constant 0 : index
    %c0_423 = arith.constant 0 : index
    %485 = vector.load %arg3[%c0_421, %484, %c0_422, %c0_423] : memref<1x36x9x4xbf16, #tpu.memory_space<vmem>>, vector<1x1x9x4xbf16>
    %486 = vector.shape_cast %485 : vector<1x1x9x4xbf16> to vector<9x4xbf16>
    %487 = vector.extract_strided_slice %486 {offsets = [0, 0], sizes = [8, 4], strides = [1, 1]} : vector<9x4xbf16> to vector<8x4xbf16>
    %c0_424 = arith.constant 0 : index
    %c0_425 = arith.constant 0 : index
    %c0_426 = arith.constant 0 : index
    %488 = vector.load %arg4[%c0_424, %c0_425, %c0_426] : memref<9x4x128xbf16, #tpu.memory_space<vmem>>, vector<1x4x128xbf16>
    %489 = vector.shape_cast %488 : vector<1x4x128xbf16> to vector<4x128xbf16>
    %cst_427 = arith.constant dense<0.000000e+00> : vector<8x128xf32>
    %490 = tpu.matmul %487, %489, %cst_427 {dimension_numbers = #tpu.dot_dimension_numbers<[1], [0], [0], [1], [0, 0, 1, 1], [], []>} : vector<8x4xbf16>, vector<4x128xbf16>, vector<8x128xf32> -> vector<8x128xf32>
    %491 = arith.addf %479, %490 : vector<8x128xf32>
    %c2_i32_428 = arith.constant 2 : i32
    %492 = arith.muli %c2_i32_428, %478 : i32
    %c0_i32_429 = arith.constant 0 : i32
    %493 = arith.addi %492, %c0_i32_429 : i32
    %c2_i32_430 = arith.constant 2 : i32
    %494 = arith.muli %493, %c2_i32_430 : i32
    %c1_i32_431 = arith.constant 1 : i32
    %495 = arith.addi %494, %c1_i32_431 : i32
    %c0_432 = arith.constant 0 : index
    %496 = arith.index_cast %495 : i32 to index
    %c0_433 = arith.constant 0 : index
    %c0_434 = arith.constant 0 : index
    %497 = vector.load %arg3[%c0_432, %496, %c0_433, %c0_434] : memref<1x36x9x4xbf16, #tpu.memory_space<vmem>>, vector<1x1x9x4xbf16>
    %498 = vector.shape_cast %497 : vector<1x1x9x4xbf16> to vector<9x4xbf16>
    %499 = vector.extract_strided_slice %498 {offsets = [0, 0], sizes = [8, 4], strides = [1, 1]} : vector<9x4xbf16> to vector<8x4xbf16>
    %c1_435 = arith.constant 1 : index
    %c0_436 = arith.constant 0 : index
    %c0_437 = arith.constant 0 : index
    %500 = vector.load %arg4[%c1_435, %c0_436, %c0_437] : memref<9x4x128xbf16, #tpu.memory_space<vmem>>, vector<1x4x128xbf16>
    %501 = vector.shape_cast %500 : vector<1x4x128xbf16> to vector<4x128xbf16>
    %cst_438 = arith.constant dense<0.000000e+00> : vector<8x128xf32>
    %502 = tpu.matmul %499, %501, %cst_438 {dimension_numbers = #tpu.dot_dimension_numbers<[1], [0], [0], [1], [0, 0, 1, 1], [], []>} : vector<8x4xbf16>, vector<4x128xbf16>, vector<8x128xf32> -> vector<8x128xf32>
    %503 = arith.addf %491, %502 : vector<8x128xf32>
    %c2_i32_439 = arith.constant 2 : i32
    %504 = arith.muli %c2_i32_439, %478 : i32
    %c0_i32_440 = arith.constant 0 : i32
    %505 = arith.addi %504, %c0_i32_440 : i32
    %c2_i32_441 = arith.constant 2 : i32
    %506 = arith.muli %505, %c2_i32_441 : i32
    %c0_i32_442 = arith.constant 0 : i32
    %507 = arith.addi %506, %c0_i32_442 : i32
    %c0_443 = arith.constant 0 : index
    %508 = arith.index_cast %507 : i32 to index
    %c0_444 = arith.constant 0 : index
    %c0_445 = arith.constant 0 : index
    %509 = vector.load %arg3[%c0_443, %508, %c0_444, %c0_445] : memref<1x36x9x4xbf16, #tpu.memory_space<vmem>>, vector<1x1x9x4xbf16>
    %510 = vector.shape_cast %509 : vector<1x1x9x4xbf16> to vector<9x4xbf16>
    %511 = vector.extract_strided_slice %510 {offsets = [1, 0], sizes = [8, 4], strides = [1, 1]} : vector<9x4xbf16> to vector<8x4xbf16>
    %c2_446 = arith.constant 2 : index
    %c0_447 = arith.constant 0 : index
    %c0_448 = arith.constant 0 : index
    %512 = vector.load %arg4[%c2_446, %c0_447, %c0_448] : memref<9x4x128xbf16, #tpu.memory_space<vmem>>, vector<1x4x128xbf16>
    %513 = vector.shape_cast %512 : vector<1x4x128xbf16> to vector<4x128xbf16>
    %cst_449 = arith.constant dense<0.000000e+00> : vector<8x128xf32>
    %514 = tpu.matmul %511, %513, %cst_449 {dimension_numbers = #tpu.dot_dimension_numbers<[1], [0], [0], [1], [0, 0, 1, 1], [], []>} : vector<8x4xbf16>, vector<4x128xbf16>, vector<8x128xf32> -> vector<8x128xf32>
    %515 = arith.addf %503, %514 : vector<8x128xf32>
    %c2_i32_450 = arith.constant 2 : i32
    %516 = arith.muli %c2_i32_450, %478 : i32
    %c1_i32_451 = arith.constant 1 : i32
    %517 = arith.addi %516, %c1_i32_451 : i32
    %c2_i32_452 = arith.constant 2 : i32
    %518 = arith.muli %517, %c2_i32_452 : i32
    %c0_i32_453 = arith.constant 0 : i32
    %519 = arith.addi %518, %c0_i32_453 : i32
    %c0_454 = arith.constant 0 : index
    %520 = arith.index_cast %519 : i32 to index
    %c0_455 = arith.constant 0 : index
    %c0_456 = arith.constant 0 : index
    %521 = vector.load %arg3[%c0_454, %520, %c0_455, %c0_456] : memref<1x36x9x4xbf16, #tpu.memory_space<vmem>>, vector<1x1x9x4xbf16>
    %522 = vector.shape_cast %521 : vector<1x1x9x4xbf16> to vector<9x4xbf16>
    %523 = vector.extract_strided_slice %522 {offsets = [0, 0], sizes = [8, 4], strides = [1, 1]} : vector<9x4xbf16> to vector<8x4xbf16>
    %c3_457 = arith.constant 3 : index
    %c0_458 = arith.constant 0 : index
    %c0_459 = arith.constant 0 : index
    %524 = vector.load %arg4[%c3_457, %c0_458, %c0_459] : memref<9x4x128xbf16, #tpu.memory_space<vmem>>, vector<1x4x128xbf16>
    %525 = vector.shape_cast %524 : vector<1x4x128xbf16> to vector<4x128xbf16>
    %cst_460 = arith.constant dense<0.000000e+00> : vector<8x128xf32>
    %526 = tpu.matmul %523, %525, %cst_460 {dimension_numbers = #tpu.dot_dimension_numbers<[1], [0], [0], [1], [0, 0, 1, 1], [], []>} : vector<8x4xbf16>, vector<4x128xbf16>, vector<8x128xf32> -> vector<8x128xf32>
    %527 = arith.addf %515, %526 : vector<8x128xf32>
    %c2_i32_461 = arith.constant 2 : i32
    %528 = arith.muli %c2_i32_461, %478 : i32
    %c1_i32_462 = arith.constant 1 : i32
    %529 = arith.addi %528, %c1_i32_462 : i32
    %c2_i32_463 = arith.constant 2 : i32
    %530 = arith.muli %529, %c2_i32_463 : i32
    %c1_i32_464 = arith.constant 1 : i32
    %531 = arith.addi %530, %c1_i32_464 : i32
    %c0_465 = arith.constant 0 : index
    %532 = arith.index_cast %531 : i32 to index
    %c0_466 = arith.constant 0 : index
    %c0_467 = arith.constant 0 : index
    %533 = vector.load %arg3[%c0_465, %532, %c0_466, %c0_467] : memref<1x36x9x4xbf16, #tpu.memory_space<vmem>>, vector<1x1x9x4xbf16>
    %534 = vector.shape_cast %533 : vector<1x1x9x4xbf16> to vector<9x4xbf16>
    %535 = vector.extract_strided_slice %534 {offsets = [0, 0], sizes = [8, 4], strides = [1, 1]} : vector<9x4xbf16> to vector<8x4xbf16>
    %c4_468 = arith.constant 4 : index
    %c0_469 = arith.constant 0 : index
    %c0_470 = arith.constant 0 : index
    %536 = vector.load %arg4[%c4_468, %c0_469, %c0_470] : memref<9x4x128xbf16, #tpu.memory_space<vmem>>, vector<1x4x128xbf16>
    %537 = vector.shape_cast %536 : vector<1x4x128xbf16> to vector<4x128xbf16>
    %cst_471 = arith.constant dense<0.000000e+00> : vector<8x128xf32>
    %538 = tpu.matmul %535, %537, %cst_471 {dimension_numbers = #tpu.dot_dimension_numbers<[1], [0], [0], [1], [0, 0, 1, 1], [], []>} : vector<8x4xbf16>, vector<4x128xbf16>, vector<8x128xf32> -> vector<8x128xf32>
    %539 = arith.addf %527, %538 : vector<8x128xf32>
    %c2_i32_472 = arith.constant 2 : i32
    %540 = arith.muli %c2_i32_472, %478 : i32
    %c1_i32_473 = arith.constant 1 : i32
    %541 = arith.addi %540, %c1_i32_473 : i32
    %c2_i32_474 = arith.constant 2 : i32
    %542 = arith.muli %541, %c2_i32_474 : i32
    %c0_i32_475 = arith.constant 0 : i32
    %543 = arith.addi %542, %c0_i32_475 : i32
    %c0_476 = arith.constant 0 : index
    %544 = arith.index_cast %543 : i32 to index
    %c0_477 = arith.constant 0 : index
    %c0_478 = arith.constant 0 : index
    %545 = vector.load %arg3[%c0_476, %544, %c0_477, %c0_478] : memref<1x36x9x4xbf16, #tpu.memory_space<vmem>>, vector<1x1x9x4xbf16>
    %546 = vector.shape_cast %545 : vector<1x1x9x4xbf16> to vector<9x4xbf16>
    %547 = vector.extract_strided_slice %546 {offsets = [1, 0], sizes = [8, 4], strides = [1, 1]} : vector<9x4xbf16> to vector<8x4xbf16>
    %c5_479 = arith.constant 5 : index
    %c0_480 = arith.constant 0 : index
    %c0_481 = arith.constant 0 : index
    %548 = vector.load %arg4[%c5_479, %c0_480, %c0_481] : memref<9x4x128xbf16, #tpu.memory_space<vmem>>, vector<1x4x128xbf16>
    %549 = vector.shape_cast %548 : vector<1x4x128xbf16> to vector<4x128xbf16>
    %cst_482 = arith.constant dense<0.000000e+00> : vector<8x128xf32>
    %550 = tpu.matmul %547, %549, %cst_482 {dimension_numbers = #tpu.dot_dimension_numbers<[1], [0], [0], [1], [0, 0, 1, 1], [], []>} : vector<8x4xbf16>, vector<4x128xbf16>, vector<8x128xf32> -> vector<8x128xf32>
    %551 = arith.addf %539, %550 : vector<8x128xf32>
    %c2_i32_483 = arith.constant 2 : i32
    %552 = arith.muli %c2_i32_483, %478 : i32
    %c2_i32_484 = arith.constant 2 : i32
    %553 = arith.addi %552, %c2_i32_484 : i32
    %c2_i32_485 = arith.constant 2 : i32
    %554 = arith.muli %553, %c2_i32_485 : i32
    %c0_i32_486 = arith.constant 0 : i32
    %555 = arith.addi %554, %c0_i32_486 : i32
    %c0_487 = arith.constant 0 : index
    %556 = arith.index_cast %555 : i32 to index
    %c0_488 = arith.constant 0 : index
    %c0_489 = arith.constant 0 : index
    %557 = vector.load %arg3[%c0_487, %556, %c0_488, %c0_489] : memref<1x36x9x4xbf16, #tpu.memory_space<vmem>>, vector<1x1x9x4xbf16>
    %558 = vector.shape_cast %557 : vector<1x1x9x4xbf16> to vector<9x4xbf16>
    %559 = vector.extract_strided_slice %558 {offsets = [0, 0], sizes = [8, 4], strides = [1, 1]} : vector<9x4xbf16> to vector<8x4xbf16>
    %c6_490 = arith.constant 6 : index
    %c0_491 = arith.constant 0 : index
    %c0_492 = arith.constant 0 : index
    %560 = vector.load %arg4[%c6_490, %c0_491, %c0_492] : memref<9x4x128xbf16, #tpu.memory_space<vmem>>, vector<1x4x128xbf16>
    %561 = vector.shape_cast %560 : vector<1x4x128xbf16> to vector<4x128xbf16>
    %cst_493 = arith.constant dense<0.000000e+00> : vector<8x128xf32>
    %562 = tpu.matmul %559, %561, %cst_493 {dimension_numbers = #tpu.dot_dimension_numbers<[1], [0], [0], [1], [0, 0, 1, 1], [], []>} : vector<8x4xbf16>, vector<4x128xbf16>, vector<8x128xf32> -> vector<8x128xf32>
    %563 = arith.addf %551, %562 : vector<8x128xf32>
    %c2_i32_494 = arith.constant 2 : i32
    %564 = arith.muli %c2_i32_494, %478 : i32
    %c2_i32_495 = arith.constant 2 : i32
    %565 = arith.addi %564, %c2_i32_495 : i32
    %c2_i32_496 = arith.constant 2 : i32
    %566 = arith.muli %565, %c2_i32_496 : i32
    %c1_i32_497 = arith.constant 1 : i32
    %567 = arith.addi %566, %c1_i32_497 : i32
    %c0_498 = arith.constant 0 : index
    %568 = arith.index_cast %567 : i32 to index
    %c0_499 = arith.constant 0 : index
    %c0_500 = arith.constant 0 : index
    %569 = vector.load %arg3[%c0_498, %568, %c0_499, %c0_500] : memref<1x36x9x4xbf16, #tpu.memory_space<vmem>>, vector<1x1x9x4xbf16>
    %570 = vector.shape_cast %569 : vector<1x1x9x4xbf16> to vector<9x4xbf16>
    %571 = vector.extract_strided_slice %570 {offsets = [0, 0], sizes = [8, 4], strides = [1, 1]} : vector<9x4xbf16> to vector<8x4xbf16>
    %c7_501 = arith.constant 7 : index
    %c0_502 = arith.constant 0 : index
    %c0_503 = arith.constant 0 : index
    %572 = vector.load %arg4[%c7_501, %c0_502, %c0_503] : memref<9x4x128xbf16, #tpu.memory_space<vmem>>, vector<1x4x128xbf16>
    %573 = vector.shape_cast %572 : vector<1x4x128xbf16> to vector<4x128xbf16>
    %cst_504 = arith.constant dense<0.000000e+00> : vector<8x128xf32>
    %574 = tpu.matmul %571, %573, %cst_504 {dimension_numbers = #tpu.dot_dimension_numbers<[1], [0], [0], [1], [0, 0, 1, 1], [], []>} : vector<8x4xbf16>, vector<4x128xbf16>, vector<8x128xf32> -> vector<8x128xf32>
    %575 = arith.addf %563, %574 : vector<8x128xf32>
    %c2_i32_505 = arith.constant 2 : i32
    %576 = arith.muli %c2_i32_505, %478 : i32
    %c2_i32_506 = arith.constant 2 : i32
    %577 = arith.addi %576, %c2_i32_506 : i32
    %c2_i32_507 = arith.constant 2 : i32
    %578 = arith.muli %577, %c2_i32_507 : i32
    %c0_i32_508 = arith.constant 0 : i32
    %579 = arith.addi %578, %c0_i32_508 : i32
    %c0_509 = arith.constant 0 : index
    %580 = arith.index_cast %579 : i32 to index
    %c0_510 = arith.constant 0 : index
    %c0_511 = arith.constant 0 : index
    %581 = vector.load %arg3[%c0_509, %580, %c0_510, %c0_511] : memref<1x36x9x4xbf16, #tpu.memory_space<vmem>>, vector<1x1x9x4xbf16>
    %582 = vector.shape_cast %581 : vector<1x1x9x4xbf16> to vector<9x4xbf16>
    %583 = vector.extract_strided_slice %582 {offsets = [1, 0], sizes = [8, 4], strides = [1, 1]} : vector<9x4xbf16> to vector<8x4xbf16>
    %c8_512 = arith.constant 8 : index
    %c0_513 = arith.constant 0 : index
    %c0_514 = arith.constant 0 : index
    %584 = vector.load %arg4[%c8_512, %c0_513, %c0_514] : memref<9x4x128xbf16, #tpu.memory_space<vmem>>, vector<1x4x128xbf16>
    %585 = vector.shape_cast %584 : vector<1x4x128xbf16> to vector<4x128xbf16>
    %cst_515 = arith.constant dense<0.000000e+00> : vector<8x128xf32>
    %586 = tpu.matmul %583, %585, %cst_515 {dimension_numbers = #tpu.dot_dimension_numbers<[1], [0], [0], [1], [0, 0, 1, 1], [], []>} : vector<8x4xbf16>, vector<4x128xbf16>, vector<8x128xf32> -> vector<8x128xf32>
    %587 = arith.addf %575, %586 : vector<8x128xf32>
    %588 = vector.broadcast %0 : vector<1x128xf32> to vector<8x128xf32>
    %589 = arith.addf %587, %588 : vector<8x128xf32>
    %cst_516 = arith.constant 0.000000e+00 : f32
    %590 = vector.broadcast %cst_516 : f32 to vector<8x128xf32>
    %591 = arith.maximumf %589, %590 : vector<8x128xf32>
    %592 = arith.truncf %591 : vector<8x128xf32> to vector<8x128xbf16>
    %c0_517 = arith.constant 0 : index
    %c4_518 = arith.constant 4 : index
    %c0_519 = arith.constant 0 : index
    %c0_520 = arith.constant 0 : index
    %593 = vector.load %arg6[%c0_517, %c4_518, %c0_519, %c0_520] : memref<1x8x8x128xbf16, #tpu.memory_space<vmem>>, vector<1x1x8x128xbf16>
    %594 = vector.shape_cast %593 : vector<1x1x8x128xbf16> to vector<8x128xbf16>
    %595 = vector.shape_cast %592 : vector<8x128xbf16> to vector<1x1x8x128xbf16>
    tpu.vector_store %arg6[%c0_517, %c4_518, %c0_519, %c0_520], %595 {strides = array<i32>} : memref<1x8x8x128xbf16, #tpu.memory_space<vmem>>, vector<1x1x8x128xbf16>,
    %c8_i32_521 = arith.constant 8 : i32
    %596 = arith.muli %arg2, %c8_i32_521 : i32
    %c5_i32 = arith.constant 5 : i32
    %597 = arith.addi %596, %c5_i32 : i32
    %cst_522 = arith.constant 0.000000e+00 : f32
    %598 = vector.broadcast %cst_522 : f32 to vector<8x128xf32>
    %c2_i32_523 = arith.constant 2 : i32
    %599 = arith.muli %c2_i32_523, %597 : i32
    %c0_i32_524 = arith.constant 0 : i32
    %600 = arith.addi %599, %c0_i32_524 : i32
    %c2_i32_525 = arith.constant 2 : i32
    %601 = arith.muli %600, %c2_i32_525 : i32
    %c0_i32_526 = arith.constant 0 : i32
    %602 = arith.addi %601, %c0_i32_526 : i32
    %c0_527 = arith.constant 0 : index
    %603 = arith.index_cast %602 : i32 to index
    %c0_528 = arith.constant 0 : index
    %c0_529 = arith.constant 0 : index
    %604 = vector.load %arg3[%c0_527, %603, %c0_528, %c0_529] : memref<1x36x9x4xbf16, #tpu.memory_space<vmem>>, vector<1x1x9x4xbf16>
    %605 = vector.shape_cast %604 : vector<1x1x9x4xbf16> to vector<9x4xbf16>
    %606 = vector.extract_strided_slice %605 {offsets = [0, 0], sizes = [8, 4], strides = [1, 1]} : vector<9x4xbf16> to vector<8x4xbf16>
    %c0_530 = arith.constant 0 : index
    %c0_531 = arith.constant 0 : index
    %c0_532 = arith.constant 0 : index
    %607 = vector.load %arg4[%c0_530, %c0_531, %c0_532] : memref<9x4x128xbf16, #tpu.memory_space<vmem>>, vector<1x4x128xbf16>
    %608 = vector.shape_cast %607 : vector<1x4x128xbf16> to vector<4x128xbf16>
    %cst_533 = arith.constant dense<0.000000e+00> : vector<8x128xf32>
    %609 = tpu.matmul %606, %608, %cst_533 {dimension_numbers = #tpu.dot_dimension_numbers<[1], [0], [0], [1], [0, 0, 1, 1], [], []>} : vector<8x4xbf16>, vector<4x128xbf16>, vector<8x128xf32> -> vector<8x128xf32>
    %610 = arith.addf %598, %609 : vector<8x128xf32>
    %c2_i32_534 = arith.constant 2 : i32
    %611 = arith.muli %c2_i32_534, %597 : i32
    %c0_i32_535 = arith.constant 0 : i32
    %612 = arith.addi %611, %c0_i32_535 : i32
    %c2_i32_536 = arith.constant 2 : i32
    %613 = arith.muli %612, %c2_i32_536 : i32
    %c1_i32_537 = arith.constant 1 : i32
    %614 = arith.addi %613, %c1_i32_537 : i32
    %c0_538 = arith.constant 0 : index
    %615 = arith.index_cast %614 : i32 to index
    %c0_539 = arith.constant 0 : index
    %c0_540 = arith.constant 0 : index
    %616 = vector.load %arg3[%c0_538, %615, %c0_539, %c0_540] : memref<1x36x9x4xbf16, #tpu.memory_space<vmem>>, vector<1x1x9x4xbf16>
    %617 = vector.shape_cast %616 : vector<1x1x9x4xbf16> to vector<9x4xbf16>
    %618 = vector.extract_strided_slice %617 {offsets = [0, 0], sizes = [8, 4], strides = [1, 1]} : vector<9x4xbf16> to vector<8x4xbf16>
    %c1_541 = arith.constant 1 : index
    %c0_542 = arith.constant 0 : index
    %c0_543 = arith.constant 0 : index
    %619 = vector.load %arg4[%c1_541, %c0_542, %c0_543] : memref<9x4x128xbf16, #tpu.memory_space<vmem>>, vector<1x4x128xbf16>
    %620 = vector.shape_cast %619 : vector<1x4x128xbf16> to vector<4x128xbf16>
    %cst_544 = arith.constant dense<0.000000e+00> : vector<8x128xf32>
    %621 = tpu.matmul %618, %620, %cst_544 {dimension_numbers = #tpu.dot_dimension_numbers<[1], [0], [0], [1], [0, 0, 1, 1], [], []>} : vector<8x4xbf16>, vector<4x128xbf16>, vector<8x128xf32> -> vector<8x128xf32>
    %622 = arith.addf %610, %621 : vector<8x128xf32>
    %c2_i32_545 = arith.constant 2 : i32
    %623 = arith.muli %c2_i32_545, %597 : i32
    %c0_i32_546 = arith.constant 0 : i32
    %624 = arith.addi %623, %c0_i32_546 : i32
    %c2_i32_547 = arith.constant 2 : i32
    %625 = arith.muli %624, %c2_i32_547 : i32
    %c0_i32_548 = arith.constant 0 : i32
    %626 = arith.addi %625, %c0_i32_548 : i32
    %c0_549 = arith.constant 0 : index
    %627 = arith.index_cast %626 : i32 to index
    %c0_550 = arith.constant 0 : index
    %c0_551 = arith.constant 0 : index
    %628 = vector.load %arg3[%c0_549, %627, %c0_550, %c0_551] : memref<1x36x9x4xbf16, #tpu.memory_space<vmem>>, vector<1x1x9x4xbf16>
    %629 = vector.shape_cast %628 : vector<1x1x9x4xbf16> to vector<9x4xbf16>
    %630 = vector.extract_strided_slice %629 {offsets = [1, 0], sizes = [8, 4], strides = [1, 1]} : vector<9x4xbf16> to vector<8x4xbf16>
    %c2_552 = arith.constant 2 : index
    %c0_553 = arith.constant 0 : index
    %c0_554 = arith.constant 0 : index
    %631 = vector.load %arg4[%c2_552, %c0_553, %c0_554] : memref<9x4x128xbf16, #tpu.memory_space<vmem>>, vector<1x4x128xbf16>
    %632 = vector.shape_cast %631 : vector<1x4x128xbf16> to vector<4x128xbf16>
    %cst_555 = arith.constant dense<0.000000e+00> : vector<8x128xf32>
    %633 = tpu.matmul %630, %632, %cst_555 {dimension_numbers = #tpu.dot_dimension_numbers<[1], [0], [0], [1], [0, 0, 1, 1], [], []>} : vector<8x4xbf16>, vector<4x128xbf16>, vector<8x128xf32> -> vector<8x128xf32>
    %634 = arith.addf %622, %633 : vector<8x128xf32>
    %c2_i32_556 = arith.constant 2 : i32
    %635 = arith.muli %c2_i32_556, %597 : i32
    %c1_i32_557 = arith.constant 1 : i32
    %636 = arith.addi %635, %c1_i32_557 : i32
    %c2_i32_558 = arith.constant 2 : i32
    %637 = arith.muli %636, %c2_i32_558 : i32
    %c0_i32_559 = arith.constant 0 : i32
    %638 = arith.addi %637, %c0_i32_559 : i32
    %c0_560 = arith.constant 0 : index
    %639 = arith.index_cast %638 : i32 to index
    %c0_561 = arith.constant 0 : index
    %c0_562 = arith.constant 0 : index
    %640 = vector.load %arg3[%c0_560, %639, %c0_561, %c0_562] : memref<1x36x9x4xbf16, #tpu.memory_space<vmem>>, vector<1x1x9x4xbf16>
    %641 = vector.shape_cast %640 : vector<1x1x9x4xbf16> to vector<9x4xbf16>
    %642 = vector.extract_strided_slice %641 {offsets = [0, 0], sizes = [8, 4], strides = [1, 1]} : vector<9x4xbf16> to vector<8x4xbf16>
    %c3_563 = arith.constant 3 : index
    %c0_564 = arith.constant 0 : index
    %c0_565 = arith.constant 0 : index
    %643 = vector.load %arg4[%c3_563, %c0_564, %c0_565] : memref<9x4x128xbf16, #tpu.memory_space<vmem>>, vector<1x4x128xbf16>
    %644 = vector.shape_cast %643 : vector<1x4x128xbf16> to vector<4x128xbf16>
    %cst_566 = arith.constant dense<0.000000e+00> : vector<8x128xf32>
    %645 = tpu.matmul %642, %644, %cst_566 {dimension_numbers = #tpu.dot_dimension_numbers<[1], [0], [0], [1], [0, 0, 1, 1], [], []>} : vector<8x4xbf16>, vector<4x128xbf16>, vector<8x128xf32> -> vector<8x128xf32>
    %646 = arith.addf %634, %645 : vector<8x128xf32>
    %c2_i32_567 = arith.constant 2 : i32
    %647 = arith.muli %c2_i32_567, %597 : i32
    %c1_i32_568 = arith.constant 1 : i32
    %648 = arith.addi %647, %c1_i32_568 : i32
    %c2_i32_569 = arith.constant 2 : i32
    %649 = arith.muli %648, %c2_i32_569 : i32
    %c1_i32_570 = arith.constant 1 : i32
    %650 = arith.addi %649, %c1_i32_570 : i32
    %c0_571 = arith.constant 0 : index
    %651 = arith.index_cast %650 : i32 to index
    %c0_572 = arith.constant 0 : index
    %c0_573 = arith.constant 0 : index
    %652 = vector.load %arg3[%c0_571, %651, %c0_572, %c0_573] : memref<1x36x9x4xbf16, #tpu.memory_space<vmem>>, vector<1x1x9x4xbf16>
    %653 = vector.shape_cast %652 : vector<1x1x9x4xbf16> to vector<9x4xbf16>
    %654 = vector.extract_strided_slice %653 {offsets = [0, 0], sizes = [8, 4], strides = [1, 1]} : vector<9x4xbf16> to vector<8x4xbf16>
    %c4_574 = arith.constant 4 : index
    %c0_575 = arith.constant 0 : index
    %c0_576 = arith.constant 0 : index
    %655 = vector.load %arg4[%c4_574, %c0_575, %c0_576] : memref<9x4x128xbf16, #tpu.memory_space<vmem>>, vector<1x4x128xbf16>
    %656 = vector.shape_cast %655 : vector<1x4x128xbf16> to vector<4x128xbf16>
    %cst_577 = arith.constant dense<0.000000e+00> : vector<8x128xf32>
    %657 = tpu.matmul %654, %656, %cst_577 {dimension_numbers = #tpu.dot_dimension_numbers<[1], [0], [0], [1], [0, 0, 1, 1], [], []>} : vector<8x4xbf16>, vector<4x128xbf16>, vector<8x128xf32> -> vector<8x128xf32>
    %658 = arith.addf %646, %657 : vector<8x128xf32>
    %c2_i32_578 = arith.constant 2 : i32
    %659 = arith.muli %c2_i32_578, %597 : i32
    %c1_i32_579 = arith.constant 1 : i32
    %660 = arith.addi %659, %c1_i32_579 : i32
    %c2_i32_580 = arith.constant 2 : i32
    %661 = arith.muli %660, %c2_i32_580 : i32
    %c0_i32_581 = arith.constant 0 : i32
    %662 = arith.addi %661, %c0_i32_581 : i32
    %c0_582 = arith.constant 0 : index
    %663 = arith.index_cast %662 : i32 to index
    %c0_583 = arith.constant 0 : index
    %c0_584 = arith.constant 0 : index
    %664 = vector.load %arg3[%c0_582, %663, %c0_583, %c0_584] : memref<1x36x9x4xbf16, #tpu.memory_space<vmem>>, vector<1x1x9x4xbf16>
    %665 = vector.shape_cast %664 : vector<1x1x9x4xbf16> to vector<9x4xbf16>
    %666 = vector.extract_strided_slice %665 {offsets = [1, 0], sizes = [8, 4], strides = [1, 1]} : vector<9x4xbf16> to vector<8x4xbf16>
    %c5_585 = arith.constant 5 : index
    %c0_586 = arith.constant 0 : index
    %c0_587 = arith.constant 0 : index
    %667 = vector.load %arg4[%c5_585, %c0_586, %c0_587] : memref<9x4x128xbf16, #tpu.memory_space<vmem>>, vector<1x4x128xbf16>
    %668 = vector.shape_cast %667 : vector<1x4x128xbf16> to vector<4x128xbf16>
    %cst_588 = arith.constant dense<0.000000e+00> : vector<8x128xf32>
    %669 = tpu.matmul %666, %668, %cst_588 {dimension_numbers = #tpu.dot_dimension_numbers<[1], [0], [0], [1], [0, 0, 1, 1], [], []>} : vector<8x4xbf16>, vector<4x128xbf16>, vector<8x128xf32> -> vector<8x128xf32>
    %670 = arith.addf %658, %669 : vector<8x128xf32>
    %c2_i32_589 = arith.constant 2 : i32
    %671 = arith.muli %c2_i32_589, %597 : i32
    %c2_i32_590 = arith.constant 2 : i32
    %672 = arith.addi %671, %c2_i32_590 : i32
    %c2_i32_591 = arith.constant 2 : i32
    %673 = arith.muli %672, %c2_i32_591 : i32
    %c0_i32_592 = arith.constant 0 : i32
    %674 = arith.addi %673, %c0_i32_592 : i32
    %c0_593 = arith.constant 0 : index
    %675 = arith.index_cast %674 : i32 to index
    %c0_594 = arith.constant 0 : index
    %c0_595 = arith.constant 0 : index
    %676 = vector.load %arg3[%c0_593, %675, %c0_594, %c0_595] : memref<1x36x9x4xbf16, #tpu.memory_space<vmem>>, vector<1x1x9x4xbf16>
    %677 = vector.shape_cast %676 : vector<1x1x9x4xbf16> to vector<9x4xbf16>
    %678 = vector.extract_strided_slice %677 {offsets = [0, 0], sizes = [8, 4], strides = [1, 1]} : vector<9x4xbf16> to vector<8x4xbf16>
    %c6_596 = arith.constant 6 : index
    %c0_597 = arith.constant 0 : index
    %c0_598 = arith.constant 0 : index
    %679 = vector.load %arg4[%c6_596, %c0_597, %c0_598] : memref<9x4x128xbf16, #tpu.memory_space<vmem>>, vector<1x4x128xbf16>
    %680 = vector.shape_cast %679 : vector<1x4x128xbf16> to vector<4x128xbf16>
    %cst_599 = arith.constant dense<0.000000e+00> : vector<8x128xf32>
    %681 = tpu.matmul %678, %680, %cst_599 {dimension_numbers = #tpu.dot_dimension_numbers<[1], [0], [0], [1], [0, 0, 1, 1], [], []>} : vector<8x4xbf16>, vector<4x128xbf16>, vector<8x128xf32> -> vector<8x128xf32>
    %682 = arith.addf %670, %681 : vector<8x128xf32>
    %c2_i32_600 = arith.constant 2 : i32
    %683 = arith.muli %c2_i32_600, %597 : i32
    %c2_i32_601 = arith.constant 2 : i32
    %684 = arith.addi %683, %c2_i32_601 : i32
    %c2_i32_602 = arith.constant 2 : i32
    %685 = arith.muli %684, %c2_i32_602 : i32
    %c1_i32_603 = arith.constant 1 : i32
    %686 = arith.addi %685, %c1_i32_603 : i32
    %c0_604 = arith.constant 0 : index
    %687 = arith.index_cast %686 : i32 to index
    %c0_605 = arith.constant 0 : index
    %c0_606 = arith.constant 0 : index
    %688 = vector.load %arg3[%c0_604, %687, %c0_605, %c0_606] : memref<1x36x9x4xbf16, #tpu.memory_space<vmem>>, vector<1x1x9x4xbf16>
    %689 = vector.shape_cast %688 : vector<1x1x9x4xbf16> to vector<9x4xbf16>
    %690 = vector.extract_strided_slice %689 {offsets = [0, 0], sizes = [8, 4], strides = [1, 1]} : vector<9x4xbf16> to vector<8x4xbf16>
    %c7_607 = arith.constant 7 : index
    %c0_608 = arith.constant 0 : index
    %c0_609 = arith.constant 0 : index
    %691 = vector.load %arg4[%c7_607, %c0_608, %c0_609] : memref<9x4x128xbf16, #tpu.memory_space<vmem>>, vector<1x4x128xbf16>
    %692 = vector.shape_cast %691 : vector<1x4x128xbf16> to vector<4x128xbf16>
    %cst_610 = arith.constant dense<0.000000e+00> : vector<8x128xf32>
    %693 = tpu.matmul %690, %692, %cst_610 {dimension_numbers = #tpu.dot_dimension_numbers<[1], [0], [0], [1], [0, 0, 1, 1], [], []>} : vector<8x4xbf16>, vector<4x128xbf16>, vector<8x128xf32> -> vector<8x128xf32>
    %694 = arith.addf %682, %693 : vector<8x128xf32>
    %c2_i32_611 = arith.constant 2 : i32
    %695 = arith.muli %c2_i32_611, %597 : i32
    %c2_i32_612 = arith.constant 2 : i32
    %696 = arith.addi %695, %c2_i32_612 : i32
    %c2_i32_613 = arith.constant 2 : i32
    %697 = arith.muli %696, %c2_i32_613 : i32
    %c0_i32_614 = arith.constant 0 : i32
    %698 = arith.addi %697, %c0_i32_614 : i32
    %c0_615 = arith.constant 0 : index
    %699 = arith.index_cast %698 : i32 to index
    %c0_616 = arith.constant 0 : index
    %c0_617 = arith.constant 0 : index
    %700 = vector.load %arg3[%c0_615, %699, %c0_616, %c0_617] : memref<1x36x9x4xbf16, #tpu.memory_space<vmem>>, vector<1x1x9x4xbf16>
    %701 = vector.shape_cast %700 : vector<1x1x9x4xbf16> to vector<9x4xbf16>
    %702 = vector.extract_strided_slice %701 {offsets = [1, 0], sizes = [8, 4], strides = [1, 1]} : vector<9x4xbf16> to vector<8x4xbf16>
    %c8_618 = arith.constant 8 : index
    %c0_619 = arith.constant 0 : index
    %c0_620 = arith.constant 0 : index
    %703 = vector.load %arg4[%c8_618, %c0_619, %c0_620] : memref<9x4x128xbf16, #tpu.memory_space<vmem>>, vector<1x4x128xbf16>
    %704 = vector.shape_cast %703 : vector<1x4x128xbf16> to vector<4x128xbf16>
    %cst_621 = arith.constant dense<0.000000e+00> : vector<8x128xf32>
    %705 = tpu.matmul %702, %704, %cst_621 {dimension_numbers = #tpu.dot_dimension_numbers<[1], [0], [0], [1], [0, 0, 1, 1], [], []>} : vector<8x4xbf16>, vector<4x128xbf16>, vector<8x128xf32> -> vector<8x128xf32>
    %706 = arith.addf %694, %705 : vector<8x128xf32>
    %707 = vector.broadcast %0 : vector<1x128xf32> to vector<8x128xf32>
    %708 = arith.addf %706, %707 : vector<8x128xf32>
    %cst_622 = arith.constant 0.000000e+00 : f32
    %709 = vector.broadcast %cst_622 : f32 to vector<8x128xf32>
    %710 = arith.maximumf %708, %709 : vector<8x128xf32>
    %711 = arith.truncf %710 : vector<8x128xf32> to vector<8x128xbf16>
    %c0_623 = arith.constant 0 : index
    %c5_624 = arith.constant 5 : index
    %c0_625 = arith.constant 0 : index
    %c0_626 = arith.constant 0 : index
    %712 = vector.load %arg6[%c0_623, %c5_624, %c0_625, %c0_626] : memref<1x8x8x128xbf16, #tpu.memory_space<vmem>>, vector<1x1x8x128xbf16>
    %713 = vector.shape_cast %712 : vector<1x1x8x128xbf16> to vector<8x128xbf16>
    %714 = vector.shape_cast %711 : vector<8x128xbf16> to vector<1x1x8x128xbf16>
    tpu.vector_store %arg6[%c0_623, %c5_624, %c0_625, %c0_626], %714 {strides = array<i32>} : memref<1x8x8x128xbf16, #tpu.memory_space<vmem>>, vector<1x1x8x128xbf16>,
    %c8_i32_627 = arith.constant 8 : i32
    %715 = arith.muli %arg2, %c8_i32_627 : i32
    %c6_i32 = arith.constant 6 : i32
    %716 = arith.addi %715, %c6_i32 : i32
    %cst_628 = arith.constant 0.000000e+00 : f32
    %717 = vector.broadcast %cst_628 : f32 to vector<8x128xf32>
    %c2_i32_629 = arith.constant 2 : i32
    %718 = arith.muli %c2_i32_629, %716 : i32
    %c0_i32_630 = arith.constant 0 : i32
    %719 = arith.addi %718, %c0_i32_630 : i32
    %c2_i32_631 = arith.constant 2 : i32
    %720 = arith.muli %719, %c2_i32_631 : i32
    %c0_i32_632 = arith.constant 0 : i32
    %721 = arith.addi %720, %c0_i32_632 : i32
    %c0_633 = arith.constant 0 : index
    %722 = arith.index_cast %721 : i32 to index
    %c0_634 = arith.constant 0 : index
    %c0_635 = arith.constant 0 : index
    %723 = vector.load %arg3[%c0_633, %722, %c0_634, %c0_635] : memref<1x36x9x4xbf16, #tpu.memory_space<vmem>>, vector<1x1x9x4xbf16>
    %724 = vector.shape_cast %723 : vector<1x1x9x4xbf16> to vector<9x4xbf16>
    %725 = vector.extract_strided_slice %724 {offsets = [0, 0], sizes = [8, 4], strides = [1, 1]} : vector<9x4xbf16> to vector<8x4xbf16>
    %c0_636 = arith.constant 0 : index
    %c0_637 = arith.constant 0 : index
    %c0_638 = arith.constant 0 : index
    %726 = vector.load %arg4[%c0_636, %c0_637, %c0_638] : memref<9x4x128xbf16, #tpu.memory_space<vmem>>, vector<1x4x128xbf16>
    %727 = vector.shape_cast %726 : vector<1x4x128xbf16> to vector<4x128xbf16>
    %cst_639 = arith.constant dense<0.000000e+00> : vector<8x128xf32>
    %728 = tpu.matmul %725, %727, %cst_639 {dimension_numbers = #tpu.dot_dimension_numbers<[1], [0], [0], [1], [0, 0, 1, 1], [], []>} : vector<8x4xbf16>, vector<4x128xbf16>, vector<8x128xf32> -> vector<8x128xf32>
    %729 = arith.addf %717, %728 : vector<8x128xf32>
    %c2_i32_640 = arith.constant 2 : i32
    %730 = arith.muli %c2_i32_640, %716 : i32
    %c0_i32_641 = arith.constant 0 : i32
    %731 = arith.addi %730, %c0_i32_641 : i32
    %c2_i32_642 = arith.constant 2 : i32
    %732 = arith.muli %731, %c2_i32_642 : i32
    %c1_i32_643 = arith.constant 1 : i32
    %733 = arith.addi %732, %c1_i32_643 : i32
    %c0_644 = arith.constant 0 : index
    %734 = arith.index_cast %733 : i32 to index
    %c0_645 = arith.constant 0 : index
    %c0_646 = arith.constant 0 : index
    %735 = vector.load %arg3[%c0_644, %734, %c0_645, %c0_646] : memref<1x36x9x4xbf16, #tpu.memory_space<vmem>>, vector<1x1x9x4xbf16>
    %736 = vector.shape_cast %735 : vector<1x1x9x4xbf16> to vector<9x4xbf16>
    %737 = vector.extract_strided_slice %736 {offsets = [0, 0], sizes = [8, 4], strides = [1, 1]} : vector<9x4xbf16> to vector<8x4xbf16>
    %c1_647 = arith.constant 1 : index
    %c0_648 = arith.constant 0 : index
    %c0_649 = arith.constant 0 : index
    %738 = vector.load %arg4[%c1_647, %c0_648, %c0_649] : memref<9x4x128xbf16, #tpu.memory_space<vmem>>, vector<1x4x128xbf16>
    %739 = vector.shape_cast %738 : vector<1x4x128xbf16> to vector<4x128xbf16>
    %cst_650 = arith.constant dense<0.000000e+00> : vector<8x128xf32>
    %740 = tpu.matmul %737, %739, %cst_650 {dimension_numbers = #tpu.dot_dimension_numbers<[1], [0], [0], [1], [0, 0, 1, 1], [], []>} : vector<8x4xbf16>, vector<4x128xbf16>, vector<8x128xf32> -> vector<8x128xf32>
    %741 = arith.addf %729, %740 : vector<8x128xf32>
    %c2_i32_651 = arith.constant 2 : i32
    %742 = arith.muli %c2_i32_651, %716 : i32
    %c0_i32_652 = arith.constant 0 : i32
    %743 = arith.addi %742, %c0_i32_652 : i32
    %c2_i32_653 = arith.constant 2 : i32
    %744 = arith.muli %743, %c2_i32_653 : i32
    %c0_i32_654 = arith.constant 0 : i32
    %745 = arith.addi %744, %c0_i32_654 : i32
    %c0_655 = arith.constant 0 : index
    %746 = arith.index_cast %745 : i32 to index
    %c0_656 = arith.constant 0 : index
    %c0_657 = arith.constant 0 : index
    %747 = vector.load %arg3[%c0_655, %746, %c0_656, %c0_657] : memref<1x36x9x4xbf16, #tpu.memory_space<vmem>>, vector<1x1x9x4xbf16>
    %748 = vector.shape_cast %747 : vector<1x1x9x4xbf16> to vector<9x4xbf16>
    %749 = vector.extract_strided_slice %748 {offsets = [1, 0], sizes = [8, 4], strides = [1, 1]} : vector<9x4xbf16> to vector<8x4xbf16>
    %c2_658 = arith.constant 2 : index
    %c0_659 = arith.constant 0 : index
    %c0_660 = arith.constant 0 : index
    %750 = vector.load %arg4[%c2_658, %c0_659, %c0_660] : memref<9x4x128xbf16, #tpu.memory_space<vmem>>, vector<1x4x128xbf16>
    %751 = vector.shape_cast %750 : vector<1x4x128xbf16> to vector<4x128xbf16>
    %cst_661 = arith.constant dense<0.000000e+00> : vector<8x128xf32>
    %752 = tpu.matmul %749, %751, %cst_661 {dimension_numbers = #tpu.dot_dimension_numbers<[1], [0], [0], [1], [0, 0, 1, 1], [], []>} : vector<8x4xbf16>, vector<4x128xbf16>, vector<8x128xf32> -> vector<8x128xf32>
    %753 = arith.addf %741, %752 : vector<8x128xf32>
    %c2_i32_662 = arith.constant 2 : i32
    %754 = arith.muli %c2_i32_662, %716 : i32
    %c1_i32_663 = arith.constant 1 : i32
    %755 = arith.addi %754, %c1_i32_663 : i32
    %c2_i32_664 = arith.constant 2 : i32
    %756 = arith.muli %755, %c2_i32_664 : i32
    %c0_i32_665 = arith.constant 0 : i32
    %757 = arith.addi %756, %c0_i32_665 : i32
    %c0_666 = arith.constant 0 : index
    %758 = arith.index_cast %757 : i32 to index
    %c0_667 = arith.constant 0 : index
    %c0_668 = arith.constant 0 : index
    %759 = vector.load %arg3[%c0_666, %758, %c0_667, %c0_668] : memref<1x36x9x4xbf16, #tpu.memory_space<vmem>>, vector<1x1x9x4xbf16>
    %760 = vector.shape_cast %759 : vector<1x1x9x4xbf16> to vector<9x4xbf16>
    %761 = vector.extract_strided_slice %760 {offsets = [0, 0], sizes = [8, 4], strides = [1, 1]} : vector<9x4xbf16> to vector<8x4xbf16>
    %c3_669 = arith.constant 3 : index
    %c0_670 = arith.constant 0 : index
    %c0_671 = arith.constant 0 : index
    %762 = vector.load %arg4[%c3_669, %c0_670, %c0_671] : memref<9x4x128xbf16, #tpu.memory_space<vmem>>, vector<1x4x128xbf16>
    %763 = vector.shape_cast %762 : vector<1x4x128xbf16> to vector<4x128xbf16>
    %cst_672 = arith.constant dense<0.000000e+00> : vector<8x128xf32>
    %764 = tpu.matmul %761, %763, %cst_672 {dimension_numbers = #tpu.dot_dimension_numbers<[1], [0], [0], [1], [0, 0, 1, 1], [], []>} : vector<8x4xbf16>, vector<4x128xbf16>, vector<8x128xf32> -> vector<8x128xf32>
    %765 = arith.addf %753, %764 : vector<8x128xf32>
    %c2_i32_673 = arith.constant 2 : i32
    %766 = arith.muli %c2_i32_673, %716 : i32
    %c1_i32_674 = arith.constant 1 : i32
    %767 = arith.addi %766, %c1_i32_674 : i32
    %c2_i32_675 = arith.constant 2 : i32
    %768 = arith.muli %767, %c2_i32_675 : i32
    %c1_i32_676 = arith.constant 1 : i32
    %769 = arith.addi %768, %c1_i32_676 : i32
    %c0_677 = arith.constant 0 : index
    %770 = arith.index_cast %769 : i32 to index
    %c0_678 = arith.constant 0 : index
    %c0_679 = arith.constant 0 : index
    %771 = vector.load %arg3[%c0_677, %770, %c0_678, %c0_679] : memref<1x36x9x4xbf16, #tpu.memory_space<vmem>>, vector<1x1x9x4xbf16>
    %772 = vector.shape_cast %771 : vector<1x1x9x4xbf16> to vector<9x4xbf16>
    %773 = vector.extract_strided_slice %772 {offsets = [0, 0], sizes = [8, 4], strides = [1, 1]} : vector<9x4xbf16> to vector<8x4xbf16>
    %c4_680 = arith.constant 4 : index
    %c0_681 = arith.constant 0 : index
    %c0_682 = arith.constant 0 : index
    %774 = vector.load %arg4[%c4_680, %c0_681, %c0_682] : memref<9x4x128xbf16, #tpu.memory_space<vmem>>, vector<1x4x128xbf16>
    %775 = vector.shape_cast %774 : vector<1x4x128xbf16> to vector<4x128xbf16>
    %cst_683 = arith.constant dense<0.000000e+00> : vector<8x128xf32>
    %776 = tpu.matmul %773, %775, %cst_683 {dimension_numbers = #tpu.dot_dimension_numbers<[1], [0], [0], [1], [0, 0, 1, 1], [], []>} : vector<8x4xbf16>, vector<4x128xbf16>, vector<8x128xf32> -> vector<8x128xf32>
    %777 = arith.addf %765, %776 : vector<8x128xf32>
    %c2_i32_684 = arith.constant 2 : i32
    %778 = arith.muli %c2_i32_684, %716 : i32
    %c1_i32_685 = arith.constant 1 : i32
    %779 = arith.addi %778, %c1_i32_685 : i32
    %c2_i32_686 = arith.constant 2 : i32
    %780 = arith.muli %779, %c2_i32_686 : i32
    %c0_i32_687 = arith.constant 0 : i32
    %781 = arith.addi %780, %c0_i32_687 : i32
    %c0_688 = arith.constant 0 : index
    %782 = arith.index_cast %781 : i32 to index
    %c0_689 = arith.constant 0 : index
    %c0_690 = arith.constant 0 : index
    %783 = vector.load %arg3[%c0_688, %782, %c0_689, %c0_690] : memref<1x36x9x4xbf16, #tpu.memory_space<vmem>>, vector<1x1x9x4xbf16>
    %784 = vector.shape_cast %783 : vector<1x1x9x4xbf16> to vector<9x4xbf16>
    %785 = vector.extract_strided_slice %784 {offsets = [1, 0], sizes = [8, 4], strides = [1, 1]} : vector<9x4xbf16> to vector<8x4xbf16>
    %c5_691 = arith.constant 5 : index
    %c0_692 = arith.constant 0 : index
    %c0_693 = arith.constant 0 : index
    %786 = vector.load %arg4[%c5_691, %c0_692, %c0_693] : memref<9x4x128xbf16, #tpu.memory_space<vmem>>, vector<1x4x128xbf16>
    %787 = vector.shape_cast %786 : vector<1x4x128xbf16> to vector<4x128xbf16>
    %cst_694 = arith.constant dense<0.000000e+00> : vector<8x128xf32>
    %788 = tpu.matmul %785, %787, %cst_694 {dimension_numbers = #tpu.dot_dimension_numbers<[1], [0], [0], [1], [0, 0, 1, 1], [], []>} : vector<8x4xbf16>, vector<4x128xbf16>, vector<8x128xf32> -> vector<8x128xf32>
    %789 = arith.addf %777, %788 : vector<8x128xf32>
    %c2_i32_695 = arith.constant 2 : i32
    %790 = arith.muli %c2_i32_695, %716 : i32
    %c2_i32_696 = arith.constant 2 : i32
    %791 = arith.addi %790, %c2_i32_696 : i32
    %c2_i32_697 = arith.constant 2 : i32
    %792 = arith.muli %791, %c2_i32_697 : i32
    %c0_i32_698 = arith.constant 0 : i32
    %793 = arith.addi %792, %c0_i32_698 : i32
    %c0_699 = arith.constant 0 : index
    %794 = arith.index_cast %793 : i32 to index
    %c0_700 = arith.constant 0 : index
    %c0_701 = arith.constant 0 : index
    %795 = vector.load %arg3[%c0_699, %794, %c0_700, %c0_701] : memref<1x36x9x4xbf16, #tpu.memory_space<vmem>>, vector<1x1x9x4xbf16>
    %796 = vector.shape_cast %795 : vector<1x1x9x4xbf16> to vector<9x4xbf16>
    %797 = vector.extract_strided_slice %796 {offsets = [0, 0], sizes = [8, 4], strides = [1, 1]} : vector<9x4xbf16> to vector<8x4xbf16>
    %c6_702 = arith.constant 6 : index
    %c0_703 = arith.constant 0 : index
    %c0_704 = arith.constant 0 : index
    %798 = vector.load %arg4[%c6_702, %c0_703, %c0_704] : memref<9x4x128xbf16, #tpu.memory_space<vmem>>, vector<1x4x128xbf16>
    %799 = vector.shape_cast %798 : vector<1x4x128xbf16> to vector<4x128xbf16>
    %cst_705 = arith.constant dense<0.000000e+00> : vector<8x128xf32>
    %800 = tpu.matmul %797, %799, %cst_705 {dimension_numbers = #tpu.dot_dimension_numbers<[1], [0], [0], [1], [0, 0, 1, 1], [], []>} : vector<8x4xbf16>, vector<4x128xbf16>, vector<8x128xf32> -> vector<8x128xf32>
    %801 = arith.addf %789, %800 : vector<8x128xf32>
    %c2_i32_706 = arith.constant 2 : i32
    %802 = arith.muli %c2_i32_706, %716 : i32
    %c2_i32_707 = arith.constant 2 : i32
    %803 = arith.addi %802, %c2_i32_707 : i32
    %c2_i32_708 = arith.constant 2 : i32
    %804 = arith.muli %803, %c2_i32_708 : i32
    %c1_i32_709 = arith.constant 1 : i32
    %805 = arith.addi %804, %c1_i32_709 : i32
    %c0_710 = arith.constant 0 : index
    %806 = arith.index_cast %805 : i32 to index
    %c0_711 = arith.constant 0 : index
    %c0_712 = arith.constant 0 : index
    %807 = vector.load %arg3[%c0_710, %806, %c0_711, %c0_712] : memref<1x36x9x4xbf16, #tpu.memory_space<vmem>>, vector<1x1x9x4xbf16>
    %808 = vector.shape_cast %807 : vector<1x1x9x4xbf16> to vector<9x4xbf16>
    %809 = vector.extract_strided_slice %808 {offsets = [0, 0], sizes = [8, 4], strides = [1, 1]} : vector<9x4xbf16> to vector<8x4xbf16>
    %c7_713 = arith.constant 7 : index
    %c0_714 = arith.constant 0 : index
    %c0_715 = arith.constant 0 : index
    %810 = vector.load %arg4[%c7_713, %c0_714, %c0_715] : memref<9x4x128xbf16, #tpu.memory_space<vmem>>, vector<1x4x128xbf16>
    %811 = vector.shape_cast %810 : vector<1x4x128xbf16> to vector<4x128xbf16>
    %cst_716 = arith.constant dense<0.000000e+00> : vector<8x128xf32>
    %812 = tpu.matmul %809, %811, %cst_716 {dimension_numbers = #tpu.dot_dimension_numbers<[1], [0], [0], [1], [0, 0, 1, 1], [], []>} : vector<8x4xbf16>, vector<4x128xbf16>, vector<8x128xf32> -> vector<8x128xf32>
    %813 = arith.addf %801, %812 : vector<8x128xf32>
    %c2_i32_717 = arith.constant 2 : i32
    %814 = arith.muli %c2_i32_717, %716 : i32
    %c2_i32_718 = arith.constant 2 : i32
    %815 = arith.addi %814, %c2_i32_718 : i32
    %c2_i32_719 = arith.constant 2 : i32
    %816 = arith.muli %815, %c2_i32_719 : i32
    %c0_i32_720 = arith.constant 0 : i32
    %817 = arith.addi %816, %c0_i32_720 : i32
    %c0_721 = arith.constant 0 : index
    %818 = arith.index_cast %817 : i32 to index
    %c0_722 = arith.constant 0 : index
    %c0_723 = arith.constant 0 : index
    %819 = vector.load %arg3[%c0_721, %818, %c0_722, %c0_723] : memref<1x36x9x4xbf16, #tpu.memory_space<vmem>>, vector<1x1x9x4xbf16>
    %820 = vector.shape_cast %819 : vector<1x1x9x4xbf16> to vector<9x4xbf16>
    %821 = vector.extract_strided_slice %820 {offsets = [1, 0], sizes = [8, 4], strides = [1, 1]} : vector<9x4xbf16> to vector<8x4xbf16>
    %c8_724 = arith.constant 8 : index
    %c0_725 = arith.constant 0 : index
    %c0_726 = arith.constant 0 : index
    %822 = vector.load %arg4[%c8_724, %c0_725, %c0_726] : memref<9x4x128xbf16, #tpu.memory_space<vmem>>, vector<1x4x128xbf16>
    %823 = vector.shape_cast %822 : vector<1x4x128xbf16> to vector<4x128xbf16>
    %cst_727 = arith.constant dense<0.000000e+00> : vector<8x128xf32>
    %824 = tpu.matmul %821, %823, %cst_727 {dimension_numbers = #tpu.dot_dimension_numbers<[1], [0], [0], [1], [0, 0, 1, 1], [], []>} : vector<8x4xbf16>, vector<4x128xbf16>, vector<8x128xf32> -> vector<8x128xf32>
    %825 = arith.addf %813, %824 : vector<8x128xf32>
    %826 = vector.broadcast %0 : vector<1x128xf32> to vector<8x128xf32>
    %827 = arith.addf %825, %826 : vector<8x128xf32>
    %cst_728 = arith.constant 0.000000e+00 : f32
    %828 = vector.broadcast %cst_728 : f32 to vector<8x128xf32>
    %829 = arith.maximumf %827, %828 : vector<8x128xf32>
    %830 = arith.truncf %829 : vector<8x128xf32> to vector<8x128xbf16>
    %c0_729 = arith.constant 0 : index
    %c6_730 = arith.constant 6 : index
    %c0_731 = arith.constant 0 : index
    %c0_732 = arith.constant 0 : index
    %831 = vector.load %arg6[%c0_729, %c6_730, %c0_731, %c0_732] : memref<1x8x8x128xbf16, #tpu.memory_space<vmem>>, vector<1x1x8x128xbf16>
    %832 = vector.shape_cast %831 : vector<1x1x8x128xbf16> to vector<8x128xbf16>
    %833 = vector.shape_cast %830 : vector<8x128xbf16> to vector<1x1x8x128xbf16>
    tpu.vector_store %arg6[%c0_729, %c6_730, %c0_731, %c0_732], %833 {strides = array<i32>} : memref<1x8x8x128xbf16, #tpu.memory_space<vmem>>, vector<1x1x8x128xbf16>,
    %c8_i32_733 = arith.constant 8 : i32
    %834 = arith.muli %arg2, %c8_i32_733 : i32
    %c7_i32 = arith.constant 7 : i32
    %835 = arith.addi %834, %c7_i32 : i32
    %cst_734 = arith.constant 0.000000e+00 : f32
    %836 = vector.broadcast %cst_734 : f32 to vector<8x128xf32>
    %c2_i32_735 = arith.constant 2 : i32
    %837 = arith.muli %c2_i32_735, %835 : i32
    %c0_i32_736 = arith.constant 0 : i32
    %838 = arith.addi %837, %c0_i32_736 : i32
    %c2_i32_737 = arith.constant 2 : i32
    %839 = arith.muli %838, %c2_i32_737 : i32
    %c0_i32_738 = arith.constant 0 : i32
    %840 = arith.addi %839, %c0_i32_738 : i32
    %c0_739 = arith.constant 0 : index
    %841 = arith.index_cast %840 : i32 to index
    %c0_740 = arith.constant 0 : index
    %c0_741 = arith.constant 0 : index
    %842 = vector.load %arg3[%c0_739, %841, %c0_740, %c0_741] : memref<1x36x9x4xbf16, #tpu.memory_space<vmem>>, vector<1x1x9x4xbf16>
    %843 = vector.shape_cast %842 : vector<1x1x9x4xbf16> to vector<9x4xbf16>
    %844 = vector.extract_strided_slice %843 {offsets = [0, 0], sizes = [8, 4], strides = [1, 1]} : vector<9x4xbf16> to vector<8x4xbf16>
    %c0_742 = arith.constant 0 : index
    %c0_743 = arith.constant 0 : index
    %c0_744 = arith.constant 0 : index
    %845 = vector.load %arg4[%c0_742, %c0_743, %c0_744] : memref<9x4x128xbf16, #tpu.memory_space<vmem>>, vector<1x4x128xbf16>
    %846 = vector.shape_cast %845 : vector<1x4x128xbf16> to vector<4x128xbf16>
    %cst_745 = arith.constant dense<0.000000e+00> : vector<8x128xf32>
    %847 = tpu.matmul %844, %846, %cst_745 {dimension_numbers = #tpu.dot_dimension_numbers<[1], [0], [0], [1], [0, 0, 1, 1], [], []>} : vector<8x4xbf16>, vector<4x128xbf16>, vector<8x128xf32> -> vector<8x128xf32>
    %848 = arith.addf %836, %847 : vector<8x128xf32>
    %c2_i32_746 = arith.constant 2 : i32
    %849 = arith.muli %c2_i32_746, %835 : i32
    %c0_i32_747 = arith.constant 0 : i32
    %850 = arith.addi %849, %c0_i32_747 : i32
    %c2_i32_748 = arith.constant 2 : i32
    %851 = arith.muli %850, %c2_i32_748 : i32
    %c1_i32_749 = arith.constant 1 : i32
    %852 = arith.addi %851, %c1_i32_749 : i32
    %c0_750 = arith.constant 0 : index
    %853 = arith.index_cast %852 : i32 to index
    %c0_751 = arith.constant 0 : index
    %c0_752 = arith.constant 0 : index
    %854 = vector.load %arg3[%c0_750, %853, %c0_751, %c0_752] : memref<1x36x9x4xbf16, #tpu.memory_space<vmem>>, vector<1x1x9x4xbf16>
    %855 = vector.shape_cast %854 : vector<1x1x9x4xbf16> to vector<9x4xbf16>
    %856 = vector.extract_strided_slice %855 {offsets = [0, 0], sizes = [8, 4], strides = [1, 1]} : vector<9x4xbf16> to vector<8x4xbf16>
    %c1_753 = arith.constant 1 : index
    %c0_754 = arith.constant 0 : index
    %c0_755 = arith.constant 0 : index
    %857 = vector.load %arg4[%c1_753, %c0_754, %c0_755] : memref<9x4x128xbf16, #tpu.memory_space<vmem>>, vector<1x4x128xbf16>
    %858 = vector.shape_cast %857 : vector<1x4x128xbf16> to vector<4x128xbf16>
    %cst_756 = arith.constant dense<0.000000e+00> : vector<8x128xf32>
    %859 = tpu.matmul %856, %858, %cst_756 {dimension_numbers = #tpu.dot_dimension_numbers<[1], [0], [0], [1], [0, 0, 1, 1], [], []>} : vector<8x4xbf16>, vector<4x128xbf16>, vector<8x128xf32> -> vector<8x128xf32>
    %860 = arith.addf %848, %859 : vector<8x128xf32>
    %c2_i32_757 = arith.constant 2 : i32
    %861 = arith.muli %c2_i32_757, %835 : i32
    %c0_i32_758 = arith.constant 0 : i32
    %862 = arith.addi %861, %c0_i32_758 : i32
    %c2_i32_759 = arith.constant 2 : i32
    %863 = arith.muli %862, %c2_i32_759 : i32
    %c0_i32_760 = arith.constant 0 : i32
    %864 = arith.addi %863, %c0_i32_760 : i32
    %c0_761 = arith.constant 0 : index
    %865 = arith.index_cast %864 : i32 to index
    %c0_762 = arith.constant 0 : index
    %c0_763 = arith.constant 0 : index
    %866 = vector.load %arg3[%c0_761, %865, %c0_762, %c0_763] : memref<1x36x9x4xbf16, #tpu.memory_space<vmem>>, vector<1x1x9x4xbf16>
    %867 = vector.shape_cast %866 : vector<1x1x9x4xbf16> to vector<9x4xbf16>
    %868 = vector.extract_strided_slice %867 {offsets = [1, 0], sizes = [8, 4], strides = [1, 1]} : vector<9x4xbf16> to vector<8x4xbf16>
    %c2_764 = arith.constant 2 : index
    %c0_765 = arith.constant 0 : index
    %c0_766 = arith.constant 0 : index
    %869 = vector.load %arg4[%c2_764, %c0_765, %c0_766] : memref<9x4x128xbf16, #tpu.memory_space<vmem>>, vector<1x4x128xbf16>
    %870 = vector.shape_cast %869 : vector<1x4x128xbf16> to vector<4x128xbf16>
    %cst_767 = arith.constant dense<0.000000e+00> : vector<8x128xf32>
    %871 = tpu.matmul %868, %870, %cst_767 {dimension_numbers = #tpu.dot_dimension_numbers<[1], [0], [0], [1], [0, 0, 1, 1], [], []>} : vector<8x4xbf16>, vector<4x128xbf16>, vector<8x128xf32> -> vector<8x128xf32>
    %872 = arith.addf %860, %871 : vector<8x128xf32>
    %c2_i32_768 = arith.constant 2 : i32
    %873 = arith.muli %c2_i32_768, %835 : i32
    %c1_i32_769 = arith.constant 1 : i32
    %874 = arith.addi %873, %c1_i32_769 : i32
    %c2_i32_770 = arith.constant 2 : i32
    %875 = arith.muli %874, %c2_i32_770 : i32
    %c0_i32_771 = arith.constant 0 : i32
    %876 = arith.addi %875, %c0_i32_771 : i32
    %c0_772 = arith.constant 0 : index
    %877 = arith.index_cast %876 : i32 to index
    %c0_773 = arith.constant 0 : index
    %c0_774 = arith.constant 0 : index
    %878 = vector.load %arg3[%c0_772, %877, %c0_773, %c0_774] : memref<1x36x9x4xbf16, #tpu.memory_space<vmem>>, vector<1x1x9x4xbf16>
    %879 = vector.shape_cast %878 : vector<1x1x9x4xbf16> to vector<9x4xbf16>
    %880 = vector.extract_strided_slice %879 {offsets = [0, 0], sizes = [8, 4], strides = [1, 1]} : vector<9x4xbf16> to vector<8x4xbf16>
    %c3_775 = arith.constant 3 : index
    %c0_776 = arith.constant 0 : index
    %c0_777 = arith.constant 0 : index
    %881 = vector.load %arg4[%c3_775, %c0_776, %c0_777] : memref<9x4x128xbf16, #tpu.memory_space<vmem>>, vector<1x4x128xbf16>
    %882 = vector.shape_cast %881 : vector<1x4x128xbf16> to vector<4x128xbf16>
    %cst_778 = arith.constant dense<0.000000e+00> : vector<8x128xf32>
    %883 = tpu.matmul %880, %882, %cst_778 {dimension_numbers = #tpu.dot_dimension_numbers<[1], [0], [0], [1], [0, 0, 1, 1], [], []>} : vector<8x4xbf16>, vector<4x128xbf16>, vector<8x128xf32> -> vector<8x128xf32>
    %884 = arith.addf %872, %883 : vector<8x128xf32>
    %c2_i32_779 = arith.constant 2 : i32
    %885 = arith.muli %c2_i32_779, %835 : i32
    %c1_i32_780 = arith.constant 1 : i32
    %886 = arith.addi %885, %c1_i32_780 : i32
    %c2_i32_781 = arith.constant 2 : i32
    %887 = arith.muli %886, %c2_i32_781 : i32
    %c1_i32_782 = arith.constant 1 : i32
    %888 = arith.addi %887, %c1_i32_782 : i32
    %c0_783 = arith.constant 0 : index
    %889 = arith.index_cast %888 : i32 to index
    %c0_784 = arith.constant 0 : index
    %c0_785 = arith.constant 0 : index
    %890 = vector.load %arg3[%c0_783, %889, %c0_784, %c0_785] : memref<1x36x9x4xbf16, #tpu.memory_space<vmem>>, vector<1x1x9x4xbf16>
    %891 = vector.shape_cast %890 : vector<1x1x9x4xbf16> to vector<9x4xbf16>
    %892 = vector.extract_strided_slice %891 {offsets = [0, 0], sizes = [8, 4], strides = [1, 1]} : vector<9x4xbf16> to vector<8x4xbf16>
    %c4_786 = arith.constant 4 : index
    %c0_787 = arith.constant 0 : index
    %c0_788 = arith.constant 0 : index
    %893 = vector.load %arg4[%c4_786, %c0_787, %c0_788] : memref<9x4x128xbf16, #tpu.memory_space<vmem>>, vector<1x4x128xbf16>
    %894 = vector.shape_cast %893 : vector<1x4x128xbf16> to vector<4x128xbf16>
    %cst_789 = arith.constant dense<0.000000e+00> : vector<8x128xf32>
    %895 = tpu.matmul %892, %894, %cst_789 {dimension_numbers = #tpu.dot_dimension_numbers<[1], [0], [0], [1], [0, 0, 1, 1], [], []>} : vector<8x4xbf16>, vector<4x128xbf16>, vector<8x128xf32> -> vector<8x128xf32>
    %896 = arith.addf %884, %895 : vector<8x128xf32>
    %c2_i32_790 = arith.constant 2 : i32
    %897 = arith.muli %c2_i32_790, %835 : i32
    %c1_i32_791 = arith.constant 1 : i32
    %898 = arith.addi %897, %c1_i32_791 : i32
    %c2_i32_792 = arith.constant 2 : i32
    %899 = arith.muli %898, %c2_i32_792 : i32
    %c0_i32_793 = arith.constant 0 : i32
    %900 = arith.addi %899, %c0_i32_793 : i32
    %c0_794 = arith.constant 0 : index
    %901 = arith.index_cast %900 : i32 to index
    %c0_795 = arith.constant 0 : index
    %c0_796 = arith.constant 0 : index
    %902 = vector.load %arg3[%c0_794, %901, %c0_795, %c0_796] : memref<1x36x9x4xbf16, #tpu.memory_space<vmem>>, vector<1x1x9x4xbf16>
    %903 = vector.shape_cast %902 : vector<1x1x9x4xbf16> to vector<9x4xbf16>
    %904 = vector.extract_strided_slice %903 {offsets = [1, 0], sizes = [8, 4], strides = [1, 1]} : vector<9x4xbf16> to vector<8x4xbf16>
    %c5_797 = arith.constant 5 : index
    %c0_798 = arith.constant 0 : index
    %c0_799 = arith.constant 0 : index
    %905 = vector.load %arg4[%c5_797, %c0_798, %c0_799] : memref<9x4x128xbf16, #tpu.memory_space<vmem>>, vector<1x4x128xbf16>
    %906 = vector.shape_cast %905 : vector<1x4x128xbf16> to vector<4x128xbf16>
    %cst_800 = arith.constant dense<0.000000e+00> : vector<8x128xf32>
    %907 = tpu.matmul %904, %906, %cst_800 {dimension_numbers = #tpu.dot_dimension_numbers<[1], [0], [0], [1], [0, 0, 1, 1], [], []>} : vector<8x4xbf16>, vector<4x128xbf16>, vector<8x128xf32> -> vector<8x128xf32>
    %908 = arith.addf %896, %907 : vector<8x128xf32>
    %c2_i32_801 = arith.constant 2 : i32
    %909 = arith.muli %c2_i32_801, %835 : i32
    %c2_i32_802 = arith.constant 2 : i32
    %910 = arith.addi %909, %c2_i32_802 : i32
    %c2_i32_803 = arith.constant 2 : i32
    %911 = arith.muli %910, %c2_i32_803 : i32
    %c0_i32_804 = arith.constant 0 : i32
    %912 = arith.addi %911, %c0_i32_804 : i32
    %c0_805 = arith.constant 0 : index
    %913 = arith.index_cast %912 : i32 to index
    %c0_806 = arith.constant 0 : index
    %c0_807 = arith.constant 0 : index
    %914 = vector.load %arg3[%c0_805, %913, %c0_806, %c0_807] : memref<1x36x9x4xbf16, #tpu.memory_space<vmem>>, vector<1x1x9x4xbf16>
    %915 = vector.shape_cast %914 : vector<1x1x9x4xbf16> to vector<9x4xbf16>
    %916 = vector.extract_strided_slice %915 {offsets = [0, 0], sizes = [8, 4], strides = [1, 1]} : vector<9x4xbf16> to vector<8x4xbf16>
    %c6_808 = arith.constant 6 : index
    %c0_809 = arith.constant 0 : index
    %c0_810 = arith.constant 0 : index
    %917 = vector.load %arg4[%c6_808, %c0_809, %c0_810] : memref<9x4x128xbf16, #tpu.memory_space<vmem>>, vector<1x4x128xbf16>
    %918 = vector.shape_cast %917 : vector<1x4x128xbf16> to vector<4x128xbf16>
    %cst_811 = arith.constant dense<0.000000e+00> : vector<8x128xf32>
    %919 = tpu.matmul %916, %918, %cst_811 {dimension_numbers = #tpu.dot_dimension_numbers<[1], [0], [0], [1], [0, 0, 1, 1], [], []>} : vector<8x4xbf16>, vector<4x128xbf16>, vector<8x128xf32> -> vector<8x128xf32>
    %920 = arith.addf %908, %919 : vector<8x128xf32>
    %c2_i32_812 = arith.constant 2 : i32
    %921 = arith.muli %c2_i32_812, %835 : i32
    %c2_i32_813 = arith.constant 2 : i32
    %922 = arith.addi %921, %c2_i32_813 : i32
    %c2_i32_814 = arith.constant 2 : i32
    %923 = arith.muli %922, %c2_i32_814 : i32
    %c1_i32_815 = arith.constant 1 : i32
    %924 = arith.addi %923, %c1_i32_815 : i32
    %c0_816 = arith.constant 0 : index
    %925 = arith.index_cast %924 : i32 to index
    %c0_817 = arith.constant 0 : index
    %c0_818 = arith.constant 0 : index
    %926 = vector.load %arg3[%c0_816, %925, %c0_817, %c0_818] : memref<1x36x9x4xbf16, #tpu.memory_space<vmem>>, vector<1x1x9x4xbf16>
    %927 = vector.shape_cast %926 : vector<1x1x9x4xbf16> to vector<9x4xbf16>
    %928 = vector.extract_strided_slice %927 {offsets = [0, 0], sizes = [8, 4], strides = [1, 1]} : vector<9x4xbf16> to vector<8x4xbf16>
    %c7_819 = arith.constant 7 : index
    %c0_820 = arith.constant 0 : index
    %c0_821 = arith.constant 0 : index
    %929 = vector.load %arg4[%c7_819, %c0_820, %c0_821] : memref<9x4x128xbf16, #tpu.memory_space<vmem>>, vector<1x4x128xbf16>
    %930 = vector.shape_cast %929 : vector<1x4x128xbf16> to vector<4x128xbf16>
    %cst_822 = arith.constant dense<0.000000e+00> : vector<8x128xf32>
    %931 = tpu.matmul %928, %930, %cst_822 {dimension_numbers = #tpu.dot_dimension_numbers<[1], [0], [0], [1], [0, 0, 1, 1], [], []>} : vector<8x4xbf16>, vector<4x128xbf16>, vector<8x128xf32> -> vector<8x128xf32>
    %932 = arith.addf %920, %931 : vector<8x128xf32>
    %c2_i32_823 = arith.constant 2 : i32
    %933 = arith.muli %c2_i32_823, %835 : i32
    %c2_i32_824 = arith.constant 2 : i32
    %934 = arith.addi %933, %c2_i32_824 : i32
    %c2_i32_825 = arith.constant 2 : i32
    %935 = arith.muli %934, %c2_i32_825 : i32
    %c0_i32_826 = arith.constant 0 : i32
    %936 = arith.addi %935, %c0_i32_826 : i32
    %c0_827 = arith.constant 0 : index
    %937 = arith.index_cast %936 : i32 to index
    %c0_828 = arith.constant 0 : index
    %c0_829 = arith.constant 0 : index
    %938 = vector.load %arg3[%c0_827, %937, %c0_828, %c0_829] : memref<1x36x9x4xbf16, #tpu.memory_space<vmem>>, vector<1x1x9x4xbf16>
    %939 = vector.shape_cast %938 : vector<1x1x9x4xbf16> to vector<9x4xbf16>
    %940 = vector.extract_strided_slice %939 {offsets = [1, 0], sizes = [8, 4], strides = [1, 1]} : vector<9x4xbf16> to vector<8x4xbf16>
    %c8_830 = arith.constant 8 : index
    %c0_831 = arith.constant 0 : index
    %c0_832 = arith.constant 0 : index
    %941 = vector.load %arg4[%c8_830, %c0_831, %c0_832] : memref<9x4x128xbf16, #tpu.memory_space<vmem>>, vector<1x4x128xbf16>
    %942 = vector.shape_cast %941 : vector<1x4x128xbf16> to vector<4x128xbf16>
    %cst_833 = arith.constant dense<0.000000e+00> : vector<8x128xf32>
    %943 = tpu.matmul %940, %942, %cst_833 {dimension_numbers = #tpu.dot_dimension_numbers<[1], [0], [0], [1], [0, 0, 1, 1], [], []>} : vector<8x4xbf16>, vector<4x128xbf16>, vector<8x128xf32> -> vector<8x128xf32>
    %944 = arith.addf %932, %943 : vector<8x128xf32>
    %945 = vector.broadcast %0 : vector<1x128xf32> to vector<8x128xf32>
    %946 = arith.addf %944, %945 : vector<8x128xf32>
    %cst_834 = arith.constant 0.000000e+00 : f32
    %947 = vector.broadcast %cst_834 : f32 to vector<8x128xf32>
    %948 = arith.maximumf %946, %947 : vector<8x128xf32>
    %949 = arith.truncf %948 : vector<8x128xf32> to vector<8x128xbf16>
    %c0_835 = arith.constant 0 : index
    %c7_836 = arith.constant 7 : index
    %c0_837 = arith.constant 0 : index
    %c0_838 = arith.constant 0 : index
    %950 = vector.load %arg6[%c0_835, %c7_836, %c0_837, %c0_838] : memref<1x8x8x128xbf16, #tpu.memory_space<vmem>>, vector<1x1x8x128xbf16>
    %951 = vector.shape_cast %950 : vector<1x1x8x128xbf16> to vector<8x128xbf16>
    %952 = vector.shape_cast %949 : vector<8x128xbf16> to vector<1x1x8x128xbf16>
    tpu.vector_store %arg6[%c0_835, %c7_836, %c0_837, %c0_838], %952 {strides = array<i32>} : memref<1x8x8x128xbf16, #tpu.memory_space<vmem>>, vector<1x1x8x128xbf16>,
    return
  }
  func.func @transform_0(%arg0: i32, %arg1: i32, %arg2: i32) -> (i32, i32, i32, i32) {
    %c0_i32 = arith.constant 0 : i32
    %c0_i32_0 = arith.constant 0 : i32
    %c0_i32_1 = arith.constant 0 : i32
    %c0_i32_2 = arith.constant 0 : i32
    return %arg0, %c0_i32, %c0_i32_0, %c0_i32_1 : i32, i32, i32, i32
  }
  func.func @transform_1(%arg0: i32, %arg1: i32, %arg2: i32) -> (i32, i32, i32) {
    %c0_i32 = arith.constant 0 : i32
    %c0_i32_0 = arith.constant 0 : i32
    %c0_i32_1 = arith.constant 0 : i32
    return %c0_i32, %c0_i32_0, %arg1 : i32, i32, i32
  }
  func.func @transform_2(%arg0: i32, %arg1: i32, %arg2: i32) -> (i32, i32) {
    %c0_i32 = arith.constant 0 : i32
    %c0_i32_0 = arith.constant 0 : i32
    return %c0_i32, %arg1 : i32, i32
  }
  func.func @transform_3(%arg0: i32, %arg1: i32, %arg2: i32) -> (i32, i32, i32, i32) {
    %c0_i32 = arith.constant 0 : i32
    %c0_i32_0 = arith.constant 0 : i32
    return %arg0, %arg2, %c0_i32, %arg1 : i32, i32, i32, i32
  }
}

module attributes {stable_mosaic.version = 11 : i64} {
  func.func @_mm_kernel(%arg0: i32, %arg1: i32, %arg2: memref<32x128xbf16, #tpu.memory_space<vmem>>, %arg3: memref<128x128xbf16, #tpu.memory_space<vmem>>, %arg4: memref<1x128xf32, #tpu.memory_space<vmem>>, %arg5: memref<32x128xbf16, #tpu.memory_space<vmem>>) attributes {dimension_semantics = [#tpu.dimension_semantics<parallel>, #tpu.dimension_semantics<parallel>], iteration_bounds = array<i64: 1, 1>, scalar_prefetch = 0 : i64, scratch_operands = 0 : i64, tpu.core_type = #tpu.core_type<tc>, window_params = [{transform_indices = @transform_0, window_bounds = array<i64: 32, 128>}, {transform_indices = @transform_1, window_bounds = array<i64: 128, 128>}, {transform_indices = @transform_2, window_bounds = array<i64: 1, 128>}, {transform_indices = @transform_3, window_bounds = array<i64: 32, 128>}]} {
    %c0 = arith.constant 0 : index
    %c0_0 = arith.constant 0 : index
    %0 = vector.load %arg2[%c0, %c0_0] : memref<32x128xbf16, #tpu.memory_space<vmem>>, vector<32x128xbf16>
    %c0_1 = arith.constant 0 : index
    %c0_2 = arith.constant 0 : index
    %1 = vector.load %arg3[%c0_1, %c0_2] : memref<128x128xbf16, #tpu.memory_space<vmem>>, vector<128x128xbf16>
    %cst = arith.constant dense<0.000000e+00> : vector<32x128xf32>
    %2 = tpu.matmul %0, %1, %cst {dimension_numbers = #tpu.dot_dimension_numbers<[1], [0], [0], [1], [0, 0, 1, 1], [], []>} : vector<32x128xbf16>, vector<128x128xbf16>, vector<32x128xf32> -> vector<32x128xf32>
    %c0_3 = arith.constant 0 : index
    %c0_4 = arith.constant 0 : index
    %3 = vector.load %arg4[%c0_3, %c0_4] : memref<1x128xf32, #tpu.memory_space<vmem>>, vector<1x128xf32>
    %4 = vector.broadcast %3 : vector<1x128xf32> to vector<32x128xf32>
    %5 = arith.addf %2, %4 : vector<32x128xf32>
    %cst_5 = arith.constant 0.000000e+00 : f32
    %6 = vector.broadcast %cst_5 : f32 to vector<32x128xf32>
    %7 = arith.maximumf %5, %6 : vector<32x128xf32>
    %8 = arith.truncf %7 : vector<32x128xf32> to vector<32x128xbf16>
    %c0_6 = arith.constant 0 : index
    %c0_7 = arith.constant 0 : index
    %9 = vector.load %arg5[%c0_6, %c0_7] : memref<32x128xbf16, #tpu.memory_space<vmem>>, vector<32x128xbf16>
    tpu.vector_store %arg5[%c0_6, %c0_7], %8 {strides = array<i32>} : memref<32x128xbf16, #tpu.memory_space<vmem>>, vector<32x128xbf16>,
    return
  }
  func.func @transform_0(%arg0: i32, %arg1: i32) -> (i32, i32) {
    %c0_i32 = arith.constant 0 : i32
    %c0_i32_0 = arith.constant 0 : i32
    return %arg0, %c0_i32 : i32, i32
  }
  func.func @transform_1(%arg0: i32, %arg1: i32) -> (i32, i32) {
    %c0_i32 = arith.constant 0 : i32
    %c0_i32_0 = arith.constant 0 : i32
    return %c0_i32, %arg1 : i32, i32
  }
  func.func @transform_2(%arg0: i32, %arg1: i32) -> (i32, i32) {
    %c0_i32 = arith.constant 0 : i32
    %c0_i32_0 = arith.constant 0 : i32
    return %c0_i32, %arg1 : i32, i32
  }
  func.func @transform_3(%arg0: i32, %arg1: i32) -> (i32, i32) {
    %c0_i32 = arith.constant 0 : i32
    return %arg0, %arg1 : i32, i32
  }
}

module attributes {stable_mosaic.version = 11 : i64} {
  func.func @_conv_kernel(%arg0: i32, %arg1: i32, %arg2: i32, %arg3: memref<1x20x5x128xbf16, #tpu.memory_space<vmem>>, %arg4: memref<9x128x128xbf16, #tpu.memory_space<vmem>>, %arg5: memref<1x128xf32, #tpu.memory_space<vmem>>, %arg6: memref<1x4x4x128xbf16, #tpu.memory_space<vmem>>) attributes {dimension_semantics = [#tpu.dimension_semantics<parallel>, #tpu.dimension_semantics<parallel>, #tpu.dimension_semantics<parallel>], iteration_bounds = array<i64: 2, 1, 1>, scalar_prefetch = 0 : i64, scratch_operands = 0 : i64, tpu.core_type = #tpu.core_type<tc>, window_params = [{transform_indices = @transform_0, window_bounds = array<i64: 1, 20, 5, 128>}, {transform_indices = @transform_1, window_bounds = array<i64: 9, 128, 128>}, {transform_indices = @transform_2, window_bounds = array<i64: 1, 128>}, {transform_indices = @transform_3, window_bounds = array<i64: 1, 4, 4, 128>}]} {
    %c0 = arith.constant 0 : index
    %c0_0 = arith.constant 0 : index
    %0 = vector.load %arg5[%c0, %c0_0] : memref<1x128xf32, #tpu.memory_space<vmem>>, vector<1x128xf32>
    %c4_i32 = arith.constant 4 : i32
    %1 = arith.muli %arg2, %c4_i32 : i32
    %c0_i32 = arith.constant 0 : i32
    %2 = arith.addi %1, %c0_i32 : i32
    %cst = arith.constant 0.000000e+00 : f32
    %3 = vector.broadcast %cst : f32 to vector<4x128xf32>
    %c2_i32 = arith.constant 2 : i32
    %4 = arith.muli %c2_i32, %2 : i32
    %c0_i32_1 = arith.constant 0 : i32
    %5 = arith.addi %4, %c0_i32_1 : i32
    %c2_i32_2 = arith.constant 2 : i32
    %6 = arith.muli %5, %c2_i32_2 : i32
    %c0_i32_3 = arith.constant 0 : i32
    %7 = arith.addi %6, %c0_i32_3 : i32
    %c0_4 = arith.constant 0 : index
    %8 = arith.index_cast %7 : i32 to index
    %c0_5 = arith.constant 0 : index
    %c0_6 = arith.constant 0 : index
    %9 = vector.load %arg3[%c0_4, %8, %c0_5, %c0_6] : memref<1x20x5x128xbf16, #tpu.memory_space<vmem>>, vector<1x1x5x128xbf16>
    %10 = vector.shape_cast %9 : vector<1x1x5x128xbf16> to vector<5x128xbf16>
    %11 = vector.extract_strided_slice %10 {offsets = [0, 0], sizes = [4, 128], strides = [1, 1]} : vector<5x128xbf16> to vector<4x128xbf16>
    %c0_7 = arith.constant 0 : index
    %c0_8 = arith.constant 0 : index
    %c0_9 = arith.constant 0 : index
    %12 = vector.load %arg4[%c0_7, %c0_8, %c0_9] : memref<9x128x128xbf16, #tpu.memory_space<vmem>>, vector<1x128x128xbf16>
    %13 = vector.shape_cast %12 : vector<1x128x128xbf16> to vector<128x128xbf16>
    %cst_10 = arith.constant dense<0.000000e+00> : vector<4x128xf32>
    %14 = tpu.matmul %11, %13, %cst_10 {dimension_numbers = #tpu.dot_dimension_numbers<[1], [0], [0], [1], [0, 0, 1, 1], [], []>} : vector<4x128xbf16>, vector<128x128xbf16>, vector<4x128xf32> -> vector<4x128xf32>
    %15 = arith.addf %3, %14 : vector<4x128xf32>
    %c2_i32_11 = arith.constant 2 : i32
    %16 = arith.muli %c2_i32_11, %2 : i32
    %c0_i32_12 = arith.constant 0 : i32
    %17 = arith.addi %16, %c0_i32_12 : i32
    %c2_i32_13 = arith.constant 2 : i32
    %18 = arith.muli %17, %c2_i32_13 : i32
    %c1_i32 = arith.constant 1 : i32
    %19 = arith.addi %18, %c1_i32 : i32
    %c0_14 = arith.constant 0 : index
    %20 = arith.index_cast %19 : i32 to index
    %c0_15 = arith.constant 0 : index
    %c0_16 = arith.constant 0 : index
    %21 = vector.load %arg3[%c0_14, %20, %c0_15, %c0_16] : memref<1x20x5x128xbf16, #tpu.memory_space<vmem>>, vector<1x1x5x128xbf16>
    %22 = vector.shape_cast %21 : vector<1x1x5x128xbf16> to vector<5x128xbf16>
    %23 = vector.extract_strided_slice %22 {offsets = [0, 0], sizes = [4, 128], strides = [1, 1]} : vector<5x128xbf16> to vector<4x128xbf16>
    %c1 = arith.constant 1 : index
    %c0_17 = arith.constant 0 : index
    %c0_18 = arith.constant 0 : index
    %24 = vector.load %arg4[%c1, %c0_17, %c0_18] : memref<9x128x128xbf16, #tpu.memory_space<vmem>>, vector<1x128x128xbf16>
    %25 = vector.shape_cast %24 : vector<1x128x128xbf16> to vector<128x128xbf16>
    %cst_19 = arith.constant dense<0.000000e+00> : vector<4x128xf32>
    %26 = tpu.matmul %23, %25, %cst_19 {dimension_numbers = #tpu.dot_dimension_numbers<[1], [0], [0], [1], [0, 0, 1, 1], [], []>} : vector<4x128xbf16>, vector<128x128xbf16>, vector<4x128xf32> -> vector<4x128xf32>
    %27 = arith.addf %15, %26 : vector<4x128xf32>
    %c2_i32_20 = arith.constant 2 : i32
    %28 = arith.muli %c2_i32_20, %2 : i32
    %c0_i32_21 = arith.constant 0 : i32
    %29 = arith.addi %28, %c0_i32_21 : i32
    %c2_i32_22 = arith.constant 2 : i32
    %30 = arith.muli %29, %c2_i32_22 : i32
    %c0_i32_23 = arith.constant 0 : i32
    %31 = arith.addi %30, %c0_i32_23 : i32
    %c0_24 = arith.constant 0 : index
    %32 = arith.index_cast %31 : i32 to index
    %c0_25 = arith.constant 0 : index
    %c0_26 = arith.constant 0 : index
    %33 = vector.load %arg3[%c0_24, %32, %c0_25, %c0_26] : memref<1x20x5x128xbf16, #tpu.memory_space<vmem>>, vector<1x1x5x128xbf16>
    %34 = vector.shape_cast %33 : vector<1x1x5x128xbf16> to vector<5x128xbf16>
    %35 = vector.extract_strided_slice %34 {offsets = [1, 0], sizes = [4, 128], strides = [1, 1]} : vector<5x128xbf16> to vector<4x128xbf16>
    %c2 = arith.constant 2 : index
    %c0_27 = arith.constant 0 : index
    %c0_28 = arith.constant 0 : index
    %36 = vector.load %arg4[%c2, %c0_27, %c0_28] : memref<9x128x128xbf16, #tpu.memory_space<vmem>>, vector<1x128x128xbf16>
    %37 = vector.shape_cast %36 : vector<1x128x128xbf16> to vector<128x128xbf16>
    %cst_29 = arith.constant dense<0.000000e+00> : vector<4x128xf32>
    %38 = tpu.matmul %35, %37, %cst_29 {dimension_numbers = #tpu.dot_dimension_numbers<[1], [0], [0], [1], [0, 0, 1, 1], [], []>} : vector<4x128xbf16>, vector<128x128xbf16>, vector<4x128xf32> -> vector<4x128xf32>
    %39 = arith.addf %27, %38 : vector<4x128xf32>
    %c2_i32_30 = arith.constant 2 : i32
    %40 = arith.muli %c2_i32_30, %2 : i32
    %c1_i32_31 = arith.constant 1 : i32
    %41 = arith.addi %40, %c1_i32_31 : i32
    %c2_i32_32 = arith.constant 2 : i32
    %42 = arith.muli %41, %c2_i32_32 : i32
    %c0_i32_33 = arith.constant 0 : i32
    %43 = arith.addi %42, %c0_i32_33 : i32
    %c0_34 = arith.constant 0 : index
    %44 = arith.index_cast %43 : i32 to index
    %c0_35 = arith.constant 0 : index
    %c0_36 = arith.constant 0 : index
    %45 = vector.load %arg3[%c0_34, %44, %c0_35, %c0_36] : memref<1x20x5x128xbf16, #tpu.memory_space<vmem>>, vector<1x1x5x128xbf16>
    %46 = vector.shape_cast %45 : vector<1x1x5x128xbf16> to vector<5x128xbf16>
    %47 = vector.extract_strided_slice %46 {offsets = [0, 0], sizes = [4, 128], strides = [1, 1]} : vector<5x128xbf16> to vector<4x128xbf16>
    %c3 = arith.constant 3 : index
    %c0_37 = arith.constant 0 : index
    %c0_38 = arith.constant 0 : index
    %48 = vector.load %arg4[%c3, %c0_37, %c0_38] : memref<9x128x128xbf16, #tpu.memory_space<vmem>>, vector<1x128x128xbf16>
    %49 = vector.shape_cast %48 : vector<1x128x128xbf16> to vector<128x128xbf16>
    %cst_39 = arith.constant dense<0.000000e+00> : vector<4x128xf32>
    %50 = tpu.matmul %47, %49, %cst_39 {dimension_numbers = #tpu.dot_dimension_numbers<[1], [0], [0], [1], [0, 0, 1, 1], [], []>} : vector<4x128xbf16>, vector<128x128xbf16>, vector<4x128xf32> -> vector<4x128xf32>
    %51 = arith.addf %39, %50 : vector<4x128xf32>
    %c2_i32_40 = arith.constant 2 : i32
    %52 = arith.muli %c2_i32_40, %2 : i32
    %c1_i32_41 = arith.constant 1 : i32
    %53 = arith.addi %52, %c1_i32_41 : i32
    %c2_i32_42 = arith.constant 2 : i32
    %54 = arith.muli %53, %c2_i32_42 : i32
    %c1_i32_43 = arith.constant 1 : i32
    %55 = arith.addi %54, %c1_i32_43 : i32
    %c0_44 = arith.constant 0 : index
    %56 = arith.index_cast %55 : i32 to index
    %c0_45 = arith.constant 0 : index
    %c0_46 = arith.constant 0 : index
    %57 = vector.load %arg3[%c0_44, %56, %c0_45, %c0_46] : memref<1x20x5x128xbf16, #tpu.memory_space<vmem>>, vector<1x1x5x128xbf16>
    %58 = vector.shape_cast %57 : vector<1x1x5x128xbf16> to vector<5x128xbf16>
    %59 = vector.extract_strided_slice %58 {offsets = [0, 0], sizes = [4, 128], strides = [1, 1]} : vector<5x128xbf16> to vector<4x128xbf16>
    %c4 = arith.constant 4 : index
    %c0_47 = arith.constant 0 : index
    %c0_48 = arith.constant 0 : index
    %60 = vector.load %arg4[%c4, %c0_47, %c0_48] : memref<9x128x128xbf16, #tpu.memory_space<vmem>>, vector<1x128x128xbf16>
    %61 = vector.shape_cast %60 : vector<1x128x128xbf16> to vector<128x128xbf16>
    %cst_49 = arith.constant dense<0.000000e+00> : vector<4x128xf32>
    %62 = tpu.matmul %59, %61, %cst_49 {dimension_numbers = #tpu.dot_dimension_numbers<[1], [0], [0], [1], [0, 0, 1, 1], [], []>} : vector<4x128xbf16>, vector<128x128xbf16>, vector<4x128xf32> -> vector<4x128xf32>
    %63 = arith.addf %51, %62 : vector<4x128xf32>
    %c2_i32_50 = arith.constant 2 : i32
    %64 = arith.muli %c2_i32_50, %2 : i32
    %c1_i32_51 = arith.constant 1 : i32
    %65 = arith.addi %64, %c1_i32_51 : i32
    %c2_i32_52 = arith.constant 2 : i32
    %66 = arith.muli %65, %c2_i32_52 : i32
    %c0_i32_53 = arith.constant 0 : i32
    %67 = arith.addi %66, %c0_i32_53 : i32
    %c0_54 = arith.constant 0 : index
    %68 = arith.index_cast %67 : i32 to index
    %c0_55 = arith.constant 0 : index
    %c0_56 = arith.constant 0 : index
    %69 = vector.load %arg3[%c0_54, %68, %c0_55, %c0_56] : memref<1x20x5x128xbf16, #tpu.memory_space<vmem>>, vector<1x1x5x128xbf16>
    %70 = vector.shape_cast %69 : vector<1x1x5x128xbf16> to vector<5x128xbf16>
    %71 = vector.extract_strided_slice %70 {offsets = [1, 0], sizes = [4, 128], strides = [1, 1]} : vector<5x128xbf16> to vector<4x128xbf16>
    %c5 = arith.constant 5 : index
    %c0_57 = arith.constant 0 : index
    %c0_58 = arith.constant 0 : index
    %72 = vector.load %arg4[%c5, %c0_57, %c0_58] : memref<9x128x128xbf16, #tpu.memory_space<vmem>>, vector<1x128x128xbf16>
    %73 = vector.shape_cast %72 : vector<1x128x128xbf16> to vector<128x128xbf16>
    %cst_59 = arith.constant dense<0.000000e+00> : vector<4x128xf32>
    %74 = tpu.matmul %71, %73, %cst_59 {dimension_numbers = #tpu.dot_dimension_numbers<[1], [0], [0], [1], [0, 0, 1, 1], [], []>} : vector<4x128xbf16>, vector<128x128xbf16>, vector<4x128xf32> -> vector<4x128xf32>
    %75 = arith.addf %63, %74 : vector<4x128xf32>
    %c2_i32_60 = arith.constant 2 : i32
    %76 = arith.muli %c2_i32_60, %2 : i32
    %c2_i32_61 = arith.constant 2 : i32
    %77 = arith.addi %76, %c2_i32_61 : i32
    %c2_i32_62 = arith.constant 2 : i32
    %78 = arith.muli %77, %c2_i32_62 : i32
    %c0_i32_63 = arith.constant 0 : i32
    %79 = arith.addi %78, %c0_i32_63 : i32
    %c0_64 = arith.constant 0 : index
    %80 = arith.index_cast %79 : i32 to index
    %c0_65 = arith.constant 0 : index
    %c0_66 = arith.constant 0 : index
    %81 = vector.load %arg3[%c0_64, %80, %c0_65, %c0_66] : memref<1x20x5x128xbf16, #tpu.memory_space<vmem>>, vector<1x1x5x128xbf16>
    %82 = vector.shape_cast %81 : vector<1x1x5x128xbf16> to vector<5x128xbf16>
    %83 = vector.extract_strided_slice %82 {offsets = [0, 0], sizes = [4, 128], strides = [1, 1]} : vector<5x128xbf16> to vector<4x128xbf16>
    %c6 = arith.constant 6 : index
    %c0_67 = arith.constant 0 : index
    %c0_68 = arith.constant 0 : index
    %84 = vector.load %arg4[%c6, %c0_67, %c0_68] : memref<9x128x128xbf16, #tpu.memory_space<vmem>>, vector<1x128x128xbf16>
    %85 = vector.shape_cast %84 : vector<1x128x128xbf16> to vector<128x128xbf16>
    %cst_69 = arith.constant dense<0.000000e+00> : vector<4x128xf32>
    %86 = tpu.matmul %83, %85, %cst_69 {dimension_numbers = #tpu.dot_dimension_numbers<[1], [0], [0], [1], [0, 0, 1, 1], [], []>} : vector<4x128xbf16>, vector<128x128xbf16>, vector<4x128xf32> -> vector<4x128xf32>
    %87 = arith.addf %75, %86 : vector<4x128xf32>
    %c2_i32_70 = arith.constant 2 : i32
    %88 = arith.muli %c2_i32_70, %2 : i32
    %c2_i32_71 = arith.constant 2 : i32
    %89 = arith.addi %88, %c2_i32_71 : i32
    %c2_i32_72 = arith.constant 2 : i32
    %90 = arith.muli %89, %c2_i32_72 : i32
    %c1_i32_73 = arith.constant 1 : i32
    %91 = arith.addi %90, %c1_i32_73 : i32
    %c0_74 = arith.constant 0 : index
    %92 = arith.index_cast %91 : i32 to index
    %c0_75 = arith.constant 0 : index
    %c0_76 = arith.constant 0 : index
    %93 = vector.load %arg3[%c0_74, %92, %c0_75, %c0_76] : memref<1x20x5x128xbf16, #tpu.memory_space<vmem>>, vector<1x1x5x128xbf16>
    %94 = vector.shape_cast %93 : vector<1x1x5x128xbf16> to vector<5x128xbf16>
    %95 = vector.extract_strided_slice %94 {offsets = [0, 0], sizes = [4, 128], strides = [1, 1]} : vector<5x128xbf16> to vector<4x128xbf16>
    %c7 = arith.constant 7 : index
    %c0_77 = arith.constant 0 : index
    %c0_78 = arith.constant 0 : index
    %96 = vector.load %arg4[%c7, %c0_77, %c0_78] : memref<9x128x128xbf16, #tpu.memory_space<vmem>>, vector<1x128x128xbf16>
    %97 = vector.shape_cast %96 : vector<1x128x128xbf16> to vector<128x128xbf16>
    %cst_79 = arith.constant dense<0.000000e+00> : vector<4x128xf32>
    %98 = tpu.matmul %95, %97, %cst_79 {dimension_numbers = #tpu.dot_dimension_numbers<[1], [0], [0], [1], [0, 0, 1, 1], [], []>} : vector<4x128xbf16>, vector<128x128xbf16>, vector<4x128xf32> -> vector<4x128xf32>
    %99 = arith.addf %87, %98 : vector<4x128xf32>
    %c2_i32_80 = arith.constant 2 : i32
    %100 = arith.muli %c2_i32_80, %2 : i32
    %c2_i32_81 = arith.constant 2 : i32
    %101 = arith.addi %100, %c2_i32_81 : i32
    %c2_i32_82 = arith.constant 2 : i32
    %102 = arith.muli %101, %c2_i32_82 : i32
    %c0_i32_83 = arith.constant 0 : i32
    %103 = arith.addi %102, %c0_i32_83 : i32
    %c0_84 = arith.constant 0 : index
    %104 = arith.index_cast %103 : i32 to index
    %c0_85 = arith.constant 0 : index
    %c0_86 = arith.constant 0 : index
    %105 = vector.load %arg3[%c0_84, %104, %c0_85, %c0_86] : memref<1x20x5x128xbf16, #tpu.memory_space<vmem>>, vector<1x1x5x128xbf16>
    %106 = vector.shape_cast %105 : vector<1x1x5x128xbf16> to vector<5x128xbf16>
    %107 = vector.extract_strided_slice %106 {offsets = [1, 0], sizes = [4, 128], strides = [1, 1]} : vector<5x128xbf16> to vector<4x128xbf16>
    %c8 = arith.constant 8 : index
    %c0_87 = arith.constant 0 : index
    %c0_88 = arith.constant 0 : index
    %108 = vector.load %arg4[%c8, %c0_87, %c0_88] : memref<9x128x128xbf16, #tpu.memory_space<vmem>>, vector<1x128x128xbf16>
    %109 = vector.shape_cast %108 : vector<1x128x128xbf16> to vector<128x128xbf16>
    %cst_89 = arith.constant dense<0.000000e+00> : vector<4x128xf32>
    %110 = tpu.matmul %107, %109, %cst_89 {dimension_numbers = #tpu.dot_dimension_numbers<[1], [0], [0], [1], [0, 0, 1, 1], [], []>} : vector<4x128xbf16>, vector<128x128xbf16>, vector<4x128xf32> -> vector<4x128xf32>
    %111 = arith.addf %99, %110 : vector<4x128xf32>
    %112 = vector.broadcast %0 : vector<1x128xf32> to vector<4x128xf32>
    %113 = arith.addf %111, %112 : vector<4x128xf32>
    %cst_90 = arith.constant 0.000000e+00 : f32
    %114 = vector.broadcast %cst_90 : f32 to vector<4x128xf32>
    %115 = arith.maximumf %113, %114 : vector<4x128xf32>
    %116 = arith.truncf %115 : vector<4x128xf32> to vector<4x128xbf16>
    %c0_91 = arith.constant 0 : index
    %c0_92 = arith.constant 0 : index
    %c0_93 = arith.constant 0 : index
    %c0_94 = arith.constant 0 : index
    %117 = vector.load %arg6[%c0_91, %c0_92, %c0_93, %c0_94] : memref<1x4x4x128xbf16, #tpu.memory_space<vmem>>, vector<1x1x4x128xbf16>
    %118 = vector.shape_cast %117 : vector<1x1x4x128xbf16> to vector<4x128xbf16>
    %119 = vector.shape_cast %116 : vector<4x128xbf16> to vector<1x1x4x128xbf16>
    tpu.vector_store %arg6[%c0_91, %c0_92, %c0_93, %c0_94], %119 {strides = array<i32>} : memref<1x4x4x128xbf16, #tpu.memory_space<vmem>>, vector<1x1x4x128xbf16>,
    %c4_i32_95 = arith.constant 4 : i32
    %120 = arith.muli %arg2, %c4_i32_95 : i32
    %c1_i32_96 = arith.constant 1 : i32
    %121 = arith.addi %120, %c1_i32_96 : i32
    %cst_97 = arith.constant 0.000000e+00 : f32
    %122 = vector.broadcast %cst_97 : f32 to vector<4x128xf32>
    %c2_i32_98 = arith.constant 2 : i32
    %123 = arith.muli %c2_i32_98, %121 : i32
    %c0_i32_99 = arith.constant 0 : i32
    %124 = arith.addi %123, %c0_i32_99 : i32
    %c2_i32_100 = arith.constant 2 : i32
    %125 = arith.muli %124, %c2_i32_100 : i32
    %c0_i32_101 = arith.constant 0 : i32
    %126 = arith.addi %125, %c0_i32_101 : i32
    %c0_102 = arith.constant 0 : index
    %127 = arith.index_cast %126 : i32 to index
    %c0_103 = arith.constant 0 : index
    %c0_104 = arith.constant 0 : index
    %128 = vector.load %arg3[%c0_102, %127, %c0_103, %c0_104] : memref<1x20x5x128xbf16, #tpu.memory_space<vmem>>, vector<1x1x5x128xbf16>
    %129 = vector.shape_cast %128 : vector<1x1x5x128xbf16> to vector<5x128xbf16>
    %130 = vector.extract_strided_slice %129 {offsets = [0, 0], sizes = [4, 128], strides = [1, 1]} : vector<5x128xbf16> to vector<4x128xbf16>
    %c0_105 = arith.constant 0 : index
    %c0_106 = arith.constant 0 : index
    %c0_107 = arith.constant 0 : index
    %131 = vector.load %arg4[%c0_105, %c0_106, %c0_107] : memref<9x128x128xbf16, #tpu.memory_space<vmem>>, vector<1x128x128xbf16>
    %132 = vector.shape_cast %131 : vector<1x128x128xbf16> to vector<128x128xbf16>
    %cst_108 = arith.constant dense<0.000000e+00> : vector<4x128xf32>
    %133 = tpu.matmul %130, %132, %cst_108 {dimension_numbers = #tpu.dot_dimension_numbers<[1], [0], [0], [1], [0, 0, 1, 1], [], []>} : vector<4x128xbf16>, vector<128x128xbf16>, vector<4x128xf32> -> vector<4x128xf32>
    %134 = arith.addf %122, %133 : vector<4x128xf32>
    %c2_i32_109 = arith.constant 2 : i32
    %135 = arith.muli %c2_i32_109, %121 : i32
    %c0_i32_110 = arith.constant 0 : i32
    %136 = arith.addi %135, %c0_i32_110 : i32
    %c2_i32_111 = arith.constant 2 : i32
    %137 = arith.muli %136, %c2_i32_111 : i32
    %c1_i32_112 = arith.constant 1 : i32
    %138 = arith.addi %137, %c1_i32_112 : i32
    %c0_113 = arith.constant 0 : index
    %139 = arith.index_cast %138 : i32 to index
    %c0_114 = arith.constant 0 : index
    %c0_115 = arith.constant 0 : index
    %140 = vector.load %arg3[%c0_113, %139, %c0_114, %c0_115] : memref<1x20x5x128xbf16, #tpu.memory_space<vmem>>, vector<1x1x5x128xbf16>
    %141 = vector.shape_cast %140 : vector<1x1x5x128xbf16> to vector<5x128xbf16>
    %142 = vector.extract_strided_slice %141 {offsets = [0, 0], sizes = [4, 128], strides = [1, 1]} : vector<5x128xbf16> to vector<4x128xbf16>
    %c1_116 = arith.constant 1 : index
    %c0_117 = arith.constant 0 : index
    %c0_118 = arith.constant 0 : index
    %143 = vector.load %arg4[%c1_116, %c0_117, %c0_118] : memref<9x128x128xbf16, #tpu.memory_space<vmem>>, vector<1x128x128xbf16>
    %144 = vector.shape_cast %143 : vector<1x128x128xbf16> to vector<128x128xbf16>
    %cst_119 = arith.constant dense<0.000000e+00> : vector<4x128xf32>
    %145 = tpu.matmul %142, %144, %cst_119 {dimension_numbers = #tpu.dot_dimension_numbers<[1], [0], [0], [1], [0, 0, 1, 1], [], []>} : vector<4x128xbf16>, vector<128x128xbf16>, vector<4x128xf32> -> vector<4x128xf32>
    %146 = arith.addf %134, %145 : vector<4x128xf32>
    %c2_i32_120 = arith.constant 2 : i32
    %147 = arith.muli %c2_i32_120, %121 : i32
    %c0_i32_121 = arith.constant 0 : i32
    %148 = arith.addi %147, %c0_i32_121 : i32
    %c2_i32_122 = arith.constant 2 : i32
    %149 = arith.muli %148, %c2_i32_122 : i32
    %c0_i32_123 = arith.constant 0 : i32
    %150 = arith.addi %149, %c0_i32_123 : i32
    %c0_124 = arith.constant 0 : index
    %151 = arith.index_cast %150 : i32 to index
    %c0_125 = arith.constant 0 : index
    %c0_126 = arith.constant 0 : index
    %152 = vector.load %arg3[%c0_124, %151, %c0_125, %c0_126] : memref<1x20x5x128xbf16, #tpu.memory_space<vmem>>, vector<1x1x5x128xbf16>
    %153 = vector.shape_cast %152 : vector<1x1x5x128xbf16> to vector<5x128xbf16>
    %154 = vector.extract_strided_slice %153 {offsets = [1, 0], sizes = [4, 128], strides = [1, 1]} : vector<5x128xbf16> to vector<4x128xbf16>
    %c2_127 = arith.constant 2 : index
    %c0_128 = arith.constant 0 : index
    %c0_129 = arith.constant 0 : index
    %155 = vector.load %arg4[%c2_127, %c0_128, %c0_129] : memref<9x128x128xbf16, #tpu.memory_space<vmem>>, vector<1x128x128xbf16>
    %156 = vector.shape_cast %155 : vector<1x128x128xbf16> to vector<128x128xbf16>
    %cst_130 = arith.constant dense<0.000000e+00> : vector<4x128xf32>
    %157 = tpu.matmul %154, %156, %cst_130 {dimension_numbers = #tpu.dot_dimension_numbers<[1], [0], [0], [1], [0, 0, 1, 1], [], []>} : vector<4x128xbf16>, vector<128x128xbf16>, vector<4x128xf32> -> vector<4x128xf32>
    %158 = arith.addf %146, %157 : vector<4x128xf32>
    %c2_i32_131 = arith.constant 2 : i32
    %159 = arith.muli %c2_i32_131, %121 : i32
    %c1_i32_132 = arith.constant 1 : i32
    %160 = arith.addi %159, %c1_i32_132 : i32
    %c2_i32_133 = arith.constant 2 : i32
    %161 = arith.muli %160, %c2_i32_133 : i32
    %c0_i32_134 = arith.constant 0 : i32
    %162 = arith.addi %161, %c0_i32_134 : i32
    %c0_135 = arith.constant 0 : index
    %163 = arith.index_cast %162 : i32 to index
    %c0_136 = arith.constant 0 : index
    %c0_137 = arith.constant 0 : index
    %164 = vector.load %arg3[%c0_135, %163, %c0_136, %c0_137] : memref<1x20x5x128xbf16, #tpu.memory_space<vmem>>, vector<1x1x5x128xbf16>
    %165 = vector.shape_cast %164 : vector<1x1x5x128xbf16> to vector<5x128xbf16>
    %166 = vector.extract_strided_slice %165 {offsets = [0, 0], sizes = [4, 128], strides = [1, 1]} : vector<5x128xbf16> to vector<4x128xbf16>
    %c3_138 = arith.constant 3 : index
    %c0_139 = arith.constant 0 : index
    %c0_140 = arith.constant 0 : index
    %167 = vector.load %arg4[%c3_138, %c0_139, %c0_140] : memref<9x128x128xbf16, #tpu.memory_space<vmem>>, vector<1x128x128xbf16>
    %168 = vector.shape_cast %167 : vector<1x128x128xbf16> to vector<128x128xbf16>
    %cst_141 = arith.constant dense<0.000000e+00> : vector<4x128xf32>
    %169 = tpu.matmul %166, %168, %cst_141 {dimension_numbers = #tpu.dot_dimension_numbers<[1], [0], [0], [1], [0, 0, 1, 1], [], []>} : vector<4x128xbf16>, vector<128x128xbf16>, vector<4x128xf32> -> vector<4x128xf32>
    %170 = arith.addf %158, %169 : vector<4x128xf32>
    %c2_i32_142 = arith.constant 2 : i32
    %171 = arith.muli %c2_i32_142, %121 : i32
    %c1_i32_143 = arith.constant 1 : i32
    %172 = arith.addi %171, %c1_i32_143 : i32
    %c2_i32_144 = arith.constant 2 : i32
    %173 = arith.muli %172, %c2_i32_144 : i32
    %c1_i32_145 = arith.constant 1 : i32
    %174 = arith.addi %173, %c1_i32_145 : i32
    %c0_146 = arith.constant 0 : index
    %175 = arith.index_cast %174 : i32 to index
    %c0_147 = arith.constant 0 : index
    %c0_148 = arith.constant 0 : index
    %176 = vector.load %arg3[%c0_146, %175, %c0_147, %c0_148] : memref<1x20x5x128xbf16, #tpu.memory_space<vmem>>, vector<1x1x5x128xbf16>
    %177 = vector.shape_cast %176 : vector<1x1x5x128xbf16> to vector<5x128xbf16>
    %178 = vector.extract_strided_slice %177 {offsets = [0, 0], sizes = [4, 128], strides = [1, 1]} : vector<5x128xbf16> to vector<4x128xbf16>
    %c4_149 = arith.constant 4 : index
    %c0_150 = arith.constant 0 : index
    %c0_151 = arith.constant 0 : index
    %179 = vector.load %arg4[%c4_149, %c0_150, %c0_151] : memref<9x128x128xbf16, #tpu.memory_space<vmem>>, vector<1x128x128xbf16>
    %180 = vector.shape_cast %179 : vector<1x128x128xbf16> to vector<128x128xbf16>
    %cst_152 = arith.constant dense<0.000000e+00> : vector<4x128xf32>
    %181 = tpu.matmul %178, %180, %cst_152 {dimension_numbers = #tpu.dot_dimension_numbers<[1], [0], [0], [1], [0, 0, 1, 1], [], []>} : vector<4x128xbf16>, vector<128x128xbf16>, vector<4x128xf32> -> vector<4x128xf32>
    %182 = arith.addf %170, %181 : vector<4x128xf32>
    %c2_i32_153 = arith.constant 2 : i32
    %183 = arith.muli %c2_i32_153, %121 : i32
    %c1_i32_154 = arith.constant 1 : i32
    %184 = arith.addi %183, %c1_i32_154 : i32
    %c2_i32_155 = arith.constant 2 : i32
    %185 = arith.muli %184, %c2_i32_155 : i32
    %c0_i32_156 = arith.constant 0 : i32
    %186 = arith.addi %185, %c0_i32_156 : i32
    %c0_157 = arith.constant 0 : index
    %187 = arith.index_cast %186 : i32 to index
    %c0_158 = arith.constant 0 : index
    %c0_159 = arith.constant 0 : index
    %188 = vector.load %arg3[%c0_157, %187, %c0_158, %c0_159] : memref<1x20x5x128xbf16, #tpu.memory_space<vmem>>, vector<1x1x5x128xbf16>
    %189 = vector.shape_cast %188 : vector<1x1x5x128xbf16> to vector<5x128xbf16>
    %190 = vector.extract_strided_slice %189 {offsets = [1, 0], sizes = [4, 128], strides = [1, 1]} : vector<5x128xbf16> to vector<4x128xbf16>
    %c5_160 = arith.constant 5 : index
    %c0_161 = arith.constant 0 : index
    %c0_162 = arith.constant 0 : index
    %191 = vector.load %arg4[%c5_160, %c0_161, %c0_162] : memref<9x128x128xbf16, #tpu.memory_space<vmem>>, vector<1x128x128xbf16>
    %192 = vector.shape_cast %191 : vector<1x128x128xbf16> to vector<128x128xbf16>
    %cst_163 = arith.constant dense<0.000000e+00> : vector<4x128xf32>
    %193 = tpu.matmul %190, %192, %cst_163 {dimension_numbers = #tpu.dot_dimension_numbers<[1], [0], [0], [1], [0, 0, 1, 1], [], []>} : vector<4x128xbf16>, vector<128x128xbf16>, vector<4x128xf32> -> vector<4x128xf32>
    %194 = arith.addf %182, %193 : vector<4x128xf32>
    %c2_i32_164 = arith.constant 2 : i32
    %195 = arith.muli %c2_i32_164, %121 : i32
    %c2_i32_165 = arith.constant 2 : i32
    %196 = arith.addi %195, %c2_i32_165 : i32
    %c2_i32_166 = arith.constant 2 : i32
    %197 = arith.muli %196, %c2_i32_166 : i32
    %c0_i32_167 = arith.constant 0 : i32
    %198 = arith.addi %197, %c0_i32_167 : i32
    %c0_168 = arith.constant 0 : index
    %199 = arith.index_cast %198 : i32 to index
    %c0_169 = arith.constant 0 : index
    %c0_170 = arith.constant 0 : index
    %200 = vector.load %arg3[%c0_168, %199, %c0_169, %c0_170] : memref<1x20x5x128xbf16, #tpu.memory_space<vmem>>, vector<1x1x5x128xbf16>
    %201 = vector.shape_cast %200 : vector<1x1x5x128xbf16> to vector<5x128xbf16>
    %202 = vector.extract_strided_slice %201 {offsets = [0, 0], sizes = [4, 128], strides = [1, 1]} : vector<5x128xbf16> to vector<4x128xbf16>
    %c6_171 = arith.constant 6 : index
    %c0_172 = arith.constant 0 : index
    %c0_173 = arith.constant 0 : index
    %203 = vector.load %arg4[%c6_171, %c0_172, %c0_173] : memref<9x128x128xbf16, #tpu.memory_space<vmem>>, vector<1x128x128xbf16>
    %204 = vector.shape_cast %203 : vector<1x128x128xbf16> to vector<128x128xbf16>
    %cst_174 = arith.constant dense<0.000000e+00> : vector<4x128xf32>
    %205 = tpu.matmul %202, %204, %cst_174 {dimension_numbers = #tpu.dot_dimension_numbers<[1], [0], [0], [1], [0, 0, 1, 1], [], []>} : vector<4x128xbf16>, vector<128x128xbf16>, vector<4x128xf32> -> vector<4x128xf32>
    %206 = arith.addf %194, %205 : vector<4x128xf32>
    %c2_i32_175 = arith.constant 2 : i32
    %207 = arith.muli %c2_i32_175, %121 : i32
    %c2_i32_176 = arith.constant 2 : i32
    %208 = arith.addi %207, %c2_i32_176 : i32
    %c2_i32_177 = arith.constant 2 : i32
    %209 = arith.muli %208, %c2_i32_177 : i32
    %c1_i32_178 = arith.constant 1 : i32
    %210 = arith.addi %209, %c1_i32_178 : i32
    %c0_179 = arith.constant 0 : index
    %211 = arith.index_cast %210 : i32 to index
    %c0_180 = arith.constant 0 : index
    %c0_181 = arith.constant 0 : index
    %212 = vector.load %arg3[%c0_179, %211, %c0_180, %c0_181] : memref<1x20x5x128xbf16, #tpu.memory_space<vmem>>, vector<1x1x5x128xbf16>
    %213 = vector.shape_cast %212 : vector<1x1x5x128xbf16> to vector<5x128xbf16>
    %214 = vector.extract_strided_slice %213 {offsets = [0, 0], sizes = [4, 128], strides = [1, 1]} : vector<5x128xbf16> to vector<4x128xbf16>
    %c7_182 = arith.constant 7 : index
    %c0_183 = arith.constant 0 : index
    %c0_184 = arith.constant 0 : index
    %215 = vector.load %arg4[%c7_182, %c0_183, %c0_184] : memref<9x128x128xbf16, #tpu.memory_space<vmem>>, vector<1x128x128xbf16>
    %216 = vector.shape_cast %215 : vector<1x128x128xbf16> to vector<128x128xbf16>
    %cst_185 = arith.constant dense<0.000000e+00> : vector<4x128xf32>
    %217 = tpu.matmul %214, %216, %cst_185 {dimension_numbers = #tpu.dot_dimension_numbers<[1], [0], [0], [1], [0, 0, 1, 1], [], []>} : vector<4x128xbf16>, vector<128x128xbf16>, vector<4x128xf32> -> vector<4x128xf32>
    %218 = arith.addf %206, %217 : vector<4x128xf32>
    %c2_i32_186 = arith.constant 2 : i32
    %219 = arith.muli %c2_i32_186, %121 : i32
    %c2_i32_187 = arith.constant 2 : i32
    %220 = arith.addi %219, %c2_i32_187 : i32
    %c2_i32_188 = arith.constant 2 : i32
    %221 = arith.muli %220, %c2_i32_188 : i32
    %c0_i32_189 = arith.constant 0 : i32
    %222 = arith.addi %221, %c0_i32_189 : i32
    %c0_190 = arith.constant 0 : index
    %223 = arith.index_cast %222 : i32 to index
    %c0_191 = arith.constant 0 : index
    %c0_192 = arith.constant 0 : index
    %224 = vector.load %arg3[%c0_190, %223, %c0_191, %c0_192] : memref<1x20x5x128xbf16, #tpu.memory_space<vmem>>, vector<1x1x5x128xbf16>
    %225 = vector.shape_cast %224 : vector<1x1x5x128xbf16> to vector<5x128xbf16>
    %226 = vector.extract_strided_slice %225 {offsets = [1, 0], sizes = [4, 128], strides = [1, 1]} : vector<5x128xbf16> to vector<4x128xbf16>
    %c8_193 = arith.constant 8 : index
    %c0_194 = arith.constant 0 : index
    %c0_195 = arith.constant 0 : index
    %227 = vector.load %arg4[%c8_193, %c0_194, %c0_195] : memref<9x128x128xbf16, #tpu.memory_space<vmem>>, vector<1x128x128xbf16>
    %228 = vector.shape_cast %227 : vector<1x128x128xbf16> to vector<128x128xbf16>
    %cst_196 = arith.constant dense<0.000000e+00> : vector<4x128xf32>
    %229 = tpu.matmul %226, %228, %cst_196 {dimension_numbers = #tpu.dot_dimension_numbers<[1], [0], [0], [1], [0, 0, 1, 1], [], []>} : vector<4x128xbf16>, vector<128x128xbf16>, vector<4x128xf32> -> vector<4x128xf32>
    %230 = arith.addf %218, %229 : vector<4x128xf32>
    %231 = vector.broadcast %0 : vector<1x128xf32> to vector<4x128xf32>
    %232 = arith.addf %230, %231 : vector<4x128xf32>
    %cst_197 = arith.constant 0.000000e+00 : f32
    %233 = vector.broadcast %cst_197 : f32 to vector<4x128xf32>
    %234 = arith.maximumf %232, %233 : vector<4x128xf32>
    %235 = arith.truncf %234 : vector<4x128xf32> to vector<4x128xbf16>
    %c0_198 = arith.constant 0 : index
    %c1_199 = arith.constant 1 : index
    %c0_200 = arith.constant 0 : index
    %c0_201 = arith.constant 0 : index
    %236 = vector.load %arg6[%c0_198, %c1_199, %c0_200, %c0_201] : memref<1x4x4x128xbf16, #tpu.memory_space<vmem>>, vector<1x1x4x128xbf16>
    %237 = vector.shape_cast %236 : vector<1x1x4x128xbf16> to vector<4x128xbf16>
    %238 = vector.shape_cast %235 : vector<4x128xbf16> to vector<1x1x4x128xbf16>
    tpu.vector_store %arg6[%c0_198, %c1_199, %c0_200, %c0_201], %238 {strides = array<i32>} : memref<1x4x4x128xbf16, #tpu.memory_space<vmem>>, vector<1x1x4x128xbf16>,
    %c4_i32_202 = arith.constant 4 : i32
    %239 = arith.muli %arg2, %c4_i32_202 : i32
    %c2_i32_203 = arith.constant 2 : i32
    %240 = arith.addi %239, %c2_i32_203 : i32
    %cst_204 = arith.constant 0.000000e+00 : f32
    %241 = vector.broadcast %cst_204 : f32 to vector<4x128xf32>
    %c2_i32_205 = arith.constant 2 : i32
    %242 = arith.muli %c2_i32_205, %240 : i32
    %c0_i32_206 = arith.constant 0 : i32
    %243 = arith.addi %242, %c0_i32_206 : i32
    %c2_i32_207 = arith.constant 2 : i32
    %244 = arith.muli %243, %c2_i32_207 : i32
    %c0_i32_208 = arith.constant 0 : i32
    %245 = arith.addi %244, %c0_i32_208 : i32
    %c0_209 = arith.constant 0 : index
    %246 = arith.index_cast %245 : i32 to index
    %c0_210 = arith.constant 0 : index
    %c0_211 = arith.constant 0 : index
    %247 = vector.load %arg3[%c0_209, %246, %c0_210, %c0_211] : memref<1x20x5x128xbf16, #tpu.memory_space<vmem>>, vector<1x1x5x128xbf16>
    %248 = vector.shape_cast %247 : vector<1x1x5x128xbf16> to vector<5x128xbf16>
    %249 = vector.extract_strided_slice %248 {offsets = [0, 0], sizes = [4, 128], strides = [1, 1]} : vector<5x128xbf16> to vector<4x128xbf16>
    %c0_212 = arith.constant 0 : index
    %c0_213 = arith.constant 0 : index
    %c0_214 = arith.constant 0 : index
    %250 = vector.load %arg4[%c0_212, %c0_213, %c0_214] : memref<9x128x128xbf16, #tpu.memory_space<vmem>>, vector<1x128x128xbf16>
    %251 = vector.shape_cast %250 : vector<1x128x128xbf16> to vector<128x128xbf16>
    %cst_215 = arith.constant dense<0.000000e+00> : vector<4x128xf32>
    %252 = tpu.matmul %249, %251, %cst_215 {dimension_numbers = #tpu.dot_dimension_numbers<[1], [0], [0], [1], [0, 0, 1, 1], [], []>} : vector<4x128xbf16>, vector<128x128xbf16>, vector<4x128xf32> -> vector<4x128xf32>
    %253 = arith.addf %241, %252 : vector<4x128xf32>
    %c2_i32_216 = arith.constant 2 : i32
    %254 = arith.muli %c2_i32_216, %240 : i32
    %c0_i32_217 = arith.constant 0 : i32
    %255 = arith.addi %254, %c0_i32_217 : i32
    %c2_i32_218 = arith.constant 2 : i32
    %256 = arith.muli %255, %c2_i32_218 : i32
    %c1_i32_219 = arith.constant 1 : i32
    %257 = arith.addi %256, %c1_i32_219 : i32
    %c0_220 = arith.constant 0 : index
    %258 = arith.index_cast %257 : i32 to index
    %c0_221 = arith.constant 0 : index
    %c0_222 = arith.constant 0 : index
    %259 = vector.load %arg3[%c0_220, %258, %c0_221, %c0_222] : memref<1x20x5x128xbf16, #tpu.memory_space<vmem>>, vector<1x1x5x128xbf16>
    %260 = vector.shape_cast %259 : vector<1x1x5x128xbf16> to vector<5x128xbf16>
    %261 = vector.extract_strided_slice %260 {offsets = [0, 0], sizes = [4, 128], strides = [1, 1]} : vector<5x128xbf16> to vector<4x128xbf16>
    %c1_223 = arith.constant 1 : index
    %c0_224 = arith.constant 0 : index
    %c0_225 = arith.constant 0 : index
    %262 = vector.load %arg4[%c1_223, %c0_224, %c0_225] : memref<9x128x128xbf16, #tpu.memory_space<vmem>>, vector<1x128x128xbf16>
    %263 = vector.shape_cast %262 : vector<1x128x128xbf16> to vector<128x128xbf16>
    %cst_226 = arith.constant dense<0.000000e+00> : vector<4x128xf32>
    %264 = tpu.matmul %261, %263, %cst_226 {dimension_numbers = #tpu.dot_dimension_numbers<[1], [0], [0], [1], [0, 0, 1, 1], [], []>} : vector<4x128xbf16>, vector<128x128xbf16>, vector<4x128xf32> -> vector<4x128xf32>
    %265 = arith.addf %253, %264 : vector<4x128xf32>
    %c2_i32_227 = arith.constant 2 : i32
    %266 = arith.muli %c2_i32_227, %240 : i32
    %c0_i32_228 = arith.constant 0 : i32
    %267 = arith.addi %266, %c0_i32_228 : i32
    %c2_i32_229 = arith.constant 2 : i32
    %268 = arith.muli %267, %c2_i32_229 : i32
    %c0_i32_230 = arith.constant 0 : i32
    %269 = arith.addi %268, %c0_i32_230 : i32
    %c0_231 = arith.constant 0 : index
    %270 = arith.index_cast %269 : i32 to index
    %c0_232 = arith.constant 0 : index
    %c0_233 = arith.constant 0 : index
    %271 = vector.load %arg3[%c0_231, %270, %c0_232, %c0_233] : memref<1x20x5x128xbf16, #tpu.memory_space<vmem>>, vector<1x1x5x128xbf16>
    %272 = vector.shape_cast %271 : vector<1x1x5x128xbf16> to vector<5x128xbf16>
    %273 = vector.extract_strided_slice %272 {offsets = [1, 0], sizes = [4, 128], strides = [1, 1]} : vector<5x128xbf16> to vector<4x128xbf16>
    %c2_234 = arith.constant 2 : index
    %c0_235 = arith.constant 0 : index
    %c0_236 = arith.constant 0 : index
    %274 = vector.load %arg4[%c2_234, %c0_235, %c0_236] : memref<9x128x128xbf16, #tpu.memory_space<vmem>>, vector<1x128x128xbf16>
    %275 = vector.shape_cast %274 : vector<1x128x128xbf16> to vector<128x128xbf16>
    %cst_237 = arith.constant dense<0.000000e+00> : vector<4x128xf32>
    %276 = tpu.matmul %273, %275, %cst_237 {dimension_numbers = #tpu.dot_dimension_numbers<[1], [0], [0], [1], [0, 0, 1, 1], [], []>} : vector<4x128xbf16>, vector<128x128xbf16>, vector<4x128xf32> -> vector<4x128xf32>
    %277 = arith.addf %265, %276 : vector<4x128xf32>
    %c2_i32_238 = arith.constant 2 : i32
    %278 = arith.muli %c2_i32_238, %240 : i32
    %c1_i32_239 = arith.constant 1 : i32
    %279 = arith.addi %278, %c1_i32_239 : i32
    %c2_i32_240 = arith.constant 2 : i32
    %280 = arith.muli %279, %c2_i32_240 : i32
    %c0_i32_241 = arith.constant 0 : i32
    %281 = arith.addi %280, %c0_i32_241 : i32
    %c0_242 = arith.constant 0 : index
    %282 = arith.index_cast %281 : i32 to index
    %c0_243 = arith.constant 0 : index
    %c0_244 = arith.constant 0 : index
    %283 = vector.load %arg3[%c0_242, %282, %c0_243, %c0_244] : memref<1x20x5x128xbf16, #tpu.memory_space<vmem>>, vector<1x1x5x128xbf16>
    %284 = vector.shape_cast %283 : vector<1x1x5x128xbf16> to vector<5x128xbf16>
    %285 = vector.extract_strided_slice %284 {offsets = [0, 0], sizes = [4, 128], strides = [1, 1]} : vector<5x128xbf16> to vector<4x128xbf16>
    %c3_245 = arith.constant 3 : index
    %c0_246 = arith.constant 0 : index
    %c0_247 = arith.constant 0 : index
    %286 = vector.load %arg4[%c3_245, %c0_246, %c0_247] : memref<9x128x128xbf16, #tpu.memory_space<vmem>>, vector<1x128x128xbf16>
    %287 = vector.shape_cast %286 : vector<1x128x128xbf16> to vector<128x128xbf16>
    %cst_248 = arith.constant dense<0.000000e+00> : vector<4x128xf32>
    %288 = tpu.matmul %285, %287, %cst_248 {dimension_numbers = #tpu.dot_dimension_numbers<[1], [0], [0], [1], [0, 0, 1, 1], [], []>} : vector<4x128xbf16>, vector<128x128xbf16>, vector<4x128xf32> -> vector<4x128xf32>
    %289 = arith.addf %277, %288 : vector<4x128xf32>
    %c2_i32_249 = arith.constant 2 : i32
    %290 = arith.muli %c2_i32_249, %240 : i32
    %c1_i32_250 = arith.constant 1 : i32
    %291 = arith.addi %290, %c1_i32_250 : i32
    %c2_i32_251 = arith.constant 2 : i32
    %292 = arith.muli %291, %c2_i32_251 : i32
    %c1_i32_252 = arith.constant 1 : i32
    %293 = arith.addi %292, %c1_i32_252 : i32
    %c0_253 = arith.constant 0 : index
    %294 = arith.index_cast %293 : i32 to index
    %c0_254 = arith.constant 0 : index
    %c0_255 = arith.constant 0 : index
    %295 = vector.load %arg3[%c0_253, %294, %c0_254, %c0_255] : memref<1x20x5x128xbf16, #tpu.memory_space<vmem>>, vector<1x1x5x128xbf16>
    %296 = vector.shape_cast %295 : vector<1x1x5x128xbf16> to vector<5x128xbf16>
    %297 = vector.extract_strided_slice %296 {offsets = [0, 0], sizes = [4, 128], strides = [1, 1]} : vector<5x128xbf16> to vector<4x128xbf16>
    %c4_256 = arith.constant 4 : index
    %c0_257 = arith.constant 0 : index
    %c0_258 = arith.constant 0 : index
    %298 = vector.load %arg4[%c4_256, %c0_257, %c0_258] : memref<9x128x128xbf16, #tpu.memory_space<vmem>>, vector<1x128x128xbf16>
    %299 = vector.shape_cast %298 : vector<1x128x128xbf16> to vector<128x128xbf16>
    %cst_259 = arith.constant dense<0.000000e+00> : vector<4x128xf32>
    %300 = tpu.matmul %297, %299, %cst_259 {dimension_numbers = #tpu.dot_dimension_numbers<[1], [0], [0], [1], [0, 0, 1, 1], [], []>} : vector<4x128xbf16>, vector<128x128xbf16>, vector<4x128xf32> -> vector<4x128xf32>
    %301 = arith.addf %289, %300 : vector<4x128xf32>
    %c2_i32_260 = arith.constant 2 : i32
    %302 = arith.muli %c2_i32_260, %240 : i32
    %c1_i32_261 = arith.constant 1 : i32
    %303 = arith.addi %302, %c1_i32_261 : i32
    %c2_i32_262 = arith.constant 2 : i32
    %304 = arith.muli %303, %c2_i32_262 : i32
    %c0_i32_263 = arith.constant 0 : i32
    %305 = arith.addi %304, %c0_i32_263 : i32
    %c0_264 = arith.constant 0 : index
    %306 = arith.index_cast %305 : i32 to index
    %c0_265 = arith.constant 0 : index
    %c0_266 = arith.constant 0 : index
    %307 = vector.load %arg3[%c0_264, %306, %c0_265, %c0_266] : memref<1x20x5x128xbf16, #tpu.memory_space<vmem>>, vector<1x1x5x128xbf16>
    %308 = vector.shape_cast %307 : vector<1x1x5x128xbf16> to vector<5x128xbf16>
    %309 = vector.extract_strided_slice %308 {offsets = [1, 0], sizes = [4, 128], strides = [1, 1]} : vector<5x128xbf16> to vector<4x128xbf16>
    %c5_267 = arith.constant 5 : index
    %c0_268 = arith.constant 0 : index
    %c0_269 = arith.constant 0 : index
    %310 = vector.load %arg4[%c5_267, %c0_268, %c0_269] : memref<9x128x128xbf16, #tpu.memory_space<vmem>>, vector<1x128x128xbf16>
    %311 = vector.shape_cast %310 : vector<1x128x128xbf16> to vector<128x128xbf16>
    %cst_270 = arith.constant dense<0.000000e+00> : vector<4x128xf32>
    %312 = tpu.matmul %309, %311, %cst_270 {dimension_numbers = #tpu.dot_dimension_numbers<[1], [0], [0], [1], [0, 0, 1, 1], [], []>} : vector<4x128xbf16>, vector<128x128xbf16>, vector<4x128xf32> -> vector<4x128xf32>
    %313 = arith.addf %301, %312 : vector<4x128xf32>
    %c2_i32_271 = arith.constant 2 : i32
    %314 = arith.muli %c2_i32_271, %240 : i32
    %c2_i32_272 = arith.constant 2 : i32
    %315 = arith.addi %314, %c2_i32_272 : i32
    %c2_i32_273 = arith.constant 2 : i32
    %316 = arith.muli %315, %c2_i32_273 : i32
    %c0_i32_274 = arith.constant 0 : i32
    %317 = arith.addi %316, %c0_i32_274 : i32
    %c0_275 = arith.constant 0 : index
    %318 = arith.index_cast %317 : i32 to index
    %c0_276 = arith.constant 0 : index
    %c0_277 = arith.constant 0 : index
    %319 = vector.load %arg3[%c0_275, %318, %c0_276, %c0_277] : memref<1x20x5x128xbf16, #tpu.memory_space<vmem>>, vector<1x1x5x128xbf16>
    %320 = vector.shape_cast %319 : vector<1x1x5x128xbf16> to vector<5x128xbf16>
    %321 = vector.extract_strided_slice %320 {offsets = [0, 0], sizes = [4, 128], strides = [1, 1]} : vector<5x128xbf16> to vector<4x128xbf16>
    %c6_278 = arith.constant 6 : index
    %c0_279 = arith.constant 0 : index
    %c0_280 = arith.constant 0 : index
    %322 = vector.load %arg4[%c6_278, %c0_279, %c0_280] : memref<9x128x128xbf16, #tpu.memory_space<vmem>>, vector<1x128x128xbf16>
    %323 = vector.shape_cast %322 : vector<1x128x128xbf16> to vector<128x128xbf16>
    %cst_281 = arith.constant dense<0.000000e+00> : vector<4x128xf32>
    %324 = tpu.matmul %321, %323, %cst_281 {dimension_numbers = #tpu.dot_dimension_numbers<[1], [0], [0], [1], [0, 0, 1, 1], [], []>} : vector<4x128xbf16>, vector<128x128xbf16>, vector<4x128xf32> -> vector<4x128xf32>
    %325 = arith.addf %313, %324 : vector<4x128xf32>
    %c2_i32_282 = arith.constant 2 : i32
    %326 = arith.muli %c2_i32_282, %240 : i32
    %c2_i32_283 = arith.constant 2 : i32
    %327 = arith.addi %326, %c2_i32_283 : i32
    %c2_i32_284 = arith.constant 2 : i32
    %328 = arith.muli %327, %c2_i32_284 : i32
    %c1_i32_285 = arith.constant 1 : i32
    %329 = arith.addi %328, %c1_i32_285 : i32
    %c0_286 = arith.constant 0 : index
    %330 = arith.index_cast %329 : i32 to index
    %c0_287 = arith.constant 0 : index
    %c0_288 = arith.constant 0 : index
    %331 = vector.load %arg3[%c0_286, %330, %c0_287, %c0_288] : memref<1x20x5x128xbf16, #tpu.memory_space<vmem>>, vector<1x1x5x128xbf16>
    %332 = vector.shape_cast %331 : vector<1x1x5x128xbf16> to vector<5x128xbf16>
    %333 = vector.extract_strided_slice %332 {offsets = [0, 0], sizes = [4, 128], strides = [1, 1]} : vector<5x128xbf16> to vector<4x128xbf16>
    %c7_289 = arith.constant 7 : index
    %c0_290 = arith.constant 0 : index
    %c0_291 = arith.constant 0 : index
    %334 = vector.load %arg4[%c7_289, %c0_290, %c0_291] : memref<9x128x128xbf16, #tpu.memory_space<vmem>>, vector<1x128x128xbf16>
    %335 = vector.shape_cast %334 : vector<1x128x128xbf16> to vector<128x128xbf16>
    %cst_292 = arith.constant dense<0.000000e+00> : vector<4x128xf32>
    %336 = tpu.matmul %333, %335, %cst_292 {dimension_numbers = #tpu.dot_dimension_numbers<[1], [0], [0], [1], [0, 0, 1, 1], [], []>} : vector<4x128xbf16>, vector<128x128xbf16>, vector<4x128xf32> -> vector<4x128xf32>
    %337 = arith.addf %325, %336 : vector<4x128xf32>
    %c2_i32_293 = arith.constant 2 : i32
    %338 = arith.muli %c2_i32_293, %240 : i32
    %c2_i32_294 = arith.constant 2 : i32
    %339 = arith.addi %338, %c2_i32_294 : i32
    %c2_i32_295 = arith.constant 2 : i32
    %340 = arith.muli %339, %c2_i32_295 : i32
    %c0_i32_296 = arith.constant 0 : i32
    %341 = arith.addi %340, %c0_i32_296 : i32
    %c0_297 = arith.constant 0 : index
    %342 = arith.index_cast %341 : i32 to index
    %c0_298 = arith.constant 0 : index
    %c0_299 = arith.constant 0 : index
    %343 = vector.load %arg3[%c0_297, %342, %c0_298, %c0_299] : memref<1x20x5x128xbf16, #tpu.memory_space<vmem>>, vector<1x1x5x128xbf16>
    %344 = vector.shape_cast %343 : vector<1x1x5x128xbf16> to vector<5x128xbf16>
    %345 = vector.extract_strided_slice %344 {offsets = [1, 0], sizes = [4, 128], strides = [1, 1]} : vector<5x128xbf16> to vector<4x128xbf16>
    %c8_300 = arith.constant 8 : index
    %c0_301 = arith.constant 0 : index
    %c0_302 = arith.constant 0 : index
    %346 = vector.load %arg4[%c8_300, %c0_301, %c0_302] : memref<9x128x128xbf16, #tpu.memory_space<vmem>>, vector<1x128x128xbf16>
    %347 = vector.shape_cast %346 : vector<1x128x128xbf16> to vector<128x128xbf16>
    %cst_303 = arith.constant dense<0.000000e+00> : vector<4x128xf32>
    %348 = tpu.matmul %345, %347, %cst_303 {dimension_numbers = #tpu.dot_dimension_numbers<[1], [0], [0], [1], [0, 0, 1, 1], [], []>} : vector<4x128xbf16>, vector<128x128xbf16>, vector<4x128xf32> -> vector<4x128xf32>
    %349 = arith.addf %337, %348 : vector<4x128xf32>
    %350 = vector.broadcast %0 : vector<1x128xf32> to vector<4x128xf32>
    %351 = arith.addf %349, %350 : vector<4x128xf32>
    %cst_304 = arith.constant 0.000000e+00 : f32
    %352 = vector.broadcast %cst_304 : f32 to vector<4x128xf32>
    %353 = arith.maximumf %351, %352 : vector<4x128xf32>
    %354 = arith.truncf %353 : vector<4x128xf32> to vector<4x128xbf16>
    %c0_305 = arith.constant 0 : index
    %c2_306 = arith.constant 2 : index
    %c0_307 = arith.constant 0 : index
    %c0_308 = arith.constant 0 : index
    %355 = vector.load %arg6[%c0_305, %c2_306, %c0_307, %c0_308] : memref<1x4x4x128xbf16, #tpu.memory_space<vmem>>, vector<1x1x4x128xbf16>
    %356 = vector.shape_cast %355 : vector<1x1x4x128xbf16> to vector<4x128xbf16>
    %357 = vector.shape_cast %354 : vector<4x128xbf16> to vector<1x1x4x128xbf16>
    tpu.vector_store %arg6[%c0_305, %c2_306, %c0_307, %c0_308], %357 {strides = array<i32>} : memref<1x4x4x128xbf16, #tpu.memory_space<vmem>>, vector<1x1x4x128xbf16>,
    %c4_i32_309 = arith.constant 4 : i32
    %358 = arith.muli %arg2, %c4_i32_309 : i32
    %c3_i32 = arith.constant 3 : i32
    %359 = arith.addi %358, %c3_i32 : i32
    %cst_310 = arith.constant 0.000000e+00 : f32
    %360 = vector.broadcast %cst_310 : f32 to vector<4x128xf32>
    %c2_i32_311 = arith.constant 2 : i32
    %361 = arith.muli %c2_i32_311, %359 : i32
    %c0_i32_312 = arith.constant 0 : i32
    %362 = arith.addi %361, %c0_i32_312 : i32
    %c2_i32_313 = arith.constant 2 : i32
    %363 = arith.muli %362, %c2_i32_313 : i32
    %c0_i32_314 = arith.constant 0 : i32
    %364 = arith.addi %363, %c0_i32_314 : i32
    %c0_315 = arith.constant 0 : index
    %365 = arith.index_cast %364 : i32 to index
    %c0_316 = arith.constant 0 : index
    %c0_317 = arith.constant 0 : index
    %366 = vector.load %arg3[%c0_315, %365, %c0_316, %c0_317] : memref<1x20x5x128xbf16, #tpu.memory_space<vmem>>, vector<1x1x5x128xbf16>
    %367 = vector.shape_cast %366 : vector<1x1x5x128xbf16> to vector<5x128xbf16>
    %368 = vector.extract_strided_slice %367 {offsets = [0, 0], sizes = [4, 128], strides = [1, 1]} : vector<5x128xbf16> to vector<4x128xbf16>
    %c0_318 = arith.constant 0 : index
    %c0_319 = arith.constant 0 : index
    %c0_320 = arith.constant 0 : index
    %369 = vector.load %arg4[%c0_318, %c0_319, %c0_320] : memref<9x128x128xbf16, #tpu.memory_space<vmem>>, vector<1x128x128xbf16>
    %370 = vector.shape_cast %369 : vector<1x128x128xbf16> to vector<128x128xbf16>
    %cst_321 = arith.constant dense<0.000000e+00> : vector<4x128xf32>
    %371 = tpu.matmul %368, %370, %cst_321 {dimension_numbers = #tpu.dot_dimension_numbers<[1], [0], [0], [1], [0, 0, 1, 1], [], []>} : vector<4x128xbf16>, vector<128x128xbf16>, vector<4x128xf32> -> vector<4x128xf32>
    %372 = arith.addf %360, %371 : vector<4x128xf32>
    %c2_i32_322 = arith.constant 2 : i32
    %373 = arith.muli %c2_i32_322, %359 : i32
    %c0_i32_323 = arith.constant 0 : i32
    %374 = arith.addi %373, %c0_i32_323 : i32
    %c2_i32_324 = arith.constant 2 : i32
    %375 = arith.muli %374, %c2_i32_324 : i32
    %c1_i32_325 = arith.constant 1 : i32
    %376 = arith.addi %375, %c1_i32_325 : i32
    %c0_326 = arith.constant 0 : index
    %377 = arith.index_cast %376 : i32 to index
    %c0_327 = arith.constant 0 : index
    %c0_328 = arith.constant 0 : index
    %378 = vector.load %arg3[%c0_326, %377, %c0_327, %c0_328] : memref<1x20x5x128xbf16, #tpu.memory_space<vmem>>, vector<1x1x5x128xbf16>
    %379 = vector.shape_cast %378 : vector<1x1x5x128xbf16> to vector<5x128xbf16>
    %380 = vector.extract_strided_slice %379 {offsets = [0, 0], sizes = [4, 128], strides = [1, 1]} : vector<5x128xbf16> to vector<4x128xbf16>
    %c1_329 = arith.constant 1 : index
    %c0_330 = arith.constant 0 : index
    %c0_331 = arith.constant 0 : index
    %381 = vector.load %arg4[%c1_329, %c0_330, %c0_331] : memref<9x128x128xbf16, #tpu.memory_space<vmem>>, vector<1x128x128xbf16>
    %382 = vector.shape_cast %381 : vector<1x128x128xbf16> to vector<128x128xbf16>
    %cst_332 = arith.constant dense<0.000000e+00> : vector<4x128xf32>
    %383 = tpu.matmul %380, %382, %cst_332 {dimension_numbers = #tpu.dot_dimension_numbers<[1], [0], [0], [1], [0, 0, 1, 1], [], []>} : vector<4x128xbf16>, vector<128x128xbf16>, vector<4x128xf32> -> vector<4x128xf32>
    %384 = arith.addf %372, %383 : vector<4x128xf32>
    %c2_i32_333 = arith.constant 2 : i32
    %385 = arith.muli %c2_i32_333, %359 : i32
    %c0_i32_334 = arith.constant 0 : i32
    %386 = arith.addi %385, %c0_i32_334 : i32
    %c2_i32_335 = arith.constant 2 : i32
    %387 = arith.muli %386, %c2_i32_335 : i32
    %c0_i32_336 = arith.constant 0 : i32
    %388 = arith.addi %387, %c0_i32_336 : i32
    %c0_337 = arith.constant 0 : index
    %389 = arith.index_cast %388 : i32 to index
    %c0_338 = arith.constant 0 : index
    %c0_339 = arith.constant 0 : index
    %390 = vector.load %arg3[%c0_337, %389, %c0_338, %c0_339] : memref<1x20x5x128xbf16, #tpu.memory_space<vmem>>, vector<1x1x5x128xbf16>
    %391 = vector.shape_cast %390 : vector<1x1x5x128xbf16> to vector<5x128xbf16>
    %392 = vector.extract_strided_slice %391 {offsets = [1, 0], sizes = [4, 128], strides = [1, 1]} : vector<5x128xbf16> to vector<4x128xbf16>
    %c2_340 = arith.constant 2 : index
    %c0_341 = arith.constant 0 : index
    %c0_342 = arith.constant 0 : index
    %393 = vector.load %arg4[%c2_340, %c0_341, %c0_342] : memref<9x128x128xbf16, #tpu.memory_space<vmem>>, vector<1x128x128xbf16>
    %394 = vector.shape_cast %393 : vector<1x128x128xbf16> to vector<128x128xbf16>
    %cst_343 = arith.constant dense<0.000000e+00> : vector<4x128xf32>
    %395 = tpu.matmul %392, %394, %cst_343 {dimension_numbers = #tpu.dot_dimension_numbers<[1], [0], [0], [1], [0, 0, 1, 1], [], []>} : vector<4x128xbf16>, vector<128x128xbf16>, vector<4x128xf32> -> vector<4x128xf32>
    %396 = arith.addf %384, %395 : vector<4x128xf32>
    %c2_i32_344 = arith.constant 2 : i32
    %397 = arith.muli %c2_i32_344, %359 : i32
    %c1_i32_345 = arith.constant 1 : i32
    %398 = arith.addi %397, %c1_i32_345 : i32
    %c2_i32_346 = arith.constant 2 : i32
    %399 = arith.muli %398, %c2_i32_346 : i32
    %c0_i32_347 = arith.constant 0 : i32
    %400 = arith.addi %399, %c0_i32_347 : i32
    %c0_348 = arith.constant 0 : index
    %401 = arith.index_cast %400 : i32 to index
    %c0_349 = arith.constant 0 : index
    %c0_350 = arith.constant 0 : index
    %402 = vector.load %arg3[%c0_348, %401, %c0_349, %c0_350] : memref<1x20x5x128xbf16, #tpu.memory_space<vmem>>, vector<1x1x5x128xbf16>
    %403 = vector.shape_cast %402 : vector<1x1x5x128xbf16> to vector<5x128xbf16>
    %404 = vector.extract_strided_slice %403 {offsets = [0, 0], sizes = [4, 128], strides = [1, 1]} : vector<5x128xbf16> to vector<4x128xbf16>
    %c3_351 = arith.constant 3 : index
    %c0_352 = arith.constant 0 : index
    %c0_353 = arith.constant 0 : index
    %405 = vector.load %arg4[%c3_351, %c0_352, %c0_353] : memref<9x128x128xbf16, #tpu.memory_space<vmem>>, vector<1x128x128xbf16>
    %406 = vector.shape_cast %405 : vector<1x128x128xbf16> to vector<128x128xbf16>
    %cst_354 = arith.constant dense<0.000000e+00> : vector<4x128xf32>
    %407 = tpu.matmul %404, %406, %cst_354 {dimension_numbers = #tpu.dot_dimension_numbers<[1], [0], [0], [1], [0, 0, 1, 1], [], []>} : vector<4x128xbf16>, vector<128x128xbf16>, vector<4x128xf32> -> vector<4x128xf32>
    %408 = arith.addf %396, %407 : vector<4x128xf32>
    %c2_i32_355 = arith.constant 2 : i32
    %409 = arith.muli %c2_i32_355, %359 : i32
    %c1_i32_356 = arith.constant 1 : i32
    %410 = arith.addi %409, %c1_i32_356 : i32
    %c2_i32_357 = arith.constant 2 : i32
    %411 = arith.muli %410, %c2_i32_357 : i32
    %c1_i32_358 = arith.constant 1 : i32
    %412 = arith.addi %411, %c1_i32_358 : i32
    %c0_359 = arith.constant 0 : index
    %413 = arith.index_cast %412 : i32 to index
    %c0_360 = arith.constant 0 : index
    %c0_361 = arith.constant 0 : index
    %414 = vector.load %arg3[%c0_359, %413, %c0_360, %c0_361] : memref<1x20x5x128xbf16, #tpu.memory_space<vmem>>, vector<1x1x5x128xbf16>
    %415 = vector.shape_cast %414 : vector<1x1x5x128xbf16> to vector<5x128xbf16>
    %416 = vector.extract_strided_slice %415 {offsets = [0, 0], sizes = [4, 128], strides = [1, 1]} : vector<5x128xbf16> to vector<4x128xbf16>
    %c4_362 = arith.constant 4 : index
    %c0_363 = arith.constant 0 : index
    %c0_364 = arith.constant 0 : index
    %417 = vector.load %arg4[%c4_362, %c0_363, %c0_364] : memref<9x128x128xbf16, #tpu.memory_space<vmem>>, vector<1x128x128xbf16>
    %418 = vector.shape_cast %417 : vector<1x128x128xbf16> to vector<128x128xbf16>
    %cst_365 = arith.constant dense<0.000000e+00> : vector<4x128xf32>
    %419 = tpu.matmul %416, %418, %cst_365 {dimension_numbers = #tpu.dot_dimension_numbers<[1], [0], [0], [1], [0, 0, 1, 1], [], []>} : vector<4x128xbf16>, vector<128x128xbf16>, vector<4x128xf32> -> vector<4x128xf32>
    %420 = arith.addf %408, %419 : vector<4x128xf32>
    %c2_i32_366 = arith.constant 2 : i32
    %421 = arith.muli %c2_i32_366, %359 : i32
    %c1_i32_367 = arith.constant 1 : i32
    %422 = arith.addi %421, %c1_i32_367 : i32
    %c2_i32_368 = arith.constant 2 : i32
    %423 = arith.muli %422, %c2_i32_368 : i32
    %c0_i32_369 = arith.constant 0 : i32
    %424 = arith.addi %423, %c0_i32_369 : i32
    %c0_370 = arith.constant 0 : index
    %425 = arith.index_cast %424 : i32 to index
    %c0_371 = arith.constant 0 : index
    %c0_372 = arith.constant 0 : index
    %426 = vector.load %arg3[%c0_370, %425, %c0_371, %c0_372] : memref<1x20x5x128xbf16, #tpu.memory_space<vmem>>, vector<1x1x5x128xbf16>
    %427 = vector.shape_cast %426 : vector<1x1x5x128xbf16> to vector<5x128xbf16>
    %428 = vector.extract_strided_slice %427 {offsets = [1, 0], sizes = [4, 128], strides = [1, 1]} : vector<5x128xbf16> to vector<4x128xbf16>
    %c5_373 = arith.constant 5 : index
    %c0_374 = arith.constant 0 : index
    %c0_375 = arith.constant 0 : index
    %429 = vector.load %arg4[%c5_373, %c0_374, %c0_375] : memref<9x128x128xbf16, #tpu.memory_space<vmem>>, vector<1x128x128xbf16>
    %430 = vector.shape_cast %429 : vector<1x128x128xbf16> to vector<128x128xbf16>
    %cst_376 = arith.constant dense<0.000000e+00> : vector<4x128xf32>
    %431 = tpu.matmul %428, %430, %cst_376 {dimension_numbers = #tpu.dot_dimension_numbers<[1], [0], [0], [1], [0, 0, 1, 1], [], []>} : vector<4x128xbf16>, vector<128x128xbf16>, vector<4x128xf32> -> vector<4x128xf32>
    %432 = arith.addf %420, %431 : vector<4x128xf32>
    %c2_i32_377 = arith.constant 2 : i32
    %433 = arith.muli %c2_i32_377, %359 : i32
    %c2_i32_378 = arith.constant 2 : i32
    %434 = arith.addi %433, %c2_i32_378 : i32
    %c2_i32_379 = arith.constant 2 : i32
    %435 = arith.muli %434, %c2_i32_379 : i32
    %c0_i32_380 = arith.constant 0 : i32
    %436 = arith.addi %435, %c0_i32_380 : i32
    %c0_381 = arith.constant 0 : index
    %437 = arith.index_cast %436 : i32 to index
    %c0_382 = arith.constant 0 : index
    %c0_383 = arith.constant 0 : index
    %438 = vector.load %arg3[%c0_381, %437, %c0_382, %c0_383] : memref<1x20x5x128xbf16, #tpu.memory_space<vmem>>, vector<1x1x5x128xbf16>
    %439 = vector.shape_cast %438 : vector<1x1x5x128xbf16> to vector<5x128xbf16>
    %440 = vector.extract_strided_slice %439 {offsets = [0, 0], sizes = [4, 128], strides = [1, 1]} : vector<5x128xbf16> to vector<4x128xbf16>
    %c6_384 = arith.constant 6 : index
    %c0_385 = arith.constant 0 : index
    %c0_386 = arith.constant 0 : index
    %441 = vector.load %arg4[%c6_384, %c0_385, %c0_386] : memref<9x128x128xbf16, #tpu.memory_space<vmem>>, vector<1x128x128xbf16>
    %442 = vector.shape_cast %441 : vector<1x128x128xbf16> to vector<128x128xbf16>
    %cst_387 = arith.constant dense<0.000000e+00> : vector<4x128xf32>
    %443 = tpu.matmul %440, %442, %cst_387 {dimension_numbers = #tpu.dot_dimension_numbers<[1], [0], [0], [1], [0, 0, 1, 1], [], []>} : vector<4x128xbf16>, vector<128x128xbf16>, vector<4x128xf32> -> vector<4x128xf32>
    %444 = arith.addf %432, %443 : vector<4x128xf32>
    %c2_i32_388 = arith.constant 2 : i32
    %445 = arith.muli %c2_i32_388, %359 : i32
    %c2_i32_389 = arith.constant 2 : i32
    %446 = arith.addi %445, %c2_i32_389 : i32
    %c2_i32_390 = arith.constant 2 : i32
    %447 = arith.muli %446, %c2_i32_390 : i32
    %c1_i32_391 = arith.constant 1 : i32
    %448 = arith.addi %447, %c1_i32_391 : i32
    %c0_392 = arith.constant 0 : index
    %449 = arith.index_cast %448 : i32 to index
    %c0_393 = arith.constant 0 : index
    %c0_394 = arith.constant 0 : index
    %450 = vector.load %arg3[%c0_392, %449, %c0_393, %c0_394] : memref<1x20x5x128xbf16, #tpu.memory_space<vmem>>, vector<1x1x5x128xbf16>
    %451 = vector.shape_cast %450 : vector<1x1x5x128xbf16> to vector<5x128xbf16>
    %452 = vector.extract_strided_slice %451 {offsets = [0, 0], sizes = [4, 128], strides = [1, 1]} : vector<5x128xbf16> to vector<4x128xbf16>
    %c7_395 = arith.constant 7 : index
    %c0_396 = arith.constant 0 : index
    %c0_397 = arith.constant 0 : index
    %453 = vector.load %arg4[%c7_395, %c0_396, %c0_397] : memref<9x128x128xbf16, #tpu.memory_space<vmem>>, vector<1x128x128xbf16>
    %454 = vector.shape_cast %453 : vector<1x128x128xbf16> to vector<128x128xbf16>
    %cst_398 = arith.constant dense<0.000000e+00> : vector<4x128xf32>
    %455 = tpu.matmul %452, %454, %cst_398 {dimension_numbers = #tpu.dot_dimension_numbers<[1], [0], [0], [1], [0, 0, 1, 1], [], []>} : vector<4x128xbf16>, vector<128x128xbf16>, vector<4x128xf32> -> vector<4x128xf32>
    %456 = arith.addf %444, %455 : vector<4x128xf32>
    %c2_i32_399 = arith.constant 2 : i32
    %457 = arith.muli %c2_i32_399, %359 : i32
    %c2_i32_400 = arith.constant 2 : i32
    %458 = arith.addi %457, %c2_i32_400 : i32
    %c2_i32_401 = arith.constant 2 : i32
    %459 = arith.muli %458, %c2_i32_401 : i32
    %c0_i32_402 = arith.constant 0 : i32
    %460 = arith.addi %459, %c0_i32_402 : i32
    %c0_403 = arith.constant 0 : index
    %461 = arith.index_cast %460 : i32 to index
    %c0_404 = arith.constant 0 : index
    %c0_405 = arith.constant 0 : index
    %462 = vector.load %arg3[%c0_403, %461, %c0_404, %c0_405] : memref<1x20x5x128xbf16, #tpu.memory_space<vmem>>, vector<1x1x5x128xbf16>
    %463 = vector.shape_cast %462 : vector<1x1x5x128xbf16> to vector<5x128xbf16>
    %464 = vector.extract_strided_slice %463 {offsets = [1, 0], sizes = [4, 128], strides = [1, 1]} : vector<5x128xbf16> to vector<4x128xbf16>
    %c8_406 = arith.constant 8 : index
    %c0_407 = arith.constant 0 : index
    %c0_408 = arith.constant 0 : index
    %465 = vector.load %arg4[%c8_406, %c0_407, %c0_408] : memref<9x128x128xbf16, #tpu.memory_space<vmem>>, vector<1x128x128xbf16>
    %466 = vector.shape_cast %465 : vector<1x128x128xbf16> to vector<128x128xbf16>
    %cst_409 = arith.constant dense<0.000000e+00> : vector<4x128xf32>
    %467 = tpu.matmul %464, %466, %cst_409 {dimension_numbers = #tpu.dot_dimension_numbers<[1], [0], [0], [1], [0, 0, 1, 1], [], []>} : vector<4x128xbf16>, vector<128x128xbf16>, vector<4x128xf32> -> vector<4x128xf32>
    %468 = arith.addf %456, %467 : vector<4x128xf32>
    %469 = vector.broadcast %0 : vector<1x128xf32> to vector<4x128xf32>
    %470 = arith.addf %468, %469 : vector<4x128xf32>
    %cst_410 = arith.constant 0.000000e+00 : f32
    %471 = vector.broadcast %cst_410 : f32 to vector<4x128xf32>
    %472 = arith.maximumf %470, %471 : vector<4x128xf32>
    %473 = arith.truncf %472 : vector<4x128xf32> to vector<4x128xbf16>
    %c0_411 = arith.constant 0 : index
    %c3_412 = arith.constant 3 : index
    %c0_413 = arith.constant 0 : index
    %c0_414 = arith.constant 0 : index
    %474 = vector.load %arg6[%c0_411, %c3_412, %c0_413, %c0_414] : memref<1x4x4x128xbf16, #tpu.memory_space<vmem>>, vector<1x1x4x128xbf16>
    %475 = vector.shape_cast %474 : vector<1x1x4x128xbf16> to vector<4x128xbf16>
    %476 = vector.shape_cast %473 : vector<4x128xbf16> to vector<1x1x4x128xbf16>
    tpu.vector_store %arg6[%c0_411, %c3_412, %c0_413, %c0_414], %476 {strides = array<i32>} : memref<1x4x4x128xbf16, #tpu.memory_space<vmem>>, vector<1x1x4x128xbf16>,
    return
  }
  func.func @transform_0(%arg0: i32, %arg1: i32, %arg2: i32) -> (i32, i32, i32, i32) {
    %c0_i32 = arith.constant 0 : i32
    %c0_i32_0 = arith.constant 0 : i32
    %c0_i32_1 = arith.constant 0 : i32
    %c0_i32_2 = arith.constant 0 : i32
    return %arg0, %c0_i32, %c0_i32_0, %c0_i32_1 : i32, i32, i32, i32
  }
  func.func @transform_1(%arg0: i32, %arg1: i32, %arg2: i32) -> (i32, i32, i32) {
    %c0_i32 = arith.constant 0 : i32
    %c0_i32_0 = arith.constant 0 : i32
    %c0_i32_1 = arith.constant 0 : i32
    return %c0_i32, %c0_i32_0, %arg1 : i32, i32, i32
  }
  func.func @transform_2(%arg0: i32, %arg1: i32, %arg2: i32) -> (i32, i32) {
    %c0_i32 = arith.constant 0 : i32
    %c0_i32_0 = arith.constant 0 : i32
    return %c0_i32, %arg1 : i32, i32
  }
  func.func @transform_3(%arg0: i32, %arg1: i32, %arg2: i32) -> (i32, i32, i32, i32) {
    %c0_i32 = arith.constant 0 : i32
    %c0_i32_0 = arith.constant 0 : i32
    return %arg0, %arg2, %c0_i32, %arg1 : i32, i32, i32, i32
  }
}

module attributes {stable_mosaic.version = 11 : i64} {
  func.func @_conv_kernel(%arg0: i32, %arg1: i32, %arg2: i32, %arg3: memref<1x12x3x128xbf16, #tpu.memory_space<vmem>>, %arg4: memref<9x128x128xbf16, #tpu.memory_space<vmem>>, %arg5: memref<1x128xf32, #tpu.memory_space<vmem>>, %arg6: memref<1x2x2x128xbf16, #tpu.memory_space<vmem>>) attributes {dimension_semantics = [#tpu.dimension_semantics<parallel>, #tpu.dimension_semantics<parallel>, #tpu.dimension_semantics<parallel>], iteration_bounds = array<i64: 2, 1, 1>, scalar_prefetch = 0 : i64, scratch_operands = 0 : i64, tpu.core_type = #tpu.core_type<tc>, window_params = [{transform_indices = @transform_0, window_bounds = array<i64: 1, 12, 3, 128>}, {transform_indices = @transform_1, window_bounds = array<i64: 9, 128, 128>}, {transform_indices = @transform_2, window_bounds = array<i64: 1, 128>}, {transform_indices = @transform_3, window_bounds = array<i64: 1, 2, 2, 128>}]} {
    %c0 = arith.constant 0 : index
    %c0_0 = arith.constant 0 : index
    %0 = vector.load %arg5[%c0, %c0_0] : memref<1x128xf32, #tpu.memory_space<vmem>>, vector<1x128xf32>
    %c2_i32 = arith.constant 2 : i32
    %1 = arith.muli %arg2, %c2_i32 : i32
    %c0_i32 = arith.constant 0 : i32
    %2 = arith.addi %1, %c0_i32 : i32
    %cst = arith.constant 0.000000e+00 : f32
    %3 = vector.broadcast %cst : f32 to vector<2x128xf32>
    %c2_i32_1 = arith.constant 2 : i32
    %4 = arith.muli %c2_i32_1, %2 : i32
    %c0_i32_2 = arith.constant 0 : i32
    %5 = arith.addi %4, %c0_i32_2 : i32
    %c2_i32_3 = arith.constant 2 : i32
    %6 = arith.muli %5, %c2_i32_3 : i32
    %c0_i32_4 = arith.constant 0 : i32
    %7 = arith.addi %6, %c0_i32_4 : i32
    %c0_5 = arith.constant 0 : index
    %8 = arith.index_cast %7 : i32 to index
    %c0_6 = arith.constant 0 : index
    %c0_7 = arith.constant 0 : index
    %9 = vector.load %arg3[%c0_5, %8, %c0_6, %c0_7] : memref<1x12x3x128xbf16, #tpu.memory_space<vmem>>, vector<1x1x3x128xbf16>
    %10 = vector.shape_cast %9 : vector<1x1x3x128xbf16> to vector<3x128xbf16>
    %11 = vector.extract_strided_slice %10 {offsets = [0, 0], sizes = [2, 128], strides = [1, 1]} : vector<3x128xbf16> to vector<2x128xbf16>
    %c0_8 = arith.constant 0 : index
    %c0_9 = arith.constant 0 : index
    %c0_10 = arith.constant 0 : index
    %12 = vector.load %arg4[%c0_8, %c0_9, %c0_10] : memref<9x128x128xbf16, #tpu.memory_space<vmem>>, vector<1x128x128xbf16>
    %13 = vector.shape_cast %12 : vector<1x128x128xbf16> to vector<128x128xbf16>
    %cst_11 = arith.constant dense<0.000000e+00> : vector<2x128xf32>
    %14 = tpu.matmul %11, %13, %cst_11 {dimension_numbers = #tpu.dot_dimension_numbers<[1], [0], [0], [1], [0, 0, 1, 1], [], []>} : vector<2x128xbf16>, vector<128x128xbf16>, vector<2x128xf32> -> vector<2x128xf32>
    %15 = arith.addf %3, %14 : vector<2x128xf32>
    %c2_i32_12 = arith.constant 2 : i32
    %16 = arith.muli %c2_i32_12, %2 : i32
    %c0_i32_13 = arith.constant 0 : i32
    %17 = arith.addi %16, %c0_i32_13 : i32
    %c2_i32_14 = arith.constant 2 : i32
    %18 = arith.muli %17, %c2_i32_14 : i32
    %c1_i32 = arith.constant 1 : i32
    %19 = arith.addi %18, %c1_i32 : i32
    %c0_15 = arith.constant 0 : index
    %20 = arith.index_cast %19 : i32 to index
    %c0_16 = arith.constant 0 : index
    %c0_17 = arith.constant 0 : index
    %21 = vector.load %arg3[%c0_15, %20, %c0_16, %c0_17] : memref<1x12x3x128xbf16, #tpu.memory_space<vmem>>, vector<1x1x3x128xbf16>
    %22 = vector.shape_cast %21 : vector<1x1x3x128xbf16> to vector<3x128xbf16>
    %23 = vector.extract_strided_slice %22 {offsets = [0, 0], sizes = [2, 128], strides = [1, 1]} : vector<3x128xbf16> to vector<2x128xbf16>
    %c1 = arith.constant 1 : index
    %c0_18 = arith.constant 0 : index
    %c0_19 = arith.constant 0 : index
    %24 = vector.load %arg4[%c1, %c0_18, %c0_19] : memref<9x128x128xbf16, #tpu.memory_space<vmem>>, vector<1x128x128xbf16>
    %25 = vector.shape_cast %24 : vector<1x128x128xbf16> to vector<128x128xbf16>
    %cst_20 = arith.constant dense<0.000000e+00> : vector<2x128xf32>
    %26 = tpu.matmul %23, %25, %cst_20 {dimension_numbers = #tpu.dot_dimension_numbers<[1], [0], [0], [1], [0, 0, 1, 1], [], []>} : vector<2x128xbf16>, vector<128x128xbf16>, vector<2x128xf32> -> vector<2x128xf32>
    %27 = arith.addf %15, %26 : vector<2x128xf32>
    %c2_i32_21 = arith.constant 2 : i32
    %28 = arith.muli %c2_i32_21, %2 : i32
    %c0_i32_22 = arith.constant 0 : i32
    %29 = arith.addi %28, %c0_i32_22 : i32
    %c2_i32_23 = arith.constant 2 : i32
    %30 = arith.muli %29, %c2_i32_23 : i32
    %c0_i32_24 = arith.constant 0 : i32
    %31 = arith.addi %30, %c0_i32_24 : i32
    %c0_25 = arith.constant 0 : index
    %32 = arith.index_cast %31 : i32 to index
    %c0_26 = arith.constant 0 : index
    %c0_27 = arith.constant 0 : index
    %33 = vector.load %arg3[%c0_25, %32, %c0_26, %c0_27] : memref<1x12x3x128xbf16, #tpu.memory_space<vmem>>, vector<1x1x3x128xbf16>
    %34 = vector.shape_cast %33 : vector<1x1x3x128xbf16> to vector<3x128xbf16>
    %35 = vector.extract_strided_slice %34 {offsets = [1, 0], sizes = [2, 128], strides = [1, 1]} : vector<3x128xbf16> to vector<2x128xbf16>
    %c2 = arith.constant 2 : index
    %c0_28 = arith.constant 0 : index
    %c0_29 = arith.constant 0 : index
    %36 = vector.load %arg4[%c2, %c0_28, %c0_29] : memref<9x128x128xbf16, #tpu.memory_space<vmem>>, vector<1x128x128xbf16>
    %37 = vector.shape_cast %36 : vector<1x128x128xbf16> to vector<128x128xbf16>
    %cst_30 = arith.constant dense<0.000000e+00> : vector<2x128xf32>
    %38 = tpu.matmul %35, %37, %cst_30 {dimension_numbers = #tpu.dot_dimension_numbers<[1], [0], [0], [1], [0, 0, 1, 1], [], []>} : vector<2x128xbf16>, vector<128x128xbf16>, vector<2x128xf32> -> vector<2x128xf32>
    %39 = arith.addf %27, %38 : vector<2x128xf32>
    %c2_i32_31 = arith.constant 2 : i32
    %40 = arith.muli %c2_i32_31, %2 : i32
    %c1_i32_32 = arith.constant 1 : i32
    %41 = arith.addi %40, %c1_i32_32 : i32
    %c2_i32_33 = arith.constant 2 : i32
    %42 = arith.muli %41, %c2_i32_33 : i32
    %c0_i32_34 = arith.constant 0 : i32
    %43 = arith.addi %42, %c0_i32_34 : i32
    %c0_35 = arith.constant 0 : index
    %44 = arith.index_cast %43 : i32 to index
    %c0_36 = arith.constant 0 : index
    %c0_37 = arith.constant 0 : index
    %45 = vector.load %arg3[%c0_35, %44, %c0_36, %c0_37] : memref<1x12x3x128xbf16, #tpu.memory_space<vmem>>, vector<1x1x3x128xbf16>
    %46 = vector.shape_cast %45 : vector<1x1x3x128xbf16> to vector<3x128xbf16>
    %47 = vector.extract_strided_slice %46 {offsets = [0, 0], sizes = [2, 128], strides = [1, 1]} : vector<3x128xbf16> to vector<2x128xbf16>
    %c3 = arith.constant 3 : index
    %c0_38 = arith.constant 0 : index
    %c0_39 = arith.constant 0 : index
    %48 = vector.load %arg4[%c3, %c0_38, %c0_39] : memref<9x128x128xbf16, #tpu.memory_space<vmem>>, vector<1x128x128xbf16>
    %49 = vector.shape_cast %48 : vector<1x128x128xbf16> to vector<128x128xbf16>
    %cst_40 = arith.constant dense<0.000000e+00> : vector<2x128xf32>
    %50 = tpu.matmul %47, %49, %cst_40 {dimension_numbers = #tpu.dot_dimension_numbers<[1], [0], [0], [1], [0, 0, 1, 1], [], []>} : vector<2x128xbf16>, vector<128x128xbf16>, vector<2x128xf32> -> vector<2x128xf32>
    %51 = arith.addf %39, %50 : vector<2x128xf32>
    %c2_i32_41 = arith.constant 2 : i32
    %52 = arith.muli %c2_i32_41, %2 : i32
    %c1_i32_42 = arith.constant 1 : i32
    %53 = arith.addi %52, %c1_i32_42 : i32
    %c2_i32_43 = arith.constant 2 : i32
    %54 = arith.muli %53, %c2_i32_43 : i32
    %c1_i32_44 = arith.constant 1 : i32
    %55 = arith.addi %54, %c1_i32_44 : i32
    %c0_45 = arith.constant 0 : index
    %56 = arith.index_cast %55 : i32 to index
    %c0_46 = arith.constant 0 : index
    %c0_47 = arith.constant 0 : index
    %57 = vector.load %arg3[%c0_45, %56, %c0_46, %c0_47] : memref<1x12x3x128xbf16, #tpu.memory_space<vmem>>, vector<1x1x3x128xbf16>
    %58 = vector.shape_cast %57 : vector<1x1x3x128xbf16> to vector<3x128xbf16>
    %59 = vector.extract_strided_slice %58 {offsets = [0, 0], sizes = [2, 128], strides = [1, 1]} : vector<3x128xbf16> to vector<2x128xbf16>
    %c4 = arith.constant 4 : index
    %c0_48 = arith.constant 0 : index
    %c0_49 = arith.constant 0 : index
    %60 = vector.load %arg4[%c4, %c0_48, %c0_49] : memref<9x128x128xbf16, #tpu.memory_space<vmem>>, vector<1x128x128xbf16>
    %61 = vector.shape_cast %60 : vector<1x128x128xbf16> to vector<128x128xbf16>
    %cst_50 = arith.constant dense<0.000000e+00> : vector<2x128xf32>
    %62 = tpu.matmul %59, %61, %cst_50 {dimension_numbers = #tpu.dot_dimension_numbers<[1], [0], [0], [1], [0, 0, 1, 1], [], []>} : vector<2x128xbf16>, vector<128x128xbf16>, vector<2x128xf32> -> vector<2x128xf32>
    %63 = arith.addf %51, %62 : vector<2x128xf32>
    %c2_i32_51 = arith.constant 2 : i32
    %64 = arith.muli %c2_i32_51, %2 : i32
    %c1_i32_52 = arith.constant 1 : i32
    %65 = arith.addi %64, %c1_i32_52 : i32
    %c2_i32_53 = arith.constant 2 : i32
    %66 = arith.muli %65, %c2_i32_53 : i32
    %c0_i32_54 = arith.constant 0 : i32
    %67 = arith.addi %66, %c0_i32_54 : i32
    %c0_55 = arith.constant 0 : index
    %68 = arith.index_cast %67 : i32 to index
    %c0_56 = arith.constant 0 : index
    %c0_57 = arith.constant 0 : index
    %69 = vector.load %arg3[%c0_55, %68, %c0_56, %c0_57] : memref<1x12x3x128xbf16, #tpu.memory_space<vmem>>, vector<1x1x3x128xbf16>
    %70 = vector.shape_cast %69 : vector<1x1x3x128xbf16> to vector<3x128xbf16>
    %71 = vector.extract_strided_slice %70 {offsets = [1, 0], sizes = [2, 128], strides = [1, 1]} : vector<3x128xbf16> to vector<2x128xbf16>
    %c5 = arith.constant 5 : index
    %c0_58 = arith.constant 0 : index
    %c0_59 = arith.constant 0 : index
    %72 = vector.load %arg4[%c5, %c0_58, %c0_59] : memref<9x128x128xbf16, #tpu.memory_space<vmem>>, vector<1x128x128xbf16>
    %73 = vector.shape_cast %72 : vector<1x128x128xbf16> to vector<128x128xbf16>
    %cst_60 = arith.constant dense<0.000000e+00> : vector<2x128xf32>
    %74 = tpu.matmul %71, %73, %cst_60 {dimension_numbers = #tpu.dot_dimension_numbers<[1], [0], [0], [1], [0, 0, 1, 1], [], []>} : vector<2x128xbf16>, vector<128x128xbf16>, vector<2x128xf32> -> vector<2x128xf32>
    %75 = arith.addf %63, %74 : vector<2x128xf32>
    %c2_i32_61 = arith.constant 2 : i32
    %76 = arith.muli %c2_i32_61, %2 : i32
    %c2_i32_62 = arith.constant 2 : i32
    %77 = arith.addi %76, %c2_i32_62 : i32
    %c2_i32_63 = arith.constant 2 : i32
    %78 = arith.muli %77, %c2_i32_63 : i32
    %c0_i32_64 = arith.constant 0 : i32
    %79 = arith.addi %78, %c0_i32_64 : i32
    %c0_65 = arith.constant 0 : index
    %80 = arith.index_cast %79 : i32 to index
    %c0_66 = arith.constant 0 : index
    %c0_67 = arith.constant 0 : index
    %81 = vector.load %arg3[%c0_65, %80, %c0_66, %c0_67] : memref<1x12x3x128xbf16, #tpu.memory_space<vmem>>, vector<1x1x3x128xbf16>
    %82 = vector.shape_cast %81 : vector<1x1x3x128xbf16> to vector<3x128xbf16>
    %83 = vector.extract_strided_slice %82 {offsets = [0, 0], sizes = [2, 128], strides = [1, 1]} : vector<3x128xbf16> to vector<2x128xbf16>
    %c6 = arith.constant 6 : index
    %c0_68 = arith.constant 0 : index
    %c0_69 = arith.constant 0 : index
    %84 = vector.load %arg4[%c6, %c0_68, %c0_69] : memref<9x128x128xbf16, #tpu.memory_space<vmem>>, vector<1x128x128xbf16>
    %85 = vector.shape_cast %84 : vector<1x128x128xbf16> to vector<128x128xbf16>
    %cst_70 = arith.constant dense<0.000000e+00> : vector<2x128xf32>
    %86 = tpu.matmul %83, %85, %cst_70 {dimension_numbers = #tpu.dot_dimension_numbers<[1], [0], [0], [1], [0, 0, 1, 1], [], []>} : vector<2x128xbf16>, vector<128x128xbf16>, vector<2x128xf32> -> vector<2x128xf32>
    %87 = arith.addf %75, %86 : vector<2x128xf32>
    %c2_i32_71 = arith.constant 2 : i32
    %88 = arith.muli %c2_i32_71, %2 : i32
    %c2_i32_72 = arith.constant 2 : i32
    %89 = arith.addi %88, %c2_i32_72 : i32
    %c2_i32_73 = arith.constant 2 : i32
    %90 = arith.muli %89, %c2_i32_73 : i32
    %c1_i32_74 = arith.constant 1 : i32
    %91 = arith.addi %90, %c1_i32_74 : i32
    %c0_75 = arith.constant 0 : index
    %92 = arith.index_cast %91 : i32 to index
    %c0_76 = arith.constant 0 : index
    %c0_77 = arith.constant 0 : index
    %93 = vector.load %arg3[%c0_75, %92, %c0_76, %c0_77] : memref<1x12x3x128xbf16, #tpu.memory_space<vmem>>, vector<1x1x3x128xbf16>
    %94 = vector.shape_cast %93 : vector<1x1x3x128xbf16> to vector<3x128xbf16>
    %95 = vector.extract_strided_slice %94 {offsets = [0, 0], sizes = [2, 128], strides = [1, 1]} : vector<3x128xbf16> to vector<2x128xbf16>
    %c7 = arith.constant 7 : index
    %c0_78 = arith.constant 0 : index
    %c0_79 = arith.constant 0 : index
    %96 = vector.load %arg4[%c7, %c0_78, %c0_79] : memref<9x128x128xbf16, #tpu.memory_space<vmem>>, vector<1x128x128xbf16>
    %97 = vector.shape_cast %96 : vector<1x128x128xbf16> to vector<128x128xbf16>
    %cst_80 = arith.constant dense<0.000000e+00> : vector<2x128xf32>
    %98 = tpu.matmul %95, %97, %cst_80 {dimension_numbers = #tpu.dot_dimension_numbers<[1], [0], [0], [1], [0, 0, 1, 1], [], []>} : vector<2x128xbf16>, vector<128x128xbf16>, vector<2x128xf32> -> vector<2x128xf32>
    %99 = arith.addf %87, %98 : vector<2x128xf32>
    %c2_i32_81 = arith.constant 2 : i32
    %100 = arith.muli %c2_i32_81, %2 : i32
    %c2_i32_82 = arith.constant 2 : i32
    %101 = arith.addi %100, %c2_i32_82 : i32
    %c2_i32_83 = arith.constant 2 : i32
    %102 = arith.muli %101, %c2_i32_83 : i32
    %c0_i32_84 = arith.constant 0 : i32
    %103 = arith.addi %102, %c0_i32_84 : i32
    %c0_85 = arith.constant 0 : index
    %104 = arith.index_cast %103 : i32 to index
    %c0_86 = arith.constant 0 : index
    %c0_87 = arith.constant 0 : index
    %105 = vector.load %arg3[%c0_85, %104, %c0_86, %c0_87] : memref<1x12x3x128xbf16, #tpu.memory_space<vmem>>, vector<1x1x3x128xbf16>
    %106 = vector.shape_cast %105 : vector<1x1x3x128xbf16> to vector<3x128xbf16>
    %107 = vector.extract_strided_slice %106 {offsets = [1, 0], sizes = [2, 128], strides = [1, 1]} : vector<3x128xbf16> to vector<2x128xbf16>
    %c8 = arith.constant 8 : index
    %c0_88 = arith.constant 0 : index
    %c0_89 = arith.constant 0 : index
    %108 = vector.load %arg4[%c8, %c0_88, %c0_89] : memref<9x128x128xbf16, #tpu.memory_space<vmem>>, vector<1x128x128xbf16>
    %109 = vector.shape_cast %108 : vector<1x128x128xbf16> to vector<128x128xbf16>
    %cst_90 = arith.constant dense<0.000000e+00> : vector<2x128xf32>
    %110 = tpu.matmul %107, %109, %cst_90 {dimension_numbers = #tpu.dot_dimension_numbers<[1], [0], [0], [1], [0, 0, 1, 1], [], []>} : vector<2x128xbf16>, vector<128x128xbf16>, vector<2x128xf32> -> vector<2x128xf32>
    %111 = arith.addf %99, %110 : vector<2x128xf32>
    %112 = vector.broadcast %0 : vector<1x128xf32> to vector<2x128xf32>
    %113 = arith.addf %111, %112 : vector<2x128xf32>
    %cst_91 = arith.constant 0.000000e+00 : f32
    %114 = vector.broadcast %cst_91 : f32 to vector<2x128xf32>
    %115 = arith.maximumf %113, %114 : vector<2x128xf32>
    %116 = arith.truncf %115 : vector<2x128xf32> to vector<2x128xbf16>
    %c0_92 = arith.constant 0 : index
    %c0_93 = arith.constant 0 : index
    %c0_94 = arith.constant 0 : index
    %c0_95 = arith.constant 0 : index
    %117 = vector.load %arg6[%c0_92, %c0_93, %c0_94, %c0_95] : memref<1x2x2x128xbf16, #tpu.memory_space<vmem>>, vector<1x1x2x128xbf16>
    %118 = vector.shape_cast %117 : vector<1x1x2x128xbf16> to vector<2x128xbf16>
    %119 = vector.shape_cast %116 : vector<2x128xbf16> to vector<1x1x2x128xbf16>
    tpu.vector_store %arg6[%c0_92, %c0_93, %c0_94, %c0_95], %119 {strides = array<i32>} : memref<1x2x2x128xbf16, #tpu.memory_space<vmem>>, vector<1x1x2x128xbf16>,
    %c2_i32_96 = arith.constant 2 : i32
    %120 = arith.muli %arg2, %c2_i32_96 : i32
    %c1_i32_97 = arith.constant 1 : i32
    %121 = arith.addi %120, %c1_i32_97 : i32
    %cst_98 = arith.constant 0.000000e+00 : f32
    %122 = vector.broadcast %cst_98 : f32 to vector<2x128xf32>
    %c2_i32_99 = arith.constant 2 : i32
    %123 = arith.muli %c2_i32_99, %121 : i32
    %c0_i32_100 = arith.constant 0 : i32
    %124 = arith.addi %123, %c0_i32_100 : i32
    %c2_i32_101 = arith.constant 2 : i32
    %125 = arith.muli %124, %c2_i32_101 : i32
    %c0_i32_102 = arith.constant 0 : i32
    %126 = arith.addi %125, %c0_i32_102 : i32
    %c0_103 = arith.constant 0 : index
    %127 = arith.index_cast %126 : i32 to index
    %c0_104 = arith.constant 0 : index
    %c0_105 = arith.constant 0 : index
    %128 = vector.load %arg3[%c0_103, %127, %c0_104, %c0_105] : memref<1x12x3x128xbf16, #tpu.memory_space<vmem>>, vector<1x1x3x128xbf16>
    %129 = vector.shape_cast %128 : vector<1x1x3x128xbf16> to vector<3x128xbf16>
    %130 = vector.extract_strided_slice %129 {offsets = [0, 0], sizes = [2, 128], strides = [1, 1]} : vector<3x128xbf16> to vector<2x128xbf16>
    %c0_106 = arith.constant 0 : index
    %c0_107 = arith.constant 0 : index
    %c0_108 = arith.constant 0 : index
    %131 = vector.load %arg4[%c0_106, %c0_107, %c0_108] : memref<9x128x128xbf16, #tpu.memory_space<vmem>>, vector<1x128x128xbf16>
    %132 = vector.shape_cast %131 : vector<1x128x128xbf16> to vector<128x128xbf16>
    %cst_109 = arith.constant dense<0.000000e+00> : vector<2x128xf32>
    %133 = tpu.matmul %130, %132, %cst_109 {dimension_numbers = #tpu.dot_dimension_numbers<[1], [0], [0], [1], [0, 0, 1, 1], [], []>} : vector<2x128xbf16>, vector<128x128xbf16>, vector<2x128xf32> -> vector<2x128xf32>
    %134 = arith.addf %122, %133 : vector<2x128xf32>
    %c2_i32_110 = arith.constant 2 : i32
    %135 = arith.muli %c2_i32_110, %121 : i32
    %c0_i32_111 = arith.constant 0 : i32
    %136 = arith.addi %135, %c0_i32_111 : i32
    %c2_i32_112 = arith.constant 2 : i32
    %137 = arith.muli %136, %c2_i32_112 : i32
    %c1_i32_113 = arith.constant 1 : i32
    %138 = arith.addi %137, %c1_i32_113 : i32
    %c0_114 = arith.constant 0 : index
    %139 = arith.index_cast %138 : i32 to index
    %c0_115 = arith.constant 0 : index
    %c0_116 = arith.constant 0 : index
    %140 = vector.load %arg3[%c0_114, %139, %c0_115, %c0_116] : memref<1x12x3x128xbf16, #tpu.memory_space<vmem>>, vector<1x1x3x128xbf16>
    %141 = vector.shape_cast %140 : vector<1x1x3x128xbf16> to vector<3x128xbf16>
    %142 = vector.extract_strided_slice %141 {offsets = [0, 0], sizes = [2, 128], strides = [1, 1]} : vector<3x128xbf16> to vector<2x128xbf16>
    %c1_117 = arith.constant 1 : index
    %c0_118 = arith.constant 0 : index
    %c0_119 = arith.constant 0 : index
    %143 = vector.load %arg4[%c1_117, %c0_118, %c0_119] : memref<9x128x128xbf16, #tpu.memory_space<vmem>>, vector<1x128x128xbf16>
    %144 = vector.shape_cast %143 : vector<1x128x128xbf16> to vector<128x128xbf16>
    %cst_120 = arith.constant dense<0.000000e+00> : vector<2x128xf32>
    %145 = tpu.matmul %142, %144, %cst_120 {dimension_numbers = #tpu.dot_dimension_numbers<[1], [0], [0], [1], [0, 0, 1, 1], [], []>} : vector<2x128xbf16>, vector<128x128xbf16>, vector<2x128xf32> -> vector<2x128xf32>
    %146 = arith.addf %134, %145 : vector<2x128xf32>
    %c2_i32_121 = arith.constant 2 : i32
    %147 = arith.muli %c2_i32_121, %121 : i32
    %c0_i32_122 = arith.constant 0 : i32
    %148 = arith.addi %147, %c0_i32_122 : i32
    %c2_i32_123 = arith.constant 2 : i32
    %149 = arith.muli %148, %c2_i32_123 : i32
    %c0_i32_124 = arith.constant 0 : i32
    %150 = arith.addi %149, %c0_i32_124 : i32
    %c0_125 = arith.constant 0 : index
    %151 = arith.index_cast %150 : i32 to index
    %c0_126 = arith.constant 0 : index
    %c0_127 = arith.constant 0 : index
    %152 = vector.load %arg3[%c0_125, %151, %c0_126, %c0_127] : memref<1x12x3x128xbf16, #tpu.memory_space<vmem>>, vector<1x1x3x128xbf16>
    %153 = vector.shape_cast %152 : vector<1x1x3x128xbf16> to vector<3x128xbf16>
    %154 = vector.extract_strided_slice %153 {offsets = [1, 0], sizes = [2, 128], strides = [1, 1]} : vector<3x128xbf16> to vector<2x128xbf16>
    %c2_128 = arith.constant 2 : index
    %c0_129 = arith.constant 0 : index
    %c0_130 = arith.constant 0 : index
    %155 = vector.load %arg4[%c2_128, %c0_129, %c0_130] : memref<9x128x128xbf16, #tpu.memory_space<vmem>>, vector<1x128x128xbf16>
    %156 = vector.shape_cast %155 : vector<1x128x128xbf16> to vector<128x128xbf16>
    %cst_131 = arith.constant dense<0.000000e+00> : vector<2x128xf32>
    %157 = tpu.matmul %154, %156, %cst_131 {dimension_numbers = #tpu.dot_dimension_numbers<[1], [0], [0], [1], [0, 0, 1, 1], [], []>} : vector<2x128xbf16>, vector<128x128xbf16>, vector<2x128xf32> -> vector<2x128xf32>
    %158 = arith.addf %146, %157 : vector<2x128xf32>
    %c2_i32_132 = arith.constant 2 : i32
    %159 = arith.muli %c2_i32_132, %121 : i32
    %c1_i32_133 = arith.constant 1 : i32
    %160 = arith.addi %159, %c1_i32_133 : i32
    %c2_i32_134 = arith.constant 2 : i32
    %161 = arith.muli %160, %c2_i32_134 : i32
    %c0_i32_135 = arith.constant 0 : i32
    %162 = arith.addi %161, %c0_i32_135 : i32
    %c0_136 = arith.constant 0 : index
    %163 = arith.index_cast %162 : i32 to index
    %c0_137 = arith.constant 0 : index
    %c0_138 = arith.constant 0 : index
    %164 = vector.load %arg3[%c0_136, %163, %c0_137, %c0_138] : memref<1x12x3x128xbf16, #tpu.memory_space<vmem>>, vector<1x1x3x128xbf16>
    %165 = vector.shape_cast %164 : vector<1x1x3x128xbf16> to vector<3x128xbf16>
    %166 = vector.extract_strided_slice %165 {offsets = [0, 0], sizes = [2, 128], strides = [1, 1]} : vector<3x128xbf16> to vector<2x128xbf16>
    %c3_139 = arith.constant 3 : index
    %c0_140 = arith.constant 0 : index
    %c0_141 = arith.constant 0 : index
    %167 = vector.load %arg4[%c3_139, %c0_140, %c0_141] : memref<9x128x128xbf16, #tpu.memory_space<vmem>>, vector<1x128x128xbf16>
    %168 = vector.shape_cast %167 : vector<1x128x128xbf16> to vector<128x128xbf16>
    %cst_142 = arith.constant dense<0.000000e+00> : vector<2x128xf32>
    %169 = tpu.matmul %166, %168, %cst_142 {dimension_numbers = #tpu.dot_dimension_numbers<[1], [0], [0], [1], [0, 0, 1, 1], [], []>} : vector<2x128xbf16>, vector<128x128xbf16>, vector<2x128xf32> -> vector<2x128xf32>
    %170 = arith.addf %158, %169 : vector<2x128xf32>
    %c2_i32_143 = arith.constant 2 : i32
    %171 = arith.muli %c2_i32_143, %121 : i32
    %c1_i32_144 = arith.constant 1 : i32
    %172 = arith.addi %171, %c1_i32_144 : i32
    %c2_i32_145 = arith.constant 2 : i32
    %173 = arith.muli %172, %c2_i32_145 : i32
    %c1_i32_146 = arith.constant 1 : i32
    %174 = arith.addi %173, %c1_i32_146 : i32
    %c0_147 = arith.constant 0 : index
    %175 = arith.index_cast %174 : i32 to index
    %c0_148 = arith.constant 0 : index
    %c0_149 = arith.constant 0 : index
    %176 = vector.load %arg3[%c0_147, %175, %c0_148, %c0_149] : memref<1x12x3x128xbf16, #tpu.memory_space<vmem>>, vector<1x1x3x128xbf16>
    %177 = vector.shape_cast %176 : vector<1x1x3x128xbf16> to vector<3x128xbf16>
    %178 = vector.extract_strided_slice %177 {offsets = [0, 0], sizes = [2, 128], strides = [1, 1]} : vector<3x128xbf16> to vector<2x128xbf16>
    %c4_150 = arith.constant 4 : index
    %c0_151 = arith.constant 0 : index
    %c0_152 = arith.constant 0 : index
    %179 = vector.load %arg4[%c4_150, %c0_151, %c0_152] : memref<9x128x128xbf16, #tpu.memory_space<vmem>>, vector<1x128x128xbf16>
    %180 = vector.shape_cast %179 : vector<1x128x128xbf16> to vector<128x128xbf16>
    %cst_153 = arith.constant dense<0.000000e+00> : vector<2x128xf32>
    %181 = tpu.matmul %178, %180, %cst_153 {dimension_numbers = #tpu.dot_dimension_numbers<[1], [0], [0], [1], [0, 0, 1, 1], [], []>} : vector<2x128xbf16>, vector<128x128xbf16>, vector<2x128xf32> -> vector<2x128xf32>
    %182 = arith.addf %170, %181 : vector<2x128xf32>
    %c2_i32_154 = arith.constant 2 : i32
    %183 = arith.muli %c2_i32_154, %121 : i32
    %c1_i32_155 = arith.constant 1 : i32
    %184 = arith.addi %183, %c1_i32_155 : i32
    %c2_i32_156 = arith.constant 2 : i32
    %185 = arith.muli %184, %c2_i32_156 : i32
    %c0_i32_157 = arith.constant 0 : i32
    %186 = arith.addi %185, %c0_i32_157 : i32
    %c0_158 = arith.constant 0 : index
    %187 = arith.index_cast %186 : i32 to index
    %c0_159 = arith.constant 0 : index
    %c0_160 = arith.constant 0 : index
    %188 = vector.load %arg3[%c0_158, %187, %c0_159, %c0_160] : memref<1x12x3x128xbf16, #tpu.memory_space<vmem>>, vector<1x1x3x128xbf16>
    %189 = vector.shape_cast %188 : vector<1x1x3x128xbf16> to vector<3x128xbf16>
    %190 = vector.extract_strided_slice %189 {offsets = [1, 0], sizes = [2, 128], strides = [1, 1]} : vector<3x128xbf16> to vector<2x128xbf16>
    %c5_161 = arith.constant 5 : index
    %c0_162 = arith.constant 0 : index
    %c0_163 = arith.constant 0 : index
    %191 = vector.load %arg4[%c5_161, %c0_162, %c0_163] : memref<9x128x128xbf16, #tpu.memory_space<vmem>>, vector<1x128x128xbf16>
    %192 = vector.shape_cast %191 : vector<1x128x128xbf16> to vector<128x128xbf16>
    %cst_164 = arith.constant dense<0.000000e+00> : vector<2x128xf32>
    %193 = tpu.matmul %190, %192, %cst_164 {dimension_numbers = #tpu.dot_dimension_numbers<[1], [0], [0], [1], [0, 0, 1, 1], [], []>} : vector<2x128xbf16>, vector<128x128xbf16>, vector<2x128xf32> -> vector<2x128xf32>
    %194 = arith.addf %182, %193 : vector<2x128xf32>
    %c2_i32_165 = arith.constant 2 : i32
    %195 = arith.muli %c2_i32_165, %121 : i32
    %c2_i32_166 = arith.constant 2 : i32
    %196 = arith.addi %195, %c2_i32_166 : i32
    %c2_i32_167 = arith.constant 2 : i32
    %197 = arith.muli %196, %c2_i32_167 : i32
    %c0_i32_168 = arith.constant 0 : i32
    %198 = arith.addi %197, %c0_i32_168 : i32
    %c0_169 = arith.constant 0 : index
    %199 = arith.index_cast %198 : i32 to index
    %c0_170 = arith.constant 0 : index
    %c0_171 = arith.constant 0 : index
    %200 = vector.load %arg3[%c0_169, %199, %c0_170, %c0_171] : memref<1x12x3x128xbf16, #tpu.memory_space<vmem>>, vector<1x1x3x128xbf16>
    %201 = vector.shape_cast %200 : vector<1x1x3x128xbf16> to vector<3x128xbf16>
    %202 = vector.extract_strided_slice %201 {offsets = [0, 0], sizes = [2, 128], strides = [1, 1]} : vector<3x128xbf16> to vector<2x128xbf16>
    %c6_172 = arith.constant 6 : index
    %c0_173 = arith.constant 0 : index
    %c0_174 = arith.constant 0 : index
    %203 = vector.load %arg4[%c6_172, %c0_173, %c0_174] : memref<9x128x128xbf16, #tpu.memory_space<vmem>>, vector<1x128x128xbf16>
    %204 = vector.shape_cast %203 : vector<1x128x128xbf16> to vector<128x128xbf16>
    %cst_175 = arith.constant dense<0.000000e+00> : vector<2x128xf32>
    %205 = tpu.matmul %202, %204, %cst_175 {dimension_numbers = #tpu.dot_dimension_numbers<[1], [0], [0], [1], [0, 0, 1, 1], [], []>} : vector<2x128xbf16>, vector<128x128xbf16>, vector<2x128xf32> -> vector<2x128xf32>
    %206 = arith.addf %194, %205 : vector<2x128xf32>
    %c2_i32_176 = arith.constant 2 : i32
    %207 = arith.muli %c2_i32_176, %121 : i32
    %c2_i32_177 = arith.constant 2 : i32
    %208 = arith.addi %207, %c2_i32_177 : i32
    %c2_i32_178 = arith.constant 2 : i32
    %209 = arith.muli %208, %c2_i32_178 : i32
    %c1_i32_179 = arith.constant 1 : i32
    %210 = arith.addi %209, %c1_i32_179 : i32
    %c0_180 = arith.constant 0 : index
    %211 = arith.index_cast %210 : i32 to index
    %c0_181 = arith.constant 0 : index
    %c0_182 = arith.constant 0 : index
    %212 = vector.load %arg3[%c0_180, %211, %c0_181, %c0_182] : memref<1x12x3x128xbf16, #tpu.memory_space<vmem>>, vector<1x1x3x128xbf16>
    %213 = vector.shape_cast %212 : vector<1x1x3x128xbf16> to vector<3x128xbf16>
    %214 = vector.extract_strided_slice %213 {offsets = [0, 0], sizes = [2, 128], strides = [1, 1]} : vector<3x128xbf16> to vector<2x128xbf16>
    %c7_183 = arith.constant 7 : index
    %c0_184 = arith.constant 0 : index
    %c0_185 = arith.constant 0 : index
    %215 = vector.load %arg4[%c7_183, %c0_184, %c0_185] : memref<9x128x128xbf16, #tpu.memory_space<vmem>>, vector<1x128x128xbf16>
    %216 = vector.shape_cast %215 : vector<1x128x128xbf16> to vector<128x128xbf16>
    %cst_186 = arith.constant dense<0.000000e+00> : vector<2x128xf32>
    %217 = tpu.matmul %214, %216, %cst_186 {dimension_numbers = #tpu.dot_dimension_numbers<[1], [0], [0], [1], [0, 0, 1, 1], [], []>} : vector<2x128xbf16>, vector<128x128xbf16>, vector<2x128xf32> -> vector<2x128xf32>
    %218 = arith.addf %206, %217 : vector<2x128xf32>
    %c2_i32_187 = arith.constant 2 : i32
    %219 = arith.muli %c2_i32_187, %121 : i32
    %c2_i32_188 = arith.constant 2 : i32
    %220 = arith.addi %219, %c2_i32_188 : i32
    %c2_i32_189 = arith.constant 2 : i32
    %221 = arith.muli %220, %c2_i32_189 : i32
    %c0_i32_190 = arith.constant 0 : i32
    %222 = arith.addi %221, %c0_i32_190 : i32
    %c0_191 = arith.constant 0 : index
    %223 = arith.index_cast %222 : i32 to index
    %c0_192 = arith.constant 0 : index
    %c0_193 = arith.constant 0 : index
    %224 = vector.load %arg3[%c0_191, %223, %c0_192, %c0_193] : memref<1x12x3x128xbf16, #tpu.memory_space<vmem>>, vector<1x1x3x128xbf16>
    %225 = vector.shape_cast %224 : vector<1x1x3x128xbf16> to vector<3x128xbf16>
    %226 = vector.extract_strided_slice %225 {offsets = [1, 0], sizes = [2, 128], strides = [1, 1]} : vector<3x128xbf16> to vector<2x128xbf16>
    %c8_194 = arith.constant 8 : index
    %c0_195 = arith.constant 0 : index
    %c0_196 = arith.constant 0 : index
    %227 = vector.load %arg4[%c8_194, %c0_195, %c0_196] : memref<9x128x128xbf16, #tpu.memory_space<vmem>>, vector<1x128x128xbf16>
    %228 = vector.shape_cast %227 : vector<1x128x128xbf16> to vector<128x128xbf16>
    %cst_197 = arith.constant dense<0.000000e+00> : vector<2x128xf32>
    %229 = tpu.matmul %226, %228, %cst_197 {dimension_numbers = #tpu.dot_dimension_numbers<[1], [0], [0], [1], [0, 0, 1, 1], [], []>} : vector<2x128xbf16>, vector<128x128xbf16>, vector<2x128xf32> -> vector<2x128xf32>
    %230 = arith.addf %218, %229 : vector<2x128xf32>
    %231 = vector.broadcast %0 : vector<1x128xf32> to vector<2x128xf32>
    %232 = arith.addf %230, %231 : vector<2x128xf32>
    %cst_198 = arith.constant 0.000000e+00 : f32
    %233 = vector.broadcast %cst_198 : f32 to vector<2x128xf32>
    %234 = arith.maximumf %232, %233 : vector<2x128xf32>
    %235 = arith.truncf %234 : vector<2x128xf32> to vector<2x128xbf16>
    %c0_199 = arith.constant 0 : index
    %c1_200 = arith.constant 1 : index
    %c0_201 = arith.constant 0 : index
    %c0_202 = arith.constant 0 : index
    %236 = vector.load %arg6[%c0_199, %c1_200, %c0_201, %c0_202] : memref<1x2x2x128xbf16, #tpu.memory_space<vmem>>, vector<1x1x2x128xbf16>
    %237 = vector.shape_cast %236 : vector<1x1x2x128xbf16> to vector<2x128xbf16>
    %238 = vector.shape_cast %235 : vector<2x128xbf16> to vector<1x1x2x128xbf16>
    tpu.vector_store %arg6[%c0_199, %c1_200, %c0_201, %c0_202], %238 {strides = array<i32>} : memref<1x2x2x128xbf16, #tpu.memory_space<vmem>>, vector<1x1x2x128xbf16>,
    return
  }
  func.func @transform_0(%arg0: i32, %arg1: i32, %arg2: i32) -> (i32, i32, i32, i32) {
    %c0_i32 = arith.constant 0 : i32
    %c0_i32_0 = arith.constant 0 : i32
    %c0_i32_1 = arith.constant 0 : i32
    %c0_i32_2 = arith.constant 0 : i32
    return %arg0, %c0_i32, %c0_i32_0, %c0_i32_1 : i32, i32, i32, i32
  }
  func.func @transform_1(%arg0: i32, %arg1: i32, %arg2: i32) -> (i32, i32, i32) {
    %c0_i32 = arith.constant 0 : i32
    %c0_i32_0 = arith.constant 0 : i32
    %c0_i32_1 = arith.constant 0 : i32
    return %c0_i32, %c0_i32_0, %arg1 : i32, i32, i32
  }
  func.func @transform_2(%arg0: i32, %arg1: i32, %arg2: i32) -> (i32, i32) {
    %c0_i32 = arith.constant 0 : i32
    %c0_i32_0 = arith.constant 0 : i32
    return %c0_i32, %arg1 : i32, i32
  }
  func.func @transform_3(%arg0: i32, %arg1: i32, %arg2: i32) -> (i32, i32, i32, i32) {
    %c0_i32 = arith.constant 0 : i32
    %c0_i32_0 = arith.constant 0 : i32
    return %arg0, %arg2, %c0_i32, %arg1 : i32, i32, i32, i32
  }
}

module attributes {stable_mosaic.version = 11 : i64} {
  func.func @_mm_kernel(%arg0: i32, %arg1: i32, %arg2: memref<8x128xbf16, #tpu.memory_space<vmem>>, %arg3: memref<128x128xbf16, #tpu.memory_space<vmem>>, %arg4: memref<1x128xf32, #tpu.memory_space<vmem>>, %arg5: memref<8x128xbf16, #tpu.memory_space<vmem>>) attributes {dimension_semantics = [#tpu.dimension_semantics<parallel>, #tpu.dimension_semantics<parallel>], iteration_bounds = array<i64: 1, 1>, scalar_prefetch = 0 : i64, scratch_operands = 0 : i64, tpu.core_type = #tpu.core_type<tc>, window_params = [{transform_indices = @transform_0, window_bounds = array<i64: 8, 128>}, {transform_indices = @transform_1, window_bounds = array<i64: 128, 128>}, {transform_indices = @transform_2, window_bounds = array<i64: 1, 128>}, {transform_indices = @transform_3, window_bounds = array<i64: 8, 128>}]} {
    %c0 = arith.constant 0 : index
    %c0_0 = arith.constant 0 : index
    %0 = vector.load %arg2[%c0, %c0_0] : memref<8x128xbf16, #tpu.memory_space<vmem>>, vector<8x128xbf16>
    %c0_1 = arith.constant 0 : index
    %c0_2 = arith.constant 0 : index
    %1 = vector.load %arg3[%c0_1, %c0_2] : memref<128x128xbf16, #tpu.memory_space<vmem>>, vector<128x128xbf16>
    %cst = arith.constant dense<0.000000e+00> : vector<8x128xf32>
    %2 = tpu.matmul %0, %1, %cst {dimension_numbers = #tpu.dot_dimension_numbers<[1], [0], [0], [1], [0, 0, 1, 1], [], []>} : vector<8x128xbf16>, vector<128x128xbf16>, vector<8x128xf32> -> vector<8x128xf32>
    %c0_3 = arith.constant 0 : index
    %c0_4 = arith.constant 0 : index
    %3 = vector.load %arg4[%c0_3, %c0_4] : memref<1x128xf32, #tpu.memory_space<vmem>>, vector<1x128xf32>
    %4 = vector.broadcast %3 : vector<1x128xf32> to vector<8x128xf32>
    %5 = arith.addf %2, %4 : vector<8x128xf32>
    %6 = arith.truncf %5 : vector<8x128xf32> to vector<8x128xbf16>
    %c0_5 = arith.constant 0 : index
    %c0_6 = arith.constant 0 : index
    %7 = vector.load %arg5[%c0_5, %c0_6] : memref<8x128xbf16, #tpu.memory_space<vmem>>, vector<8x128xbf16>
    tpu.vector_store %arg5[%c0_5, %c0_6], %6 {strides = array<i32>} : memref<8x128xbf16, #tpu.memory_space<vmem>>, vector<8x128xbf16>,
    return
  }
  func.func @transform_0(%arg0: i32, %arg1: i32) -> (i32, i32) {
    %c0_i32 = arith.constant 0 : i32
    %c0_i32_0 = arith.constant 0 : i32
    return %arg0, %c0_i32 : i32, i32
  }
  func.func @transform_1(%arg0: i32, %arg1: i32) -> (i32, i32) {
    %c0_i32 = arith.constant 0 : i32
    %c0_i32_0 = arith.constant 0 : i32
    return %c0_i32, %arg1 : i32, i32
  }
  func.func @transform_2(%arg0: i32, %arg1: i32) -> (i32, i32) {
    %c0_i32 = arith.constant 0 : i32
    %c0_i32_0 = arith.constant 0 : i32
    return %c0_i32, %arg1 : i32, i32
  }
  func.func @transform_3(%arg0: i32, %arg1: i32) -> (i32, i32) {
    %c0_i32 = arith.constant 0 : i32
    return %arg0, %arg1 : i32, i32
  }
}

module attributes {stable_mosaic.version = 11 : i64} {
  func.func @_mm_res_kernel(%arg0: i32, %arg1: i32, %arg2: memref<8x128xbf16, #tpu.memory_space<vmem>>, %arg3: memref<128x128xbf16, #tpu.memory_space<vmem>>, %arg4: memref<1x128xf32, #tpu.memory_space<vmem>>, %arg5: memref<8x128xbf16, #tpu.memory_space<vmem>>, %arg6: memref<8x128xbf16, #tpu.memory_space<vmem>>) attributes {dimension_semantics = [#tpu.dimension_semantics<parallel>, #tpu.dimension_semantics<parallel>], iteration_bounds = array<i64: 1, 1>, scalar_prefetch = 0 : i64, scratch_operands = 0 : i64, tpu.core_type = #tpu.core_type<tc>, window_params = [{transform_indices = @transform_0, window_bounds = array<i64: 8, 128>}, {transform_indices = @transform_1, window_bounds = array<i64: 128, 128>}, {transform_indices = @transform_2, window_bounds = array<i64: 1, 128>}, {transform_indices = @transform_3, window_bounds = array<i64: 8, 128>}, {transform_indices = @transform_4, window_bounds = array<i64: 8, 128>}]} {
    %c0 = arith.constant 0 : index
    %c0_0 = arith.constant 0 : index
    %0 = vector.load %arg2[%c0, %c0_0] : memref<8x128xbf16, #tpu.memory_space<vmem>>, vector<8x128xbf16>
    %c0_1 = arith.constant 0 : index
    %c0_2 = arith.constant 0 : index
    %1 = vector.load %arg3[%c0_1, %c0_2] : memref<128x128xbf16, #tpu.memory_space<vmem>>, vector<128x128xbf16>
    %cst = arith.constant dense<0.000000e+00> : vector<8x128xf32>
    %2 = tpu.matmul %0, %1, %cst {dimension_numbers = #tpu.dot_dimension_numbers<[1], [0], [0], [1], [0, 0, 1, 1], [], []>} : vector<8x128xbf16>, vector<128x128xbf16>, vector<8x128xf32> -> vector<8x128xf32>
    %c0_3 = arith.constant 0 : index
    %c0_4 = arith.constant 0 : index
    %3 = vector.load %arg4[%c0_3, %c0_4] : memref<1x128xf32, #tpu.memory_space<vmem>>, vector<1x128xf32>
    %4 = vector.broadcast %3 : vector<1x128xf32> to vector<8x128xf32>
    %5 = arith.addf %2, %4 : vector<8x128xf32>
    %c0_5 = arith.constant 0 : index
    %c0_6 = arith.constant 0 : index
    %6 = vector.load %arg5[%c0_5, %c0_6] : memref<8x128xbf16, #tpu.memory_space<vmem>>, vector<8x128xbf16>
    %7 = arith.extf %6 : vector<8x128xbf16> to vector<8x128xf32>
    %8 = arith.addf %5, %7 : vector<8x128xf32>
    %9 = arith.truncf %8 : vector<8x128xf32> to vector<8x128xbf16>
    %c0_7 = arith.constant 0 : index
    %c0_8 = arith.constant 0 : index
    %10 = vector.load %arg6[%c0_7, %c0_8] : memref<8x128xbf16, #tpu.memory_space<vmem>>, vector<8x128xbf16>
    tpu.vector_store %arg6[%c0_7, %c0_8], %9 {strides = array<i32>} : memref<8x128xbf16, #tpu.memory_space<vmem>>, vector<8x128xbf16>,
    return
  }
  func.func @transform_0(%arg0: i32, %arg1: i32) -> (i32, i32) {
    %c0_i32 = arith.constant 0 : i32
    %c0_i32_0 = arith.constant 0 : i32
    return %arg0, %c0_i32 : i32, i32
  }
  func.func @transform_1(%arg0: i32, %arg1: i32) -> (i32, i32) {
    %c0_i32 = arith.constant 0 : i32
    %c0_i32_0 = arith.constant 0 : i32
    return %c0_i32, %arg1 : i32, i32
  }
  func.func @transform_2(%arg0: i32, %arg1: i32) -> (i32, i32) {
    %c0_i32 = arith.constant 0 : i32
    %c0_i32_0 = arith.constant 0 : i32
    return %c0_i32, %arg1 : i32, i32
  }
  func.func @transform_3(%arg0: i32, %arg1: i32) -> (i32, i32) {
    %c0_i32 = arith.constant 0 : i32
    return %arg0, %arg1 : i32, i32
  }
  func.func @transform_4(%arg0: i32, %arg1: i32) -> (i32, i32) {
    %c0_i32 = arith.constant 0 : i32
    return %arg0, %arg1 : i32, i32
  }
}

</mosaic_0001>

<bundles_post_ra>
// kernel: _lambda_.8
= control target key start
LH: loop header
LB: loop body
LE: loop exit
PB: predicated region body
PF: predicated region fallthrough
CT: control target
= control target key end

     0   :  { %s308_s1 = inlined_call_operand.vmem [shape: bf16[128,128], index: 1, kind: input, shape index: {}]   ;;  %s309_s0 = inlined_call_operand.vmem [shape: bf16[32,128], index: 0, kind: input, shape index: {}]   ;;  %s310_s2 = inlined_call_operand.vmem [shape: f32[1,128], index: 2, kind: input, shape index: {}]   ;;  %s311_s3 = inlined_call_operand.vmem [shape: bf16[32,128], index: 3, kind: output, shape index: {}]  }
   0x1   :  { %v239_v0 = vld [vmem:[%s308_s1] sm:$0xff]   ;;  %v240_v1 = vld [vmem:[%s308_s1 + $0x8] sm:$0xff]   ;;  %v241_v2 = vld [vmem:[%s308_s1 + $0x10] sm:$0xff]  }
   0x2   :  { %219 = vmatprep.subr.bf16.mxu0 %v239_v0  ;;  %v242_v3 = vld [vmem:[%s308_s1 + $0x18] sm:$0xff]   ;;  %v247_v4 = vld [vmem:[%s309_s0] sm:$0xff]   ;;  %v244_v6 = vld [vmem:[%s308_s1 + $0x28] sm:$0xff]  }
   0x3   :  { %220 = vmatpush3.bf16.msra.mxu0 %v239_v0  ;;  %235 = vmatprep.mubr.bf16.mxu0 %v247_v4  ;;  %v243_v5 = vld [vmem:[%s308_s1 + $0x20] sm:$0xff]   ;;  %v245_v7 = vld [vmem:[%s308_s1 + $0x30] sm:$0xff]   ;;  %v246_v8 = vld [vmem:[%s308_s1 + $0x38] sm:$0xff]  }
   0x4   :  { %221 = vmatprep.subr.bf16.mxu0 %v240_v1  ;;  %v248_v9 = vld [vmem:[%s309_s0 + $0x8] sm:$0xff]   ;;  %v179_v10 = vld [vmem:[%s310_s2] ss:$0 sm:$0xff] }
   0x7   :  { %222 = vmatpush3.bf16.msra.mxu0 %v240_v1 }
   0x8   :  { %223 = vmatprep.subr.bf16.mxu0 %v241_v2 }
   0xb   :  { %224 = vmatpush3.bf16.msra.mxu0 %v241_v2 }
   0xc   :  { %225 = vmatprep.subr.bf16.mxu0 %v242_v3 }
   0xf   :  { %226 = vmatpush3.bf16.msra.mxu0 %v242_v3 }
  0x10   :  { %227 = vmatprep.subr.bf16.mxu0 %v243_v5 }
  0x13   :  { %228 = vmatpush3.bf16.msra.mxu0 %v243_v5 }
  0x14   :  { %229 = vmatprep.subr.bf16.mxu0 %v244_v6 }
  0x17   :  { %230 = vmatpush3.bf16.msra.mxu0 %v244_v6 }
  0x18   :  { %231 = vmatprep.subr.bf16.mxu0 %v245_v7 }
  0x1b   :  { %232 = vmatpush3.bf16.msra.mxu0 %v245_v7 }
  0x1c   :  { %233 = vmatprep.subr.bf16.mxu0 %v246_v8 }
  0x1f   :  { %234 = vmatpush3.bf16.msra.mxu0 %v246_v8 }
  0x22   :  { %236 = vmatmul.mubr.bf16.vlgmr.msra.gmra.mrb[0].mxu0 %v248_v9 }
  0xf5   :  { %v237_v11 = vpop.f32.mrb[0].mxu0 }
  0xf6   :  { %v145_v12 = vadd.f32 %v237_v11, %v179_v10  ;;  %v136_v13 = vpop.f32.mrb[1].mxu0 }
  0xf7   :  { %v137_v14 = vadd.f32 %v179_v10, %v136_v13  ;;  %v238_v15 = vpop.f32.mrb[2].mxu0 }
  0xf8   :  { %v148_v16 = vadd.f32 %v238_v15, %v179_v10  ;;  %v139_v17 = vpop.f32.mrb[3].mxu0  ;;  %v153_v19 = vmax.f32 %v145_v12, 0.0 }
  0xf9   :  { %v140_v18 = vadd.f32 %v179_v10, %v139_v17  ;;  %v151_v21 = vmax.f32 %v137_v14, 0.0 }
  0xfa   :  { %v154_v20 = vmax.f32 %v148_v16, 0.0 }
  0xfb   :  { %v152_v22 = vmax.f32 %v140_v18, 0.0 }
  0xfc   :  { %v206_v23 = vpack.c.bf16 %v154_v20, %v153_v19 }
  0xfd   :  { %v201_v24 = vpack.c.bf16 %v152_v22, %v151_v21 }
  0xfe   :  { %208 = vst [vmem:[%s311_s3 + $0x8] sm:$0xff] %v206_v23  }
  0xff   :  { %202 = vst [vmem:[%s311_s3] sm:$0xff] %v201_v24  }

// kernel: _lambda_.10
= control target key start
LH: loop header
LB: loop body
LE: loop exit
PB: predicated region body
PF: predicated region fallthrough
CT: control target
= control target key end

     0   :  { %v181_v0 = vmov 0.0   ;;  %vm182_vm0 = vmmov 0   ;;  %s236_s1 = inlined_call_operand.vmem [shape: bf16[128,128], index: 1, kind: input, shape index: {}]   ;;  %s237_s0 = inlined_call_operand.vmem [shape: bf16[8,128], index: 0, kind: input, shape index: {}]   ;;  %s238_s2 = inlined_call_operand.vmem [shape: f32[1,128], index: 2, kind: input, shape index: {}]   ;;  %s239_s3 = inlined_call_operand.vmem [shape: bf16[8,128], index: 3, kind: output, shape index: {}]  }
   0x1   :  { %151 = vmatprep.subr.bf16.mxu0 %v181_v0  ;;  %v173_v1 = vld [vmem:[%s236_s1] sm:$0xff]   ;;  %167 = vmatprep.mubr.msk.bf16.mxu0 %vm182_vm0, %v181_v0  ;;  %v174_v2 = vld [vmem:[%s236_s1 + $0x8] sm:$0xff]   ;;  %v175_v3 = vld [vmem:[%s236_s1 + $0x10] sm:$0xff]  }
   0x2   :  { %152 = vmatpush3.bf16.msra.mxu0 %v173_v1  ;;  %v176_v4 = vld [vmem:[%s236_s1 + $0x18] sm:$0xff]   ;;  %v177_v5 = vld [vmem:[%s236_s1 + $0x20] sm:$0xff]   ;;  %v178_v6 = vld [vmem:[%s236_s1 + $0x28] sm:$0xff]  }
   0x3   :  { %153 = vmatprep.subr.bf16.mxu0 %v181_v0  ;;  %v179_v7 = vld [vmem:[%s236_s1 + $0x30] sm:$0xff]   ;;  %v180_v8 = vld [vmem:[%s236_s1 + $0x38] sm:$0xff]   ;;  %v15_v9 = vld [vmem:[%s237_s0] sm:$0xf] }
   0x4   :  { %v133_v10 = vld [vmem:[%s238_s2] ss:$0 sm:$0xff] }
   0x6   :  { %154 = vmatpush3.bf16.msra.mxu0 %v174_v2 }
   0x7   :  { %155 = vmatprep.subr.bf16.mxu0 %v181_v0 }
   0xa   :  { %156 = vmatpush3.bf16.msra.mxu0 %v175_v3 }
   0xb   :  { %157 = vmatprep.subr.bf16.mxu0 %v181_v0 }
   0xe   :  { %158 = vmatpush3.bf16.msra.mxu0 %v176_v4 }
   0xf   :  { %159 = vmatprep.subr.bf16.mxu0 %v181_v0 }
  0x12   :  { %160 = vmatpush3.bf16.msra.mxu0 %v177_v5 }
  0x13   :  { %161 = vmatprep.subr.bf16.mxu0 %v181_v0 }
  0x16   :  { %162 = vmatpush3.bf16.msra.mxu0 %v178_v6 }
  0x17   :  { %163 = vmatprep.subr.bf16.mxu0 %v181_v0 }
  0x1a   :  { %164 = vmatpush3.bf16.msra.mxu0 %v179_v7 }
  0x1b   :  { %165 = vmatprep.subr.bf16.mxu0 %v181_v0 }
  0x1e   :  { %166 = vmatpush3.bf16.msra.mxu0 %v180_v8 }
  0x21   :  { %168 = vmatmul.mubr.bf16.vlgmr.msra.gmra.mrb[0].mxu0 %v15_v9 }
  0xf4   :  { %v121_v11 = vpop.f32.mrb[0].mxu0 }
  0xf5   :  { %v122_v12 = vadd.f32 %v133_v10, %v121_v11  ;;  %v169_v13 = vpop.f32.mrb[1].mxu0 }
  0xf6   :  { %v124_v14 = vpop.f32.mrb[2].mxu0 }
  0xf7   :  { %v127_v15 = vpack.c.bf16 %v122_v12, %v122_v12  ;;  %v170_v16 = vpop.f32.mrb[3].mxu0 }
  0xf9   :  { %128 = vst [vmem:[%s239_s3] sm:$0xf] %v127_v15 }

// kernel: _lambda_.11
= control target key start
LH: loop header
LB: loop body
LE: loop exit
PB: predicated region body
PF: predicated region fallthrough
CT: control target
= control target key end

     0   :  { %v187_v0 = vmov 0.0   ;;  %vm188_vm0 = vmmov 0   ;;  %s250_s1 = inlined_call_operand.vmem [shape: bf16[128,128], index: 1, kind: input, shape index: {}]   ;;  %s251_s0 = inlined_call_operand.vmem [shape: bf16[8,128], index: 0, kind: input, shape index: {}]   ;;  %s252_s3 = inlined_call_operand.vmem [shape: bf16[8,128], index: 3, kind: input, shape index: {}]   ;;  %s253_s2 = inlined_call_operand.vmem [shape: f32[1,128], index: 2, kind: input, shape index: {}]   ;;  %s254_s4 = inlined_call_operand.vmem [shape: bf16[8,128], index: 4, kind: output, shape index: {}]  }
   0x1   :  { %157 = vmatprep.subr.bf16.mxu0 %v187_v0  ;;  %v179_v1 = vld [vmem:[%s250_s1] sm:$0xff]   ;;  %173 = vmatprep.mubr.msk.bf16.mxu0 %vm188_vm0, %v187_v0  ;;  %v180_v2 = vld [vmem:[%s250_s1 + $0x8] sm:$0xff]   ;;  %v181_v3 = vld [vmem:[%s250_s1 + $0x10] sm:$0xff]  }
   0x2   :  { %158 = vmatpush3.bf16.msra.mxu0 %v179_v1  ;;  %v182_v4 = vld [vmem:[%s250_s1 + $0x18] sm:$0xff]   ;;  %v183_v5 = vld [vmem:[%s250_s1 + $0x20] sm:$0xff]   ;;  %v184_v6 = vld [vmem:[%s250_s1 + $0x28] sm:$0xff]  }
   0x3   :  { %159 = vmatprep.subr.bf16.mxu0 %v187_v0  ;;  %v185_v7 = vld [vmem:[%s250_s1 + $0x30] sm:$0xff]   ;;  %v186_v8 = vld [vmem:[%s250_s1 + $0x38] sm:$0xff]   ;;  %v18_v9 = vld [vmem:[%s251_s0] sm:$0xf] }
   0x4   :  { %v130_v10 = vld [vmem:[%s252_s3] sm:$0xf] }
   0x5   :  { %v139_v11 = vld [vmem:[%s253_s2] ss:$0 sm:$0xff]  ;;  %v131_v12 = vunpack.c.l.bf16 %v130_v10 }
   0x6   :  { %160 = vmatpush3.bf16.msra.mxu0 %v180_v2 }
   0x7   :  { %161 = vmatprep.subr.bf16.mxu0 %v187_v0 }
   0xa   :  { %162 = vmatpush3.bf16.msra.mxu0 %v181_v3 }
   0xb   :  { %163 = vmatprep.subr.bf16.mxu0 %v187_v0 }
   0xe   :  { %164 = vmatpush3.bf16.msra.mxu0 %v182_v4 }
   0xf   :  { %165 = vmatprep.subr.bf16.mxu0 %v187_v0 }
  0x12   :  { %166 = vmatpush3.bf16.msra.mxu0 %v183_v5 }
  0x13   :  { %167 = vmatprep.subr.bf16.mxu0 %v187_v0 }
  0x16   :  { %168 = vmatpush3.bf16.msra.mxu0 %v184_v6 }
  0x17   :  { %169 = vmatprep.subr.bf16.mxu0 %v187_v0 }
  0x1a   :  { %170 = vmatpush3.bf16.msra.mxu0 %v185_v7 }
  0x1b   :  { %171 = vmatprep.subr.bf16.mxu0 %v187_v0 }
  0x1e   :  { %172 = vmatpush3.bf16.msra.mxu0 %v186_v8 }
  0x21   :  { %174 = vmatmul.mubr.bf16.vlgmr.msra.gmra.mrb[0].mxu0 %v18_v9 }
  0xf4   :  { %v124_v13 = vpop.f32.mrb[0].mxu0 }
  0xf5   :  { %v125_v14 = vadd.f32 %v139_v11, %v124_v13  ;;  %v175_v15 = vpop.f32.mrb[1].mxu0 }
  0xf6   :  { %v127_v16 = vpop.f32.mrb[2].mxu0 }
  0xf7   :  { %v132_v17 = vadd.f32 %v131_v12, %v125_v14  ;;  %v176_v18 = vpop.f32.mrb[3].mxu0 }
  0xf9   :  { %v133_v19 = vpack.c.bf16 %v132_v17, %v132_v17 }
  0xfb   :  { %134 = vst [vmem:[%s254_s4] sm:$0xf] %v133_v19 }

// kernel: _lambda_.6
= control target key start
LH: loop header
LB: loop body
LE: loop exit
PB: predicated region body
PF: predicated region fallthrough
CT: control target
= control target key end

     0   :  { %s5607_s12 = smov 0   ;;  %s5609_s13 = smov 0   ;;  %s6321_s0 = inlined_call_operand.vmem [shape: bf16[2,36,9,4], index: 0, kind: input, shape index: {}]   ;;  %s6322_s1 = inlined_call_operand.vmem [shape: bf16[9,4,128], index: 1, kind: input, shape index: {}]   ;;  %s6323_s2 = inlined_call_operand.vmem [shape: f32[1,128], index: 2, kind: input, shape index: {}]   ;;  %s6324_s3 = inlined_call_operand.vmem [shape: bf16[2,8,8,128], index: 3, kind: output, shape index: {}]  }
   0x1   :  { %s5611_s14 = smov 0  }
   0x2 LB: > { %s32_s15 = sadd.s32 1, %s5579_s13  ;;  %p4689_p0 = scmp.ge.s32.totalorder %s5583_s14, 1  ;;  %s5583_s14 = sphi %s5611_s14, %s13_s14   ;;  %s5579_s13 = sphi %s5609_s13, %s6326_s13   ;;  %s5575_s12 = sphi %s5607_s12, %s6325_s12  }
   0x3   : > { %p34_p1 = scmp.ge.s32.totalorder %s32_s15, 2  ;;  %p177_p2 = scmp.lt.s32.totalorder %s5583_s14, 3 }
   0x5   : > { %s6328_s15 = smov (%p34_p1, %s32_s15), 0  ;;  %p178_p3 = pnand %p4689_p0, %p177_p2 }
   0x6   : > { %v4694_v0 = vld [vmem:[%s6322_s1 + $0x2] sm:$0x3] (!%p178_p3)  ;;  %vm260_vm0 = vcmask (!%p178_p3), 1041408   ;;  %v248_v1 = vld [vmem:[%s6322_s1] sm:$0x3] (!%p178_p3)  ;;  %v5585_v2 = vmov (!%p178_p3), 0.0  }
   0x7   : > { %181 = sbr.rel (%p178_p3) target bundleno = 522 (0x20a), region = 32  ;;  %5078 = vmatprep.subr.bf16.mxu0 (!%p178_p3), %v5585_v2  ;;  %v262_v3 = vsel (!%p178_p3), %vm260_vm0, %v4694_v0, 0  ;;  %5084 = vmatprep.subr.bf16.mxu1 (!%p178_p3), %v5585_v2  ;;  %v308_v4 = vsel (!%p178_p3), %vm260_vm0, %v248_v1, 0  ;;  %p215_p4 = scmp.lt.s32.totalorder (!%p178_p3), %s5575_s12, 1  ;;  %vm5586_vm1 = vmmov (!%p178_p3), 0   ;;  %vm256_vm2 = vcmask (!%p178_p3), 31744  }
   0x8   : > { %5079 = vmatpush3.bf16.msra.mxu0 (!%p178_p3), %v262_v3  ;;  %5085 = vmatpush3.bf16.msra.mxu1 (!%p178_p3), %v308_v4  ;;  %v4697_v5 = vld [vmem:[%s6322_s1 + $0x4] sm:$0x3] (!%p178_p3)  ;;  %v4702_v6 = vld [vmem:[%s6322_s1 + $0x6] sm:$0x3] (!%p178_p3)  ;;  %v4705_v18 = vld [vmem:[%s6322_s1 + $0x8] sm:$0x3] (!%p178_p3) }
   0x9   : > { %5080 = vmatprep.mubr.msk.bf16.mxu0 (!%p178_p3), %vm5586_vm1, %v5585_v2  ;;  %5086 = vmatprep.mubr.msk.bf16.mxu1 (!%p178_p3), %vm5586_vm1, %v5585_v2  ;;  %v368_v7 = vsel (!%p178_p3), %vm260_vm0, %v4697_v5, 0  ;;  %v425_v8 = vsel (!%p178_p3), %vm260_vm0, %v4702_v6, 0  ;;  %v4707_v19 = vld [vmem:[%s6322_s1 + $0xa] sm:$0x3] (!%p178_p3)  ;;  %v479_v23 = vsel (!%p178_p3), %vm260_vm0, %v4705_v18, 0 }
   0xa   : > { %5090 = vmatprep.subr.bf16.mxu0 (!%p178_p3), %v5585_v2  ;;  %5096 = vmatprep.subr.bf16.mxu1 (!%p178_p3), %v5585_v2  ;;  %v540_v24 = vsel (!%p178_p3), %vm260_vm0, %v4707_v19, 0  ;;  %v4712_v27 = vld [vmem:[%s6322_s1 + $0xc] sm:$0x3] (!%p178_p3)  ;;  %v4715_v28 = vld [vmem:[%s6322_s1 + $0xe] sm:$0x3] (!%p178_p3) }
   0xb   : > { %v596_v33 = vsel (!%p178_p3), %vm260_vm0, %v4712_v27, 0  ;;  %v650_v34 = vsel (!%p178_p3), %vm260_vm0, %v4715_v28, 0  ;;  %v4717_v36 = vld [vmem:[%s6322_s1 + $0x10] sm:$0x3] (!%p178_p3)  ;;  %v4724_v37 = vld [vmem:[%s6322_s1 + $0x2] sm:$0x3] (!%p178_p3) }
   0xc   : > { %v711_v42 = vsel (!%p178_p3), %vm260_vm0, %v4717_v36, 0  ;;  %v783_v43 = vsel (!%p178_p3), %vm260_vm0, %v4724_v37, 0  ;;  %v772_v47 = vld [vmem:[%s6322_s1] sm:$0x3] (!%p178_p3)  ;;  %v4727_v48 = vld [vmem:[%s6322_s1 + $0x4] sm:$0x3] (!%p178_p3) }
   0xd   : > { %v829_v52 = vsel (!%p178_p3), %vm260_vm0, %v772_v47, 0  ;;  %v888_v53 = vsel (!%p178_p3), %vm260_vm0, %v4727_v48, 0  ;;  %v4732_v56 = vld [vmem:[%s6322_s1 + $0x6] sm:$0x3] (!%p178_p3)  ;;  %v4735_v57 = vld [vmem:[%s6322_s1 + $0x8] sm:$0x3] (!%p178_p3) }
   0xe   : > { %s6330_s12 = smov (!%p215_p4, %s5575_s12), 1  ;;  %v944_v61 = vsel %vm260_vm0, %v4732_v56, 0  ;;  %v997_v62 = vsel %vm260_vm0, %v4735_v57, 0  ;;  %v4737_v0 = vld [vmem:[%s6322_s1 + $0xa] sm:$0x3] }
   0xf   : > { %s5510_s24 = smul.u32 288, %s6330_s12  ;;  %v4742_v1 = vld [vmem:[%s6322_s1 + $0xc] sm:$0x3]  ;;  %v4777_v57 = vld [vmem:[%s6322_s1 + $0x10] sm:$0x3]  ;;  %s4933_s21 = sshll.u32 %s6330_s12, 5 }
  0x10   : > { %v4772_v48 = vld [vmem:[%s6322_s1 + $0xc] sm:$0x3] }
  0x11   : > { %s5653_s27 = scalar_lea.vmem %s6321_s0, %s5510_s24  ;;  %s6234_s24 = scalar_lea.vmem %s6324_s3, %s4933_s21 }
  0x12   : > { %v4693_v9 = vld [vmem:[%s5653_s27 + $0x8] sm:$0xf]  ;;  %v246_v10 = vld [vmem:[%s5653_s27] sm:$0xf]  ;;  %v247_v11 = vld [vmem:[%s5653_s27 + $0x4] sm:$0x1] }
  0x13   : > { %5081 = vmatmul.mubr.msk.bf16.vlgmr.msra.gmra.mrb[0].mxu0 %vm256_vm2, %v4693_v9  ;;  %5087 = vmatmul.mubr.msk.bf16.vlgmr.msra.gmra.mrb[0].mxu1 %vm256_vm2, %v246_v10  ;;  %v4698_v12 = vcombine.low %v246_v10, %v247_v11  ;;  %v4700_v13 = vld [vmem:[%s5653_s27 + $0x10] sm:$0xf]  ;;  %v4701_v14 = vld [vmem:[%s5653_s27 + $0x14] sm:$0x1]  ;;  %v4704_v30 = vld [vmem:[%s5653_s27 + $0x18] sm:$0xf] }
  0x14   : > { %5091 = vmatpush3.bf16.msra.mxu0 %v368_v7  ;;  %5097 = vmatpush3.bf16.msra.mxu1 %v425_v8  ;;  %v4708_v15 = vcombine.low %v4700_v13, %v4701_v14  ;;  %v4710_v31 = vld [vmem:[%s5653_s27 + $0x20] sm:$0xf]  ;;  %v4711_v32 = vld [vmem:[%s5653_s27 + $0x24] sm:$0x1]  ;;  %v4714_v39 = vld [vmem:[%s5653_s27 + $0x28] sm:$0xf] }
  0x15   : > { %v358_v16 = vshrl.u32 %v4698_v12, 16  ;;  %v360_v17 = vshll.u32 %v4698_v12, 16  ;;  %5092 = vmatprep.mubr.msk.bf16.mxu0 %vm5586_vm1, %v5585_v2  ;;  %5098 = vmatprep.mubr.msk.bf16.mxu1 %vm5586_vm1, %v5585_v2  ;;  %v4718_v35 = vcombine.low %v4710_v31, %v4711_v32  ;;  %v4721_v40 = vld [vmem:[%s5653_s27 + $0x20] sm:$0xf]  ;;  %v4722_v41 = vld [vmem:[%s5653_s27 + $0x24] sm:$0x1] }
  0x16   : > { %5102 = vmatprep.subr.bf16.mxu0 %v5585_v2  ;;  %5108 = vmatprep.subr.bf16.mxu1 %v5585_v2  ;;  %v532_v21 = vshll.u32 %v4708_v15, 16  ;;  %v530_v25 = vshrl.u32 %v4708_v15, 16  ;;  %v4728_v46 = vcombine.low %v4721_v40, %v4722_v41  ;;  %v4723_v51 = vld [vmem:[%s5653_s27 + $0x28] sm:$0xf]  ;;  %v4730_v59 = vld [vmem:[%s5653_s27 + $0x30] sm:$0xf] }
  0x17   : > { %v362_v20 = vrot.slane %v360_v17, 1  ;;  %v703_v38 = vshll.u32 %v4718_v35, 16  ;;  %v701_v44 = vshrl.u32 %v4718_v35, 16  ;;  %v4731_v60 = vld [vmem:[%s5653_s27 + $0x34] sm:$0x1]  ;;  %v1057_v7 = vsel %vm260_vm0, %v4737_v0, 0 }
  0x18   : > { %v534_v26 = vrot.slane %v532_v21, 1  ;;  %v880_v50 = vshll.u32 %v4728_v46, 16  ;;  %v878_v54 = vshrl.u32 %v4728_v46, 16  ;;  %v4738_v63 = vcombine.low %v4730_v59, %v4731_v60  ;;  %v4734_v4 = vld [vmem:[%s5653_s27 + $0x38] sm:$0xf] }
  0x19   : > { %v363_v22 = vor.u32 %v362_v20, %v358_v16  ;;  %v705_v45 = vrot.slane %v703_v38, 1  ;;  %v4740_v5 = vld [vmem:[%s5653_s27 + $0x40] sm:$0xf]  ;;  %v4741_v6 = vld [vmem:[%s5653_s27 + $0x44] sm:$0x1]  ;;  %v1112_v8 = vsel %vm260_vm0, %v4742_v1, 0 }
  0x1a   : > { %v535_v29 = vor.u32 %v534_v26, %v530_v25  ;;  %v882_v55 = vrot.slane %v880_v50, 1  ;;  %v1049_v3 = vshll.u32 %v4738_v63, 16  ;;  %v1047_v9 = vshrl.u32 %v4738_v63, 16  ;;  %v4745_v12 = vld [vmem:[%s6322_s1 + $0xe] sm:$0x3] }
  0x1b   : > { %5093 = vmatmul.mubr.msk.bf16.vlgmr.msra.gmra.mrb[4].mxu0 %vm256_vm2, %v363_v22  ;;  %5099 = vmatmul.mubr.msk.bf16.vlgmr.msra.gmra.mrb[4].mxu1 %vm256_vm2, %v4700_v13  ;;  %v706_v49 = vor.u32 %v705_v45, %v701_v44  ;;  %v4748_v11 = vcombine.low %v4740_v5, %v4741_v6  ;;  %v4747_v13 = vld [vmem:[%s6322_s1 + $0x10] sm:$0x3]  ;;  %v1165_v16 = vsel %vm260_vm0, %v4745_v12, 0  ;;  %v4754_v20 = vld [vmem:[%s6322_s1 + $0x2] sm:$0x3]  ;;  %v1733_v63 = vsel %vm260_vm0, %v4777_v57, 0 }
  0x1c   : > { %5103 = vmatpush3.bf16.msra.mxu0 %v479_v23  ;;  %5109 = vmatpush3.bf16.msra.mxu1 %v540_v24  ;;  %v883_v58 = vor.u32 %v882_v55, %v878_v54  ;;  %v1051_v10 = vrot.slane %v1049_v3, 1  ;;  %v1225_v17 = vsel %vm260_vm0, %v4747_v13, 0  ;;  %v1280_v21 = vld [vmem:[%s6322_s1] sm:$0x3]  ;;  %v4744_v23 = vld [vmem:[%s5653_s27 + $0x48] sm:$0xf] }
  0x1d   : > { %5104 = vmatprep.mubr.msk.bf16.mxu0 %vm5586_vm1, %v5585_v2  ;;  %5110 = vmatprep.mubr.msk.bf16.mxu1 %vm5586_vm1, %v5585_v2  ;;  %v1217_v15 = vshll.u32 %v4748_v11, 16  ;;  %v1215_v18 = vshrl.u32 %v4748_v11, 16  ;;  %v4751_v24 = vld [vmem:[%s5653_s27 + $0x40] sm:$0xf]  ;;  %v4752_v25 = vld [vmem:[%s5653_s27 + $0x44] sm:$0x1] }
  0x1e   : > { %5114 = vmatprep.subr.bf16.mxu0 %v5585_v2  ;;  %5120 = vmatprep.subr.bf16.mxu1 %v5585_v2  ;;  %v1052_v14 = vor.u32 %v1051_v10, %v1047_v9  ;;  %v1291_v26 = vsel %vm260_vm0, %v4754_v20, 0  ;;  %v1337_v27 = vsel %vm260_vm0, %v1280_v21, 0  ;;  %v4758_v28 = vcombine.low %v4751_v24, %v4752_v25  ;;  %v4753_v32 = vld [vmem:[%s5653_s27 + $0x48] sm:$0xf]  ;;  %v4787_v6 = vld [vmem:[%s6322_s1 + $0x4] sm:$0x3] }
  0x1f   : > { %v1219_v19 = vrot.slane %v1217_v15, 1  ;;  %v4767_v41 = vld [vmem:[%s6322_s1 + $0xa] sm:$0x3]  ;;  %v1620_v54 = vsel %vm260_vm0, %v4772_v48, 0  ;;  %v1904_v11 = vsel %vm260_vm0, %v4787_v6, 0 }
  0x20   : > { %v1386_v37 = vshrl.u32 %v4758_v28, 16  ;;  %v1565_v45 = vsel %vm260_vm0, %v4767_v41, 0  ;;  %v4774_v60 = vld [vmem:[%s5653_s27 + $0x68] sm:$0xf]  ;;  %v4794_v25 = vld [vmem:[%s5653_s27 + $0x78] sm:$0xf] }
  0x21   : > { %v1220_v22 = vor.u32 %v1219_v19, %v1215_v18  ;;  %v4783_v9 = vld [vmem:[%s5653_s27 + $0x68] sm:$0xf]  ;;  %v4791_v18 = vld [vmem:[%s5653_s27 + $0x74] sm:$0x1]  ;;  %v4814_v41 = vld [vmem:[%s6322_s1 + $0x2] sm:$0x3] }
  0x22   : > { %v4795_v15 = vld [vmem:[%s6322_s1 + $0x8] sm:$0x3]  ;;  %v4832_v6 = vld [vmem:[%s6322_s1 + $0xc] sm:$0x3] }
  0x23   : > { %5105 = vmatmul.mubr.msk.bf16.vlgmr.msra.gmra.mrb[8].mxu0 %vm256_vm2, %v4704_v30  ;;  %5111 = vmatmul.mubr.msk.bf16.vlgmr.msra.gmra.mrb[8].mxu1 %vm256_vm2, %v535_v29  ;;  %v4757_v29 = vld [vmem:[%s6322_s1 + $0x4] sm:$0x3]  ;;  %v4762_v30 = vld [vmem:[%s6322_s1 + $0x6] sm:$0x3]  ;;  %v2013_v20 = vsel %vm260_vm0, %v4795_v15, 0 }
  0x24   : > { %5115 = vmatpush3.bf16.msra.mxu0 %v596_v33  ;;  %5121 = vmatpush3.bf16.msra.mxu1 %v650_v34  ;;  %v4760_v33 = vld [vmem:[%s5653_s27 + $0x50] sm:$0xf]  ;;  %v4761_v34 = vld [vmem:[%s5653_s27 + $0x54] sm:$0x1]  ;;  %v1396_v35 = vsel %vm260_vm0, %v4757_v29, 0  ;;  %v1452_v36 = vsel %vm260_vm0, %v4762_v30, 0 }
  0x25   : > { %5116 = vmatprep.mubr.msk.bf16.mxu0 %vm5586_vm1, %v5585_v2  ;;  %5122 = vmatprep.mubr.msk.bf16.mxu1 %vm5586_vm1, %v5585_v2  ;;  %v4837_v15 = vld [vmem:[%s6322_s1 + $0x10] sm:$0x3] }
  0x26   : > { %5126 = vmatprep.subr.bf16.mxu0 %v5585_v2  ;;  %5132 = vmatprep.subr.bf16.mxu1 %v5585_v2 }
  0x2b   : > { %5117 = vmatmul.mubr.msk.bf16.vlgmr.msra.gmra.mrb[12].mxu0 %vm256_vm2, %v4710_v31  ;;  %5123 = vmatmul.mubr.msk.bf16.vlgmr.msra.gmra.mrb[12].mxu1 %vm256_vm2, %v4714_v39  ;;  %v1388_v31 = vshll.u32 %v4758_v28, 16  ;;  %v4768_v39 = vcombine.low %v4760_v33, %v4761_v34  ;;  %v4807_v34 = vld [vmem:[%s6322_s1 + $0x10] sm:$0x3] }
  0x2c   : > { %5127 = vmatpush3.bf16.msra.mxu0 %v711_v42  ;;  %5133 = vmatpush3.bf16.msra.mxu1 %v783_v43 }
  0x2d   : > { %5128 = vmatprep.mubr.msk.bf16.mxu0 %vm5586_vm1, %v5585_v2  ;;  %5134 = vmatprep.mubr.msk.bf16.mxu1 %vm5586_vm1, %v5585_v2  ;;  %v1390_v38 = vrot.slane %v1388_v31, 1  ;;  %v1557_v43 = vshll.u32 %v4768_v39, 16  ;;  %v1555_v46 = vshrl.u32 %v4768_v39, 16 }
  0x2e   : > { %5138 = vmatprep.subr.bf16.mxu0 %v5585_v2  ;;  %5144 = vmatprep.subr.bf16.mxu1 %v5585_v2 }
  0x2f   : > { %v1391_v42 = vor.u32 %v1390_v38, %v1386_v37  ;;  %v1559_v47 = vrot.slane %v1557_v43, 1  ;;  %v2241_v38 = vsel %vm260_vm0, %v4807_v34, 0 }
  0x31   : > { %v1560_v50 = vor.u32 %v1559_v47, %v1555_v46  ;;  %v4812_v46 = vld [vmem:[%s5653_s27 + $0x84] sm:$0x1]  ;;  %v2307_v47 = vsel %vm260_vm0, %v4814_v41, 0 }
  0x33   : > { %5129 = vmatmul.mubr.msk.bf16.vlgmr.msra.gmra.mrb[16].mxu0 %vm256_vm2, %v706_v49  ;;  %5135 = vmatmul.mubr.msk.bf16.vlgmr.msra.gmra.mrb[16].mxu1 %vm256_vm2, %v4723_v51  ;;  %v4775_v49 = vld [vmem:[%s6322_s1 + $0xe] sm:$0x3]  ;;  %v4764_v51 = vld [vmem:[%s5653_s27 + $0x58] sm:$0xf] }
  0x34   : > { %5139 = vmatpush3.bf16.msra.mxu0 %v829_v52  ;;  %5145 = vmatpush3.bf16.msra.mxu1 %v888_v53  ;;  %v4770_v52 = vld [vmem:[%s5653_s27 + $0x60] sm:$0xf]  ;;  %v4771_v53 = vld [vmem:[%s5653_s27 + $0x64] sm:$0x1]  ;;  %v1673_v55 = vsel %vm260_vm0, %v4775_v49, 0 }
  0x35   : > { %5140 = vmatprep.mubr.msk.bf16.mxu0 %vm5586_vm1, %v5585_v2  ;;  %5146 = vmatprep.mubr.msk.bf16.mxu1 %vm5586_vm1, %v5585_v2  ;;  %v4778_v56 = vcombine.low %v4770_v52, %v4771_v53  ;;  %v4813_v53 = vld [vmem:[%s5653_s27 + $0x88] sm:$0xf] }
  0x36   : > { %5150 = vmatprep.subr.bf16.mxu0 %v5585_v2  ;;  %5156 = vmatprep.subr.bf16.mxu1 %v5585_v2 }
  0x37   : > { %v1723_v1 = vshrl.u32 %v4778_v56, 16 }
  0x3b   : > { %5141 = vmatmul.mubr.msk.bf16.vlgmr.msra.gmra.mrb[20].mxu0 %vm256_vm2, %v4721_v40  ;;  %5147 = vmatmul.mubr.msk.bf16.vlgmr.msra.gmra.mrb[20].mxu1 %vm256_vm2, %v883_v58  ;;  %v4765_v40 = vld [vmem:[%s6322_s1 + $0x8] sm:$0x3]  ;;  %v4784_v58 = vld [vmem:[%s6322_s1 + $0x2] sm:$0x3] }
  0x3c   : > { %5151 = vmatpush3.bf16.msra.mxu0 %v944_v61  ;;  %5157 = vmatpush3.bf16.msra.mxu1 %v997_v62  ;;  %v1505_v44 = vsel %vm260_vm0, %v4765_v40, 0  ;;  %v4781_v61 = vld [vmem:[%s5653_s27 + $0x60] sm:$0xf]  ;;  %v4782_v62 = vld [vmem:[%s5653_s27 + $0x64] sm:$0x1]  ;;  %v1799_v0 = vsel %vm260_vm0, %v4784_v58, 0 }
  0x3d   : > { %5152 = vmatprep.mubr.msk.bf16.mxu0 %vm5586_vm1, %v5585_v2  ;;  %5158 = vmatprep.mubr.msk.bf16.mxu1 %vm5586_vm1, %v5585_v2 }
  0x3e   : > { %5162 = vmatprep.subr.bf16.mxu0 %v5585_v2  ;;  %5168 = vmatprep.subr.bf16.mxu1 %v5585_v2 }
  0x43   : > { %5153 = vmatmul.mubr.msk.bf16.vlgmr.msra.gmra.mrb[24].mxu0 %vm256_vm2, %v4730_v59  ;;  %5159 = vmatmul.mubr.msk.bf16.vlgmr.msra.gmra.mrb[24].mxu1 %vm256_vm2, %v4734_v4  ;;  %v1725_v59 = vshll.u32 %v4778_v56, 16  ;;  %v4788_v4 = vcombine.low %v4781_v61, %v4782_v62  ;;  %v4827_v62 = vld [vmem:[%s6322_s1 + $0xa] sm:$0x3] }
  0x44   : > { %5163 = vmatpush3.bf16.msra.mxu0 %v1057_v7  ;;  %5169 = vmatpush3.bf16.msra.mxu1 %v1112_v8 }
  0x45   : > { %5164 = vmatprep.mubr.msk.bf16.mxu0 %vm5586_vm1, %v5585_v2  ;;  %5170 = vmatprep.mubr.msk.bf16.mxu1 %vm5586_vm1, %v5585_v2  ;;  %v1727_v3 = vrot.slane %v1725_v59, 1  ;;  %v1896_v8 = vshll.u32 %v4788_v4, 16  ;;  %v1894_v12 = vshrl.u32 %v4788_v4, 16 }
  0x46   : > { %5174 = vmatprep.subr.bf16.mxu0 %v5585_v2  ;;  %5180 = vmatprep.subr.bf16.mxu1 %v5585_v2 }
  0x47   : > { %v1728_v7 = vor.u32 %v1727_v3, %v1723_v1  ;;  %v1898_v13 = vrot.slane %v1896_v8, 1  ;;  %v2581_v3 = vsel %vm260_vm0, %v4827_v62, 0  ;;  %v4874_v62 = vld [vmem:[%s6322_s1 + $0x2] sm:$0x3] }
  0x4b   : > { %5165 = vmatmul.mubr.msk.bf16.vlgmr.msra.gmra.mrb[28].mxu0 %vm256_vm2, %v1052_v14  ;;  %5171 = vmatmul.mubr.msk.bf16.vlgmr.msra.gmra.mrb[28].mxu1 %vm256_vm2, %v4740_v5  ;;  %v1788_v5 = vld [vmem:[%s6322_s1] sm:$0x3]  ;;  %v4792_v14 = vld [vmem:[%s6322_s1 + $0x6] sm:$0x3] }
  0x4c   : > { %5175 = vmatpush3.bf16.msra.mxu0 %v1165_v16  ;;  %5181 = vmatpush3.bf16.msra.mxu1 %v1225_v17  ;;  %v1845_v10 = vsel %vm260_vm0, %v1788_v5, 0  ;;  %v1899_v16 = vor.u32 %v1898_v13, %v1894_v12  ;;  %v4790_v17 = vld [vmem:[%s5653_s27 + $0x70] sm:$0xf]  ;;  %v1960_v19 = vsel %vm260_vm0, %v4792_v14, 0  ;;  %v2636_v12 = vsel %vm260_vm0, %v4832_v6, 0 }
  0x4d   : > { %5176 = vmatprep.mubr.msk.bf16.mxu0 %vm5586_vm1, %v5585_v2  ;;  %5182 = vmatprep.mubr.msk.bf16.mxu1 %vm5586_vm1, %v5585_v2  ;;  %v4798_v21 = vcombine.low %v4790_v17, %v4791_v18  ;;  %v4834_v18 = vld [vmem:[%s5653_s27 + $0xa8] sm:$0xf] }
  0x4e   : > { %5186 = vmatprep.subr.bf16.mxu0 %v5585_v2  ;;  %5192 = vmatprep.subr.bf16.mxu1 %v5585_v2 }
  0x4f   : > { %v2063_v30 = vshrl.u32 %v4798_v21, 16 }
  0x53   : > { %5177 = vmatmul.mubr.msk.bf16.vlgmr.msra.gmra.mrb[32].mxu0 %vm256_vm2, %v4744_v23  ;;  %5183 = vmatmul.mubr.msk.bf16.vlgmr.msra.gmra.mrb[32].mxu1 %vm256_vm2, %v1220_v22  ;;  %v4797_v22 = vld [vmem:[%s6322_s1 + $0xa] sm:$0x3]  ;;  %v4802_v23 = vld [vmem:[%s6322_s1 + $0xc] sm:$0x3] }
  0x54   : > { %5187 = vmatpush3.bf16.msra.mxu0 %v1291_v26  ;;  %5193 = vmatpush3.bf16.msra.mxu1 %v1337_v27  ;;  %v4800_v26 = vld [vmem:[%s5653_s27 + $0x80] sm:$0xf]  ;;  %v4801_v27 = vld [vmem:[%s5653_s27 + $0x84] sm:$0x1]  ;;  %v2073_v28 = vsel %vm260_vm0, %v4797_v22, 0  ;;  %v2128_v29 = vsel %vm260_vm0, %v4802_v23, 0 }
  0x55   : > { %5188 = vmatprep.mubr.msk.bf16.mxu0 %vm5586_vm1, %v5585_v2  ;;  %5194 = vmatprep.mubr.msk.bf16.mxu1 %vm5586_vm1, %v5585_v2 }
  0x56   : > { %5198 = vmatprep.subr.bf16.mxu0 %v5585_v2  ;;  %5204 = vmatprep.subr.bf16.mxu1 %v5585_v2 }
  0x5b   : > { %5189 = vmatmul.mubr.msk.bf16.vlgmr.msra.gmra.mrb[36].mxu0 %vm256_vm2, %v4753_v32  ;;  %5195 = vmatmul.mubr.msk.bf16.vlgmr.msra.gmra.mrb[36].mxu1 %vm256_vm2, %v4751_v24  ;;  %v2065_v24 = vshll.u32 %v4798_v21, 16  ;;  %v4808_v32 = vcombine.low %v4800_v26, %v4801_v27  ;;  %v2749_v21 = vsel %vm260_vm0, %v4837_v15, 0  ;;  %v4847_v27 = vld [vmem:[%s6322_s1 + $0x4] sm:$0x3]  ;;  %v4873_v15 = vld [vmem:[%s5653_s27 + $0xc8] sm:$0xf] }
  0x5c   : > { %5199 = vmatpush3.bf16.msra.mxu0 %v1396_v35  ;;  %5205 = vmatpush3.bf16.msra.mxu1 %v1452_v36 }
  0x5d   : > { %5200 = vmatprep.mubr.msk.bf16.mxu0 %vm5586_vm1, %v5585_v2  ;;  %5206 = vmatprep.mubr.msk.bf16.mxu1 %vm5586_vm1, %v5585_v2  ;;  %v2067_v31 = vrot.slane %v2065_v24, 1  ;;  %v2233_v36 = vshll.u32 %v4808_v32, 16  ;;  %v2231_v39 = vshrl.u32 %v4808_v32, 16  ;;  %v2920_v32 = vsel %vm260_vm0, %v4847_v27, 0 }
  0x5e   : > { %5210 = vmatprep.subr.bf16.mxu0 %v5585_v2  ;;  %5216 = vmatprep.subr.bf16.mxu1 %v5585_v2 }
  0x5f   : > { %v2068_v35 = vor.u32 %v2067_v31, %v2063_v30  ;;  %v2235_v40 = vrot.slane %v2233_v36, 1  ;;  %v4843_v30 = vld [vmem:[%s5653_s27 + $0xa8] sm:$0xf] }
  0x60   : > { %v4855_v36 = vld [vmem:[%s6322_s1 + $0x8] sm:$0x3] }
  0x61   : > { %v2236_v43 = vor.u32 %v2235_v40, %v2231_v39  ;;  %v4851_v39 = vld [vmem:[%s5653_s27 + $0xb4] sm:$0x1]  ;;  %v3029_v41 = vsel %vm260_vm0, %v4855_v36, 0 }
  0x63   : > { %5201 = vmatmul.mubr.msk.bf16.vlgmr.msra.gmra.mrb[40].mxu0 %vm256_vm2, %v1391_v42  ;;  %5207 = vmatmul.mubr.msk.bf16.vlgmr.msra.gmra.mrb[40].mxu1 %vm256_vm2, %v4760_v33  ;;  %v4805_v33 = vld [vmem:[%s6322_s1 + $0xe] sm:$0x3]  ;;  %v2296_v42 = vld [vmem:[%s6322_s1] sm:$0x3] }
  0x64   : > { %5211 = vmatpush3.bf16.msra.mxu0 %v1505_v44  ;;  %5217 = vmatpush3.bf16.msra.mxu1 %v1565_v45  ;;  %v2181_v37 = vsel %vm260_vm0, %v4805_v33, 0  ;;  %v4804_v44 = vld [vmem:[%s5653_s27 + $0x88] sm:$0xf]  ;;  %v4811_v45 = vld [vmem:[%s5653_s27 + $0x80] sm:$0xf]  ;;  %v2353_v48 = vsel %vm260_vm0, %v2296_v42, 0 }
  0x65   : > { %5212 = vmatprep.mubr.msk.bf16.mxu0 %vm5586_vm1, %v5585_v2  ;;  %5218 = vmatprep.mubr.msk.bf16.mxu1 %vm5586_vm1, %v5585_v2  ;;  %v4818_v49 = vcombine.low %v4811_v45, %v4812_v46  ;;  %v4854_v46 = vld [vmem:[%s5653_s27 + $0xb8] sm:$0xf] }
  0x66   : > { %5222 = vmatprep.subr.bf16.mxu0 %v5585_v2  ;;  %5228 = vmatprep.subr.bf16.mxu1 %v5585_v2 }
  0x67   : > { %v2402_v58 = vshrl.u32 %v4818_v49, 16 }
  0x6b   : > { %5213 = vmatmul.mubr.msk.bf16.vlgmr.msra.gmra.mrb[44].mxu0 %vm256_vm2, %v4764_v51  ;;  %5219 = vmatmul.mubr.msk.bf16.vlgmr.msra.gmra.mrb[44].mxu1 %vm256_vm2, %v1560_v50  ;;  %v4817_v50 = vld [vmem:[%s6322_s1 + $0x4] sm:$0x3]  ;;  %v4822_v51 = vld [vmem:[%s6322_s1 + $0x6] sm:$0x3] }
  0x6c   : > { %5223 = vmatpush3.bf16.msra.mxu0 %v1620_v54  ;;  %5229 = vmatpush3.bf16.msra.mxu1 %v1673_v55  ;;  %v4820_v54 = vld [vmem:[%s5653_s27 + $0x90] sm:$0xf]  ;;  %v4821_v55 = vld [vmem:[%s5653_s27 + $0x94] sm:$0x1]  ;;  %v2412_v56 = vsel %vm260_vm0, %v4817_v50, 0  ;;  %v2468_v57 = vsel %vm260_vm0, %v4822_v51, 0 }
  0x6d   : > { %5224 = vmatprep.mubr.msk.bf16.mxu0 %vm5586_vm1, %v5585_v2  ;;  %5230 = vmatprep.mubr.msk.bf16.mxu1 %vm5586_vm1, %v5585_v2 }
  0x6e   : > { %5234 = vmatprep.subr.bf16.mxu0 %v5585_v2  ;;  %5240 = vmatprep.subr.bf16.mxu1 %v5585_v2 }
  0x73   : > { %5225 = vmatmul.mubr.msk.bf16.vlgmr.msra.gmra.mrb[48].mxu0 %vm256_vm2, %v4770_v52  ;;  %5231 = vmatmul.mubr.msk.bf16.vlgmr.msra.gmra.mrb[48].mxu1 %vm256_vm2, %v4774_v60  ;;  %v2404_v52 = vshll.u32 %v4818_v49, 16  ;;  %v4828_v60 = vcombine.low %v4820_v54, %v4821_v55  ;;  %v4867_v55 = vld [vmem:[%s6322_s1 + $0x10] sm:$0x3] }
  0x74   : > { %5235 = vmatpush3.bf16.msra.mxu0 %v1733_v63  ;;  %5241 = vmatpush3.bf16.msra.mxu1 %v1799_v0 }
  0x75   : > { %5236 = vmatprep.mubr.msk.bf16.mxu0 %vm5586_vm1, %v5585_v2  ;;  %5242 = vmatprep.mubr.msk.bf16.mxu1 %vm5586_vm1, %v5585_v2  ;;  %v2406_v59 = vrot.slane %v2404_v52, 1  ;;  %v2573_v0 = vshll.u32 %v4828_v60, 16  ;;  %v2571_v4 = vshrl.u32 %v4828_v60, 16 }
  0x76   : > { %5246 = vmatprep.subr.bf16.mxu0 %v5585_v2  ;;  %5252 = vmatprep.subr.bf16.mxu1 %v5585_v2 }
  0x77   : > { %v2407_v63 = vor.u32 %v2406_v59, %v2402_v58  ;;  %v2575_v5 = vrot.slane %v2573_v0, 1  ;;  %v3257_v59 = vsel %vm260_vm0, %v4867_v55, 0 }
  0x79   : > { %v2576_v8 = vor.u32 %v2575_v5, %v2571_v4  ;;  %v4872_v4 = vld [vmem:[%s5653_s27 + $0xc4] sm:$0x1]  ;;  %v3323_v5 = vsel %vm260_vm0, %v4874_v62, 0 }
  0x7b   : > { %5237 = vmatmul.mubr.msk.bf16.vlgmr.msra.gmra.mrb[52].mxu0 %vm256_vm2, %v1728_v7  ;;  %5243 = vmatmul.mubr.msk.bf16.vlgmr.msra.gmra.mrb[52].mxu1 %vm256_vm2, %v4783_v9  ;;  %v4835_v7 = vld [vmem:[%s6322_s1 + $0xe] sm:$0x3]  ;;  %v4824_v9 = vld [vmem:[%s5653_s27 + $0x98] sm:$0xf] }
  0x7c   : > { %5247 = vmatpush3.bf16.msra.mxu0 %v1845_v10  ;;  %5253 = vmatpush3.bf16.msra.mxu1 %v1904_v11  ;;  %v4830_v10 = vld [vmem:[%s5653_s27 + $0xa0] sm:$0xf]  ;;  %v4831_v11 = vld [vmem:[%s5653_s27 + $0xa4] sm:$0x1]  ;;  %v2689_v13 = vsel %vm260_vm0, %v4835_v7, 0 }
  0x7d   : > { %5248 = vmatprep.mubr.msk.bf16.mxu0 %vm5586_vm1, %v5585_v2  ;;  %5254 = vmatprep.mubr.msk.bf16.mxu1 %vm5586_vm1, %v5585_v2  ;;  %v4838_v14 = vcombine.low %v4830_v10, %v4831_v11  ;;  %v4882_v11 = vld [vmem:[%s6322_s1 + $0x6] sm:$0x3] }
  0x7e   : > { %5258 = vmatprep.subr.bf16.mxu0 %v5585_v2  ;;  %5264 = vmatprep.subr.bf16.mxu1 %v5585_v2 }
  0x7f   : > { %v2739_v23 = vshrl.u32 %v4838_v14, 16 }
  0x83   : > { %5249 = vmatmul.mubr.msk.bf16.vlgmr.msra.gmra.mrb[56].mxu0 %vm256_vm2, %v4781_v61  ;;  %5255 = vmatmul.mubr.msk.bf16.vlgmr.msra.gmra.mrb[56].mxu1 %vm256_vm2, %v1899_v16  ;;  %v4825_v61 = vld [vmem:[%s6322_s1 + $0x8] sm:$0x3]  ;;  %v4844_v16 = vld [vmem:[%s6322_s1 + $0x2] sm:$0x3] }
  0x84   : > { %5259 = vmatpush3.bf16.msra.mxu0 %v1960_v19  ;;  %5265 = vmatpush3.bf16.msra.mxu1 %v2013_v20  ;;  %v2521_v1 = vsel %vm260_vm0, %v4825_v61, 0  ;;  %v4841_v19 = vld [vmem:[%s5653_s27 + $0xa0] sm:$0xf]  ;;  %v4842_v20 = vld [vmem:[%s5653_s27 + $0xa4] sm:$0x1]  ;;  %v2815_v22 = vsel %vm260_vm0, %v4844_v16, 0 }
  0x85   : > { %5260 = vmatprep.mubr.msk.bf16.mxu0 %vm5586_vm1, %v5585_v2  ;;  %5266 = vmatprep.mubr.msk.bf16.mxu1 %vm5586_vm1, %v5585_v2 }
  0x86   : > { %5270 = vmatprep.subr.bf16.mxu0 %v5585_v2  ;;  %5276 = vmatprep.subr.bf16.mxu1 %v5585_v2 }
  0x8b   : > { %5261 = vmatmul.mubr.msk.bf16.vlgmr.msra.gmra.mrb[60].mxu0 %vm256_vm2, %v4790_v17  ;;  %5267 = vmatmul.mubr.msk.bf16.vlgmr.msra.gmra.mrb[60].mxu1 %vm256_vm2, %v4794_v25  ;;  %v2741_v17 = vshll.u32 %v4838_v14, 16  ;;  %v4848_v25 = vcombine.low %v4841_v19, %v4842_v20  ;;  %v4881_v20 = vld [vmem:[%s5653_s27 + $0xd4] sm:$0x1] }
  0x8c   : > { %5271 = vmatpush3.bf16.msra.mxu0 %v2073_v28  ;;  %5277 = vmatpush3.bf16.msra.mxu1 %v2128_v29 }
  0x8d   : > { %5272 = vmatprep.mubr.msk.bf16.mxu0 %vm5586_vm1, %v5585_v2  ;;  %5278 = vmatprep.mubr.msk.bf16.mxu1 %vm5586_vm1, %v5585_v2  ;;  %v2743_v24 = vrot.slane %v2741_v17, 1  ;;  %v2912_v29 = vshll.u32 %v4848_v25, 16  ;;  %v2910_v33 = vshrl.u32 %v4848_v25, 16 }
  0x8e   : > { %5282 = vmatprep.subr.bf16.mxu0 %v5585_v2  ;;  %5288 = vmatprep.subr.bf16.mxu1 %v5585_v2 }
  0x8f   : > { %v2744_v28 = vor.u32 %v2743_v24, %v2739_v23  ;;  %v2914_v34 = vrot.slane %v2912_v29, 1  ;;  %v3484_v24 = vsel %vm260_vm0, %v4882_v11, 0 }
  0x93   : > { %5273 = vmatmul.mubr.msk.bf16.vlgmr.msra.gmra.mrb[64].mxu0 %vm256_vm2, %v2068_v35  ;;  %5279 = vmatmul.mubr.msk.bf16.vlgmr.msra.gmra.mrb[64].mxu1 %vm256_vm2, %v4800_v26  ;;  %v2804_v26 = vld [vmem:[%s6322_s1] sm:$0x3]  ;;  %v4852_v35 = vld [vmem:[%s6322_s1 + $0x6] sm:$0x3] }
  0x94   : > { %5283 = vmatpush3.bf16.msra.mxu0 %v2181_v37  ;;  %5289 = vmatpush3.bf16.msra.mxu1 %v2241_v38  ;;  %v2861_v31 = vsel %vm260_vm0, %v2804_v26, 0  ;;  %v2915_v37 = vor.u32 %v2914_v34, %v2910_v33  ;;  %v4850_v38 = vld [vmem:[%s5653_s27 + $0xb0] sm:$0xf]  ;;  %v2976_v40 = vsel %vm260_vm0, %v4852_v35, 0 }
  0x95   : > { %5284 = vmatprep.mubr.msk.bf16.mxu0 %vm5586_vm1, %v5585_v2  ;;  %5290 = vmatprep.mubr.msk.bf16.mxu1 %vm5586_vm1, %v5585_v2  ;;  %v4858_v42 = vcombine.low %v4850_v38, %v4851_v39 }
  0x96   : > { %5294 = vmatprep.subr.bf16.mxu0 %v5585_v2  ;;  %5300 = vmatprep.subr.bf16.mxu1 %v5585_v2 }
  0x97   : > { %v3079_v51 = vshrl.u32 %v4858_v42, 16 }
  0x9b   : > { %5285 = vmatmul.mubr.msk.bf16.vlgmr.msra.gmra.mrb[68].mxu0 %vm256_vm2, %v4804_v44  ;;  %5291 = vmatmul.mubr.msk.bf16.vlgmr.msra.gmra.mrb[68].mxu1 %vm256_vm2, %v2236_v43  ;;  %v4857_v43 = vld [vmem:[%s6322_s1 + $0xa] sm:$0x3]  ;;  %v4862_v44 = vld [vmem:[%s6322_s1 + $0xc] sm:$0x3] }
  0x9c   : > { %5295 = vmatpush3.bf16.msra.mxu0 %v2307_v47  ;;  %5301 = vmatpush3.bf16.msra.mxu1 %v2353_v48  ;;  %v4860_v47 = vld [vmem:[%s5653_s27 + $0xc0] sm:$0xf]  ;;  %v4861_v48 = vld [vmem:[%s5653_s27 + $0xc4] sm:$0x1]  ;;  %v3089_v49 = vsel %vm260_vm0, %v4857_v43, 0  ;;  %v3144_v50 = vsel %vm260_vm0, %v4862_v44, 0 }
  0x9d   : > { %5296 = vmatprep.mubr.msk.bf16.mxu0 %vm5586_vm1, %v5585_v2  ;;  %5302 = vmatprep.mubr.msk.bf16.mxu1 %vm5586_vm1, %v5585_v2 }
  0x9e   : > { %5306 = vmatprep.subr.bf16.mxu0 %v5585_v2  ;;  %5312 = vmatprep.subr.bf16.mxu1 %v5585_v2 }
  0xa3   : > { %5297 = vmatmul.mubr.msk.bf16.vlgmr.msra.gmra.mrb[72].mxu0 %vm256_vm2, %v4813_v53  ;;  %5303 = vmatmul.mubr.msk.bf16.vlgmr.msra.gmra.mrb[72].mxu1 %vm256_vm2, %v4811_v45  ;;  %v3081_v45 = vshll.u32 %v4858_v42, 16  ;;  %v4868_v53 = vcombine.low %v4860_v47, %v4861_v48  ;;  %v4892_v48 = vld [vmem:[%s6322_s1 + $0xc] sm:$0x3] }
  0xa4   : > { %5307 = vmatpush3.bf16.msra.mxu0 %v2412_v56  ;;  %5313 = vmatpush3.bf16.msra.mxu1 %v2468_v57  ;;  %v3652_v62 = vsel %vm260_vm0, %v4892_v48, 0  ;;  %v4915_v48 = vld [vmem:[%s6322_s1 + $0x8] sm:$0x3] }
  0xa5   : > { %5308 = vmatprep.mubr.msk.bf16.mxu0 %vm5586_vm1, %v5585_v2  ;;  %5314 = vmatprep.mubr.msk.bf16.mxu1 %vm5586_vm1, %v5585_v2  ;;  %v3083_v52 = vrot.slane %v3081_v45, 1  ;;  %v3249_v57 = vshll.u32 %v4868_v53, 16  ;;  %v3247_v60 = vshrl.u32 %v4868_v53, 16 }
  0xa6   : > { %5318 = vmatprep.subr.bf16.mxu0 %v5585_v2  ;;  %5324 = vmatprep.subr.bf16.mxu1 %v5585_v2 }
  0xa7   : > { %v3084_v56 = vor.u32 %v3083_v52, %v3079_v51  ;;  %v3251_v61 = vrot.slane %v3249_v57, 1  ;;  %v4890_v57 = vld [vmem:[%s5653_s27 + $0xe0] sm:$0xf] }
  0xa9   : > { %v3252_v0 = vor.u32 %v3251_v61, %v3247_v60 }
  0xab   : > { %5309 = vmatmul.mubr.msk.bf16.vlgmr.msra.gmra.mrb[76].mxu0 %vm256_vm2, %v2407_v63  ;;  %5315 = vmatmul.mubr.msk.bf16.vlgmr.msra.gmra.mrb[76].mxu1 %vm256_vm2, %v4820_v54  ;;  %v4865_v54 = vld [vmem:[%s6322_s1 + $0xe] sm:$0x3]  ;;  %v3312_v63 = vld [vmem:[%s6322_s1] sm:$0x3] }
  0xac   : > { %5319 = vmatpush3.bf16.msra.mxu0 %v2521_v1  ;;  %5325 = vmatpush3.bf16.msra.mxu1 %v2581_v3  ;;  %v3197_v58 = vsel %vm260_vm0, %v4865_v54, 0  ;;  %v4864_v1 = vld [vmem:[%s5653_s27 + $0xc8] sm:$0xf]  ;;  %v4871_v3 = vld [vmem:[%s5653_s27 + $0xc0] sm:$0xf]  ;;  %v3369_v6 = vsel %vm260_vm0, %v3312_v63, 0 }
  0xad   : > { %5320 = vmatprep.mubr.msk.bf16.mxu0 %vm5586_vm1, %v5585_v2  ;;  %5326 = vmatprep.mubr.msk.bf16.mxu1 %vm5586_vm1, %v5585_v2  ;;  %v4878_v7 = vcombine.low %v4871_v3, %v4872_v4  ;;  %v4884_v54 = vld [vmem:[%s5653_s27 + $0xd8] sm:$0xf]  ;;  %v4897_v4 = vld [vmem:[%s6322_s1 + $0x10] sm:$0x3] }
  0xae   : > { %5330 = vmatprep.subr.bf16.mxu0 %v5585_v2  ;;  %5336 = vmatprep.subr.bf16.mxu1 %v5585_v2 }
  0xaf   : > { %v3420_v16 = vshll.u32 %v4878_v7, 16  ;;  %v3418_v25 = vshrl.u32 %v4878_v7, 16 }
  0xb1   : > { %v3422_v26 = vrot.slane %v3420_v16, 1 }
  0xb3   : > { %5321 = vmatmul.mubr.msk.bf16.vlgmr.msra.gmra.mrb[80].mxu0 %vm256_vm2, %v4824_v9  ;;  %5327 = vmatmul.mubr.msk.bf16.vlgmr.msra.gmra.mrb[80].mxu1 %vm256_vm2, %v2576_v8 }
  0xb4   : > { %5331 = vmatpush3.bf16.msra.mxu0 %v2636_v12  ;;  %5337 = vmatpush3.bf16.msra.mxu1 %v2689_v13 }
  0xb5   : > { %5332 = vmatprep.mubr.msk.bf16.mxu0 %vm5586_vm1, %v5585_v2  ;;  %5338 = vmatprep.mubr.msk.bf16.mxu1 %vm5586_vm1, %v5585_v2 }
  0xb6   : > { %5342 = vmatprep.subr.bf16.mxu0 %v5585_v2  ;;  %5348 = vmatprep.subr.bf16.mxu1 %v5585_v2 }
  0xbb   : > { %5333 = vmatmul.mubr.msk.bf16.vlgmr.msra.gmra.mrb[84].mxu0 %vm256_vm2, %v4830_v10  ;;  %5339 = vmatmul.mubr.msk.bf16.vlgmr.msra.gmra.mrb[84].mxu1 %vm256_vm2, %v4834_v18  ;;  %v4877_v10 = vld [vmem:[%s6322_s1 + $0x4] sm:$0x3] }
  0xbc   : > { %5343 = vmatpush3.bf16.msra.mxu0 %v2749_v21  ;;  %5349 = vmatpush3.bf16.msra.mxu1 %v2815_v22  ;;  %v3428_v23 = vsel %vm260_vm0, %v4877_v10, 0  ;;  %v4894_v10 = vld [vmem:[%s5653_s27 + $0xe8] sm:$0xf] }
  0xbd   : > { %5344 = vmatprep.mubr.msk.bf16.mxu0 %vm5586_vm1, %v5585_v2  ;;  %5350 = vmatprep.mubr.msk.bf16.mxu1 %vm5586_vm1, %v5585_v2 }
  0xbe   : > { %5354 = vmatprep.subr.bf16.mxu0 %v5585_v2  ;;  %5360 = vmatprep.subr.bf16.mxu1 %v5585_v2 }
  0xc3   : > { %5345 = vmatmul.mubr.msk.bf16.vlgmr.msra.gmra.mrb[88].mxu0 %vm256_vm2, %v2744_v28  ;;  %5351 = vmatmul.mubr.msk.bf16.vlgmr.msra.gmra.mrb[88].mxu1 %vm256_vm2, %v4843_v30  ;;  %v4885_v30 = vld [vmem:[%s6322_s1 + $0x8] sm:$0x3] }
  0xc4   : > { %5355 = vmatpush3.bf16.msra.mxu0 %v2861_v31  ;;  %5361 = vmatpush3.bf16.msra.mxu1 %v2920_v32  ;;  %v4887_v31 = vld [vmem:[%s6322_s1 + $0xa] sm:$0x3]  ;;  %v3423_v32 = vor.u32 %v3422_v26, %v3418_v25  ;;  %v3537_v42 = vsel %vm260_vm0, %v4885_v30, 0  ;;  %v3820_v26 = vld [vmem:[%s6322_s1] sm:$0x3] }
  0xc5   : > { %5356 = vmatprep.mubr.msk.bf16.mxu0 %vm5586_vm1, %v5585_v2  ;;  %5362 = vmatprep.mubr.msk.bf16.mxu1 %vm5586_vm1, %v5585_v2  ;;  %v3597_v43 = vsel %vm260_vm0, %v4887_v31, 0 }
  0xc6   : > { %5366 = vmatprep.subr.bf16.mxu0 %v5585_v2  ;;  %5372 = vmatprep.subr.bf16.mxu1 %v5585_v2 }
  0xcb   : > { %5357 = vmatmul.mubr.msk.bf16.vlgmr.msra.gmra.mrb[92].mxu0 %vm256_vm2, %v4841_v19  ;;  %5363 = vmatmul.mubr.msk.bf16.vlgmr.msra.gmra.mrb[92].mxu1 %vm256_vm2, %v2915_v37  ;;  %v4880_v19 = vld [vmem:[%s5653_s27 + $0xd0] sm:$0xf] }
  0xcc   : > { %5367 = vmatpush3.bf16.msra.mxu0 %v2976_v40  ;;  %5373 = vmatpush3.bf16.msra.mxu1 %v3029_v41  ;;  %v4888_v27 = vcombine.low %v4880_v19, %v4881_v20 }
  0xcd   : > { %5368 = vmatprep.mubr.msk.bf16.mxu0 %vm5586_vm1, %v5585_v2  ;;  %5374 = vmatprep.mubr.msk.bf16.mxu1 %vm5586_vm1, %v5585_v2 }
  0xce   : > { %5378 = vmatprep.subr.bf16.mxu0 %v5585_v2  ;;  %5384 = vmatprep.subr.bf16.mxu1 %v5585_v2  ;;  %v3589_v36 = vshll.u32 %v4888_v27, 16  ;;  %v3587_v44 = vshrl.u32 %v4888_v27, 16  ;;  %v4907_v27 = vld [vmem:[%s6322_s1 + $0x4] sm:$0x3] }
  0xd0   : > { %v3591_v45 = vrot.slane %v3589_v36, 1 }
  0xd3   : > { %5369 = vmatmul.mubr.msk.bf16.vlgmr.msra.gmra.mrb[96].mxu0 %vm256_vm2, %v4850_v38  ;;  %5375 = vmatmul.mubr.msk.bf16.vlgmr.msra.gmra.mrb[96].mxu1 %vm256_vm2, %v4854_v46 }
  0xd4   : > { %5379 = vmatpush3.bf16.msra.mxu0 %v3089_v49  ;;  %5385 = vmatpush3.bf16.msra.mxu1 %v3144_v50  ;;  %v4895_v49 = vld [vmem:[%s6322_s1 + $0xe] sm:$0x3]  ;;  %v3592_v50 = vor.u32 %v3591_v45, %v3587_v44 }
  0xd5   : > { %5380 = vmatprep.mubr.msk.bf16.mxu0 %vm5586_vm1, %v5585_v2  ;;  %5386 = vmatprep.mubr.msk.bf16.mxu1 %vm5586_vm1, %v5585_v2  ;;  %v3705_v63 = vsel %vm260_vm0, %v4895_v49, 0 }
  0xd6   : > { %5390 = vmatprep.subr.bf16.mxu0 %v5585_v2  ;;  %5396 = vmatprep.subr.bf16.mxu1 %v5585_v2 }
  0xdb   : > { %5381 = vmatmul.mubr.msk.bf16.vlgmr.msra.gmra.mrb[100].mxu0 %vm256_vm2, %v3084_v56  ;;  %5387 = vmatmul.mubr.msk.bf16.vlgmr.msra.gmra.mrb[100].mxu1 %vm256_vm2, %v4860_v47 }
  0xdc   : > { %5391 = vmatpush3.bf16.msra.mxu0 %v3197_v58  ;;  %5397 = vmatpush3.bf16.msra.mxu1 %v3257_v59  ;;  %v4891_v58 = vld [vmem:[%s5653_s27 + $0xe4] sm:$0x1] }
  0xdd   : > { %5392 = vmatprep.mubr.msk.bf16.mxu0 %vm5586_vm1, %v5585_v2  ;;  %5398 = vmatprep.mubr.msk.bf16.mxu1 %vm5586_vm1, %v5585_v2 }
  0xde   : > { %5402 = vmatprep.subr.bf16.mxu0 %v5585_v2  ;;  %5408 = vmatprep.subr.bf16.mxu1 %v5585_v2 }
  0xe3   : > { %5393 = vmatmul.mubr.msk.bf16.vlgmr.msra.gmra.mrb[104].mxu0 %vm256_vm2, %v4864_v1  ;;  %5399 = vmatmul.mubr.msk.bf16.vlgmr.msra.gmra.mrb[104].mxu1 %vm256_vm2, %v3252_v0  ;;  %v4898_v0 = vcombine.low %v4890_v57, %v4891_v58 }
  0xe4   : > { %5403 = vmatpush3.bf16.msra.mxu0 %v3323_v5  ;;  %5409 = vmatpush3.bf16.msra.mxu1 %v3369_v6  ;;  %v4904_v5 = vld [vmem:[%s6322_s1 + $0x2] sm:$0x3] }
  0xe5   : > { %5404 = vmatprep.mubr.msk.bf16.mxu0 %vm5586_vm1, %v5585_v2  ;;  %5410 = vmatprep.mubr.msk.bf16.mxu1 %vm5586_vm1, %v5585_v2  ;;  %v3755_v20 = vshrl.u32 %v4898_v0, 16 }
  0xe6   : > { %v298_v8 = vpop.f32.mrb[0].mxu0  ;;  %v344_v9 = vpop.f32.mrb[0].mxu1  ;;  %5414 = vmatprep.subr.bf16.mxu0 %v5585_v2  ;;  %5420 = vmatprep.subr.bf16.mxu1 %v5585_v2 }
  0xe7   : > { %v345_v12 = vadd.f32 %v344_v9, %v298_v8  ;;  %v5082_v13 = vpop.f32.mrb[1].mxu0  ;;  %v5088_v14 = vpop.f32.mrb[1].mxu1  ;;  %v3757_v9 = vshll.u32 %v4898_v0, 16 }
  0xe8   : > { %v301_v17 = vpop.f32.mrb[2].mxu0  ;;  %v347_v18 = vpop.f32.mrb[2].mxu1  ;;  %v6199_v13 = vld [vmem:[%s5653_s27 + $0xe0] sm:$0xf]  ;;  %v4902_v14 = vld [vmem:[%s5653_s27 + $0xe4] sm:$0x1] }
  0xe9   : > { %v5083_v21 = vpop.f32.mrb[3].mxu0  ;;  %v5089_v22 = vpop.f32.mrb[3].mxu1  ;;  %v3765_v18 = vsel %vm260_vm0, %v4897_v4, 0 }
  0xea   : > { %v3759_v21 = vrot.slane %v3757_v9, 1  ;;  %v4908_v22 = vcombine.low %v6199_v13, %v4902_v14 }
  0xeb   : > { %5405 = vmatmul.mubr.msk.bf16.vlgmr.msra.gmra.mrb[108].mxu0 %vm256_vm2, %v4873_v15  ;;  %5411 = vmatmul.mubr.msk.bf16.vlgmr.msra.gmra.mrb[108].mxu1 %vm256_vm2, %v4871_v3 }
  0xec   : > { %5415 = vmatpush3.bf16.msra.mxu0 %v3428_v23  ;;  %5421 = vmatpush3.bf16.msra.mxu1 %v3484_v24  ;;  %v6210_v23 = vld [vmem:[%s6323_s2] ss:$0 sm:$0xff] }
  0xed   : > { %5416 = vmatprep.mubr.msk.bf16.mxu0 %vm5586_vm1, %v5585_v2  ;;  %5422 = vmatprep.mubr.msk.bf16.mxu1 %vm5586_vm1, %v5585_v2 }
  0xee   : > { %v404_v28 = vpop.f32.mrb[4].mxu0  ;;  %v461_v29 = vpop.f32.mrb[4].mxu1  ;;  %5426 = vmatprep.subr.bf16.mxu0 %v5585_v2  ;;  %5432 = vmatprep.subr.bf16.mxu1 %v5585_v2 }
  0xef   : > { %v410_v33 = vadd.f32 %v404_v28, %v345_v12  ;;  %v5094_v34 = vpop.f32.mrb[5].mxu0  ;;  %v5100_v35 = vpop.f32.mrb[5].mxu1  ;;  %v3760_v28 = vor.u32 %v3759_v21, %v3755_v20 }
  0xf0   : > { %v407_v37 = vpop.f32.mrb[6].mxu0  ;;  %v464_v38 = vpop.f32.mrb[6].mxu1  ;;  %v4903_v35 = vld [vmem:[%s5653_s27 + $0xe8] sm:$0xf] }
  0xf1   : > { %v467_v39 = vadd.f32 %v461_v29, %v410_v33  ;;  %v5095_v40 = vpop.f32.mrb[7].mxu0  ;;  %v5101_v41 = vpop.f32.mrb[7].mxu1 }
  0xf2   : > { %v3936_v40 = vsel %vm260_vm0, %v4907_v27, 0 }
  0xf3   : > { %5417 = vmatmul.mubr.msk.bf16.vlgmr.msra.gmra.mrb[112].mxu0 %vm256_vm2, %v3423_v32  ;;  %5423 = vmatmul.mubr.msk.bf16.vlgmr.msra.gmra.mrb[112].mxu1 %vm256_vm2, %v4880_v19  ;;  %v3831_v19 = vsel %vm260_vm0, %v4904_v5, 0  ;;  %v3928_v32 = vshll.u32 %v4908_v22, 16 }
  0xf4   : > { %5427 = vmatpush3.bf16.msra.mxu0 %v3537_v42  ;;  %5433 = vmatpush3.bf16.msra.mxu1 %v3597_v43  ;;  %v3926_v42 = vshrl.u32 %v4908_v22, 16 }
  0xf5   : > { %5428 = vmatprep.mubr.msk.bf16.mxu0 %vm5586_vm1, %v5585_v2  ;;  %5434 = vmatprep.mubr.msk.bf16.mxu1 %vm5586_vm1, %v5585_v2  ;;  %v3930_v43 = vrot.slane %v3928_v32, 1 }
  0xf6   : > { %v515_v46 = vpop.f32.mrb[8].mxu0  ;;  %v576_v47 = vpop.f32.mrb[8].mxu1  ;;  %5438 = vmatprep.subr.bf16.mxu0 %v5585_v2  ;;  %5444 = vmatprep.subr.bf16.mxu1 %v5585_v2 }
  0xf7   : > { %v521_v51 = vadd.f32 %v515_v46, %v467_v39  ;;  %v5106_v52 = vpop.f32.mrb[9].mxu0  ;;  %v5112_v53 = vpop.f32.mrb[9].mxu1  ;;  %v3877_v39 = vsel %vm260_vm0, %v3820_v26, 0 }
  0xf8   : > { %v518_v55 = vpop.f32.mrb[10].mxu0  ;;  %v579_v56 = vpop.f32.mrb[10].mxu1  ;;  %v3931_v52 = vor.u32 %v3930_v43, %v3926_v42 }
  0xf9   : > { %v582_v59 = vadd.f32 %v576_v47, %v521_v51  ;;  %v5107_v60 = vpop.f32.mrb[11].mxu0  ;;  %v5113_v61 = vpop.f32.mrb[11].mxu1  ;;  %v4912_v47 = vld [vmem:[%s6322_s1 + $0x6] sm:$0x3]  ;;  %v4910_v55 = vld [vmem:[%s5653_s27 + $0xf0] sm:$0xf] }
  0xfa   : > { %v4911_v56 = vld [vmem:[%s5653_s27 + $0xf4] sm:$0x1]  ;;  %v3992_v60 = vsel %vm260_vm0, %v4912_v47, 0  ;;  %v4045_v61 = vsel %vm260_vm0, %v4915_v48, 0  ;;  %v4924_v48 = vld [vmem:[%s5653_s27 + $0x108] sm:$0xf] }
  0xfb   : > { %5429 = vmatmul.mubr.msk.bf16.vlgmr.msra.gmra.mrb[116].mxu0 %vm256_vm2, %v4884_v54  ;;  %5435 = vmatmul.mubr.msk.bf16.vlgmr.msra.gmra.mrb[116].mxu1 %vm256_vm2, %v3592_v50 }
  0xfc   : > { %5439 = vmatpush3.bf16.msra.mxu0 %v3652_v62  ;;  %5445 = vmatpush3.bf16.msra.mxu1 %v3705_v63  ;;  %v4918_v62 = vcombine.low %v4910_v55, %v4911_v56 }
  0xfd   : > { %5440 = vmatprep.mubr.msk.bf16.mxu0 %vm5586_vm1, %v5585_v2  ;;  %5446 = vmatprep.mubr.msk.bf16.mxu1 %vm5586_vm1, %v5585_v2 }
  0xfe   : > { %v632_v1 = vpop.f32.mrb[12].mxu0  ;;  %v686_v3 = vpop.f32.mrb[12].mxu1  ;;  %5450 = vmatprep.subr.bf16.mxu0 %v5585_v2  ;;  %5456 = vmatprep.subr.bf16.mxu1 %v5585_v2 }
  0xff   : > { %v638_v6 = vadd.f32 %v632_v1, %v582_v59  ;;  %v5118_v7 = vpop.f32.mrb[13].mxu0  ;;  %v5124_v8 = vpop.f32.mrb[13].mxu1  ;;  %v4917_v1 = vld [vmem:[%s6322_s1 + $0xa] sm:$0x3] }
 0x100   : > { %v635_v11 = vpop.f32.mrb[14].mxu0  ;;  %v689_v12 = vpop.f32.mrb[14].mxu1  ;;  %v4097_v7 = vshll.u32 %v4918_v62, 16  ;;  %v4914_v8 = vld [vmem:[%s5653_s27 + $0xf8] sm:$0xf] }
 0x101   : > { %v692_v15 = vadd.f32 %v686_v3, %v638_v6  ;;  %v5119_v16 = vpop.f32.mrb[15].mxu0  ;;  %v5125_v17 = vpop.f32.mrb[15].mxu1  ;;  %v4922_v3 = vld [vmem:[%s6322_s1 + $0xc] sm:$0x3]  ;;  %v4920_v11 = vld [vmem:[%s5653_s27 + $0x100] sm:$0xf] }
 0x102   : > { %v4921_v12 = vld [vmem:[%s5653_s27 + $0x104] sm:$0x1]  ;;  %v4105_v16 = vsel %vm260_vm0, %v4917_v1, 0  ;;  %v4160_v17 = vsel %vm260_vm0, %v4922_v3, 0 }
 0x103   : > { %5441 = vmatmul.mubr.msk.bf16.vlgmr.msra.gmra.mrb[120].mxu0 %vm256_vm2, %v4890_v57  ;;  %5447 = vmatmul.mubr.msk.bf16.vlgmr.msra.gmra.mrb[120].mxu1 %vm256_vm2, %v4894_v10  ;;  %v4928_v20 = vcombine.low %v4920_v11, %v4921_v12 }
 0x104   : > { %5451 = vmatpush3.bf16.msra.mxu0 %v3765_v18  ;;  %5457 = vmatpush3.bf16.msra.mxu1 %v3831_v19  ;;  %v4095_v18 = vshrl.u32 %v4918_v62, 16  ;;  %v4099_v19 = vrot.slane %v4097_v7, 1 }
 0x105   : > { %5452 = vmatprep.mubr.msk.bf16.mxu0 %vm5586_vm1, %v5585_v2  ;;  %5458 = vmatprep.mubr.msk.bf16.mxu1 %vm5586_vm1, %v5585_v2 }
 0x106   : > { %v747_v24 = vpop.f32.mrb[16].mxu0  ;;  %v819_v25 = vpop.f32.mrb[16].mxu1  ;;  %5462 = vmatprep.subr.bf16.mxu0 %v5585_v2  ;;  %5468 = vmatprep.subr.bf16.mxu1 %v5585_v2  ;;  %v4100_v26 = vor.u32 %v4099_v19, %v4095_v18 }
 0x107   : > { %v753_v29 = vadd.f32 %v747_v24, %v692_v15  ;;  %v5130_v30 = vpop.f32.mrb[17].mxu0  ;;  %v5136_v31 = vpop.f32.mrb[17].mxu1  ;;  %v4925_v24 = vld [vmem:[%s6322_s1 + $0xe] sm:$0x3] }
 0x108   : > { %v750_v33 = vpop.f32.mrb[18].mxu0  ;;  %v822_v34 = vpop.f32.mrb[18].mxu1  ;;  %v4265_v30 = vshll.u32 %v4928_v20, 16 }
 0x109   : > { %v760_v36 = vadd.f32 %v6210_v23, %v753_v29  ;;  %v5131_v37 = vpop.f32.mrb[19].mxu0  ;;  %v5137_v38 = vpop.f32.mrb[19].mxu1 }
 0x10a   : > { %v4263_v38 = vshrl.u32 %v4928_v20, 16 }
 0x10b   : > { %v761_v41 = vmax.f32 %v760_v36, 0.0  ;;  %5453 = vmatmul.mubr.msk.bf16.vlgmr.msra.gmra.mrb[124].mxu0 %vm256_vm2, %v3760_v28  ;;  %5459 = vmatmul.mubr.msk.bf16.vlgmr.msra.gmra.mrb[124].mxu1 %vm256_vm2, %v4903_v35  ;;  %v4213_v36 = vsel %vm260_vm0, %v4925_v24, 0 }
 0x10c   : > { %5463 = vmatpush3.bf16.msra.mxu0 %v3877_v39  ;;  %5469 = vmatpush3.bf16.msra.mxu1 %v3936_v40  ;;  %v4267_v39 = vrot.slane %v4265_v30, 1 }
 0x10d   : > { %v762_v44 = vpack.c.bf16 %v761_v41, %v761_v41  ;;  %5464 = vmatprep.mubr.msk.bf16.mxu0 %vm5586_vm1, %v5585_v2  ;;  %5470 = vmatprep.mubr.msk.bf16.mxu1 %vm5586_vm1, %v5585_v2 }
 0x10e   : > { %v865_v45 = vpop.f32.mrb[20].mxu0  ;;  %v924_v46 = vpop.f32.mrb[20].mxu1  ;;  %5474 = vmatprep.subr.bf16.mxu0 %v5585_v2  ;;  %5480 = vmatprep.subr.bf16.mxu1 %v5585_v2  ;;  %v4268_v42 = vor.u32 %v4267_v39, %v4263_v38 }
 0x10f   : > { %763 = vst [vmem:[%s6234_s24] sm:$0xf] %v762_v44  ;;  %v866_v49 = vadd.f32 %v865_v45, %v819_v25  ;;  %v5142_v50 = vpop.f32.mrb[21].mxu0  ;;  %v5148_v51 = vpop.f32.mrb[21].mxu1  ;;  %v4927_v25 = vld [vmem:[%s6322_s1 + $0x10] sm:$0x3] }
 0x110   : > { %v868_v53 = vpop.f32.mrb[22].mxu0  ;;  %v927_v54 = vpop.f32.mrb[22].mxu1  ;;  %v4273_v37 = vsel %vm260_vm0, %v4927_v25, 0 }
 0x111   : > { %v930_v57 = vadd.f32 %v924_v46, %v866_v49  ;;  %v5143_v58 = vpop.f32.mrb[23].mxu0  ;;  %v5149_v59 = vpop.f32.mrb[23].mxu1 }
 0x113   : > { %5465 = vmatmul.mubr.msk.bf16.vlgmr.msra.gmra.mrb[128].mxu0 %vm256_vm2, %v6199_v13  ;;  %5471 = vmatmul.mubr.msk.bf16.vlgmr.msra.gmra.mrb[128].mxu1 %vm256_vm2, %v3931_v52 }
 0x114   : > { %5475 = vmatpush3.bf16.msra.mxu0 %v3992_v60  ;;  %5481 = vmatpush3.bf16.msra.mxu1 %v4045_v61 }
 0x115   : > { %5476 = vmatprep.mubr.msk.bf16.mxu0 %vm5586_vm1, %v5585_v2  ;;  %5482 = vmatprep.mubr.msk.bf16.mxu1 %vm5586_vm1, %v5585_v2 }
 0x116   : > { %v980_v63 = vpop.f32.mrb[24].mxu0  ;;  %v1033_v0 = vpop.f32.mrb[24].mxu1  ;;  %5486 = vmatprep.subr.bf16.mxu0 %v5585_v2  ;;  %5492 = vmatprep.subr.bf16.mxu1 %v5585_v2 }
 0x117   : > { %v986_v4 = vadd.f32 %v980_v63, %v930_v57  ;;  %v5154_v5 = vpop.f32.mrb[25].mxu0  ;;  %v5160_v6 = vpop.f32.mrb[25].mxu1 }
 0x118   : > { %v983_v9 = vpop.f32.mrb[26].mxu0  ;;  %v1036_v10 = vpop.f32.mrb[26].mxu1 }
 0x119   : > { %v1039_v13 = vadd.f32 %v1033_v0, %v986_v4  ;;  %v5155_v14 = vpop.f32.mrb[27].mxu0  ;;  %v5161_v15 = vpop.f32.mrb[27].mxu1 }
 0x11b   : > { %5477 = vmatmul.mubr.msk.bf16.vlgmr.msra.gmra.mrb[132].mxu0 %vm256_vm2, %v4910_v55  ;;  %5483 = vmatmul.mubr.msk.bf16.vlgmr.msra.gmra.mrb[132].mxu1 %vm256_vm2, %v4914_v8 }
 0x11c   : > { %5487 = vmatpush3.bf16.msra.mxu0 %v4105_v16  ;;  %5493 = vmatpush3.bf16.msra.mxu1 %v4160_v17 }
 0x11d   : > { %5488 = vmatprep.mubr.msk.bf16.mxu0 %vm5586_vm1, %v5585_v2  ;;  %5494 = vmatprep.mubr.msk.bf16.mxu1 %vm5586_vm1, %v5585_v2 }
 0x11e   : > { %v1093_v21 = vpop.f32.mrb[28].mxu0  ;;  %v1148_v22 = vpop.f32.mrb[28].mxu1  ;;  %5498 = vmatprep.subr.bf16.mxu0 %v5585_v2  ;;  %5504 = vmatprep.subr.bf16.mxu1 %v5585_v2 }
 0x11f   : > { %v1099_v27 = vadd.f32 %v1093_v21, %v1039_v13  ;;  %v5166_v28 = vpop.f32.mrb[29].mxu0  ;;  %v5172_v29 = vpop.f32.mrb[29].mxu1 }
 0x120   : > { %v1096_v31 = vpop.f32.mrb[30].mxu0  ;;  %v1151_v32 = vpop.f32.mrb[30].mxu1 }
 0x121   : > { %v1154_v33 = vadd.f32 %v1148_v22, %v1099_v27  ;;  %v5167_v34 = vpop.f32.mrb[31].mxu0  ;;  %v5173_v35 = vpop.f32.mrb[31].mxu1 }
 0x123   : > { %5489 = vmatmul.mubr.msk.bf16.vlgmr.msra.gmra.mrb[136].mxu0 %vm256_vm2, %v4100_v26  ;;  %5495 = vmatmul.mubr.msk.bf16.vlgmr.msra.gmra.mrb[136].mxu1 %vm256_vm2, %v4920_v11 }
 0x124   : > { %5499 = vmatpush3.bf16.msra.mxu0 %v4213_v36  ;;  %5505 = vmatpush3.bf16.msra.mxu1 %v4273_v37 }
 0x125   : > { %5500 = vmatprep.mubr.msk.bf16.mxu0 %vm5586_vm1, %v5585_v2  ;;  %5506 = vmatprep.mubr.msk.bf16.mxu1 %vm5586_vm1, %v5585_v2 }
 0x126   : > { %v1201_v40 = vpop.f32.mrb[32].mxu0  ;;  %v1261_v41 = vpop.f32.mrb[32].mxu1 }
 0x127   : > { %v1207_v43 = vadd.f32 %v1201_v40, %v1154_v33  ;;  %v5178_v44 = vpop.f32.mrb[33].mxu0  ;;  %v5184_v45 = vpop.f32.mrb[33].mxu1 }
 0x128   : > { %v1204_v46 = vpop.f32.mrb[34].mxu0  ;;  %v1264_v47 = vpop.f32.mrb[34].mxu1 }
 0x129   : > { %v1267_v49 = vadd.f32 %v1261_v41, %v1207_v43  ;;  %v5179_v50 = vpop.f32.mrb[35].mxu0  ;;  %v5185_v51 = vpop.f32.mrb[35].mxu1 }
 0x12b   : > { %v1268_v52 = vadd.f32 %v6210_v23, %v1267_v49  ;;  %5501 = vmatmul.mubr.msk.bf16.vlgmr.msra.gmra.mrb[140].mxu0 %vm256_vm2, %v4924_v48  ;;  %5507 = vmatmul.mubr.msk.bf16.vlgmr.msra.gmra.mrb[140].mxu1 %vm256_vm2, %v4268_v42 }
 0x12d   : > { %v1269_v2 = vmax.f32 %v1268_v52, 0.0 }
 0x12e   : > { %v1327_v53 = vpop.f32.mrb[36].mxu0  ;;  %v1373_v54 = vpop.f32.mrb[36].mxu1 }
 0x12f   : > { %v1270_v55 = vpack.c.bf16 %v1269_v2, %v1269_v2  ;;  %v1374_v56 = vadd.f32 %v1373_v54, %v1327_v53  ;;  %v5190_v57 = vpop.f32.mrb[37].mxu0  ;;  %v5196_v58 = vpop.f32.mrb[37].mxu1 }
 0x130   : > { %v1330_v59 = vpop.f32.mrb[38].mxu0  ;;  %v1376_v60 = vpop.f32.mrb[38].mxu1 }
 0x131   : > { %4750 = vst [vmem:[%s6234_s24 + $0x4] sm:$0xf] %v1270_v55  ;;  %v5191_v61 = vpop.f32.mrb[39].mxu0  ;;  %v5197_v62 = vpop.f32.mrb[39].mxu1 }
 0x136   : > { %v1432_v63 = vpop.f32.mrb[40].mxu0  ;;  %v1488_v0 = vpop.f32.mrb[40].mxu1 }
 0x137   : > { %v1438_v1 = vadd.f32 %v1432_v63, %v1374_v56  ;;  %v5202_v3 = vpop.f32.mrb[41].mxu0  ;;  %v5208_v4 = vpop.f32.mrb[41].mxu1 }
 0x138   : > { %v1435_v5 = vpop.f32.mrb[42].mxu0  ;;  %v1491_v6 = vpop.f32.mrb[42].mxu1 }
 0x139   : > { %v1494_v7 = vadd.f32 %v1488_v0, %v1438_v1  ;;  %v5203_v8 = vpop.f32.mrb[43].mxu0  ;;  %v5209_v9 = vpop.f32.mrb[43].mxu1 }
 0x13e   : > { %v1541_v10 = vpop.f32.mrb[44].mxu0  ;;  %v1601_v11 = vpop.f32.mrb[44].mxu1 }
 0x13f   : > { %v1547_v12 = vadd.f32 %v1541_v10, %v1494_v7  ;;  %v5214_v13 = vpop.f32.mrb[45].mxu0  ;;  %v5220_v14 = vpop.f32.mrb[45].mxu1 }
 0x140   : > { %v1544_v15 = vpop.f32.mrb[46].mxu0  ;;  %v1604_v16 = vpop.f32.mrb[46].mxu1 }
 0x141   : > { %v1607_v17 = vadd.f32 %v1601_v11, %v1547_v12  ;;  %v5215_v18 = vpop.f32.mrb[47].mxu0  ;;  %v5221_v19 = vpop.f32.mrb[47].mxu1 }
 0x146   : > { %v1656_v20 = vpop.f32.mrb[48].mxu0  ;;  %v1709_v21 = vpop.f32.mrb[48].mxu1 }
 0x147   : > { %v1662_v22 = vadd.f32 %v1656_v20, %v1607_v17  ;;  %v5226_v24 = vpop.f32.mrb[49].mxu0  ;;  %v5232_v25 = vpop.f32.mrb[49].mxu1 }
 0x148   : > { %v1659_v26 = vpop.f32.mrb[50].mxu0  ;;  %v1712_v27 = vpop.f32.mrb[50].mxu1 }
 0x149   : > { %v1715_v28 = vadd.f32 %v1709_v21, %v1662_v22  ;;  %v5227_v29 = vpop.f32.mrb[51].mxu0  ;;  %v5233_v30 = vpop.f32.mrb[51].mxu1 }
 0x14e   : > { %v1769_v31 = vpop.f32.mrb[52].mxu0  ;;  %v1835_v32 = vpop.f32.mrb[52].mxu1 }
 0x14f   : > { %v1775_v33 = vadd.f32 %v1769_v31, %v1715_v28  ;;  %v5238_v34 = vpop.f32.mrb[53].mxu0  ;;  %v5244_v35 = vpop.f32.mrb[53].mxu1 }
 0x150   : > { %v1772_v36 = vpop.f32.mrb[54].mxu0  ;;  %v1838_v37 = vpop.f32.mrb[54].mxu1 }
 0x151   : > { %v1776_v38 = vadd.f32 %v6210_v23, %v1775_v33  ;;  %v5239_v39 = vpop.f32.mrb[55].mxu0  ;;  %v5245_v40 = vpop.f32.mrb[55].mxu1 }
 0x153   : > { %v1777_v41 = vmax.f32 %v1776_v38, 0.0 }
 0x155   : > { %v1778_v42 = vpack.c.bf16 %v1777_v41, %v1777_v41 }
 0x156   : > { %v1881_v43 = vpop.f32.mrb[56].mxu0  ;;  %v1940_v44 = vpop.f32.mrb[56].mxu1 }
 0x157   : > { %4780 = vst [vmem:[%s6234_s24 + $0x8] sm:$0xf] %v1778_v42  ;;  %v1882_v45 = vadd.f32 %v1881_v43, %v1835_v32  ;;  %v5250_v46 = vpop.f32.mrb[57].mxu0  ;;  %v5256_v47 = vpop.f32.mrb[57].mxu1 }
 0x158   : > { %v1884_v48 = vpop.f32.mrb[58].mxu0  ;;  %v1943_v49 = vpop.f32.mrb[58].mxu1 }
 0x159   : > { %v1946_v50 = vadd.f32 %v1940_v44, %v1882_v45  ;;  %v5251_v51 = vpop.f32.mrb[59].mxu0  ;;  %v5257_v52 = vpop.f32.mrb[59].mxu1 }
 0x15e   : > { %v1996_v2 = vpop.f32.mrb[60].mxu0  ;;  %v2049_v53 = vpop.f32.mrb[60].mxu1 }
 0x15f   : > { %v2002_v54 = vadd.f32 %v1996_v2, %v1946_v50  ;;  %v5262_v55 = vpop.f32.mrb[61].mxu0  ;;  %v5268_v56 = vpop.f32.mrb[61].mxu1 }
 0x160   : > { %v1999_v57 = vpop.f32.mrb[62].mxu0  ;;  %v2052_v58 = vpop.f32.mrb[62].mxu1 }
 0x161   : > { %v2055_v59 = vadd.f32 %v2049_v53, %v2002_v54  ;;  %v5263_v60 = vpop.f32.mrb[63].mxu0  ;;  %v5269_v61 = vpop.f32.mrb[63].mxu1 }
 0x166   : > { %v2109_v62 = vpop.f32.mrb[64].mxu0  ;;  %v2164_v63 = vpop.f32.mrb[64].mxu1 }
 0x167   : > { %v2115_v0 = vadd.f32 %v2109_v62, %v2055_v59  ;;  %v5274_v1 = vpop.f32.mrb[65].mxu0  ;;  %v5280_v3 = vpop.f32.mrb[65].mxu1 }
 0x168   : > { %v2112_v4 = vpop.f32.mrb[66].mxu0  ;;  %v2167_v5 = vpop.f32.mrb[66].mxu1 }
 0x169   : > { %v2170_v6 = vadd.f32 %v2164_v63, %v2115_v0  ;;  %v5275_v7 = vpop.f32.mrb[67].mxu0  ;;  %v5281_v8 = vpop.f32.mrb[67].mxu1 }
 0x16e   : > { %v2217_v9 = vpop.f32.mrb[68].mxu0  ;;  %v2277_v10 = vpop.f32.mrb[68].mxu1 }
 0x16f   : > { %v2223_v11 = vadd.f32 %v2217_v9, %v2170_v6  ;;  %v5286_v12 = vpop.f32.mrb[69].mxu0  ;;  %v5292_v13 = vpop.f32.mrb[69].mxu1 }
 0x170   : > { %v2220_v14 = vpop.f32.mrb[70].mxu0  ;;  %v2280_v15 = vpop.f32.mrb[70].mxu1 }
 0x171   : > { %v2283_v16 = vadd.f32 %v2277_v10, %v2223_v11  ;;  %v5287_v17 = vpop.f32.mrb[71].mxu0  ;;  %v5293_v18 = vpop.f32.mrb[71].mxu1 }
 0x173   : > { %v2284_v19 = vadd.f32 %v6210_v23, %v2283_v16 }
 0x175   : > { %v2285_v20 = vmax.f32 %v2284_v19, 0.0 }
 0x176   : > { %v2343_v21 = vpop.f32.mrb[72].mxu0  ;;  %v2389_v22 = vpop.f32.mrb[72].mxu1 }
 0x177   : > { %v2286_v24 = vpack.c.bf16 %v2285_v20, %v2285_v20  ;;  %v2390_v25 = vadd.f32 %v2389_v22, %v2343_v21  ;;  %v5298_v26 = vpop.f32.mrb[73].mxu0  ;;  %v5304_v27 = vpop.f32.mrb[73].mxu1 }
 0x178   : > { %v2346_v28 = vpop.f32.mrb[74].mxu0  ;;  %v2392_v29 = vpop.f32.mrb[74].mxu1 }
 0x179   : > { %4810 = vst [vmem:[%s6234_s24 + $0xc] sm:$0xf] %v2286_v24  ;;  %v5299_v30 = vpop.f32.mrb[75].mxu0  ;;  %v5305_v31 = vpop.f32.mrb[75].mxu1 }
 0x17e   : > { %v2448_v32 = vpop.f32.mrb[76].mxu0  ;;  %v2504_v33 = vpop.f32.mrb[76].mxu1 }
 0x17f   : > { %v2454_v34 = vadd.f32 %v2448_v32, %v2390_v25  ;;  %v5310_v35 = vpop.f32.mrb[77].mxu0  ;;  %v5316_v36 = vpop.f32.mrb[77].mxu1 }
 0x180   : > { %v2451_v37 = vpop.f32.mrb[78].mxu0  ;;  %v2507_v38 = vpop.f32.mrb[78].mxu1 }
 0x181   : > { %v2510_v39 = vadd.f32 %v2504_v33, %v2454_v34  ;;  %v5311_v40 = vpop.f32.mrb[79].mxu0  ;;  %v5317_v41 = vpop.f32.mrb[79].mxu1 }
 0x186   : > { %v2557_v42 = vpop.f32.mrb[80].mxu0  ;;  %v2617_v43 = vpop.f32.mrb[80].mxu1 }
 0x187   : > { %v2563_v44 = vadd.f32 %v2557_v42, %v2510_v39  ;;  %v5322_v45 = vpop.f32.mrb[81].mxu0  ;;  %v5328_v46 = vpop.f32.mrb[81].mxu1 }
 0x188   : > { %v2560_v47 = vpop.f32.mrb[82].mxu0  ;;  %v2620_v48 = vpop.f32.mrb[82].mxu1 }
 0x189   : > { %v2623_v49 = vadd.f32 %v2617_v43, %v2563_v44  ;;  %v5323_v50 = vpop.f32.mrb[83].mxu0  ;;  %v5329_v51 = vpop.f32.mrb[83].mxu1 }
 0x18e   : > { %v2672_v52 = vpop.f32.mrb[84].mxu0  ;;  %v2725_v2 = vpop.f32.mrb[84].mxu1 }
 0x18f   : > { %v2678_v53 = vadd.f32 %v2672_v52, %v2623_v49  ;;  %v5334_v54 = vpop.f32.mrb[85].mxu0  ;;  %v5340_v55 = vpop.f32.mrb[85].mxu1 }
 0x190   : > { %v2675_v56 = vpop.f32.mrb[86].mxu0  ;;  %v2728_v57 = vpop.f32.mrb[86].mxu1 }
 0x191   : > { %v2731_v58 = vadd.f32 %v2725_v2, %v2678_v53  ;;  %v5335_v59 = vpop.f32.mrb[87].mxu0  ;;  %v5341_v60 = vpop.f32.mrb[87].mxu1 }
 0x196   : > { %v2785_v61 = vpop.f32.mrb[88].mxu0  ;;  %v2851_v62 = vpop.f32.mrb[88].mxu1 }
 0x197   : > { %v2791_v63 = vadd.f32 %v2785_v61, %v2731_v58  ;;  %v5346_v0 = vpop.f32.mrb[89].mxu0  ;;  %v5352_v1 = vpop.f32.mrb[89].mxu1 }
 0x198   : > { %v2788_v3 = vpop.f32.mrb[90].mxu0  ;;  %v2854_v4 = vpop.f32.mrb[90].mxu1 }
 0x199   : > { %v2792_v5 = vadd.f32 %v6210_v23, %v2791_v63  ;;  %v5347_v6 = vpop.f32.mrb[91].mxu0  ;;  %v5353_v7 = vpop.f32.mrb[91].mxu1 }
 0x19b   : > { %v2793_v8 = vmax.f32 %v2792_v5, 0.0 }
 0x19d   : > { %v2794_v9 = vpack.c.bf16 %v2793_v8, %v2793_v8 }
 0x19e   : > { %v2897_v10 = vpop.f32.mrb[92].mxu0  ;;  %v2956_v11 = vpop.f32.mrb[92].mxu1 }
 0x19f   : > { %4840 = vst [vmem:[%s6234_s24 + $0x10] sm:$0xf] %v2794_v9  ;;  %v2898_v12 = vadd.f32 %v2897_v10, %v2851_v62  ;;  %v5358_v13 = vpop.f32.mrb[93].mxu0  ;;  %v5364_v14 = vpop.f32.mrb[93].mxu1 }
 0x1a0   : > { %v2900_v15 = vpop.f32.mrb[94].mxu0  ;;  %v2959_v16 = vpop.f32.mrb[94].mxu1 }
 0x1a1   : > { %v2962_v17 = vadd.f32 %v2956_v11, %v2898_v12  ;;  %v5359_v18 = vpop.f32.mrb[95].mxu0  ;;  %v5365_v19 = vpop.f32.mrb[95].mxu1 }
 0x1a6   : > { %v3012_v20 = vpop.f32.mrb[96].mxu0  ;;  %v3065_v21 = vpop.f32.mrb[96].mxu1 }
 0x1a7   : > { %v3018_v22 = vadd.f32 %v3012_v20, %v2962_v17  ;;  %v5370_v24 = vpop.f32.mrb[97].mxu0  ;;  %v5376_v25 = vpop.f32.mrb[97].mxu1 }
 0x1a8   : > { %v3015_v26 = vpop.f32.mrb[98].mxu0  ;;  %v3068_v27 = vpop.f32.mrb[98].mxu1 }
 0x1a9   : > { %v3071_v28 = vadd.f32 %v3065_v21, %v3018_v22  ;;  %v5371_v29 = vpop.f32.mrb[99].mxu0  ;;  %v5377_v30 = vpop.f32.mrb[99].mxu1 }
 0x1ae   : > { %v3125_v31 = vpop.f32.mrb[100].mxu0  ;;  %v3180_v32 = vpop.f32.mrb[100].mxu1 }
 0x1af   : > { %v3131_v33 = vadd.f32 %v3125_v31, %v3071_v28  ;;  %v5382_v34 = vpop.f32.mrb[101].mxu0  ;;  %v5388_v35 = vpop.f32.mrb[101].mxu1 }
 0x1b0   : > { %v3128_v36 = vpop.f32.mrb[102].mxu0  ;;  %v3183_v37 = vpop.f32.mrb[102].mxu1 }
 0x1b1   : > { %v3186_v38 = vadd.f32 %v3180_v32, %v3131_v33  ;;  %v5383_v39 = vpop.f32.mrb[103].mxu0  ;;  %v5389_v40 = vpop.f32.mrb[103].mxu1 }
 0x1b6   : > { %v3233_v41 = vpop.f32.mrb[104].mxu0  ;;  %v3293_v42 = vpop.f32.mrb[104].mxu1 }
 0x1b7   : > { %v3239_v43 = vadd.f32 %v3233_v41, %v3186_v38  ;;  %v5394_v44 = vpop.f32.mrb[105].mxu0  ;;  %v5400_v45 = vpop.f32.mrb[105].mxu1 }
 0x1b8   : > { %v3236_v46 = vpop.f32.mrb[106].mxu0  ;;  %v3296_v47 = vpop.f32.mrb[106].mxu1 }
 0x1b9   : > { %v3299_v48 = vadd.f32 %v3293_v42, %v3239_v43  ;;  %v5395_v49 = vpop.f32.mrb[107].mxu0  ;;  %v5401_v50 = vpop.f32.mrb[107].mxu1 }
 0x1bb   : > { %v3300_v51 = vadd.f32 %v6210_v23, %v3299_v48 }
 0x1bd   : > { %v3301_v52 = vmax.f32 %v3300_v51, 0.0 }
 0x1be   : > { %v3359_v2 = vpop.f32.mrb[108].mxu0  ;;  %v3405_v53 = vpop.f32.mrb[108].mxu1 }
 0x1bf   : > { %v3302_v54 = vpack.c.bf16 %v3301_v52, %v3301_v52  ;;  %v3406_v55 = vadd.f32 %v3405_v53, %v3359_v2  ;;  %v5406_v56 = vpop.f32.mrb[109].mxu0  ;;  %v5412_v57 = vpop.f32.mrb[109].mxu1 }
 0x1c0   : > { %v3362_v58 = vpop.f32.mrb[110].mxu0  ;;  %v3408_v59 = vpop.f32.mrb[110].mxu1 }
 0x1c1   : > { %4870 = vst [vmem:[%s6234_s24 + $0x14] sm:$0xf] %v3302_v54  ;;  %v5407_v60 = vpop.f32.mrb[111].mxu0  ;;  %v5413_v61 = vpop.f32.mrb[111].mxu1 }
 0x1c6   : > { %v3464_v62 = vpop.f32.mrb[112].mxu0  ;;  %v3520_v63 = vpop.f32.mrb[112].mxu1 }
 0x1c7   : > { %v3470_v0 = vadd.f32 %v3464_v62, %v3406_v55  ;;  %v5418_v1 = vpop.f32.mrb[113].mxu0  ;;  %v5424_v3 = vpop.f32.mrb[113].mxu1 }
 0x1c8   : > { %v3467_v4 = vpop.f32.mrb[114].mxu0  ;;  %v3523_v5 = vpop.f32.mrb[114].mxu1 }
 0x1c9   : > { %v3526_v6 = vadd.f32 %v3520_v63, %v3470_v0  ;;  %v5419_v7 = vpop.f32.mrb[115].mxu0  ;;  %v5425_v8 = vpop.f32.mrb[115].mxu1 }
 0x1ce   : > { %v3573_v9 = vpop.f32.mrb[116].mxu0  ;;  %v3633_v10 = vpop.f32.mrb[116].mxu1 }
 0x1cf   : > { %v3579_v11 = vadd.f32 %v3573_v9, %v3526_v6  ;;  %v5430_v12 = vpop.f32.mrb[117].mxu0  ;;  %v5436_v13 = vpop.f32.mrb[117].mxu1 }
 0x1d0   : > { %v3576_v14 = vpop.f32.mrb[118].mxu0  ;;  %v3636_v15 = vpop.f32.mrb[118].mxu1 }
 0x1d1   : > { %v3639_v16 = vadd.f32 %v3633_v10, %v3579_v11  ;;  %v5431_v17 = vpop.f32.mrb[119].mxu0  ;;  %v5437_v18 = vpop.f32.mrb[119].mxu1 }
 0x1d6   : > { %v3688_v19 = vpop.f32.mrb[120].mxu0  ;;  %v3741_v20 = vpop.f32.mrb[120].mxu1 }
 0x1d7   : > { %v3694_v21 = vadd.f32 %v3688_v19, %v3639_v16  ;;  %v5442_v22 = vpop.f32.mrb[121].mxu0  ;;  %v5448_v24 = vpop.f32.mrb[121].mxu1 }
 0x1d8   : > { %v3691_v25 = vpop.f32.mrb[122].mxu0  ;;  %v3744_v26 = vpop.f32.mrb[122].mxu1 }
 0x1d9   : > { %v3747_v27 = vadd.f32 %v3741_v20, %v3694_v21  ;;  %v5443_v28 = vpop.f32.mrb[123].mxu0  ;;  %v5449_v29 = vpop.f32.mrb[123].mxu1 }
 0x1de   : > { %v3801_v30 = vpop.f32.mrb[124].mxu0  ;;  %v3867_v31 = vpop.f32.mrb[124].mxu1 }
 0x1df   : > { %v3807_v32 = vadd.f32 %v3801_v30, %v3747_v27  ;;  %v5454_v33 = vpop.f32.mrb[125].mxu0  ;;  %v5460_v34 = vpop.f32.mrb[125].mxu1 }
 0x1e0   : > { %v3804_v35 = vpop.f32.mrb[126].mxu0  ;;  %v3870_v36 = vpop.f32.mrb[126].mxu1 }
 0x1e1   : > { %v3808_v37 = vadd.f32 %v6210_v23, %v3807_v32  ;;  %v5455_v38 = vpop.f32.mrb[127].mxu0  ;;  %v5461_v39 = vpop.f32.mrb[127].mxu1 }
 0x1e3   : > { %v3809_v40 = vmax.f32 %v3808_v37, 0.0 }
 0x1e5   : > { %v3810_v41 = vpack.c.bf16 %v3809_v40, %v3809_v40 }
 0x1e6   : > { %v3913_v42 = vpop.f32.mrb[128].mxu0  ;;  %v3972_v43 = vpop.f32.mrb[128].mxu1 }
 0x1e7   : > { %4900 = vst [vmem:[%s6234_s24 + $0x18] sm:$0xf] %v3810_v41  ;;  %v3914_v44 = vadd.f32 %v3913_v42, %v3867_v31  ;;  %v5466_v45 = vpop.f32.mrb[129].mxu0  ;;  %v5472_v46 = vpop.f32.mrb[129].mxu1 }
 0x1e8   : > { %v3916_v47 = vpop.f32.mrb[130].mxu0  ;;  %v3975_v48 = vpop.f32.mrb[130].mxu1 }
 0x1e9   : > { %v3978_v49 = vadd.f32 %v3972_v43, %v3914_v44  ;;  %v5467_v50 = vpop.f32.mrb[131].mxu0  ;;  %v5473_v51 = vpop.f32.mrb[131].mxu1 }
 0x1ee   : > { %v4028_v52 = vpop.f32.mrb[132].mxu0  ;;  %v4081_v2 = vpop.f32.mrb[132].mxu1 }
 0x1ef   : > { %v4034_v53 = vadd.f32 %v4028_v52, %v3978_v49  ;;  %v5478_v54 = vpop.f32.mrb[133].mxu0  ;;  %v5484_v55 = vpop.f32.mrb[133].mxu1 }
 0x1f0   : > { %v4031_v56 = vpop.f32.mrb[134].mxu0  ;;  %v4084_v57 = vpop.f32.mrb[134].mxu1 }
 0x1f1   : > { %v4087_v58 = vadd.f32 %v4081_v2, %v4034_v53  ;;  %v5479_v59 = vpop.f32.mrb[135].mxu0  ;;  %v5485_v60 = vpop.f32.mrb[135].mxu1 }
 0x1f6   : > { %v4141_v61 = vpop.f32.mrb[136].mxu0  ;;  %v4196_v62 = vpop.f32.mrb[136].mxu1 }
 0x1f7   : > { %v4147_v63 = vadd.f32 %v4141_v61, %v4087_v58  ;;  %v5490_v0 = vpop.f32.mrb[137].mxu0  ;;  %v5496_v1 = vpop.f32.mrb[137].mxu1 }
 0x1f8   : > { %v4144_v3 = vpop.f32.mrb[138].mxu0  ;;  %v4199_v4 = vpop.f32.mrb[138].mxu1 }
 0x1f9   : > { %v4202_v5 = vadd.f32 %v4196_v62, %v4147_v63  ;;  %v5491_v6 = vpop.f32.mrb[139].mxu0  ;;  %v5497_v7 = vpop.f32.mrb[139].mxu1 }
 0x1fe   : > { %v4249_v8 = vpop.f32.mrb[140].mxu0  ;;  %v4309_v9 = vpop.f32.mrb[140].mxu1 }
 0x1ff   : > { %v4255_v10 = vadd.f32 %v4249_v8, %v4202_v5  ;;  %v5502_v11 = vpop.f32.mrb[141].mxu0  ;;  %v5508_v12 = vpop.f32.mrb[141].mxu1 }
 0x200   : > { %v4252_v13 = vpop.f32.mrb[142].mxu0  ;;  %v4312_v14 = vpop.f32.mrb[142].mxu1 }
 0x201   : > { %v4315_v15 = vadd.f32 %v4309_v9, %v4255_v10  ;;  %v5503_v16 = vpop.f32.mrb[143].mxu0  ;;  %v5509_v17 = vpop.f32.mrb[143].mxu1 }
 0x203   : > { %v4316_v18 = vadd.f32 %v6210_v23, %v4315_v15 }
 0x205   : > { %v4317_v19 = vmax.f32 %v4316_v18, 0.0 }
 0x207   : > { %v4318_v20 = vpack.c.bf16 %v4317_v19, %v4317_v19 }
 0x209   : > { %4930 = vst [vmem:[%s6234_s24 + $0x1c] sm:$0xf] %v4318_v20 }
 0x20a PF: > { %s13_s14 = sadd.s32 1, %s5583_s14   ;;  %s6325_s12 = smov %s5579_s13 }
 0x20b   : > { %p10_p5 = scmp.ge.s32.totalorder %s13_s14, 4   ;;  %s6326_s13 = smov %s6328_s15 }
 0x20d   :  { %12 = sbr.rel (!%p10_p5) target bundleno = 2 (0x2), region = 131 }

// kernel: _lambda_.9
= control target key start
LH: loop header
LB: loop body
LE: loop exit
PB: predicated region body
PF: predicated region fallthrough
CT: control target
= control target key end

     0   :  { %s3636_s12 = smov 0   ;;  %s3638_s13 = smov 0   ;;  %s4321_s0 = inlined_call_operand.vmem [shape: bf16[2,12,3,128], index: 0, kind: input, shape index: {}]   ;;  %s4322_s1 = inlined_call_operand.vmem [shape: bf16[9,128,128], index: 1, kind: input, shape index: {}]   ;;  %s4323_s2 = inlined_call_operand.vmem [shape: f32[1,128], index: 2, kind: input, shape index: {}]   ;;  %s4324_s3 = inlined_call_operand.vmem [shape: bf16[2,2,2,128], index: 3, kind: output, shape index: {}]  }
   0x1   :  { %s3640_s14 = smov 0  }
   0x2 LB: > { %s32_s15 = sadd.s32 1, %s3607_s13  ;;  %p2477_p0 = scmp.ge.s32.totalorder %s3611_s14, 1  ;;  %s3611_s14 = sphi %s3640_s14, %s13_s14   ;;  %s3607_s13 = sphi %s3638_s13, %s4326_s13   ;;  %s3603_s12 = sphi %s3636_s12, %s4325_s12  }
   0x3   : > { %p34_p1 = scmp.ge.s32.totalorder %s32_s15, 2  ;;  %p177_p2 = scmp.lt.s32.totalorder %s3611_s14, 3 }
   0x5   : > { %s4328_s15 = smov (%p34_p1, %s32_s15), 0  ;;  %p178_p3 = pnand %p2477_p0, %p177_p2 }
   0x6   : > { %v3445_v0 = vld [vmem:[%s4322_s1 + $0x40] sm:$0xff] (!%p178_p3)   ;;  %v3613_v1 = vmov (!%p178_p3), 0.0   ;;  %v3447_v3 = vld [vmem:[%s4322_s1 + $0x48] sm:$0xff] (!%p178_p3)   ;;  %vm3614_vm0 = vmmov (!%p178_p3), 0   ;;  %v3449_v5 = vld [vmem:[%s4322_s1 + $0x50] sm:$0xff] (!%p178_p3)   ;;  %p214_p4 = scmp.lt.s32.totalorder (!%p178_p3), %s3603_s12, 1  ;;  %v478_v25 = vlaneseq (!%p178_p3) }
   0x7   : > { %181 = sbr.rel (%p178_p3) target bundleno = 518 (0x206), region = 32  ;;  %3057 = vmatprep.subr.bf16.mxu0 (!%p178_p3), %v3613_v1  ;;  %3077 = vmatprep.subr.bf16.mxu1 (!%p178_p3), %v3613_v1  ;;  %v3446_v2 = vld [vmem:[%s4322_s1] sm:$0xff] (!%p178_p3)   ;;  %v3448_v4 = vld [vmem:[%s4322_s1 + $0x8] sm:$0xff] (!%p178_p3)   ;;  %v3450_v6 = vld [vmem:[%s4322_s1 + $0x10] sm:$0xff] (!%p178_p3)   ;;  %v3615_v23 = vmov (!%p178_p3), 1983009808  }
   0x8   : > { %3058 = vmatpush3.bf16.msra.mxu0 (!%p178_p3), %v3445_v0  ;;  %3073 = vmatprep.mubr.msk.bf16.mxu0 (!%p178_p3), %vm3614_vm0, %v3613_v1  ;;  %v3451_v7 = vld [vmem:[%s4322_s1 + $0x58] sm:$0xff] (!%p178_p3)   ;;  %v3453_v9 = vld [vmem:[%s4322_s1 + $0x60] sm:$0xff] (!%p178_p3)   ;;  %v3455_v11 = vld [vmem:[%s4322_s1 + $0x68] sm:$0xff] (!%p178_p3)   ;;  %v476_v24 = vunpack.c.l.s4 (!%p178_p3), %v3615_v23  ;;  %v479_v29 = vshrl.u32 (!%p178_p3), %v478_v25, 7 }
   0x9   : > { %3078 = vmatpush3.bf16.msra.mxu1 (!%p178_p3), %v3446_v2  ;;  %3059 = vmatprep.subr.bf16.mxu0 (!%p178_p3), %v3613_v1  ;;  %v3452_v8 = vld [vmem:[%s4322_s1 + $0x18] sm:$0xff] (!%p178_p3)   ;;  %v3454_v10 = vld [vmem:[%s4322_s1 + $0x20] sm:$0xff] (!%p178_p3)   ;;  %v3456_v12 = vld [vmem:[%s4322_s1 + $0x28] sm:$0xff] (!%p178_p3)  }
   0xa   : > { %3079 = vmatprep.subr.bf16.mxu1 (!%p178_p3), %v3613_v1  ;;  %3093 = vmatprep.mubr.msk.bf16.mxu1 (!%p178_p3), %vm3614_vm0, %v3613_v1  ;;  %v3457_v13 = vld [vmem:[%s4322_s1 + $0x70] sm:$0xff] (!%p178_p3)   ;;  %v3459_v15 = vld [vmem:[%s4322_s1 + $0x78] sm:$0xff] (!%p178_p3)   ;;  %v3461_v19 = vld [vmem:[%s4322_s1 + $0x80] sm:$0xff] (!%p178_p3)   ;;  %v477_v28 = vunpack.c.0.s8 (!%p178_p3), %v476_v24 }
   0xb   : > { %v3458_v14 = vld [vmem:[%s4322_s1 + $0x30] sm:$0xff] (!%p178_p3)   ;;  %v3460_v16 = vld [vmem:[%s4322_s1 + $0x38] sm:$0xff] (!%p178_p3)   ;;  %v3462_v20 = vld [vmem:[%s4322_s1 + $0xc0] sm:$0xff] (!%p178_p3)  }
   0xc   : > { %3060 = vmatpush3.bf16.msra.mxu0 (!%p178_p3), %v3447_v3  ;;  %v3463_v21 = vld [vmem:[%s4322_s1 + $0x88] sm:$0xff] (!%p178_p3)   ;;  %v3465_v26 = vld [vmem:[%s4322_s1 + $0x90] sm:$0xff] (!%p178_p3)   ;;  %v3467_v30 = vld [vmem:[%s4322_s1 + $0x98] sm:$0xff] (!%p178_p3)   ;;  %v3772_v32 = vsub.s32 (!%p178_p3), %v477_v28, %v479_v29 }
   0xd   : > { %3080 = vmatpush3.bf16.msra.mxu1 (!%p178_p3), %v3448_v4  ;;  %3061 = vmatprep.subr.bf16.mxu0 (!%p178_p3), %v3613_v1  ;;  %v3464_v22 = vld [vmem:[%s4322_s1 + $0xc8] sm:$0xff] (!%p178_p3)   ;;  %v3466_v27 = vld [vmem:[%s4322_s1 + $0xd0] sm:$0xff] (!%p178_p3)   ;;  %v3468_v31 = vld [vmem:[%s4322_s1 + $0xd8] sm:$0xff] (!%p178_p3)  }
   0xe   : > { %3081 = vmatprep.subr.bf16.mxu1 %v3613_v1  ;;  %s4330_s12 = smov (!%p214_p4, %s3603_s12), 1  ;;  %v3469_v33 = vld [vmem:[%s4322_s1 + $0xa0] sm:$0xff]   ;;  %v3471_v36 = vld [vmem:[%s4322_s1 + $0xa8] sm:$0xff]   ;;  %v3473_v39 = vld [vmem:[%s4322_s1 + $0xb0] sm:$0xff]  }
   0xf   : > { %s3417_s17 = smul.u32 24, %s4330_s12  ;;  %v3470_v34 = vld [vmem:[%s4322_s1 + $0xe0] sm:$0xff]   ;;  %v3472_v37 = vld [vmem:[%s4322_s1 + $0xe8] sm:$0xff]   ;;  %v3474_v40 = vld [vmem:[%s4322_s1 + $0xf0] sm:$0xff]   ;;  %s2479_s21 = sshll.u32 %s4330_s12, 1 }
  0x10   : > { %3062 = vmatpush3.bf16.msra.mxu0 %v3449_v5  ;;  %v3475_v43 = vld [vmem:[%s4322_s1 + $0xb8] sm:$0xff]   ;;  %v3477_v47 = vld [vmem:[%s4322_s1 + $0x100] sm:$0xff]   ;;  %v3479_v49 = vld [vmem:[%s4322_s1 + $0x108] sm:$0xff]   ;;  %s4308_s25 = scalar_lea.vmem %s4324_s3, %s2479_s21 }
  0x11   : > { %3082 = vmatpush3.bf16.msra.mxu1 %v3450_v6  ;;  %3063 = vmatprep.subr.bf16.mxu0 %v3613_v1  ;;  %s3724_s24 = scalar_lea.vmem %s4321_s0, %s3417_s17  ;;  %v3476_v44 = vld [vmem:[%s4322_s1 + $0xf8] sm:$0xff]   ;;  %v3478_v48 = vld [vmem:[%s4322_s1 + $0x140] sm:$0xff]   ;;  %v3480_v50 = vld [vmem:[%s4322_s1 + $0x148] sm:$0xff]  }
  0x12   : > { %3083 = vmatprep.subr.bf16.mxu1 %v3613_v1  ;;  %v2480_v17 = vld [vmem:[%s3724_s24 + $0x2] sm:$0x3]  ;;  %v243_v18 = vld [vmem:[%s3724_s24] sm:$0x3]  ;;  %v2537_v46 = vld [vmem:[%s3724_s24 + $0x4] sm:$0x3] }
  0x13   : > { %v481_v35 = vrot.slane %v243_v18, %v3772_v32  ;;  %v3481_v51 = vld [vmem:[%s4322_s1 + $0x110] sm:$0xff]   ;;  %v3483_v53 = vld [vmem:[%s4322_s1 + $0x118] sm:$0xff]   ;;  %v3485_v55 = vld [vmem:[%s4322_s1 + $0x120] sm:$0xff]   ;;  %v825_v57 = vrot.slane %v2537_v46, %v3772_v32 }
  0x14   : > { %3064 = vmatpush3.bf16.msra.mxu0 %v3451_v7  ;;  %v3482_v52 = vld [vmem:[%s4322_s1 + $0x150] sm:$0xff]   ;;  %v3484_v54 = vld [vmem:[%s4322_s1 + $0x158] sm:$0xff]   ;;  %v3486_v56 = vld [vmem:[%s4322_s1 + $0x160] sm:$0xff]  }
  0x15   : > { %3084 = vmatpush3.bf16.msra.mxu1 %v3452_v8  ;;  %3065 = vmatprep.subr.bf16.mxu0 %v3613_v1  ;;  %v485_v38 = vshll.u32 %v481_v35, 16  ;;  %v483_v41 = vshrl.u32 %v481_v35, 16  ;;  %v3487_v58 = vld [vmem:[%s4322_s1 + $0x128] sm:$0xff]   ;;  %v829_v60 = vshll.u32 %v825_v57, 16  ;;  %v3489_v61 = vld [vmem:[%s4322_s1 + $0x130] sm:$0xff]   ;;  %v827_v63 = vshrl.u32 %v825_v57, 16 }
  0x16   : > { %3085 = vmatprep.subr.bf16.mxu1 %v3613_v1  ;;  %v3488_v59 = vld [vmem:[%s4322_s1 + $0x168] sm:$0xff]   ;;  %v3490_v62 = vld [vmem:[%s4322_s1 + $0x170] sm:$0xff]   ;;  %v3491_v2 = vld [vmem:[%s4322_s1 + $0x138] sm:$0xff]  }
  0x17   : > { %v487_v42 = vrot.slane %v485_v38, 1  ;;  %v831_v0 = vrot.slane %v829_v60, 1  ;;  %v3492_v3 = vld [vmem:[%s4322_s1 + $0x178] sm:$0xff]   ;;  %v2562_v4 = vld [vmem:[%s3724_s24 + $0x6] sm:$0x3]  ;;  %v3495_v8 = vld [vmem:[%s4322_s1 + $0x188] sm:$0xff]  }
  0x18   : > { %3066 = vmatpush3.bf16.msra.mxu0 %v3453_v9  ;;  %v3493_v6 = vld [vmem:[%s4322_s1 + $0x180] sm:$0xff]   ;;  %v3496_v9 = vld [vmem:[%s4322_s1 + $0x1c8] sm:$0xff]   ;;  %v3513_v28 = vld [vmem:[%s4322_s1 + $0x210] sm:$0xff]  }
  0x19   : > { %3086 = vmatpush3.bf16.msra.mxu1 %v3454_v10  ;;  %3067 = vmatprep.subr.bf16.mxu0 %v3613_v1  ;;  %v488_v45 = vor.u32 %v487_v42, %v483_v41  ;;  %v832_v5 = vor.u32 %v831_v0, %v827_v63  ;;  %v3494_v7 = vld [vmem:[%s4322_s1 + $0x1c0] sm:$0xff]   ;;  %v3497_v10 = vld [vmem:[%s4322_s1 + $0x190] sm:$0xff]   ;;  %v2636_v23 = vld [vmem:[%s3724_s24 + $0xa] sm:$0x3] }
  0x1a   : > { %3087 = vmatprep.subr.bf16.mxu1 %v3613_v1  ;;  %v3509_v24 = vld [vmem:[%s4322_s1 + $0x200] sm:$0xff]   ;;  %v3514_v29 = vld [vmem:[%s4322_s1 + $0x50] sm:$0xff]   ;;  %v2686_v57 = vld [vmem:[%s3724_s24 + $0x8] sm:$0x3] }
  0x1b   : > { %v3510_v25 = vld [vmem:[%s4322_s1 + $0x40] sm:$0xff]   ;;  %v3536_v60 = vld [vmem:[%s4322_s1 + $0xa8] sm:$0xff]   ;;  %v3538_v63 = vld [vmem:[%s4322_s1 + $0xb0] sm:$0xff]  }
  0x1c   : > { %3068 = vmatpush3.bf16.msra.mxu0 %v3455_v11  ;;  %v3498_v11 = vld [vmem:[%s4322_s1 + $0x1d0] sm:$0xff]   ;;  %v3539_v0 = vld [vmem:[%s4322_s1 + $0x38] sm:$0xff]  }
  0x1d   : > { %3088 = vmatpush3.bf16.msra.mxu1 %v3456_v12  ;;  %3069 = vmatprep.subr.bf16.mxu0 %v3613_v1  ;;  %v3499_v12 = vld [vmem:[%s4322_s1 + $0x198] sm:$0xff]  }
  0x1e   : > { %3089 = vmatprep.subr.bf16.mxu1 %v3613_v1 }
  0x20   : > { %3070 = vmatpush3.bf16.msra.mxu0 %v3457_v13  ;;  %v3500_v13 = vld [vmem:[%s4322_s1 + $0x1d8] sm:$0xff]  }
  0x21   : > { %3090 = vmatpush3.bf16.msra.mxu1 %v3458_v14  ;;  %3071 = vmatprep.subr.bf16.mxu0 %v3613_v1  ;;  %v3501_v14 = vld [vmem:[%s4322_s1 + $0x1a0] sm:$0xff]  }
  0x22   : > { %3091 = vmatprep.subr.bf16.mxu1 %v3613_v1 }
  0x24   : > { %3072 = vmatpush3.bf16.msra.mxu0 %v3459_v15  ;;  %v3502_v15 = vld [vmem:[%s4322_s1 + $0x1e0] sm:$0xff]  }
  0x25   : > { %3092 = vmatpush3.bf16.msra.mxu1 %v3460_v16  ;;  %3097 = vmatprep.subr.bf16.mxu0 %v3613_v1  ;;  %v3503_v16 = vld [vmem:[%s4322_s1 + $0x1a8] sm:$0xff]  }
  0x26   : > { %3117 = vmatprep.subr.bf16.mxu1 %v3613_v1 }
  0x27   : > { %3074 = vmatmul.mubr.bf16.vlgmr.msra.gmra.mrb[0].mxu0 %v2480_v17  ;;  %v3504_v17 = vld [vmem:[%s4322_s1 + $0x1e8] sm:$0xff]  }
  0x28   : > { %3094 = vmatmul.mubr.bf16.vlgmr.msra.gmra.mrb[0].mxu1 %v243_v18  ;;  %3098 = vmatpush3.bf16.msra.mxu0 %v3461_v19  ;;  %v3505_v18 = vld [vmem:[%s4322_s1 + $0x1b0] sm:$0xff]  }
  0x29   : > { %3118 = vmatpush3.bf16.msra.mxu1 %v3462_v20  ;;  %3099 = vmatprep.subr.bf16.mxu0 %v3613_v1  ;;  %v3506_v19 = vld [vmem:[%s4322_s1 + $0x1f0] sm:$0xff]   ;;  %v3507_v20 = vld [vmem:[%s4322_s1 + $0x1b8] sm:$0xff]  }
  0x2a   : > { %3119 = vmatprep.subr.bf16.mxu1 %v3613_v1  ;;  %3113 = vmatprep.mubr.msk.bf16.mxu0 %vm3614_vm0, %v3613_v1 }
  0x2b   : > { %3133 = vmatprep.mubr.msk.bf16.mxu1 %vm3614_vm0, %v3613_v1 }
  0x2c   : > { %3100 = vmatpush3.bf16.msra.mxu0 %v3463_v21  ;;  %v3508_v21 = vld [vmem:[%s4322_s1 + $0x1f8] sm:$0xff]  }
  0x2d   : > { %3120 = vmatpush3.bf16.msra.mxu1 %v3464_v22  ;;  %3101 = vmatprep.subr.bf16.mxu0 %v3613_v1  ;;  %v2611_v22 = vld [vmem:[%s3724_s24 + $0x8] sm:$0x3] }
  0x2e   : > { %3121 = vmatprep.subr.bf16.mxu1 %v3613_v1  ;;  %v1168_v35 = vrot.slane %v2611_v22, %v3772_v32 }
  0x30   : > { %3102 = vmatpush3.bf16.msra.mxu0 %v3465_v26  ;;  %v3511_v26 = vld [vmem:[%s4322_s1 + $0x208] sm:$0xff]   ;;  %v1172_v38 = vshll.u32 %v1168_v35, 16  ;;  %v1170_v41 = vshrl.u32 %v1168_v35, 16 }
  0x31   : > { %3122 = vmatpush3.bf16.msra.mxu1 %v3466_v27  ;;  %3103 = vmatprep.subr.bf16.mxu0 %v3613_v1  ;;  %v3512_v27 = vld [vmem:[%s4322_s1 + $0x48] sm:$0xff]  }
  0x32   : > { %3123 = vmatprep.subr.bf16.mxu1 %v3613_v1  ;;  %v1174_v42 = vrot.slane %v1172_v38, 1 }
  0x34   : > { %3104 = vmatpush3.bf16.msra.mxu0 %v3467_v30  ;;  %v3515_v30 = vld [vmem:[%s4322_s1 + $0x218] sm:$0xff]  }
  0x35   : > { %3124 = vmatpush3.bf16.msra.mxu1 %v3468_v31  ;;  %3105 = vmatprep.subr.bf16.mxu0 %v3613_v1  ;;  %v3516_v31 = vld [vmem:[%s4322_s1 + $0x58] sm:$0xff]  }
  0x36   : > { %3125 = vmatprep.subr.bf16.mxu1 %v3613_v1 }
  0x38   : > { %3106 = vmatpush3.bf16.msra.mxu0 %v3469_v33  ;;  %v3517_v33 = vld [vmem:[%s4322_s1 + $0x220] sm:$0xff]  }
  0x39   : > { %3126 = vmatpush3.bf16.msra.mxu1 %v3470_v34  ;;  %3107 = vmatprep.subr.bf16.mxu0 %v3613_v1  ;;  %v3518_v34 = vld [vmem:[%s4322_s1 + $0x60] sm:$0xff]  }
  0x3a   : > { %3127 = vmatprep.subr.bf16.mxu1 %v3613_v1 }
  0x3c   : > { %3108 = vmatpush3.bf16.msra.mxu0 %v3471_v36  ;;  %v3519_v36 = vld [vmem:[%s4322_s1 + $0x228] sm:$0xff]  }
  0x3d   : > { %3128 = vmatpush3.bf16.msra.mxu1 %v3472_v37  ;;  %3109 = vmatprep.subr.bf16.mxu0 %v3613_v1  ;;  %v3520_v37 = vld [vmem:[%s4322_s1 + $0x68] sm:$0xff]  }
  0x3e   : > { %3129 = vmatprep.subr.bf16.mxu1 %v3613_v1 }
  0x40   : > { %3110 = vmatpush3.bf16.msra.mxu0 %v3473_v39  ;;  %v3521_v39 = vld [vmem:[%s4322_s1 + $0x230] sm:$0xff]  }
  0x41   : > { %3130 = vmatpush3.bf16.msra.mxu1 %v3474_v40  ;;  %3111 = vmatprep.subr.bf16.mxu0 %v3613_v1  ;;  %v3522_v40 = vld [vmem:[%s4322_s1 + $0x70] sm:$0xff]  }
  0x42   : > { %3131 = vmatprep.subr.bf16.mxu1 %v3613_v1 }
  0x44   : > { %3112 = vmatpush3.bf16.msra.mxu0 %v3475_v43  ;;  %v3523_v43 = vld [vmem:[%s4322_s1 + $0x238] sm:$0xff]  }
  0x45   : > { %3132 = vmatpush3.bf16.msra.mxu1 %v3476_v44  ;;  %3137 = vmatprep.subr.bf16.mxu0 %v3613_v1  ;;  %v3524_v44 = vld [vmem:[%s4322_s1 + $0x78] sm:$0xff]  }
  0x46   : > { %3157 = vmatprep.subr.bf16.mxu1 %v3613_v1 }
  0x47   : > { %3114 = vmatmul.mubr.bf16.vlgmr.msra.gmra.mrb[4].mxu0 %v488_v45  ;;  %v1175_v45 = vor.u32 %v1174_v42, %v1170_v41 }
  0x48   : > { %3134 = vmatmul.mubr.bf16.vlgmr.msra.gmra.mrb[4].mxu1 %v2537_v46  ;;  %3138 = vmatpush3.bf16.msra.mxu0 %v3477_v47  ;;  %v3525_v46 = vld [vmem:[%s4322_s1] sm:$0xff]   ;;  %v2687_v47 = vld [vmem:[%s3724_s24 + $0xa] sm:$0x3] }
  0x49   : > { %3158 = vmatpush3.bf16.msra.mxu1 %v3478_v48  ;;  %3139 = vmatprep.subr.bf16.mxu0 %v3613_v1  ;;  %v3526_v48 = vld [vmem:[%s4322_s1 + $0x80] sm:$0xff]  }
  0x4a   : > { %3159 = vmatprep.subr.bf16.mxu1 %v3613_v1  ;;  %3153 = vmatprep.mubr.msk.bf16.mxu0 %vm3614_vm0, %v3613_v1 }
  0x4b   : > { %3173 = vmatprep.mubr.msk.bf16.mxu1 %vm3614_vm0, %v3613_v1 }
  0x4c   : > { %3140 = vmatpush3.bf16.msra.mxu0 %v3479_v49  ;;  %v3527_v49 = vld [vmem:[%s4322_s1 + $0x8] sm:$0xff]  }
  0x4d   : > { %3160 = vmatpush3.bf16.msra.mxu1 %v3480_v50  ;;  %3141 = vmatprep.subr.bf16.mxu0 %v3613_v1  ;;  %v3528_v50 = vld [vmem:[%s4322_s1 + $0x88] sm:$0xff]  }
  0x4e   : > { %3161 = vmatprep.subr.bf16.mxu1 %v3613_v1 }
  0x50   : > { %3142 = vmatpush3.bf16.msra.mxu0 %v3481_v51  ;;  %v3529_v51 = vld [vmem:[%s4322_s1 + $0x10] sm:$0xff]  }
  0x51   : > { %3162 = vmatpush3.bf16.msra.mxu1 %v3482_v52  ;;  %3143 = vmatprep.subr.bf16.mxu0 %v3613_v1  ;;  %v3530_v52 = vld [vmem:[%s4322_s1 + $0x90] sm:$0xff]  }
  0x52   : > { %3163 = vmatprep.subr.bf16.mxu1 %v3613_v1 }
  0x54   : > { %3144 = vmatpush3.bf16.msra.mxu0 %v3483_v53  ;;  %v3531_v53 = vld [vmem:[%s4322_s1 + $0x18] sm:$0xff]  }
  0x55   : > { %3164 = vmatpush3.bf16.msra.mxu1 %v3484_v54  ;;  %3145 = vmatprep.subr.bf16.mxu0 %v3613_v1  ;;  %v3532_v54 = vld [vmem:[%s4322_s1 + $0x98] sm:$0xff]  }
  0x56   : > { %3165 = vmatprep.subr.bf16.mxu1 %v3613_v1 }
  0x58   : > { %3146 = vmatpush3.bf16.msra.mxu0 %v3485_v55  ;;  %v3533_v55 = vld [vmem:[%s4322_s1 + $0x20] sm:$0xff]  }
  0x59   : > { %3166 = vmatpush3.bf16.msra.mxu1 %v3486_v56  ;;  %3147 = vmatprep.subr.bf16.mxu0 %v3613_v1  ;;  %v3534_v56 = vld [vmem:[%s4322_s1 + $0xa0] sm:$0xff]  }
  0x5a   : > { %3167 = vmatprep.subr.bf16.mxu1 %v3613_v1 }
  0x5c   : > { %3148 = vmatpush3.bf16.msra.mxu0 %v3487_v58  ;;  %v3535_v58 = vld [vmem:[%s4322_s1 + $0x28] sm:$0xff]  }
  0x5d   : > { %3168 = vmatpush3.bf16.msra.mxu1 %v3488_v59  ;;  %3149 = vmatprep.subr.bf16.mxu0 %v3613_v1  ;;  %v1517_v59 = vrot.slane %v2686_v57, %v3772_v32 }
  0x5e   : > { %3169 = vmatprep.subr.bf16.mxu1 %v3613_v1 }
  0x60   : > { %3150 = vmatpush3.bf16.msra.mxu0 %v3489_v61  ;;  %v3537_v61 = vld [vmem:[%s4322_s1 + $0x30] sm:$0xff]  }
  0x61   : > { %3170 = vmatpush3.bf16.msra.mxu1 %v3490_v62  ;;  %3151 = vmatprep.subr.bf16.mxu0 %v3613_v1  ;;  %v1521_v62 = vshll.u32 %v1517_v59, 16 }
  0x62   : > { %3171 = vmatprep.subr.bf16.mxu1 %v3613_v1 }
  0x64   : > { %3152 = vmatpush3.bf16.msra.mxu0 %v3491_v2  ;;  %v1519_v2 = vshrl.u32 %v1517_v59, 16  ;;  %v3576_v59 = vld [vmem:[%s4322_s1 + $0x208] sm:$0xff]  }
  0x65   : > { %3172 = vmatpush3.bf16.msra.mxu1 %v3492_v3  ;;  %3177 = vmatprep.subr.bf16.mxu0 %v3613_v1  ;;  %v1523_v3 = vrot.slane %v1521_v62, 1  ;;  %v3579_v62 = vld [vmem:[%s4322_s1 + $0x1d8] sm:$0xff]  }
  0x66   : > { %3197 = vmatprep.subr.bf16.mxu1 %v3613_v1 }
  0x67   : > { %3154 = vmatmul.mubr.bf16.vlgmr.msra.gmra.mrb[8].mxu0 %v2562_v4  ;;  %v3540_v4 = vld [vmem:[%s4322_s1 + $0xb8] sm:$0xff]  }
  0x68   : > { %3174 = vmatmul.mubr.bf16.vlgmr.msra.gmra.mrb[8].mxu1 %v832_v5  ;;  %3178 = vmatpush3.bf16.msra.mxu0 %v3493_v6  ;;  %v1524_v5 = vor.u32 %v1523_v3, %v1519_v2  ;;  %v3541_v6 = vld [vmem:[%s4322_s1 + $0xc0] sm:$0xff]  }
  0x69   : > { %3198 = vmatpush3.bf16.msra.mxu1 %v3494_v7  ;;  %3179 = vmatprep.subr.bf16.mxu0 %v3613_v1  ;;  %v3542_v7 = vld [vmem:[%s4322_s1 + $0x100] sm:$0xff]  }
  0x6a   : > { %3199 = vmatprep.subr.bf16.mxu1 %v3613_v1  ;;  %3193 = vmatprep.mubr.msk.bf16.mxu0 %vm3614_vm0, %v3613_v1  ;;  %v3582_v2 = vld [vmem:[%s4322_s1 + $0x220] sm:$0xff]  }
  0x6b   : > { %3213 = vmatprep.mubr.msk.bf16.mxu1 %vm3614_vm0, %v3613_v1 }
  0x6c   : > { %3180 = vmatpush3.bf16.msra.mxu0 %v3495_v8  ;;  %v3543_v8 = vld [vmem:[%s4322_s1 + $0xc8] sm:$0xff]  }
  0x6d   : > { %3200 = vmatpush3.bf16.msra.mxu1 %v3496_v9  ;;  %3181 = vmatprep.subr.bf16.mxu0 %v3613_v1  ;;  %v3544_v9 = vld [vmem:[%s4322_s1 + $0x108] sm:$0xff]  }
  0x6e   : > { %3201 = vmatprep.subr.bf16.mxu1 %v3613_v1 }
  0x70   : > { %3182 = vmatpush3.bf16.msra.mxu0 %v3497_v10  ;;  %v3545_v10 = vld [vmem:[%s4322_s1 + $0xd0] sm:$0xff]  }
  0x71   : > { %3202 = vmatpush3.bf16.msra.mxu1 %v3498_v11  ;;  %3183 = vmatprep.subr.bf16.mxu0 %v3613_v1  ;;  %v3546_v11 = vld [vmem:[%s4322_s1 + $0x110] sm:$0xff]  }
  0x72   : > { %3203 = vmatprep.subr.bf16.mxu1 %v3613_v1 }
  0x74   : > { %3184 = vmatpush3.bf16.msra.mxu0 %v3499_v12  ;;  %v3547_v12 = vld [vmem:[%s4322_s1 + $0xd8] sm:$0xff]  }
  0x75   : > { %3204 = vmatpush3.bf16.msra.mxu1 %v3500_v13  ;;  %3185 = vmatprep.subr.bf16.mxu0 %v3613_v1  ;;  %v3548_v13 = vld [vmem:[%s4322_s1 + $0x118] sm:$0xff]  }
  0x76   : > { %3205 = vmatprep.subr.bf16.mxu1 %v3613_v1 }
  0x78   : > { %3186 = vmatpush3.bf16.msra.mxu0 %v3501_v14  ;;  %v3549_v14 = vld [vmem:[%s4322_s1 + $0xe0] sm:$0xff]  }
  0x79   : > { %3206 = vmatpush3.bf16.msra.mxu1 %v3502_v15  ;;  %3187 = vmatprep.subr.bf16.mxu0 %v3613_v1  ;;  %v3550_v15 = vld [vmem:[%s4322_s1 + $0x120] sm:$0xff]  }
  0x7a   : > { %3207 = vmatprep.subr.bf16.mxu1 %v3613_v1 }
  0x7c   : > { %3188 = vmatpush3.bf16.msra.mxu0 %v3503_v16  ;;  %v3551_v16 = vld [vmem:[%s4322_s1 + $0xe8] sm:$0xff]  }
  0x7d   : > { %3208 = vmatpush3.bf16.msra.mxu1 %v3504_v17  ;;  %3189 = vmatprep.subr.bf16.mxu0 %v3613_v1  ;;  %v3552_v17 = vld [vmem:[%s4322_s1 + $0x128] sm:$0xff]  }
  0x7e   : > { %3209 = vmatprep.subr.bf16.mxu1 %v3613_v1 }
  0x80   : > { %3190 = vmatpush3.bf16.msra.mxu0 %v3505_v18  ;;  %v3553_v18 = vld [vmem:[%s4322_s1 + $0xf0] sm:$0xff]  }
  0x81   : > { %3210 = vmatpush3.bf16.msra.mxu1 %v3506_v19  ;;  %3191 = vmatprep.subr.bf16.mxu0 %v3613_v1  ;;  %v3554_v19 = vld [vmem:[%s4322_s1 + $0x130] sm:$0xff]  }
  0x82   : > { %3211 = vmatprep.subr.bf16.mxu1 %v3613_v1 }
  0x84   : > { %3192 = vmatpush3.bf16.msra.mxu0 %v3507_v20  ;;  %v3555_v20 = vld [vmem:[%s4322_s1 + $0xf8] sm:$0xff]  }
  0x85   : > { %3212 = vmatpush3.bf16.msra.mxu1 %v3508_v21  ;;  %3217 = vmatprep.subr.bf16.mxu0 %v3613_v1  ;;  %v3556_v21 = vld [vmem:[%s4322_s1 + $0x138] sm:$0xff]  }
  0x86   : > { %3237 = vmatprep.subr.bf16.mxu1 %v3613_v1 }
  0x87   : > { %3194 = vmatmul.mubr.bf16.vlgmr.msra.gmra.mrb[12].mxu0 %v2611_v22  ;;  %v2744_v22 = vld [vmem:[%s3724_s24 + $0xc] sm:$0x3] }
  0x88   : > { %3214 = vmatmul.mubr.bf16.vlgmr.msra.gmra.mrb[12].mxu1 %v2636_v23  ;;  %3218 = vmatpush3.bf16.msra.mxu0 %v3509_v24  ;;  %v3557_v23 = vld [vmem:[%s4322_s1 + $0x140] sm:$0xff]   ;;  %v2769_v24 = vld [vmem:[%s3724_s24 + $0xe] sm:$0x3]  ;;  %v1858_v35 = vrot.slane %v2744_v22, %v3772_v32 }
  0x89   : > { %3238 = vmatpush3.bf16.msra.mxu1 %v3510_v25  ;;  %3219 = vmatprep.subr.bf16.mxu0 %v3613_v1  ;;  %v3558_v25 = vld [vmem:[%s4322_s1 + $0x180] sm:$0xff]  }
  0x8a   : > { %3239 = vmatprep.subr.bf16.mxu1 %v3613_v1  ;;  %3233 = vmatprep.mubr.msk.bf16.mxu0 %vm3614_vm0, %v3613_v1 }
  0x8b   : > { %3253 = vmatprep.mubr.msk.bf16.mxu1 %vm3614_vm0, %v3613_v1 }
  0x8c   : > { %3220 = vmatpush3.bf16.msra.mxu0 %v3511_v26  ;;  %v3559_v26 = vld [vmem:[%s4322_s1 + $0x148] sm:$0xff]  }
  0x8d   : > { %3240 = vmatpush3.bf16.msra.mxu1 %v3512_v27  ;;  %3221 = vmatprep.subr.bf16.mxu0 %v3613_v1  ;;  %v3560_v27 = vld [vmem:[%s4322_s1 + $0x188] sm:$0xff]  }
  0x8e   : > { %3241 = vmatprep.subr.bf16.mxu1 %v3613_v1 }
  0x90   : > { %3222 = vmatpush3.bf16.msra.mxu0 %v3513_v28  ;;  %v3561_v28 = vld [vmem:[%s4322_s1 + $0x150] sm:$0xff]  }
  0x91   : > { %3242 = vmatpush3.bf16.msra.mxu1 %v3514_v29  ;;  %3223 = vmatprep.subr.bf16.mxu0 %v3613_v1  ;;  %v3562_v29 = vld [vmem:[%s4322_s1 + $0x190] sm:$0xff]  }
  0x92   : > { %3243 = vmatprep.subr.bf16.mxu1 %v3613_v1 }
  0x94   : > { %3224 = vmatpush3.bf16.msra.mxu0 %v3515_v30  ;;  %v3563_v30 = vld [vmem:[%s4322_s1 + $0x158] sm:$0xff]  }
  0x95   : > { %3244 = vmatpush3.bf16.msra.mxu1 %v3516_v31  ;;  %3225 = vmatprep.subr.bf16.mxu0 %v3613_v1  ;;  %v3564_v31 = vld [vmem:[%s4322_s1 + $0x198] sm:$0xff]  }
  0x96   : > { %3245 = vmatprep.subr.bf16.mxu1 %v3613_v1 }
  0x98   : > { %3226 = vmatpush3.bf16.msra.mxu0 %v3517_v33  ;;  %v3565_v33 = vld [vmem:[%s4322_s1 + $0x160] sm:$0xff]  }
  0x99   : > { %3246 = vmatpush3.bf16.msra.mxu1 %v3518_v34  ;;  %3227 = vmatprep.subr.bf16.mxu0 %v3613_v1  ;;  %v3566_v34 = vld [vmem:[%s4322_s1 + $0x1a0] sm:$0xff]  }
  0x9a   : > { %3247 = vmatprep.subr.bf16.mxu1 %v3613_v1 }
  0x9c   : > { %3228 = vmatpush3.bf16.msra.mxu0 %v3519_v36  ;;  %v3567_v36 = vld [vmem:[%s4322_s1 + $0x168] sm:$0xff]  }
  0x9d   : > { %3248 = vmatpush3.bf16.msra.mxu1 %v3520_v37  ;;  %3229 = vmatprep.subr.bf16.mxu0 %v3613_v1  ;;  %v3568_v37 = vld [vmem:[%s4322_s1 + $0x1a8] sm:$0xff]  }
  0x9e   : > { %3249 = vmatprep.subr.bf16.mxu1 %v3613_v1 }
  0xa0   : > { %3230 = vmatpush3.bf16.msra.mxu0 %v3521_v39  ;;  %v1862_v39 = vshll.u32 %v1858_v35, 16 }
  0xa1   : > { %3250 = vmatpush3.bf16.msra.mxu1 %v3522_v40  ;;  %3231 = vmatprep.subr.bf16.mxu0 %v3613_v1 }
  0xa2   : > { %3251 = vmatprep.subr.bf16.mxu1 %v3613_v1 }
  0xa4   : > { %3232 = vmatpush3.bf16.msra.mxu0 %v3523_v43 }
  0xa5   : > { %3252 = vmatpush3.bf16.msra.mxu1 %v3524_v44  ;;  %3257 = vmatprep.subr.bf16.mxu0 %v3613_v1 }
  0xa6   : > { %3277 = vmatprep.subr.bf16.mxu1 %v3613_v1 }
  0xa7   : > { %3234 = vmatmul.mubr.bf16.vlgmr.msra.gmra.mrb[16].mxu0 %v1175_v45  ;;  %v3569_v45 = vld [vmem:[%s4322_s1 + $0x170] sm:$0xff]  }
  0xa8   : > { %3254 = vmatmul.mubr.bf16.vlgmr.msra.gmra.mrb[16].mxu1 %v2687_v47  ;;  %3258 = vmatpush3.bf16.msra.mxu0 %v3525_v46 }
  0xa9   : > { %3278 = vmatpush3.bf16.msra.mxu1 %v3526_v48  ;;  %3259 = vmatprep.subr.bf16.mxu0 %v3613_v1  ;;  %v3570_v48 = vld [vmem:[%s4322_s1 + $0x1b0] sm:$0xff]  }
  0xaa   : > { %3279 = vmatprep.subr.bf16.mxu1 %v3613_v1  ;;  %3273 = vmatprep.mubr.msk.bf16.mxu0 %vm3614_vm0, %v3613_v1 }
  0xab   : > { %3293 = vmatprep.mubr.msk.bf16.mxu1 %vm3614_vm0, %v3613_v1 }
  0xac   : > { %3260 = vmatpush3.bf16.msra.mxu0 %v3527_v49 }
  0xad   : > { %3280 = vmatpush3.bf16.msra.mxu1 %v3528_v50  ;;  %3261 = vmatprep.subr.bf16.mxu0 %v3613_v1  ;;  %v1860_v50 = vshrl.u32 %v1858_v35, 16 }
  0xae   : > { %3281 = vmatprep.subr.bf16.mxu1 %v3613_v1 }
  0xb0   : > { %3262 = vmatpush3.bf16.msra.mxu0 %v3529_v51  ;;  %v1864_v51 = vrot.slane %v1862_v39, 1 }
  0xb1   : > { %3282 = vmatpush3.bf16.msra.mxu1 %v3530_v52  ;;  %3263 = vmatprep.subr.bf16.mxu0 %v3613_v1  ;;  %v3571_v52 = vld [vmem:[%s4322_s1 + $0x178] sm:$0xff]  }
  0xb2   : > { %3283 = vmatprep.subr.bf16.mxu1 %v3613_v1 }
  0xb4   : > { %3264 = vmatpush3.bf16.msra.mxu0 %v3531_v53  ;;  %v3572_v53 = vld [vmem:[%s4322_s1 + $0x1b8] sm:$0xff]  }
  0xb5   : > { %3284 = vmatpush3.bf16.msra.mxu1 %v3532_v54  ;;  %3265 = vmatprep.subr.bf16.mxu0 %v3613_v1  ;;  %v1865_v54 = vor.u32 %v1864_v51, %v1860_v50 }
  0xb6   : > { %3285 = vmatprep.subr.bf16.mxu1 %v3613_v1 }
  0xb8   : > { %3266 = vmatpush3.bf16.msra.mxu0 %v3533_v55  ;;  %v3573_v55 = vld [vmem:[%s4322_s1 + $0x1c0] sm:$0xff]  }
  0xb9   : > { %3286 = vmatpush3.bf16.msra.mxu1 %v3534_v56  ;;  %3267 = vmatprep.subr.bf16.mxu0 %v3613_v1  ;;  %v2818_v56 = vld [vmem:[%s3724_s24 + $0x10] sm:$0x3] }
  0xba   : > { %3287 = vmatprep.subr.bf16.mxu1 %v3613_v1  ;;  %v2198_v3 = vrot.slane %v2818_v56, %v3772_v32 }
  0xbc   : > { %3268 = vmatpush3.bf16.msra.mxu0 %v3535_v58  ;;  %v3575_v58 = vld [vmem:[%s4322_s1 + $0x1c8] sm:$0xff]   ;;  %v2202_v32 = vshll.u32 %v2198_v3, 16 }
  0xbd   : > { %3288 = vmatpush3.bf16.msra.mxu1 %v3536_v60  ;;  %3269 = vmatprep.subr.bf16.mxu0 %v3613_v1  ;;  %v3577_v60 = vld [vmem:[%s4322_s1 + $0x1d0] sm:$0xff]  }
  0xbe   : > { %3289 = vmatprep.subr.bf16.mxu1 %v3613_v1 }
  0xc0   : > { %3270 = vmatpush3.bf16.msra.mxu0 %v3537_v61  ;;  %v3578_v61 = vld [vmem:[%s4322_s1 + $0x210] sm:$0xff]  }
  0xc1   : > { %3290 = vmatpush3.bf16.msra.mxu1 %v3538_v63  ;;  %3271 = vmatprep.subr.bf16.mxu0 %v3613_v1  ;;  %v3580_v63 = vld [vmem:[%s4322_s1 + $0x218] sm:$0xff]  }
  0xc2   : > { %3291 = vmatprep.subr.bf16.mxu1 %v3613_v1 }
  0xc4   : > { %3272 = vmatpush3.bf16.msra.mxu0 %v3539_v0  ;;  %v3581_v0 = vld [vmem:[%s4322_s1 + $0x1e0] sm:$0xff]  }
  0xc5   : > { %3292 = vmatpush3.bf16.msra.mxu1 %v3540_v4  ;;  %3297 = vmatprep.subr.bf16.mxu0 %v3613_v1  ;;  %v3583_v4 = vld [vmem:[%s4322_s1 + $0x1e8] sm:$0xff]  }
  0xc6   : > { %3317 = vmatprep.subr.bf16.mxu1 %v3613_v1 }
  0xc7   : > { %3274 = vmatmul.mubr.bf16.vlgmr.msra.gmra.mrb[20].mxu0 %v2686_v57  ;;  %v3574_v57 = vld [vmem:[%s4322_s1 + $0x200] sm:$0xff]  }
  0xc8   : > { %3294 = vmatmul.mubr.bf16.vlgmr.msra.gmra.mrb[20].mxu1 %v1524_v5  ;;  %3298 = vmatpush3.bf16.msra.mxu0 %v3541_v6  ;;  %v3584_v5 = vld [vmem:[%s4322_s1 + $0x228] sm:$0xff]  }
  0xc9   : > { %3318 = vmatpush3.bf16.msra.mxu1 %v3542_v7  ;;  %3299 = vmatprep.subr.bf16.mxu0 %v3613_v1 }
  0xca   : > { %3319 = vmatprep.subr.bf16.mxu1 %v3613_v1  ;;  %3313 = vmatprep.mubr.msk.bf16.mxu0 %vm3614_vm0, %v3613_v1 }
  0xcb   : > { %3333 = vmatprep.mubr.msk.bf16.mxu1 %vm3614_vm0, %v3613_v1 }
  0xcc   : > { %3300 = vmatpush3.bf16.msra.mxu0 %v3543_v8 }
  0xcd   : > { %3320 = vmatpush3.bf16.msra.mxu1 %v3544_v9  ;;  %3301 = vmatprep.subr.bf16.mxu0 %v3613_v1 }
  0xce   : > { %3321 = vmatprep.subr.bf16.mxu1 %v3613_v1 }
  0xd0   : > { %3302 = vmatpush3.bf16.msra.mxu0 %v3545_v10 }
  0xd1   : > { %3322 = vmatpush3.bf16.msra.mxu1 %v3546_v11  ;;  %3303 = vmatprep.subr.bf16.mxu0 %v3613_v1 }
  0xd2   : > { %3323 = vmatprep.subr.bf16.mxu1 %v3613_v1 }
  0xd4   : > { %3304 = vmatpush3.bf16.msra.mxu0 %v3547_v12  ;;  %v3585_v12 = vld [vmem:[%s4322_s1 + $0x1f0] sm:$0xff]  }
  0xd5   : > { %3324 = vmatpush3.bf16.msra.mxu1 %v3548_v13  ;;  %3305 = vmatprep.subr.bf16.mxu0 %v3613_v1 }
  0xd6   : > { %3325 = vmatprep.subr.bf16.mxu1 %v3613_v1 }
  0xd8   : > { %3306 = vmatpush3.bf16.msra.mxu0 %v3549_v14 }
  0xd9   : > { %3326 = vmatpush3.bf16.msra.mxu1 %v3550_v15  ;;  %3307 = vmatprep.subr.bf16.mxu0 %v3613_v1 }
  0xda   : > { %3327 = vmatprep.subr.bf16.mxu1 %v3613_v1 }
  0xdc   : > { %3308 = vmatpush3.bf16.msra.mxu0 %v3551_v16  ;;  %v3586_v16 = vld [vmem:[%s4322_s1 + $0x230] sm:$0xff]  }
  0xdd   : > { %3328 = vmatpush3.bf16.msra.mxu1 %v3552_v17  ;;  %3309 = vmatprep.subr.bf16.mxu0 %v3613_v1 }
  0xde   : > { %3329 = vmatprep.subr.bf16.mxu1 %v3613_v1 }
  0xe0   : > { %3310 = vmatpush3.bf16.msra.mxu0 %v3553_v18  ;;  %v2200_v18 = vshrl.u32 %v2198_v3, 16 }
  0xe1   : > { %3330 = vmatpush3.bf16.msra.mxu1 %v3554_v19  ;;  %3311 = vmatprep.subr.bf16.mxu0 %v3613_v1  ;;  %v2204_v19 = vrot.slane %v2202_v32, 1 }
  0xe2   : > { %3331 = vmatprep.subr.bf16.mxu1 %v3613_v1 }
  0xe4   : > { %3312 = vmatpush3.bf16.msra.mxu0 %v3555_v20  ;;  %v3587_v20 = vld [vmem:[%s4322_s1 + $0x1f8] sm:$0xff]  }
  0xe5   : > { %3332 = vmatpush3.bf16.msra.mxu1 %v3556_v21  ;;  %3337 = vmatprep.subr.bf16.mxu0 %v3613_v1  ;;  %v3588_v21 = vld [vmem:[%s4322_s1 + $0x238] sm:$0xff]  }
  0xe6   : > { %3357 = vmatprep.subr.bf16.mxu1 %v3613_v1 }
  0xe7   : > { %3314 = vmatmul.mubr.bf16.vlgmr.msra.gmra.mrb[24].mxu0 %v2744_v22  ;;  %v2843_v22 = vld [vmem:[%s3724_s24 + $0x12] sm:$0x3] }
  0xe8   : > { %3334 = vmatmul.mubr.bf16.vlgmr.msra.gmra.mrb[24].mxu1 %v2769_v24  ;;  %3338 = vmatpush3.bf16.msra.mxu0 %v3557_v23  ;;  %v2205_v23 = vor.u32 %v2204_v19, %v2200_v18 }
  0xe9   : > { %3358 = vmatpush3.bf16.msra.mxu1 %v3558_v25  ;;  %3339 = vmatprep.subr.bf16.mxu0 %v3613_v1 }
  0xea   : > { %3359 = vmatprep.subr.bf16.mxu1 %v3613_v1  ;;  %3353 = vmatprep.mubr.msk.bf16.mxu0 %vm3614_vm0, %v3613_v1 }
  0xeb   : > { %3373 = vmatprep.mubr.msk.bf16.mxu1 %vm3614_vm0, %v3613_v1 }
  0xec   : > { %3340 = vmatpush3.bf16.msra.mxu0 %v3559_v26 }
  0xed   : > { %3360 = vmatpush3.bf16.msra.mxu1 %v3560_v27  ;;  %3341 = vmatprep.subr.bf16.mxu0 %v3613_v1 }
  0xee   : > { %3361 = vmatprep.subr.bf16.mxu1 %v3613_v1 }
  0xf0   : > { %3342 = vmatpush3.bf16.msra.mxu0 %v3561_v28 }
  0xf1   : > { %3362 = vmatpush3.bf16.msra.mxu1 %v3562_v29  ;;  %3343 = vmatprep.subr.bf16.mxu0 %v3613_v1 }
  0xf2   : > { %3363 = vmatprep.subr.bf16.mxu1 %v3613_v1 }
  0xf4   : > { %3344 = vmatpush3.bf16.msra.mxu0 %v3563_v30 }
  0xf5   : > { %3364 = vmatpush3.bf16.msra.mxu1 %v3564_v31  ;;  %3345 = vmatprep.subr.bf16.mxu0 %v3613_v1 }
  0xf6   : > { %3365 = vmatprep.subr.bf16.mxu1 %v3613_v1 }
  0xf8   : > { %3346 = vmatpush3.bf16.msra.mxu0 %v3565_v33 }
  0xf9   : > { %3366 = vmatpush3.bf16.msra.mxu1 %v3566_v34  ;;  %3347 = vmatprep.subr.bf16.mxu0 %v3613_v1 }
  0xfa   : > { %v363_v38 = vpop.f32.mrb[0].mxu0  ;;  %3367 = vmatprep.subr.bf16.mxu1 %v3613_v1 }
  0xfb   : > { %v451_v40 = vpop.f32.mrb[0].mxu1  ;;  %v3075_v41 = vpop.f32.mrb[1].mxu0 }
  0xfc   : > { %v4211_v42 = vadd.f32 %v451_v40, %v363_v38  ;;  %v3095_v43 = vpop.f32.mrb[1].mxu1  ;;  %v366_v44 = vpop.f32.mrb[2].mxu0  ;;  %3348 = vmatpush3.bf16.msra.mxu0 %v3567_v36 }
  0xfd   : > { %v454_v46 = vpop.f32.mrb[2].mxu1  ;;  %3368 = vmatpush3.bf16.msra.mxu1 %v3568_v37  ;;  %v3076_v47 = vpop.f32.mrb[3].mxu0  ;;  %3349 = vmatprep.subr.bf16.mxu0 %v3613_v1  ;;  %v2685_v44 = vld [vmem:[%s4323_s2] ss:$0 sm:$0xff] }
  0xfe   : > { %v3096_v49 = vpop.f32.mrb[3].mxu1  ;;  %3369 = vmatprep.subr.bf16.mxu1 %v3613_v1 }
 0x100   : > { %3350 = vmatpush3.bf16.msra.mxu0 %v3569_v45 }
 0x101   : > { %3370 = vmatpush3.bf16.msra.mxu1 %v3570_v48  ;;  %3351 = vmatprep.subr.bf16.mxu0 %v3613_v1 }
 0x102   : > { %3371 = vmatprep.subr.bf16.mxu1 %v3613_v1 }
 0x104   : > { %3352 = vmatpush3.bf16.msra.mxu0 %v3571_v52 }
 0x105   : > { %3372 = vmatpush3.bf16.msra.mxu1 %v3572_v53  ;;  %3377 = vmatprep.subr.bf16.mxu0 %v3613_v1 }
 0x106   : > { %3397 = vmatprep.subr.bf16.mxu1 %v3613_v1 }
 0x107   : > { %3354 = vmatmul.mubr.bf16.vlgmr.msra.gmra.mrb[28].mxu0 %v1865_v54 }
 0x108   : > { %3374 = vmatmul.mubr.bf16.vlgmr.msra.gmra.mrb[28].mxu1 %v2818_v56  ;;  %3378 = vmatpush3.bf16.msra.mxu0 %v3573_v55 }
 0x109   : > { %3398 = vmatpush3.bf16.msra.mxu1 %v3574_v57  ;;  %3379 = vmatprep.subr.bf16.mxu0 %v3613_v1 }
 0x10a   : > { %3399 = vmatprep.subr.bf16.mxu1 %v3613_v1  ;;  %3393 = vmatprep.mubr.msk.bf16.mxu0 %vm3614_vm0, %v3613_v1 }
 0x10b   : > { %3413 = vmatprep.mubr.msk.bf16.mxu1 %vm3614_vm0, %v3613_v1 }
 0x10c   : > { %3380 = vmatpush3.bf16.msra.mxu0 %v3575_v58 }
 0x10d   : > { %3400 = vmatpush3.bf16.msra.mxu1 %v3576_v59  ;;  %3381 = vmatprep.subr.bf16.mxu0 %v3613_v1 }
 0x10e   : > { %3401 = vmatprep.subr.bf16.mxu1 %v3613_v1 }
 0x110   : > { %3382 = vmatpush3.bf16.msra.mxu0 %v3577_v60 }
 0x111   : > { %3402 = vmatpush3.bf16.msra.mxu1 %v3578_v61  ;;  %3383 = vmatprep.subr.bf16.mxu0 %v3613_v1 }
 0x112   : > { %3403 = vmatprep.subr.bf16.mxu1 %v3613_v1 }
 0x114   : > { %3384 = vmatpush3.bf16.msra.mxu0 %v3579_v62 }
 0x115   : > { %3404 = vmatpush3.bf16.msra.mxu1 %v3580_v63  ;;  %3385 = vmatprep.subr.bf16.mxu0 %v3613_v1 }
 0x116   : > { %3405 = vmatprep.subr.bf16.mxu1 %v3613_v1 }
 0x118   : > { %3386 = vmatpush3.bf16.msra.mxu0 %v3581_v0 }
 0x119   : > { %3406 = vmatpush3.bf16.msra.mxu1 %v3582_v2  ;;  %3387 = vmatprep.subr.bf16.mxu0 %v3613_v1 }
 0x11a   : > { %v572_v6 = vpop.f32.mrb[4].mxu0  ;;  %3407 = vmatprep.subr.bf16.mxu1 %v3613_v1 }
 0x11b   : > { %v578_v7 = vadd.f32 %v572_v6, %v4211_v42  ;;  %v684_v8 = vpop.f32.mrb[4].mxu1  ;;  %v3115_v9 = vpop.f32.mrb[5].mxu0 }
 0x11c   : > { %v3135_v10 = vpop.f32.mrb[5].mxu1  ;;  %v575_v11 = vpop.f32.mrb[6].mxu0  ;;  %3388 = vmatpush3.bf16.msra.mxu0 %v3583_v4 }
 0x11d   : > { %v690_v13 = vadd.f32 %v684_v8, %v578_v7  ;;  %v687_v14 = vpop.f32.mrb[6].mxu1  ;;  %3408 = vmatpush3.bf16.msra.mxu1 %v3584_v5  ;;  %v3116_v15 = vpop.f32.mrb[7].mxu0  ;;  %3389 = vmatprep.subr.bf16.mxu0 %v3613_v1 }
 0x11e   : > { %v3136_v17 = vpop.f32.mrb[7].mxu1  ;;  %3409 = vmatprep.subr.bf16.mxu1 %v3613_v1 }
 0x120   : > { %3390 = vmatpush3.bf16.msra.mxu0 %v3585_v12 }
 0x121   : > { %3410 = vmatpush3.bf16.msra.mxu1 %v3586_v16  ;;  %3391 = vmatprep.subr.bf16.mxu0 %v3613_v1 }
 0x122   : > { %3411 = vmatprep.subr.bf16.mxu1 %v3613_v1 }
 0x124   : > { %3392 = vmatpush3.bf16.msra.mxu0 %v3587_v20 }
 0x125   : > { %3412 = vmatpush3.bf16.msra.mxu1 %v3588_v21 }
 0x127   : > { %3394 = vmatmul.mubr.bf16.vlgmr.msra.gmra.mrb[32].mxu0 %v2843_v22 }
 0x128   : > { %3414 = vmatmul.mubr.bf16.vlgmr.msra.gmra.mrb[32].mxu1 %v2205_v23 }
 0x13a   : > { %v794_v24 = vpop.f32.mrb[8].mxu0 }
 0x13b   : > { %v800_v25 = vadd.f32 %v794_v24, %v690_v13  ;;  %v916_v26 = vpop.f32.mrb[8].mxu1  ;;  %v3155_v27 = vpop.f32.mrb[9].mxu0 }
 0x13c   : > { %v3175_v28 = vpop.f32.mrb[9].mxu1  ;;  %v797_v29 = vpop.f32.mrb[10].mxu0 }
 0x13d   : > { %v922_v30 = vadd.f32 %v916_v26, %v800_v25  ;;  %v919_v31 = vpop.f32.mrb[10].mxu1  ;;  %v3156_v33 = vpop.f32.mrb[11].mxu0 }
 0x13e   : > { %v3176_v34 = vpop.f32.mrb[11].mxu1 }
 0x15a   : > { %v1027_v35 = vpop.f32.mrb[12].mxu0 }
 0x15b   : > { %v1033_v36 = vadd.f32 %v1027_v35, %v922_v30  ;;  %v1137_v1 = vpop.f32.mrb[12].mxu1  ;;  %v3195_v37 = vpop.f32.mrb[13].mxu0 }
 0x15c   : > { %v3215_v38 = vpop.f32.mrb[13].mxu1  ;;  %v1030_v39 = vpop.f32.mrb[14].mxu0 }
 0x15d   : > { %v1143_v40 = vadd.f32 %v1137_v1, %v1033_v36  ;;  %v1140_v41 = vpop.f32.mrb[14].mxu1  ;;  %v3196_v42 = vpop.f32.mrb[15].mxu0 }
 0x15e   : > { %v3216_v43 = vpop.f32.mrb[15].mxu1 }
 0x17a   : > { %v1259_v45 = vpop.f32.mrb[16].mxu0 }
 0x17b   : > { %v1265_v46 = vadd.f32 %v1259_v45, %v1143_v40  ;;  %v1400_v47 = vpop.f32.mrb[16].mxu1  ;;  %v3235_v48 = vpop.f32.mrb[17].mxu0 }
 0x17c   : > { %v3255_v49 = vpop.f32.mrb[17].mxu1  ;;  %v1262_v50 = vpop.f32.mrb[18].mxu0 }
 0x17d   : > { %v1272_v51 = vadd.f32 %v2685_v44, %v1265_v46  ;;  %v1403_v52 = vpop.f32.mrb[18].mxu1  ;;  %v3236_v53 = vpop.f32.mrb[19].mxu0 }
 0x17e   : > { %v3256_v54 = vpop.f32.mrb[19].mxu1 }
 0x17f   : > { %v1273_v55 = vmax.f32 %v1272_v51, 0.0 }
 0x181   : > { %v1274_v56 = vpack.c.bf16 %v1273_v55, %v1273_v55 }
 0x183   : > { %1275 = vst [vmem:[%s4308_s25] sm:$0x1] %v1274_v56 }
 0x19a   : > { %v1488_v57 = vpop.f32.mrb[20].mxu0 }
 0x19b   : > { %v1489_v58 = vadd.f32 %v1488_v57, %v1400_v47  ;;  %v1608_v59 = vpop.f32.mrb[20].mxu1  ;;  %v3275_v60 = vpop.f32.mrb[21].mxu0 }
 0x19c   : > { %v3295_v61 = vpop.f32.mrb[21].mxu1  ;;  %v1491_v62 = vpop.f32.mrb[22].mxu0 }
 0x19d   : > { %v1614_v63 = vadd.f32 %v1608_v59, %v1489_v58  ;;  %v1611_v0 = vpop.f32.mrb[22].mxu1  ;;  %v3276_v2 = vpop.f32.mrb[23].mxu0 }
 0x19e   : > { %v3296_v3 = vpop.f32.mrb[23].mxu1 }
 0x1ba   : > { %v1719_v4 = vpop.f32.mrb[24].mxu0 }
 0x1bb   : > { %v1725_v5 = vadd.f32 %v1719_v4, %v1614_v63  ;;  %v1828_v6 = vpop.f32.mrb[24].mxu1  ;;  %v3315_v7 = vpop.f32.mrb[25].mxu0 }
 0x1bc   : > { %v3335_v8 = vpop.f32.mrb[25].mxu1  ;;  %v1722_v9 = vpop.f32.mrb[26].mxu0 }
 0x1bd   : > { %v1834_v32 = vadd.f32 %v1828_v6, %v1725_v5  ;;  %v1831_v10 = vpop.f32.mrb[26].mxu1  ;;  %v3316_v11 = vpop.f32.mrb[27].mxu0 }
 0x1be   : > { %v3336_v12 = vpop.f32.mrb[27].mxu1 }
 0x1da   : > { %v1949_v13 = vpop.f32.mrb[28].mxu0 }
 0x1db   : > { %v1955_v14 = vadd.f32 %v1949_v13, %v1834_v32  ;;  %v2059_v15 = vpop.f32.mrb[28].mxu1  ;;  %v3355_v16 = vpop.f32.mrb[29].mxu0 }
 0x1dc   : > { %v3375_v17 = vpop.f32.mrb[29].mxu1  ;;  %v1952_v18 = vpop.f32.mrb[30].mxu0 }
 0x1dd   : > { %v2065_v19 = vadd.f32 %v2059_v15, %v1955_v14  ;;  %v2062_v20 = vpop.f32.mrb[30].mxu1  ;;  %v3356_v21 = vpop.f32.mrb[31].mxu0 }
 0x1de   : > { %v3376_v22 = vpop.f32.mrb[31].mxu1 }
 0x1fa   : > { %v2168_v23 = vpop.f32.mrb[32].mxu0 }
 0x1fb   : > { %v2174_v24 = vadd.f32 %v2168_v23, %v2065_v19  ;;  %v2289_v25 = vpop.f32.mrb[32].mxu1  ;;  %v3395_v26 = vpop.f32.mrb[33].mxu0 }
 0x1fc   : > { %v3415_v27 = vpop.f32.mrb[33].mxu1  ;;  %v2171_v28 = vpop.f32.mrb[34].mxu0 }
 0x1fd   : > { %v2295_v29 = vadd.f32 %v2289_v25, %v2174_v24  ;;  %v2292_v30 = vpop.f32.mrb[34].mxu1  ;;  %v3396_v31 = vpop.f32.mrb[35].mxu0 }
 0x1fe   : > { %v3416_v33 = vpop.f32.mrb[35].mxu1 }
 0x1ff   : > { %v2296_v34 = vadd.f32 %v2685_v44, %v2295_v29 }
 0x201   : > { %v2297_v35 = vmax.f32 %v2296_v34, 0.0 }
 0x203   : > { %v2298_v36 = vpack.c.bf16 %v2297_v35, %v2297_v35 }
 0x205   : > { %2892 = vst [vmem:[%s4308_s25 + $0x1] sm:$0x1] %v2298_v36 }
 0x206 PF: > { %s13_s14 = sadd.s32 1, %s3611_s14   ;;  %s4325_s12 = smov %s3607_s13 }
 0x207   : > { %p10_p5 = scmp.ge.s32.totalorder %s13_s14, 4   ;;  %s4326_s13 = smov %s4328_s15 }
 0x209   :  { %12 = sbr.rel (!%p10_p5) target bundleno = 2 (0x2), region = 89 }

// kernel: _lambda_.7
= control target key start
LH: loop header
LB: loop body
LE: loop exit
PB: predicated region body
PF: predicated region fallthrough
CT: control target
= control target key end

     0   :  { %s6799_s12 = smov 0   ;;  %s6801_s13 = smov 0   ;;  %s8113_s0 = inlined_call_operand.vmem [shape: bf16[2,20,5,128], index: 0, kind: input, shape index: {}]   ;;  %s8114_s1 = inlined_call_operand.vmem [shape: bf16[9,128,128], index: 1, kind: input, shape index: {}]   ;;  %s8115_s2 = inlined_call_operand.vmem [shape: f32[1,128], index: 2, kind: input, shape index: {}]   ;;  %s8116_s3 = inlined_call_operand.vmem [shape: bf16[2,4,4,128], index: 3, kind: output, shape index: {}]  }
   0x1   :  { %s6803_s14 = smov 0  }
   0x2 LB: > { %s32_s15 = sadd.s32 1, %s6771_s13  ;;  %p4535_p0 = scmp.ge.s32.totalorder %s6775_s14, 1  ;;  %s6775_s14 = sphi %s6803_s14, %s13_s14   ;;  %s6771_s13 = sphi %s6801_s13, %s8118_s13   ;;  %s6767_s12 = sphi %s6799_s12, %s8117_s12  }
   0x3   : > { %p34_p1 = scmp.ge.s32.totalorder %s32_s15, 2  ;;  %p177_p2 = scmp.lt.s32.totalorder %s6775_s14, 3 }
   0x5   : > { %s8120_s15 = smov (%p34_p1, %s32_s15), 0  ;;  %p178_p3 = pnand %p4535_p0, %p177_p2 }
   0x6   : > { %v6452_v0 = vld [vmem:[%s8114_s1 + $0x40] sm:$0xff] (!%p178_p3)   ;;  %v6777_v1 = vmov (!%p178_p3), 0.0   ;;  %v6454_v3 = vld [vmem:[%s8114_s1 + $0x48] sm:$0xff] (!%p178_p3)   ;;  %vm6778_vm0 = vmmov (!%p178_p3), 0   ;;  %v6456_v5 = vld [vmem:[%s8114_s1 + $0x50] sm:$0xff] (!%p178_p3)   ;;  %p215_p4 = scmp.lt.s32.totalorder (!%p178_p3), %s6767_s12, 1 }
   0x7   : > { %181 = sbr.rel (%p178_p3) target bundleno = 806 (0x326), region = 32  ;;  %5705 = vmatprep.subr.bf16.mxu0 (!%p178_p3), %v6777_v1  ;;  %5725 = vmatprep.subr.bf16.mxu1 (!%p178_p3), %v6777_v1  ;;  %v6453_v2 = vld [vmem:[%s8114_s1] sm:$0xff] (!%p178_p3)   ;;  %v6455_v4 = vld [vmem:[%s8114_s1 + $0x8] sm:$0xff] (!%p178_p3)   ;;  %v6457_v6 = vld [vmem:[%s8114_s1 + $0x10] sm:$0xff] (!%p178_p3)  }
   0x8   : > { %5706 = vmatpush3.bf16.msra.mxu0 (!%p178_p3), %v6452_v0  ;;  %5721 = vmatprep.mubr.msk.bf16.mxu0 (!%p178_p3), %vm6778_vm0, %v6777_v1  ;;  %v6458_v7 = vld [vmem:[%s8114_s1 + $0x58] sm:$0xff] (!%p178_p3)   ;;  %v6460_v9 = vld [vmem:[%s8114_s1 + $0x60] sm:$0xff] (!%p178_p3)   ;;  %v6462_v11 = vld [vmem:[%s8114_s1 + $0x68] sm:$0xff] (!%p178_p3)  }
   0x9   : > { %5726 = vmatpush3.bf16.msra.mxu1 (!%p178_p3), %v6453_v2  ;;  %5707 = vmatprep.subr.bf16.mxu0 (!%p178_p3), %v6777_v1  ;;  %v6459_v8 = vld [vmem:[%s8114_s1 + $0x18] sm:$0xff] (!%p178_p3)   ;;  %v6461_v10 = vld [vmem:[%s8114_s1 + $0x20] sm:$0xff] (!%p178_p3)   ;;  %v6463_v12 = vld [vmem:[%s8114_s1 + $0x28] sm:$0xff] (!%p178_p3)  }
   0xa   : > { %5727 = vmatprep.subr.bf16.mxu1 (!%p178_p3), %v6777_v1  ;;  %5741 = vmatprep.mubr.msk.bf16.mxu1 (!%p178_p3), %vm6778_vm0, %v6777_v1  ;;  %v6464_v13 = vld [vmem:[%s8114_s1 + $0x70] sm:$0xff] (!%p178_p3)   ;;  %v6466_v15 = vld [vmem:[%s8114_s1 + $0x78] sm:$0xff] (!%p178_p3)   ;;  %v6469_v19 = vld [vmem:[%s8114_s1 + $0x80] sm:$0xff] (!%p178_p3)  }
   0xb   : > { %v6465_v14 = vld [vmem:[%s8114_s1 + $0x30] sm:$0xff] (!%p178_p3)   ;;  %v6467_v16 = vld [vmem:[%s8114_s1 + $0x38] sm:$0xff] (!%p178_p3)   ;;  %v6470_v20 = vld [vmem:[%s8114_s1 + $0xc0] sm:$0xff] (!%p178_p3)  }
   0xc   : > { %5708 = vmatpush3.bf16.msra.mxu0 (!%p178_p3), %v6454_v3  ;;  %v6471_v21 = vld [vmem:[%s8114_s1 + $0x88] sm:$0xff] (!%p178_p3)   ;;  %v6473_v23 = vld [vmem:[%s8114_s1 + $0x90] sm:$0xff] (!%p178_p3)   ;;  %v6475_v25 = vld [vmem:[%s8114_s1 + $0x98] sm:$0xff] (!%p178_p3)  }
   0xd   : > { %5728 = vmatpush3.bf16.msra.mxu1 (!%p178_p3), %v6455_v4  ;;  %5709 = vmatprep.subr.bf16.mxu0 (!%p178_p3), %v6777_v1  ;;  %v6472_v22 = vld [vmem:[%s8114_s1 + $0xc8] sm:$0xff] (!%p178_p3)   ;;  %v6474_v24 = vld [vmem:[%s8114_s1 + $0xd0] sm:$0xff] (!%p178_p3)   ;;  %v6476_v26 = vld [vmem:[%s8114_s1 + $0xd8] sm:$0xff] (!%p178_p3)  }
   0xe   : > { %5729 = vmatprep.subr.bf16.mxu1 %v6777_v1  ;;  %s8122_s12 = smov (!%p215_p4, %s6767_s12), 1  ;;  %v6477_v27 = vld [vmem:[%s8114_s1 + $0xa0] sm:$0xff]   ;;  %v6479_v30 = vld [vmem:[%s8114_s1 + $0xa8] sm:$0xff]   ;;  %v6481_v33 = vld [vmem:[%s8114_s1 + $0xb0] sm:$0xff]  }
   0xf   : > { %s6425_s17 = smul.u32 80, %s8122_s12  ;;  %v6478_v28 = vld [vmem:[%s8114_s1 + $0xe0] sm:$0xff]   ;;  %v6480_v31 = vld [vmem:[%s8114_s1 + $0xe8] sm:$0xff]   ;;  %v6482_v34 = vld [vmem:[%s8114_s1 + $0xf0] sm:$0xff]   ;;  %s5380_s25 = sshll.u32 %s8122_s12, 3 }
  0x10   : > { %5710 = vmatpush3.bf16.msra.mxu0 %v6456_v5  ;;  %v6483_v37 = vld [vmem:[%s8114_s1 + $0xb8] sm:$0xff]   ;;  %v6486_v41 = vld [vmem:[%s8114_s1 + $0x100] sm:$0xff]   ;;  %v6488_v43 = vld [vmem:[%s8114_s1 + $0x108] sm:$0xff]   ;;  %s7664_s29 = scalar_lea.vmem %s8116_s3, %s5380_s25 }
  0x11   : > { %5730 = vmatpush3.bf16.msra.mxu1 %v6457_v6  ;;  %5711 = vmatprep.subr.bf16.mxu0 %v6777_v1  ;;  %s6887_s24 = scalar_lea.vmem %s8113_s0, %s6425_s17  ;;  %v6484_v38 = vld [vmem:[%s8114_s1 + $0xf8] sm:$0xff]   ;;  %v6487_v42 = vld [vmem:[%s8114_s1 + $0x140] sm:$0xff]   ;;  %v6489_v44 = vld [vmem:[%s8114_s1 + $0x148] sm:$0xff]  }
  0x12   : > { %5731 = vmatprep.subr.bf16.mxu1 %v6777_v1  ;;  %v4539_v17 = vld [vmem:[%s6887_s24 + $0x4] sm:$0x7]  ;;  %v245_v18 = vld [vmem:[%s6887_s24] sm:$0x7]  ;;  %v4597_v40 = vld [vmem:[%s6887_s24 + $0x8] sm:$0x7] }
  0x13   : > { %v4588_v29 = vcombine.low %v245_v18, %v245_v18  ;;  %v6490_v45 = vld [vmem:[%s8114_s1 + $0x110] sm:$0xff]   ;;  %v6492_v47 = vld [vmem:[%s8114_s1 + $0x118] sm:$0xff]   ;;  %v6494_v49 = vld [vmem:[%s8114_s1 + $0x120] sm:$0xff]   ;;  %v4663_v51 = vcombine.low %v4597_v40, %v4597_v40 }
  0x14   : > { %5712 = vmatpush3.bf16.msra.mxu0 %v6458_v7  ;;  %v6491_v46 = vld [vmem:[%s8114_s1 + $0x150] sm:$0xff]   ;;  %v6493_v48 = vld [vmem:[%s8114_s1 + $0x158] sm:$0xff]   ;;  %v6495_v50 = vld [vmem:[%s8114_s1 + $0x160] sm:$0xff]  }
  0x15   : > { %5732 = vmatpush3.bf16.msra.mxu1 %v6459_v8  ;;  %5713 = vmatprep.subr.bf16.mxu0 %v6777_v1  ;;  %v482_v32 = vshll.u32 %v4588_v29, 16  ;;  %v480_v35 = vshrl.u32 %v4588_v29, 16  ;;  %v6496_v52 = vld [vmem:[%s8114_s1 + $0x128] sm:$0xff]   ;;  %v821_v54 = vshll.u32 %v4663_v51, 16  ;;  %v6498_v55 = vld [vmem:[%s8114_s1 + $0x130] sm:$0xff]   ;;  %v819_v57 = vshrl.u32 %v4663_v51, 16 }
  0x16   : > { %5733 = vmatprep.subr.bf16.mxu1 %v6777_v1  ;;  %v6497_v53 = vld [vmem:[%s8114_s1 + $0x168] sm:$0xff]   ;;  %v6499_v56 = vld [vmem:[%s8114_s1 + $0x170] sm:$0xff]   ;;  %v6500_v59 = vld [vmem:[%s8114_s1 + $0x138] sm:$0xff]  }
  0x17   : > { %v484_v36 = vrot.slane %v482_v32, 1  ;;  %v823_v58 = vrot.slane %v821_v54, 1  ;;  %v6501_v60 = vld [vmem:[%s8114_s1 + $0x178] sm:$0xff]   ;;  %v4622_v61 = vld [vmem:[%s6887_s24 + $0xc] sm:$0x7]  ;;  %v6502_v63 = vld [vmem:[%s8114_s1 + $0x180] sm:$0xff]  }
  0x18   : > { %5714 = vmatpush3.bf16.msra.mxu0 %v6460_v9  ;;  %v6503_v0 = vld [vmem:[%s8114_s1 + $0x1c0] sm:$0xff]   ;;  %v6504_v2 = vld [vmem:[%s8114_s1 + $0x188] sm:$0xff]   ;;  %v6506_v4 = vld [vmem:[%s8114_s1 + $0x190] sm:$0xff]  }
  0x19   : > { %5734 = vmatpush3.bf16.msra.mxu1 %v6461_v10  ;;  %5715 = vmatprep.subr.bf16.mxu0 %v6777_v1  ;;  %v485_v39 = vor.u32 %v484_v36, %v480_v35  ;;  %v824_v62 = vor.u32 %v823_v58, %v819_v57  ;;  %v6505_v3 = vld [vmem:[%s8114_s1 + $0x1c8] sm:$0xff]   ;;  %v6507_v5 = vld [vmem:[%s8114_s1 + $0x1d0] sm:$0xff]   ;;  %v6508_v6 = vld [vmem:[%s8114_s1 + $0x198] sm:$0xff]  }
  0x1a   : > { %5735 = vmatprep.subr.bf16.mxu1 %v6777_v1  ;;  %v6509_v7 = vld [vmem:[%s8114_s1 + $0x1d8] sm:$0xff]   ;;  %v6510_v8 = vld [vmem:[%s8114_s1 + $0x1a0] sm:$0xff]   ;;  %v6512_v10 = vld [vmem:[%s8114_s1 + $0x1a8] sm:$0xff]  }
  0x1b   : > { %v6511_v9 = vld [vmem:[%s8114_s1 + $0x1e0] sm:$0xff]   ;;  %v6531_v32 = vld [vmem:[%s8114_s1 + $0x230] sm:$0xff]   ;;  %v6533_v35 = vld [vmem:[%s8114_s1 + $0x238] sm:$0xff]  }
  0x1c   : > { %5716 = vmatpush3.bf16.msra.mxu0 %v6462_v11  ;;  %v6513_v11 = vld [vmem:[%s8114_s1 + $0x1e8] sm:$0xff]   ;;  %v6547_v54 = vld [vmem:[%s8114_s1 + $0x30] sm:$0xff]   ;;  %v6549_v57 = vld [vmem:[%s8114_s1 + $0x38] sm:$0xff]  }
  0x1d   : > { %5736 = vmatpush3.bf16.msra.mxu1 %v6463_v12  ;;  %5717 = vmatprep.subr.bf16.mxu0 %v6777_v1  ;;  %v6514_v12 = vld [vmem:[%s8114_s1 + $0x1b0] sm:$0xff]   ;;  %v6545_v51 = vld [vmem:[%s8114_s1 + $0x28] sm:$0xff]   ;;  %v6550_v58 = vld [vmem:[%s8114_s1 + $0xb8] sm:$0xff]  }
  0x1e   : > { %5737 = vmatprep.subr.bf16.mxu1 %v6777_v1 }
  0x20   : > { %5718 = vmatpush3.bf16.msra.mxu0 %v6464_v13  ;;  %v6515_v13 = vld [vmem:[%s8114_s1 + $0x1f0] sm:$0xff]  }
  0x21   : > { %5738 = vmatpush3.bf16.msra.mxu1 %v6465_v14  ;;  %5719 = vmatprep.subr.bf16.mxu0 %v6777_v1  ;;  %v6516_v14 = vld [vmem:[%s8114_s1 + $0x1b8] sm:$0xff]  }
  0x22   : > { %5739 = vmatprep.subr.bf16.mxu1 %v6777_v1 }
  0x24   : > { %5720 = vmatpush3.bf16.msra.mxu0 %v6466_v15  ;;  %v6517_v15 = vld [vmem:[%s8114_s1 + $0x1f8] sm:$0xff]  }
  0x25   : > { %5740 = vmatpush3.bf16.msra.mxu1 %v6467_v16  ;;  %5745 = vmatprep.subr.bf16.mxu0 %v6777_v1  ;;  %v4672_v16 = vld [vmem:[%s6887_s24 + $0x10] sm:$0x7] }
  0x26   : > { %5765 = vmatprep.subr.bf16.mxu1 %v6777_v1  ;;  %v4738_v29 = vcombine.low %v4672_v16, %v4672_v16 }
  0x27   : > { %5722 = vmatmul.mubr.bf16.vlgmr.msra.gmra.mrb[0].mxu0 %v4539_v17  ;;  %v4697_v17 = vld [vmem:[%s6887_s24 + $0x14] sm:$0x7] }
  0x28   : > { %5742 = vmatmul.mubr.bf16.vlgmr.msra.gmra.mrb[0].mxu1 %v245_v18  ;;  %5746 = vmatpush3.bf16.msra.mxu0 %v6469_v19  ;;  %v6519_v18 = vld [vmem:[%s8114_s1 + $0x200] sm:$0xff]  }
  0x29   : > { %5766 = vmatpush3.bf16.msra.mxu1 %v6470_v20  ;;  %5747 = vmatprep.subr.bf16.mxu0 %v6777_v1  ;;  %v6520_v19 = vld [vmem:[%s8114_s1 + $0x40] sm:$0xff]   ;;  %v6521_v20 = vld [vmem:[%s8114_s1 + $0x208] sm:$0xff]  }
  0x2a   : > { %5767 = vmatprep.subr.bf16.mxu1 %v6777_v1  ;;  %5761 = vmatprep.mubr.msk.bf16.mxu0 %vm6778_vm0, %v6777_v1 }
  0x2b   : > { %5781 = vmatprep.mubr.msk.bf16.mxu1 %vm6778_vm0, %v6777_v1 }
  0x2c   : > { %5748 = vmatpush3.bf16.msra.mxu0 %v6471_v21  ;;  %v6522_v21 = vld [vmem:[%s8114_s1 + $0x48] sm:$0xff]  }
  0x2d   : > { %5768 = vmatpush3.bf16.msra.mxu1 %v6472_v22  ;;  %5749 = vmatprep.subr.bf16.mxu0 %v6777_v1  ;;  %v6523_v22 = vld [vmem:[%s8114_s1 + $0x210] sm:$0xff]  }
  0x2e   : > { %5769 = vmatprep.subr.bf16.mxu1 %v6777_v1 }
  0x30   : > { %5750 = vmatpush3.bf16.msra.mxu0 %v6473_v23  ;;  %v6524_v23 = vld [vmem:[%s8114_s1 + $0x50] sm:$0xff]  }
  0x31   : > { %5770 = vmatpush3.bf16.msra.mxu1 %v6474_v24  ;;  %5751 = vmatprep.subr.bf16.mxu0 %v6777_v1  ;;  %v6525_v24 = vld [vmem:[%s8114_s1 + $0x218] sm:$0xff]  }
  0x32   : > { %5771 = vmatprep.subr.bf16.mxu1 %v6777_v1 }
  0x34   : > { %5752 = vmatpush3.bf16.msra.mxu0 %v6475_v25  ;;  %v6526_v25 = vld [vmem:[%s8114_s1 + $0x58] sm:$0xff]  }
  0x35   : > { %5772 = vmatpush3.bf16.msra.mxu1 %v6476_v26  ;;  %5753 = vmatprep.subr.bf16.mxu0 %v6777_v1  ;;  %v6527_v26 = vld [vmem:[%s8114_s1 + $0x220] sm:$0xff]  }
  0x36   : > { %5773 = vmatprep.subr.bf16.mxu1 %v6777_v1 }
  0x38   : > { %5754 = vmatpush3.bf16.msra.mxu0 %v6477_v27  ;;  %v6528_v27 = vld [vmem:[%s8114_s1 + $0x60] sm:$0xff]  }
  0x39   : > { %5774 = vmatpush3.bf16.msra.mxu1 %v6478_v28  ;;  %5755 = vmatprep.subr.bf16.mxu0 %v6777_v1  ;;  %v6529_v28 = vld [vmem:[%s8114_s1 + $0x228] sm:$0xff]  }
  0x3a   : > { %5775 = vmatprep.subr.bf16.mxu1 %v6777_v1 }
  0x3c   : > { %5756 = vmatpush3.bf16.msra.mxu0 %v6479_v30  ;;  %v6530_v30 = vld [vmem:[%s8114_s1 + $0x68] sm:$0xff]  }
  0x3d   : > { %5776 = vmatpush3.bf16.msra.mxu1 %v6480_v31  ;;  %5757 = vmatprep.subr.bf16.mxu0 %v6777_v1  ;;  %v1159_v31 = vshll.u32 %v4738_v29, 16 }
  0x3e   : > { %5777 = vmatprep.subr.bf16.mxu1 %v6777_v1 }
  0x3f   : > { %v1161_v36 = vrot.slane %v1159_v31, 1 }
  0x40   : > { %5758 = vmatpush3.bf16.msra.mxu0 %v6481_v33  ;;  %v6532_v33 = vld [vmem:[%s8114_s1 + $0x70] sm:$0xff]  }
  0x41   : > { %5778 = vmatpush3.bf16.msra.mxu1 %v6482_v34  ;;  %5759 = vmatprep.subr.bf16.mxu0 %v6777_v1  ;;  %v1157_v34 = vshrl.u32 %v4738_v29, 16  ;;  %v6580_v29 = vld [vmem:[%s8114_s1 + $0x1a8] sm:$0xff]  }
  0x42   : > { %5779 = vmatprep.subr.bf16.mxu1 %v6777_v1 }
  0x44   : > { %5760 = vmatpush3.bf16.msra.mxu0 %v6483_v37  ;;  %v6534_v37 = vld [vmem:[%s8114_s1 + $0x78] sm:$0xff]  }
  0x45   : > { %5780 = vmatpush3.bf16.msra.mxu1 %v6484_v38  ;;  %5785 = vmatprep.subr.bf16.mxu0 %v6777_v1  ;;  %v1162_v38 = vor.u32 %v1161_v36, %v1157_v34  ;;  %v6581_v34 = vld [vmem:[%s8114_s1 + $0x170] sm:$0xff]  }
  0x46   : > { %5805 = vmatprep.subr.bf16.mxu1 %v6777_v1 }
  0x47   : > { %5762 = vmatmul.mubr.bf16.vlgmr.msra.gmra.mrb[4].mxu0 %v485_v39  ;;  %v4749_v39 = vld [vmem:[%s6887_s24 + $0x14] sm:$0x7] }
  0x48   : > { %5782 = vmatmul.mubr.bf16.vlgmr.msra.gmra.mrb[4].mxu1 %v4597_v40  ;;  %5786 = vmatpush3.bf16.msra.mxu0 %v6486_v41  ;;  %v6535_v40 = vld [vmem:[%s8114_s1] sm:$0xff]  }
  0x49   : > { %5806 = vmatpush3.bf16.msra.mxu1 %v6487_v42  ;;  %5787 = vmatprep.subr.bf16.mxu0 %v6777_v1  ;;  %v6536_v41 = vld [vmem:[%s8114_s1 + $0x80] sm:$0xff]   ;;  %v6537_v42 = vld [vmem:[%s8114_s1 + $0x8] sm:$0xff]  }
  0x4a   : > { %5807 = vmatprep.subr.bf16.mxu1 %v6777_v1  ;;  %5801 = vmatprep.mubr.msk.bf16.mxu0 %vm6778_vm0, %v6777_v1 }
  0x4b   : > { %5821 = vmatprep.mubr.msk.bf16.mxu1 %vm6778_vm0, %v6777_v1 }
  0x4c   : > { %5788 = vmatpush3.bf16.msra.mxu0 %v6488_v43  ;;  %v6538_v43 = vld [vmem:[%s8114_s1 + $0x88] sm:$0xff]  }
  0x4d   : > { %5808 = vmatpush3.bf16.msra.mxu1 %v6489_v44  ;;  %5789 = vmatprep.subr.bf16.mxu0 %v6777_v1  ;;  %v6539_v44 = vld [vmem:[%s8114_s1 + $0x10] sm:$0xff]  }
  0x4e   : > { %5809 = vmatprep.subr.bf16.mxu1 %v6777_v1 }
  0x50   : > { %5790 = vmatpush3.bf16.msra.mxu0 %v6490_v45  ;;  %v6540_v45 = vld [vmem:[%s8114_s1 + $0x90] sm:$0xff]  }
  0x51   : > { %5810 = vmatpush3.bf16.msra.mxu1 %v6491_v46  ;;  %5791 = vmatprep.subr.bf16.mxu0 %v6777_v1  ;;  %v6541_v46 = vld [vmem:[%s8114_s1 + $0x18] sm:$0xff]  }
  0x52   : > { %5811 = vmatprep.subr.bf16.mxu1 %v6777_v1 }
  0x54   : > { %5792 = vmatpush3.bf16.msra.mxu0 %v6492_v47  ;;  %v6542_v47 = vld [vmem:[%s8114_s1 + $0x98] sm:$0xff]  }
  0x55   : > { %5812 = vmatpush3.bf16.msra.mxu1 %v6493_v48  ;;  %5793 = vmatprep.subr.bf16.mxu0 %v6777_v1  ;;  %v6543_v48 = vld [vmem:[%s8114_s1 + $0x20] sm:$0xff]  }
  0x56   : > { %5813 = vmatprep.subr.bf16.mxu1 %v6777_v1 }
  0x58   : > { %5794 = vmatpush3.bf16.msra.mxu0 %v6494_v49  ;;  %v6544_v49 = vld [vmem:[%s8114_s1 + $0xa0] sm:$0xff]  }
  0x59   : > { %5814 = vmatpush3.bf16.msra.mxu1 %v6495_v50  ;;  %5795 = vmatprep.subr.bf16.mxu0 %v6777_v1  ;;  %v4748_v50 = vld [vmem:[%s6887_s24 + $0x10] sm:$0x7] }
  0x5a   : > { %5815 = vmatprep.subr.bf16.mxu1 %v6777_v1 }
  0x5c   : > { %5796 = vmatpush3.bf16.msra.mxu0 %v6496_v52  ;;  %v6546_v52 = vld [vmem:[%s8114_s1 + $0xa8] sm:$0xff]  }
  0x5d   : > { %5816 = vmatpush3.bf16.msra.mxu1 %v6497_v53  ;;  %5797 = vmatprep.subr.bf16.mxu0 %v6777_v1  ;;  %v4798_v53 = vcombine.low %v4748_v50, %v4748_v50 }
  0x5e   : > { %5817 = vmatprep.subr.bf16.mxu1 %v6777_v1 }
  0x60   : > { %5798 = vmatpush3.bf16.msra.mxu0 %v6498_v55  ;;  %v6548_v55 = vld [vmem:[%s8114_s1 + $0xb0] sm:$0xff]  }
  0x61   : > { %5818 = vmatpush3.bf16.msra.mxu1 %v6499_v56  ;;  %5799 = vmatprep.subr.bf16.mxu0 %v6777_v1  ;;  %v1503_v56 = vshll.u32 %v4798_v53, 16 }
  0x62   : > { %5819 = vmatprep.subr.bf16.mxu1 %v6777_v1 }
  0x64   : > { %5800 = vmatpush3.bf16.msra.mxu0 %v6500_v59  ;;  %v1501_v59 = vshrl.u32 %v4798_v53, 16  ;;  %v6591_v53 = vld [vmem:[%s8114_s1 + $0x210] sm:$0xff]  }
  0x65   : > { %5820 = vmatpush3.bf16.msra.mxu1 %v6501_v60  ;;  %5825 = vmatprep.subr.bf16.mxu0 %v6777_v1  ;;  %v1505_v60 = vrot.slane %v1503_v56, 1  ;;  %v6594_v56 = vld [vmem:[%s8114_s1 + $0x1e0] sm:$0xff]  }
  0x66   : > { %5845 = vmatprep.subr.bf16.mxu1 %v6777_v1 }
  0x67   : > { %5802 = vmatmul.mubr.bf16.vlgmr.msra.gmra.mrb[8].mxu0 %v4622_v61  ;;  %v6552_v61 = vld [vmem:[%s8114_s1 + $0xc0] sm:$0xff]  }
  0x68   : > { %5822 = vmatmul.mubr.bf16.vlgmr.msra.gmra.mrb[8].mxu1 %v824_v62  ;;  %5826 = vmatpush3.bf16.msra.mxu0 %v6502_v63  ;;  %v1506_v62 = vor.u32 %v1505_v60, %v1501_v59  ;;  %v6553_v63 = vld [vmem:[%s8114_s1 + $0x100] sm:$0xff]   ;;  %v6596_v59 = vld [vmem:[%s8114_s1 + $0x1e8] sm:$0xff]  }
  0x69   : > { %5846 = vmatpush3.bf16.msra.mxu1 %v6503_v0  ;;  %5827 = vmatprep.subr.bf16.mxu0 %v6777_v1  ;;  %v6554_v0 = vld [vmem:[%s8114_s1 + $0xc8] sm:$0xff]  }
  0x6a   : > { %5847 = vmatprep.subr.bf16.mxu1 %v6777_v1  ;;  %5841 = vmatprep.mubr.msk.bf16.mxu0 %vm6778_vm0, %v6777_v1  ;;  %v6597_v60 = vld [vmem:[%s8114_s1 + $0x228] sm:$0xff]  }
  0x6b   : > { %5861 = vmatprep.mubr.msk.bf16.mxu1 %vm6778_vm0, %v6777_v1 }
  0x6c   : > { %5828 = vmatpush3.bf16.msra.mxu0 %v6504_v2  ;;  %v6555_v2 = vld [vmem:[%s8114_s1 + $0x108] sm:$0xff]  }
  0x6d   : > { %5848 = vmatpush3.bf16.msra.mxu1 %v6505_v3  ;;  %5829 = vmatprep.subr.bf16.mxu0 %v6777_v1  ;;  %v6556_v3 = vld [vmem:[%s8114_s1 + $0xd0] sm:$0xff]  }
  0x6e   : > { %5849 = vmatprep.subr.bf16.mxu1 %v6777_v1 }
  0x70   : > { %5830 = vmatpush3.bf16.msra.mxu0 %v6506_v4  ;;  %v6557_v4 = vld [vmem:[%s8114_s1 + $0x110] sm:$0xff]  }
  0x71   : > { %5850 = vmatpush3.bf16.msra.mxu1 %v6507_v5  ;;  %5831 = vmatprep.subr.bf16.mxu0 %v6777_v1  ;;  %v6558_v5 = vld [vmem:[%s8114_s1 + $0xd8] sm:$0xff]  }
  0x72   : > { %5851 = vmatprep.subr.bf16.mxu1 %v6777_v1 }
  0x74   : > { %5832 = vmatpush3.bf16.msra.mxu0 %v6508_v6  ;;  %v6559_v6 = vld [vmem:[%s8114_s1 + $0x118] sm:$0xff]  }
  0x75   : > { %5852 = vmatpush3.bf16.msra.mxu1 %v6509_v7  ;;  %5833 = vmatprep.subr.bf16.mxu0 %v6777_v1  ;;  %v6560_v7 = vld [vmem:[%s8114_s1 + $0xe0] sm:$0xff]  }
  0x76   : > { %5853 = vmatprep.subr.bf16.mxu1 %v6777_v1 }
  0x78   : > { %5834 = vmatpush3.bf16.msra.mxu0 %v6510_v8  ;;  %v6561_v8 = vld [vmem:[%s8114_s1 + $0x120] sm:$0xff]  }
  0x79   : > { %5854 = vmatpush3.bf16.msra.mxu1 %v6511_v9  ;;  %5835 = vmatprep.subr.bf16.mxu0 %v6777_v1  ;;  %v6562_v9 = vld [vmem:[%s8114_s1 + $0xe8] sm:$0xff]  }
  0x7a   : > { %5855 = vmatprep.subr.bf16.mxu1 %v6777_v1 }
  0x7c   : > { %5836 = vmatpush3.bf16.msra.mxu0 %v6512_v10  ;;  %v6563_v10 = vld [vmem:[%s8114_s1 + $0x128] sm:$0xff]  }
  0x7d   : > { %5856 = vmatpush3.bf16.msra.mxu1 %v6513_v11  ;;  %5837 = vmatprep.subr.bf16.mxu0 %v6777_v1  ;;  %v6564_v11 = vld [vmem:[%s8114_s1 + $0xf0] sm:$0xff]  }
  0x7e   : > { %5857 = vmatprep.subr.bf16.mxu1 %v6777_v1 }
  0x80   : > { %5838 = vmatpush3.bf16.msra.mxu0 %v6514_v12  ;;  %v6565_v12 = vld [vmem:[%s8114_s1 + $0x130] sm:$0xff]  }
  0x81   : > { %5858 = vmatpush3.bf16.msra.mxu1 %v6515_v13  ;;  %5839 = vmatprep.subr.bf16.mxu0 %v6777_v1  ;;  %v6566_v13 = vld [vmem:[%s8114_s1 + $0xf8] sm:$0xff]  }
  0x82   : > { %5859 = vmatprep.subr.bf16.mxu1 %v6777_v1 }
  0x84   : > { %5840 = vmatpush3.bf16.msra.mxu0 %v6516_v14  ;;  %v6567_v14 = vld [vmem:[%s8114_s1 + $0x138] sm:$0xff]  }
  0x85   : > { %5860 = vmatpush3.bf16.msra.mxu1 %v6517_v15  ;;  %5865 = vmatprep.subr.bf16.mxu0 %v6777_v1  ;;  %v4807_v15 = vld [vmem:[%s6887_s24 + $0x18] sm:$0x7] }
  0x86   : > { %5885 = vmatprep.subr.bf16.mxu1 %v6777_v1 }
  0x87   : > { %5842 = vmatmul.mubr.bf16.vlgmr.msra.gmra.mrb[12].mxu0 %v4672_v16  ;;  %v6569_v16 = vld [vmem:[%s8114_s1 + $0x140] sm:$0xff]  }
  0x88   : > { %5862 = vmatmul.mubr.bf16.vlgmr.msra.gmra.mrb[12].mxu1 %v4697_v17  ;;  %5866 = vmatpush3.bf16.msra.mxu0 %v6519_v18  ;;  %v4832_v17 = vld [vmem:[%s6887_s24 + $0x1c] sm:$0x7]  ;;  %v6570_v18 = vld [vmem:[%s8114_s1 + $0x180] sm:$0xff]  }
  0x89   : > { %5886 = vmatpush3.bf16.msra.mxu1 %v6520_v19  ;;  %5867 = vmatprep.subr.bf16.mxu0 %v6777_v1  ;;  %v6571_v19 = vld [vmem:[%s8114_s1 + $0x148] sm:$0xff]  }
  0x8a   : > { %5887 = vmatprep.subr.bf16.mxu1 %v6777_v1  ;;  %5881 = vmatprep.mubr.msk.bf16.mxu0 %vm6778_vm0, %v6777_v1 }
  0x8b   : > { %5901 = vmatprep.mubr.msk.bf16.mxu1 %vm6778_vm0, %v6777_v1 }
  0x8c   : > { %5868 = vmatpush3.bf16.msra.mxu0 %v6521_v20  ;;  %v6572_v20 = vld [vmem:[%s8114_s1 + $0x188] sm:$0xff]  }
  0x8d   : > { %5888 = vmatpush3.bf16.msra.mxu1 %v6522_v21  ;;  %5869 = vmatprep.subr.bf16.mxu0 %v6777_v1  ;;  %v6573_v21 = vld [vmem:[%s8114_s1 + $0x150] sm:$0xff]  }
  0x8e   : > { %5889 = vmatprep.subr.bf16.mxu1 %v6777_v1 }
  0x90   : > { %5870 = vmatpush3.bf16.msra.mxu0 %v6523_v22  ;;  %v6574_v22 = vld [vmem:[%s8114_s1 + $0x190] sm:$0xff]  }
  0x91   : > { %5890 = vmatpush3.bf16.msra.mxu1 %v6524_v23  ;;  %5871 = vmatprep.subr.bf16.mxu0 %v6777_v1  ;;  %v6575_v23 = vld [vmem:[%s8114_s1 + $0x158] sm:$0xff]  }
  0x92   : > { %5891 = vmatprep.subr.bf16.mxu1 %v6777_v1 }
  0x94   : > { %5872 = vmatpush3.bf16.msra.mxu0 %v6525_v24  ;;  %v6576_v24 = vld [vmem:[%s8114_s1 + $0x198] sm:$0xff]  }
  0x95   : > { %5892 = vmatpush3.bf16.msra.mxu1 %v6526_v25  ;;  %5873 = vmatprep.subr.bf16.mxu0 %v6777_v1  ;;  %v6577_v25 = vld [vmem:[%s8114_s1 + $0x160] sm:$0xff]  }
  0x96   : > { %5893 = vmatprep.subr.bf16.mxu1 %v6777_v1 }
  0x98   : > { %5874 = vmatpush3.bf16.msra.mxu0 %v6527_v26  ;;  %v6578_v26 = vld [vmem:[%s8114_s1 + $0x1a0] sm:$0xff]  }
  0x99   : > { %5894 = vmatpush3.bf16.msra.mxu1 %v6528_v27  ;;  %5875 = vmatprep.subr.bf16.mxu0 %v6777_v1  ;;  %v4873_v27 = vcombine.low %v4807_v15, %v4807_v15 }
  0x9a   : > { %5895 = vmatprep.subr.bf16.mxu1 %v6777_v1 }
  0x9c   : > { %5876 = vmatpush3.bf16.msra.mxu0 %v6529_v28  ;;  %v6579_v28 = vld [vmem:[%s8114_s1 + $0x168] sm:$0xff]  }
  0x9d   : > { %5896 = vmatpush3.bf16.msra.mxu1 %v6530_v30  ;;  %5877 = vmatprep.subr.bf16.mxu0 %v6777_v1  ;;  %v1839_v30 = vshll.u32 %v4873_v27, 16 }
  0x9e   : > { %5897 = vmatprep.subr.bf16.mxu1 %v6777_v1 }
  0xa0   : > { %5878 = vmatpush3.bf16.msra.mxu0 %v6531_v32 }
  0xa1   : > { %5898 = vmatpush3.bf16.msra.mxu1 %v6532_v33  ;;  %5879 = vmatprep.subr.bf16.mxu0 %v6777_v1 }
  0xa2   : > { %5899 = vmatprep.subr.bf16.mxu1 %v6777_v1 }
  0xa4   : > { %5880 = vmatpush3.bf16.msra.mxu0 %v6533_v35  ;;  %v6582_v35 = vld [vmem:[%s8114_s1 + $0x1b0] sm:$0xff]  }
  0xa5   : > { %5900 = vmatpush3.bf16.msra.mxu1 %v6534_v37  ;;  %5905 = vmatprep.subr.bf16.mxu0 %v6777_v1 }
  0xa6   : > { %5925 = vmatprep.subr.bf16.mxu1 %v6777_v1 }
  0xa7   : > { %5882 = vmatmul.mubr.bf16.vlgmr.msra.gmra.mrb[16].mxu0 %v1162_v38 }
  0xa8   : > { %5902 = vmatmul.mubr.bf16.vlgmr.msra.gmra.mrb[16].mxu1 %v4749_v39  ;;  %5906 = vmatpush3.bf16.msra.mxu0 %v6535_v40 }
  0xa9   : > { %5926 = vmatpush3.bf16.msra.mxu1 %v6536_v41  ;;  %5907 = vmatprep.subr.bf16.mxu0 %v6777_v1 }
  0xaa   : > { %5927 = vmatprep.subr.bf16.mxu1 %v6777_v1  ;;  %5921 = vmatprep.mubr.msk.bf16.mxu0 %vm6778_vm0, %v6777_v1 }
  0xab   : > { %5941 = vmatprep.mubr.msk.bf16.mxu1 %vm6778_vm0, %v6777_v1 }
  0xac   : > { %5908 = vmatpush3.bf16.msra.mxu0 %v6537_v42  ;;  %v1837_v42 = vshrl.u32 %v4873_v27, 16  ;;  %v6612_v27 = vld [vmem:[%s8114_s1 + $0x68] sm:$0xff]  }
  0xad   : > { %5928 = vmatpush3.bf16.msra.mxu1 %v6538_v43  ;;  %5909 = vmatprep.subr.bf16.mxu0 %v6777_v1  ;;  %v1841_v43 = vrot.slane %v1839_v30, 1 }
  0xae   : > { %5929 = vmatprep.subr.bf16.mxu1 %v6777_v1 }
  0xb0   : > { %5910 = vmatpush3.bf16.msra.mxu0 %v6539_v44  ;;  %v6583_v44 = vld [vmem:[%s8114_s1 + $0x178] sm:$0xff]  }
  0xb1   : > { %5930 = vmatpush3.bf16.msra.mxu1 %v6540_v45  ;;  %5911 = vmatprep.subr.bf16.mxu0 %v6777_v1  ;;  %v6584_v45 = vld [vmem:[%s8114_s1 + $0x1b8] sm:$0xff]  }
  0xb2   : > { %5931 = vmatprep.subr.bf16.mxu1 %v6777_v1 }
  0xb4   : > { %5912 = vmatpush3.bf16.msra.mxu0 %v6541_v46  ;;  %v1842_v46 = vor.u32 %v1841_v43, %v1837_v42  ;;  %v6617_v42 = vld [vmem:[%s8114_s1 + $0x38] sm:$0xff]   ;;  %v4959_v43 = vld [vmem:[%s6887_s24 + $0x24] sm:$0x7] }
  0xb5   : > { %5932 = vmatpush3.bf16.msra.mxu1 %v6542_v47  ;;  %5913 = vmatprep.subr.bf16.mxu0 %v6777_v1  ;;  %v4882_v47 = vld [vmem:[%s6887_s24 + $0x20] sm:$0x7] }
  0xb6   : > { %5933 = vmatprep.subr.bf16.mxu1 %v6777_v1 }
  0xb8   : > { %5914 = vmatpush3.bf16.msra.mxu0 %v6543_v48  ;;  %v6586_v48 = vld [vmem:[%s8114_s1 + $0x1c0] sm:$0xff]  }
  0xb9   : > { %5934 = vmatpush3.bf16.msra.mxu1 %v6544_v49  ;;  %5915 = vmatprep.subr.bf16.mxu0 %v6777_v1  ;;  %v6587_v49 = vld [vmem:[%s8114_s1 + $0x200] sm:$0xff]  }
  0xba   : > { %5935 = vmatprep.subr.bf16.mxu1 %v6777_v1 }
  0xbc   : > { %5916 = vmatpush3.bf16.msra.mxu0 %v6545_v51  ;;  %v6589_v51 = vld [vmem:[%s8114_s1 + $0x208] sm:$0xff]  }
  0xbd   : > { %5936 = vmatpush3.bf16.msra.mxu1 %v6546_v52  ;;  %5917 = vmatprep.subr.bf16.mxu0 %v6777_v1  ;;  %v6590_v52 = vld [vmem:[%s8114_s1 + $0x1d0] sm:$0xff]  }
  0xbe   : > { %5937 = vmatprep.subr.bf16.mxu1 %v6777_v1 }
  0xc0   : > { %5918 = vmatpush3.bf16.msra.mxu0 %v6547_v54  ;;  %v6592_v54 = vld [vmem:[%s8114_s1 + $0x1d8] sm:$0xff]  }
  0xc1   : > { %5938 = vmatpush3.bf16.msra.mxu1 %v6548_v55  ;;  %5919 = vmatprep.subr.bf16.mxu0 %v6777_v1  ;;  %v6593_v55 = vld [vmem:[%s8114_s1 + $0x218] sm:$0xff]  }
  0xc2   : > { %5939 = vmatprep.subr.bf16.mxu1 %v6777_v1 }
  0xc4   : > { %5920 = vmatpush3.bf16.msra.mxu0 %v6549_v57  ;;  %v6595_v57 = vld [vmem:[%s8114_s1 + $0x220] sm:$0xff]  }
  0xc5   : > { %5940 = vmatpush3.bf16.msra.mxu1 %v6550_v58  ;;  %5945 = vmatprep.subr.bf16.mxu0 %v6777_v1  ;;  %v4948_v58 = vcombine.low %v4882_v47, %v4882_v47 }
  0xc6   : > { %5965 = vmatprep.subr.bf16.mxu1 %v6777_v1 }
  0xc7   : > { %5922 = vmatmul.mubr.bf16.vlgmr.msra.gmra.mrb[20].mxu0 %v4748_v50  ;;  %v6588_v50 = vld [vmem:[%s8114_s1 + $0x1c8] sm:$0xff]  }
  0xc8   : > { %5942 = vmatmul.mubr.bf16.vlgmr.msra.gmra.mrb[20].mxu1 %v1506_v62  ;;  %5946 = vmatpush3.bf16.msra.mxu0 %v6552_v61 }
  0xc9   : > { %5966 = vmatpush3.bf16.msra.mxu1 %v6553_v63  ;;  %5947 = vmatprep.subr.bf16.mxu0 %v6777_v1 }
  0xca   : > { %5967 = vmatprep.subr.bf16.mxu1 %v6777_v1  ;;  %5961 = vmatprep.mubr.msk.bf16.mxu0 %vm6778_vm0, %v6777_v1 }
  0xcb   : > { %5981 = vmatprep.mubr.msk.bf16.mxu1 %vm6778_vm0, %v6777_v1 }
  0xcc   : > { %5948 = vmatpush3.bf16.msra.mxu0 %v6554_v0 }
  0xcd   : > { %5968 = vmatpush3.bf16.msra.mxu1 %v6555_v2  ;;  %5949 = vmatprep.subr.bf16.mxu0 %v6777_v1  ;;  %v2174_v2 = vshll.u32 %v4948_v58, 16 }
  0xce   : > { %5969 = vmatprep.subr.bf16.mxu1 %v6777_v1 }
  0xd0   : > { %5950 = vmatpush3.bf16.msra.mxu0 %v6556_v3 }
  0xd1   : > { %5970 = vmatpush3.bf16.msra.mxu1 %v6557_v4  ;;  %5951 = vmatprep.subr.bf16.mxu0 %v6777_v1 }
  0xd2   : > { %5971 = vmatprep.subr.bf16.mxu1 %v6777_v1 }
  0xd4   : > { %5952 = vmatpush3.bf16.msra.mxu0 %v6558_v5  ;;  %v6598_v5 = vld [vmem:[%s8114_s1 + $0x1f0] sm:$0xff]  }
  0xd5   : > { %5972 = vmatpush3.bf16.msra.mxu1 %v6559_v6  ;;  %5953 = vmatprep.subr.bf16.mxu0 %v6777_v1 }
  0xd6   : > { %5973 = vmatprep.subr.bf16.mxu1 %v6777_v1 }
  0xd8   : > { %5954 = vmatpush3.bf16.msra.mxu0 %v6560_v7 }
  0xd9   : > { %5974 = vmatpush3.bf16.msra.mxu1 %v6561_v8  ;;  %5955 = vmatprep.subr.bf16.mxu0 %v6777_v1 }
  0xda   : > { %5975 = vmatprep.subr.bf16.mxu1 %v6777_v1 }
  0xdc   : > { %5956 = vmatpush3.bf16.msra.mxu0 %v6562_v9  ;;  %v6599_v9 = vld [vmem:[%s8114_s1 + $0x230] sm:$0xff]  }
  0xdd   : > { %5976 = vmatpush3.bf16.msra.mxu1 %v6563_v10  ;;  %5957 = vmatprep.subr.bf16.mxu0 %v6777_v1 }
  0xde   : > { %5977 = vmatprep.subr.bf16.mxu1 %v6777_v1 }
  0xe0   : > { %5958 = vmatpush3.bf16.msra.mxu0 %v6564_v11  ;;  %v2172_v11 = vshrl.u32 %v4948_v58, 16 }
  0xe1   : > { %5978 = vmatpush3.bf16.msra.mxu1 %v6565_v12  ;;  %5959 = vmatprep.subr.bf16.mxu0 %v6777_v1  ;;  %v2176_v12 = vrot.slane %v2174_v2, 1  ;;  %v6631_v2 = vld [vmem:[%s8114_s1 + $0xb0] sm:$0xff]  }
  0xe2   : > { %5979 = vmatprep.subr.bf16.mxu1 %v6777_v1 }
  0xe4   : > { %5960 = vmatpush3.bf16.msra.mxu0 %v6566_v13  ;;  %v6600_v13 = vld [vmem:[%s8114_s1 + $0x1f8] sm:$0xff]  }
  0xe5   : > { %5980 = vmatpush3.bf16.msra.mxu1 %v6567_v14  ;;  %5985 = vmatprep.subr.bf16.mxu0 %v6777_v1  ;;  %v6601_v14 = vld [vmem:[%s8114_s1 + $0x238] sm:$0xff]  }
  0xe6   : > { %6005 = vmatprep.subr.bf16.mxu1 %v6777_v1 }
  0xe7   : > { %5962 = vmatmul.mubr.bf16.vlgmr.msra.gmra.mrb[24].mxu0 %v4807_v15  ;;  %v4907_v15 = vld [vmem:[%s6887_s24 + $0x24] sm:$0x7] }
  0xe8   : > { %5982 = vmatmul.mubr.bf16.vlgmr.msra.gmra.mrb[24].mxu1 %v4832_v17  ;;  %5986 = vmatpush3.bf16.msra.mxu0 %v6569_v16  ;;  %v2177_v16 = vor.u32 %v2176_v12, %v2172_v11  ;;  %v6602_v17 = vld [vmem:[%s8114_s1 + $0x40] sm:$0xff]   ;;  %v6634_v11 = vld [vmem:[%s8114_s1 + $0xf8] sm:$0xff]  }
  0xe9   : > { %6006 = vmatpush3.bf16.msra.mxu1 %v6570_v18  ;;  %5987 = vmatprep.subr.bf16.mxu0 %v6777_v1  ;;  %v6603_v18 = vld [vmem:[%s8114_s1] sm:$0xff]  }
  0xea   : > { %6007 = vmatprep.subr.bf16.mxu1 %v6777_v1  ;;  %6001 = vmatprep.mubr.msk.bf16.mxu0 %vm6778_vm0, %v6777_v1 }
  0xeb   : > { %6021 = vmatprep.mubr.msk.bf16.mxu1 %vm6778_vm0, %v6777_v1 }
  0xec   : > { %5988 = vmatpush3.bf16.msra.mxu0 %v6571_v19  ;;  %v6604_v19 = vld [vmem:[%s8114_s1 + $0x48] sm:$0xff]  }
  0xed   : > { %6008 = vmatpush3.bf16.msra.mxu1 %v6572_v20  ;;  %5989 = vmatprep.subr.bf16.mxu0 %v6777_v1  ;;  %v6605_v20 = vld [vmem:[%s8114_s1 + $0x8] sm:$0xff]  }
  0xee   : > { %6009 = vmatprep.subr.bf16.mxu1 %v6777_v1 }
  0xf0   : > { %5990 = vmatpush3.bf16.msra.mxu0 %v6573_v21  ;;  %v6606_v21 = vld [vmem:[%s8114_s1 + $0x50] sm:$0xff]  }
  0xf1   : > { %6010 = vmatpush3.bf16.msra.mxu1 %v6574_v22  ;;  %5991 = vmatprep.subr.bf16.mxu0 %v6777_v1  ;;  %v6607_v22 = vld [vmem:[%s8114_s1 + $0x10] sm:$0xff]  }
  0xf2   : > { %6011 = vmatprep.subr.bf16.mxu1 %v6777_v1 }
  0xf4   : > { %5992 = vmatpush3.bf16.msra.mxu0 %v6575_v23  ;;  %v6608_v23 = vld [vmem:[%s8114_s1 + $0x58] sm:$0xff]  }
  0xf5   : > { %6012 = vmatpush3.bf16.msra.mxu1 %v6576_v24  ;;  %5993 = vmatprep.subr.bf16.mxu0 %v6777_v1  ;;  %v6609_v24 = vld [vmem:[%s8114_s1 + $0x18] sm:$0xff]  }
  0xf6   : > { %6013 = vmatprep.subr.bf16.mxu1 %v6777_v1 }
  0xf8   : > { %5994 = vmatpush3.bf16.msra.mxu0 %v6577_v25  ;;  %v6610_v25 = vld [vmem:[%s8114_s1 + $0x60] sm:$0xff]  }
  0xf9   : > { %6014 = vmatpush3.bf16.msra.mxu1 %v6578_v26  ;;  %5995 = vmatprep.subr.bf16.mxu0 %v6777_v1  ;;  %v6611_v26 = vld [vmem:[%s8114_s1 + $0x20] sm:$0xff]  }
  0xfa   : > { %v365_v31 = vpop.f32.mrb[0].mxu0  ;;  %6015 = vmatprep.subr.bf16.mxu1 %v6777_v1 }
  0xfb   : > { %v453_v32 = vpop.f32.mrb[0].mxu1  ;;  %v5723_v33 = vpop.f32.mrb[1].mxu0 }
  0xfc   : > { %v454_v36 = vadd.f32 %v453_v32, %v365_v31  ;;  %v5743_v37 = vpop.f32.mrb[1].mxu1  ;;  %v368_v38 = vpop.f32.mrb[2].mxu0  ;;  %5996 = vmatpush3.bf16.msra.mxu0 %v6579_v28  ;;  %v6613_v28 = vld [vmem:[%s8114_s1 + $0x28] sm:$0xff]  }
  0xfd   : > { %v456_v39 = vpop.f32.mrb[2].mxu1  ;;  %6016 = vmatpush3.bf16.msra.mxu1 %v6580_v29  ;;  %v5724_v40 = vpop.f32.mrb[3].mxu0  ;;  %5997 = vmatprep.subr.bf16.mxu0 %v6777_v1 }
  0xfe   : > { %v5744_v41 = vpop.f32.mrb[3].mxu1  ;;  %6017 = vmatprep.subr.bf16.mxu1 %v6777_v1  ;;  %v6615_v39 = vld [vmem:[%s8114_s1 + $0x30] sm:$0xff]  }
  0xff   : > { %v6616_v41 = vld [vmem:[%s8114_s1 + $0x78] sm:$0xff]  }
 0x100   : > { %5998 = vmatpush3.bf16.msra.mxu0 %v6581_v34 }
 0x101   : > { %6018 = vmatpush3.bf16.msra.mxu1 %v6582_v35  ;;  %5999 = vmatprep.subr.bf16.mxu0 %v6777_v1  ;;  %v6614_v35 = vld [vmem:[%s8114_s1 + $0x70] sm:$0xff]  }
 0x102   : > { %6019 = vmatprep.subr.bf16.mxu1 %v6777_v1 }
 0x104   : > { %6000 = vmatpush3.bf16.msra.mxu0 %v6583_v44  ;;  %v6619_v44 = vld [vmem:[%s8114_s1 + $0x80] sm:$0xff]  }
 0x105   : > { %6020 = vmatpush3.bf16.msra.mxu1 %v6584_v45  ;;  %6025 = vmatprep.subr.bf16.mxu0 %v6777_v1  ;;  %v4958_v45 = vld [vmem:[%s6887_s24 + $0x20] sm:$0x7] }
 0x106   : > { %6045 = vmatprep.subr.bf16.mxu1 %v6777_v1 }
 0x107   : > { %6002 = vmatmul.mubr.bf16.vlgmr.msra.gmra.mrb[28].mxu0 %v1842_v46  ;;  %v6620_v46 = vld [vmem:[%s8114_s1 + $0xc0] sm:$0xff]  }
 0x108   : > { %6022 = vmatmul.mubr.bf16.vlgmr.msra.gmra.mrb[28].mxu1 %v4882_v47  ;;  %6026 = vmatpush3.bf16.msra.mxu0 %v6586_v48  ;;  %v6621_v47 = vld [vmem:[%s8114_s1 + $0x88] sm:$0xff]  }
 0x109   : > { %6046 = vmatpush3.bf16.msra.mxu1 %v6587_v49  ;;  %6027 = vmatprep.subr.bf16.mxu0 %v6777_v1  ;;  %v6622_v48 = vld [vmem:[%s8114_s1 + $0xc8] sm:$0xff]   ;;  %v6623_v49 = vld [vmem:[%s8114_s1 + $0x90] sm:$0xff]  }
 0x10a   : > { %6047 = vmatprep.subr.bf16.mxu1 %v6777_v1  ;;  %6041 = vmatprep.mubr.msk.bf16.mxu0 %vm6778_vm0, %v6777_v1 }
 0x10b   : > { %6061 = vmatprep.mubr.msk.bf16.mxu1 %vm6778_vm0, %v6777_v1 }
 0x10c   : > { %6028 = vmatpush3.bf16.msra.mxu0 %v6588_v50  ;;  %v6624_v50 = vld [vmem:[%s8114_s1 + $0xd0] sm:$0xff]  }
 0x10d   : > { %6048 = vmatpush3.bf16.msra.mxu1 %v6589_v51  ;;  %6029 = vmatprep.subr.bf16.mxu0 %v6777_v1  ;;  %v6625_v51 = vld [vmem:[%s8114_s1 + $0x98] sm:$0xff]  }
 0x10e   : > { %6049 = vmatprep.subr.bf16.mxu1 %v6777_v1 }
 0x110   : > { %6030 = vmatpush3.bf16.msra.mxu0 %v6590_v52  ;;  %v6626_v52 = vld [vmem:[%s8114_s1 + $0xd8] sm:$0xff]  }
 0x111   : > { %6050 = vmatpush3.bf16.msra.mxu1 %v6591_v53  ;;  %6031 = vmatprep.subr.bf16.mxu0 %v6777_v1  ;;  %v6627_v53 = vld [vmem:[%s8114_s1 + $0xa0] sm:$0xff]  }
 0x112   : > { %6051 = vmatprep.subr.bf16.mxu1 %v6777_v1 }
 0x114   : > { %6032 = vmatpush3.bf16.msra.mxu0 %v6592_v54  ;;  %v6628_v54 = vld [vmem:[%s8114_s1 + $0xe0] sm:$0xff]  }
 0x115   : > { %6052 = vmatpush3.bf16.msra.mxu1 %v6593_v55  ;;  %6033 = vmatprep.subr.bf16.mxu0 %v6777_v1  ;;  %v5008_v55 = vcombine.low %v4958_v45, %v4958_v45 }
 0x116   : > { %6053 = vmatprep.subr.bf16.mxu1 %v6777_v1 }
 0x118   : > { %6034 = vmatpush3.bf16.msra.mxu0 %v6594_v56  ;;  %v6629_v56 = vld [vmem:[%s8114_s1 + $0xa8] sm:$0xff]  }
 0x119   : > { %6054 = vmatpush3.bf16.msra.mxu1 %v6595_v57  ;;  %6035 = vmatprep.subr.bf16.mxu0 %v6777_v1  ;;  %v6630_v57 = vld [vmem:[%s8114_s1 + $0xe8] sm:$0xff]  }
 0x11a   : > { %v569_v61 = vpop.f32.mrb[4].mxu0  ;;  %6055 = vmatprep.subr.bf16.mxu1 %v6777_v1 }
 0x11b   : > { %v575_v62 = vadd.f32 %v569_v61, %v454_v36  ;;  %v681_v63 = vpop.f32.mrb[4].mxu1  ;;  %v5763_v0 = vpop.f32.mrb[5].mxu0 }
 0x11c   : > { %v5783_v3 = vpop.f32.mrb[5].mxu1  ;;  %v572_v4 = vpop.f32.mrb[6].mxu0  ;;  %6036 = vmatpush3.bf16.msra.mxu0 %v6596_v59  ;;  %v2512_v59 = vshll.u32 %v5008_v55, 16 }
 0x11d   : > { %v687_v6 = vadd.f32 %v681_v63, %v575_v62  ;;  %v684_v7 = vpop.f32.mrb[6].mxu1  ;;  %6056 = vmatpush3.bf16.msra.mxu1 %v6597_v60  ;;  %v5764_v8 = vpop.f32.mrb[7].mxu0  ;;  %6037 = vmatprep.subr.bf16.mxu0 %v6777_v1 }
 0x11e   : > { %v5784_v10 = vpop.f32.mrb[7].mxu1  ;;  %6057 = vmatprep.subr.bf16.mxu1 %v6777_v1  ;;  %v2510_v8 = vshrl.u32 %v5008_v55, 16  ;;  %v6658_v55 = vld [vmem:[%s8114_s1 + $0x198] sm:$0xff]  }
 0x11f   : > { %v6633_v10 = vld [vmem:[%s8114_s1 + $0xb8] sm:$0xff]  }
 0x120   : > { %6038 = vmatpush3.bf16.msra.mxu0 %v6598_v5 }
 0x121   : > { %6058 = vmatpush3.bf16.msra.mxu1 %v6599_v9  ;;  %6039 = vmatprep.subr.bf16.mxu0 %v6777_v1  ;;  %v2514_v9 = vrot.slane %v2512_v59, 1  ;;  %v6662_v59 = vld [vmem:[%s8114_s1 + $0x1a8] sm:$0xff]  }
 0x122   : > { %6059 = vmatprep.subr.bf16.mxu1 %v6777_v1 }
 0x123   : > { %v2515_v12 = vor.u32 %v2514_v9, %v2510_v8  ;;  %v6665_v8 = vld [vmem:[%s8114_s1 + $0x1f0] sm:$0xff]  }
 0x124   : > { %6040 = vmatpush3.bf16.msra.mxu0 %v6600_v13  ;;  %v6636_v13 = vld [vmem:[%s8114_s1 + $0x100] sm:$0xff]  }
 0x125   : > { %6060 = vmatpush3.bf16.msra.mxu1 %v6601_v14  ;;  %6065 = vmatprep.subr.bf16.mxu0 %v6777_v1  ;;  %v5017_v14 = vld [vmem:[%s6887_s24 + $0x28] sm:$0x7] }
 0x126   : > { %6085 = vmatprep.subr.bf16.mxu1 %v6777_v1 }
 0x127   : > { %6042 = vmatmul.mubr.bf16.vlgmr.msra.gmra.mrb[32].mxu0 %v4907_v15  ;;  %v6637_v15 = vld [vmem:[%s8114_s1 + $0x140] sm:$0xff]  }
 0x128   : > { %6062 = vmatmul.mubr.bf16.vlgmr.msra.gmra.mrb[32].mxu1 %v2177_v16  ;;  %6066 = vmatpush3.bf16.msra.mxu0 %v6602_v17  ;;  %v6638_v16 = vld [vmem:[%s8114_s1 + $0x108] sm:$0xff]  }
 0x129   : > { %6086 = vmatpush3.bf16.msra.mxu1 %v6603_v18  ;;  %6067 = vmatprep.subr.bf16.mxu0 %v6777_v1  ;;  %v6639_v17 = vld [vmem:[%s8114_s1 + $0x148] sm:$0xff]   ;;  %v6640_v18 = vld [vmem:[%s8114_s1 + $0x110] sm:$0xff]  }
 0x12a   : > { %6087 = vmatprep.subr.bf16.mxu1 %v6777_v1  ;;  %6081 = vmatprep.mubr.msk.bf16.mxu0 %vm6778_vm0, %v6777_v1 }
 0x12b   : > { %6101 = vmatprep.mubr.msk.bf16.mxu1 %vm6778_vm0, %v6777_v1 }
 0x12c   : > { %6068 = vmatpush3.bf16.msra.mxu0 %v6604_v19  ;;  %v6641_v19 = vld [vmem:[%s8114_s1 + $0x150] sm:$0xff]  }
 0x12d   : > { %6088 = vmatpush3.bf16.msra.mxu1 %v6605_v20  ;;  %6069 = vmatprep.subr.bf16.mxu0 %v6777_v1  ;;  %v6642_v20 = vld [vmem:[%s8114_s1 + $0x118] sm:$0xff]  }
 0x12e   : > { %6089 = vmatprep.subr.bf16.mxu1 %v6777_v1 }
 0x130   : > { %6070 = vmatpush3.bf16.msra.mxu0 %v6606_v21  ;;  %v6643_v21 = vld [vmem:[%s8114_s1 + $0x158] sm:$0xff]  }
 0x131   : > { %6090 = vmatpush3.bf16.msra.mxu1 %v6607_v22  ;;  %6071 = vmatprep.subr.bf16.mxu0 %v6777_v1  ;;  %v6644_v22 = vld [vmem:[%s8114_s1 + $0x120] sm:$0xff]  }
 0x132   : > { %6091 = vmatprep.subr.bf16.mxu1 %v6777_v1 }
 0x134   : > { %6072 = vmatpush3.bf16.msra.mxu0 %v6608_v23  ;;  %v6645_v23 = vld [vmem:[%s8114_s1 + $0x160] sm:$0xff]  }
 0x135   : > { %6092 = vmatpush3.bf16.msra.mxu1 %v6609_v24  ;;  %6073 = vmatprep.subr.bf16.mxu0 %v6777_v1  ;;  %v5083_v24 = vcombine.low %v5017_v14, %v5017_v14 }
 0x136   : > { %6093 = vmatprep.subr.bf16.mxu1 %v6777_v1 }
 0x138   : > { %6074 = vmatpush3.bf16.msra.mxu0 %v6610_v25  ;;  %v6646_v25 = vld [vmem:[%s8114_s1 + $0x128] sm:$0xff]  }
 0x139   : > { %6094 = vmatpush3.bf16.msra.mxu1 %v6611_v26  ;;  %6075 = vmatprep.subr.bf16.mxu0 %v6777_v1  ;;  %v6647_v26 = vld [vmem:[%s8114_s1 + $0x168] sm:$0xff]  }
 0x13a   : > { %v791_v29 = vpop.f32.mrb[8].mxu0  ;;  %6095 = vmatprep.subr.bf16.mxu1 %v6777_v1 }
 0x13b   : > { %v797_v30 = vadd.f32 %v791_v29, %v687_v6  ;;  %v908_v31 = vpop.f32.mrb[8].mxu1  ;;  %v5803_v32 = vpop.f32.mrb[9].mxu0  ;;  %v6632_v6 = vld [vmem:[%s8114_s1 + $0xf0] sm:$0xff]  }
 0x13c   : > { %v5823_v33 = vpop.f32.mrb[9].mxu1  ;;  %v794_v34 = vpop.f32.mrb[10].mxu0  ;;  %6076 = vmatpush3.bf16.msra.mxu0 %v6612_v27  ;;  %v7646_v27 = vld [vmem:[%s8115_s2] ss:$0 sm:$0xff]  ;;  %v2848_v32 = vshll.u32 %v5083_v24, 16 }
 0x13d   : > { %v914_v36 = vadd.f32 %v908_v31, %v797_v30  ;;  %v911_v37 = vpop.f32.mrb[10].mxu1  ;;  %6096 = vmatpush3.bf16.msra.mxu1 %v6613_v28  ;;  %v5804_v38 = vpop.f32.mrb[11].mxu0  ;;  %6077 = vmatprep.subr.bf16.mxu0 %v6777_v1 }
 0x13e   : > { %v5824_v40 = vpop.f32.mrb[11].mxu1  ;;  %6097 = vmatprep.subr.bf16.mxu1 %v6777_v1 }
 0x140   : > { %6078 = vmatpush3.bf16.msra.mxu0 %v6614_v35  ;;  %v6648_v35 = vld [vmem:[%s8114_s1 + $0x130] sm:$0xff]  }
 0x141   : > { %6098 = vmatpush3.bf16.msra.mxu1 %v6615_v39  ;;  %6079 = vmatprep.subr.bf16.mxu0 %v6777_v1  ;;  %v6649_v39 = vld [vmem:[%s8114_s1 + $0x170] sm:$0xff]  }
 0x142   : > { %6099 = vmatprep.subr.bf16.mxu1 %v6777_v1 }
 0x144   : > { %6080 = vmatpush3.bf16.msra.mxu0 %v6616_v41 }
 0x145   : > { %6100 = vmatpush3.bf16.msra.mxu1 %v6617_v42  ;;  %6105 = vmatprep.subr.bf16.mxu0 %v6777_v1  ;;  %v2846_v42 = vshrl.u32 %v5083_v24, 16 }
 0x146   : > { %6125 = vmatprep.subr.bf16.mxu1 %v6777_v1 }
 0x147   : > { %6082 = vmatmul.mubr.bf16.vlgmr.msra.gmra.mrb[36].mxu0 %v4959_v43  ;;  %v2850_v43 = vrot.slane %v2848_v32, 1 }
 0x148   : > { %6102 = vmatmul.mubr.bf16.vlgmr.msra.gmra.mrb[36].mxu1 %v4958_v45  ;;  %6106 = vmatpush3.bf16.msra.mxu0 %v6619_v44  ;;  %v6650_v44 = vld [vmem:[%s8114_s1 + $0x138] sm:$0xff]  }
 0x149   : > { %6126 = vmatpush3.bf16.msra.mxu1 %v6620_v46  ;;  %6107 = vmatprep.subr.bf16.mxu0 %v6777_v1  ;;  %v6651_v46 = vld [vmem:[%s8114_s1 + $0x178] sm:$0xff]  }
 0x14a   : > { %6127 = vmatprep.subr.bf16.mxu1 %v6777_v1  ;;  %6121 = vmatprep.mubr.msk.bf16.mxu0 %vm6778_vm0, %v6777_v1 }
 0x14b   : > { %6141 = vmatprep.mubr.msk.bf16.mxu1 %vm6778_vm0, %v6777_v1 }
 0x14c   : > { %6108 = vmatpush3.bf16.msra.mxu0 %v6621_v47  ;;  %v5042_v47 = vld [vmem:[%s6887_s24 + $0x2c] sm:$0x7] }
 0x14d   : > { %6128 = vmatpush3.bf16.msra.mxu1 %v6622_v48  ;;  %6109 = vmatprep.subr.bf16.mxu0 %v6777_v1  ;;  %v2851_v48 = vor.u32 %v2850_v43, %v2846_v42  ;;  %v6683_v43 = vld [vmem:[%s8114_s1 + $0x238] sm:$0xff]  }
 0x14e   : > { %6129 = vmatprep.subr.bf16.mxu1 %v6777_v1 }
 0x150   : > { %6110 = vmatpush3.bf16.msra.mxu0 %v6623_v49  ;;  %v6652_v49 = vld [vmem:[%s8114_s1 + $0x180] sm:$0xff]  }
 0x151   : > { %6130 = vmatpush3.bf16.msra.mxu1 %v6624_v50  ;;  %6111 = vmatprep.subr.bf16.mxu0 %v6777_v1  ;;  %v6653_v50 = vld [vmem:[%s8114_s1 + $0x1c0] sm:$0xff]  }
 0x152   : > { %6131 = vmatprep.subr.bf16.mxu1 %v6777_v1 }
 0x154   : > { %6112 = vmatpush3.bf16.msra.mxu0 %v6625_v51  ;;  %v6654_v51 = vld [vmem:[%s8114_s1 + $0x188] sm:$0xff]  }
 0x155   : > { %6132 = vmatpush3.bf16.msra.mxu1 %v6626_v52  ;;  %6113 = vmatprep.subr.bf16.mxu0 %v6777_v1  ;;  %v6655_v52 = vld [vmem:[%s8114_s1 + $0x1c8] sm:$0xff]  }
 0x156   : > { %6133 = vmatprep.subr.bf16.mxu1 %v6777_v1 }
 0x158   : > { %6114 = vmatpush3.bf16.msra.mxu0 %v6627_v53  ;;  %v6656_v53 = vld [vmem:[%s8114_s1 + $0x190] sm:$0xff]  }
 0x159   : > { %6134 = vmatpush3.bf16.msra.mxu1 %v6628_v54  ;;  %6115 = vmatprep.subr.bf16.mxu0 %v6777_v1  ;;  %v6657_v54 = vld [vmem:[%s8114_s1 + $0x1d0] sm:$0xff]  }
 0x15a   : > { %v1019_v58 = vpop.f32.mrb[12].mxu0  ;;  %6135 = vmatprep.subr.bf16.mxu1 %v6777_v1 }
 0x15b   : > { %v1025_v60 = vadd.f32 %v1019_v58, %v914_v36  ;;  %v1129_v61 = vpop.f32.mrb[12].mxu1  ;;  %v5843_v62 = vpop.f32.mrb[13].mxu0  ;;  %v6661_v58 = vld [vmem:[%s8114_s1 + $0x1e0] sm:$0xff]  }
 0x15c   : > { %v5863_v63 = vpop.f32.mrb[13].mxu1  ;;  %v1022_v0 = vpop.f32.mrb[14].mxu0  ;;  %6116 = vmatpush3.bf16.msra.mxu0 %v6629_v56  ;;  %v6659_v56 = vld [vmem:[%s8114_s1 + $0x1d8] sm:$0xff]  }
 0x15d   : > { %v1135_v3 = vadd.f32 %v1129_v61, %v1025_v60  ;;  %v1132_v4 = vpop.f32.mrb[14].mxu1  ;;  %6136 = vmatpush3.bf16.msra.mxu1 %v6630_v57  ;;  %v5844_v5 = vpop.f32.mrb[15].mxu0  ;;  %6117 = vmatprep.subr.bf16.mxu0 %v6777_v1  ;;  %v6660_v57 = vld [vmem:[%s8114_s1 + $0x1a0] sm:$0xff]   ;;  %v6663_v60 = vld [vmem:[%s8114_s1 + $0x1e8] sm:$0xff]  }
 0x15e   : > { %v5864_v7 = vpop.f32.mrb[15].mxu1  ;;  %6137 = vmatprep.subr.bf16.mxu1 %v6777_v1  ;;  %v6664_v4 = vld [vmem:[%s8114_s1 + $0x1b0] sm:$0xff]  }
 0x160   : > { %6118 = vmatpush3.bf16.msra.mxu0 %v6631_v2 }
 0x161   : > { %6138 = vmatpush3.bf16.msra.mxu1 %v6632_v6  ;;  %6119 = vmatprep.subr.bf16.mxu0 %v6777_v1 }
 0x162   : > { %6139 = vmatprep.subr.bf16.mxu1 %v6777_v1 }
 0x164   : > { %6120 = vmatpush3.bf16.msra.mxu0 %v6633_v10  ;;  %v6666_v10 = vld [vmem:[%s8114_s1 + $0x1b8] sm:$0xff]  }
 0x165   : > { %6140 = vmatpush3.bf16.msra.mxu1 %v6634_v11  ;;  %6145 = vmatprep.subr.bf16.mxu0 %v6777_v1  ;;  %v6667_v11 = vld [vmem:[%s8114_s1 + $0x1f8] sm:$0xff]  }
 0x166   : > { %6165 = vmatprep.subr.bf16.mxu1 %v6777_v1 }
 0x167   : > { %6122 = vmatmul.mubr.bf16.vlgmr.msra.gmra.mrb[40].mxu0 %v2515_v12  ;;  %v5092_v12 = vld [vmem:[%s6887_s24 + $0x30] sm:$0x7] }
 0x168   : > { %6142 = vmatmul.mubr.bf16.vlgmr.msra.gmra.mrb[40].mxu1 %v5017_v14  ;;  %6146 = vmatpush3.bf16.msra.mxu0 %v6636_v13  ;;  %v6669_v13 = vld [vmem:[%s8114_s1 + $0x200] sm:$0xff]   ;;  %v5117_v14 = vld [vmem:[%s6887_s24 + $0x34] sm:$0x7]  ;;  %v5158_v24 = vcombine.low %v5092_v12, %v5092_v12 }
 0x169   : > { %6166 = vmatpush3.bf16.msra.mxu1 %v6637_v15  ;;  %6147 = vmatprep.subr.bf16.mxu0 %v6777_v1  ;;  %v6670_v15 = vld [vmem:[%s8114_s1 + $0x40] sm:$0xff]  }
 0x16a   : > { %6167 = vmatprep.subr.bf16.mxu1 %v6777_v1  ;;  %6161 = vmatprep.mubr.msk.bf16.mxu0 %vm6778_vm0, %v6777_v1 }
 0x16b   : > { %6181 = vmatprep.mubr.msk.bf16.mxu1 %vm6778_vm0, %v6777_v1 }
 0x16c   : > { %6148 = vmatpush3.bf16.msra.mxu0 %v6638_v16  ;;  %v6671_v16 = vld [vmem:[%s8114_s1 + $0x208] sm:$0xff]  }
 0x16d   : > { %6168 = vmatpush3.bf16.msra.mxu1 %v6639_v17  ;;  %6149 = vmatprep.subr.bf16.mxu0 %v6777_v1  ;;  %v6672_v17 = vld [vmem:[%s8114_s1 + $0x48] sm:$0xff]  }
 0x16e   : > { %6169 = vmatprep.subr.bf16.mxu1 %v6777_v1 }
 0x170   : > { %6150 = vmatpush3.bf16.msra.mxu0 %v6640_v18  ;;  %v6673_v18 = vld [vmem:[%s8114_s1 + $0x210] sm:$0xff]  }
 0x171   : > { %6170 = vmatpush3.bf16.msra.mxu1 %v6641_v19  ;;  %6151 = vmatprep.subr.bf16.mxu0 %v6777_v1  ;;  %v6674_v19 = vld [vmem:[%s8114_s1 + $0x50] sm:$0xff]  }
 0x172   : > { %6171 = vmatprep.subr.bf16.mxu1 %v6777_v1 }
 0x174   : > { %6152 = vmatpush3.bf16.msra.mxu0 %v6642_v20  ;;  %v6675_v20 = vld [vmem:[%s8114_s1 + $0x218] sm:$0xff]  }
 0x175   : > { %6172 = vmatpush3.bf16.msra.mxu1 %v6643_v21  ;;  %6153 = vmatprep.subr.bf16.mxu0 %v6777_v1  ;;  %v6676_v21 = vld [vmem:[%s8114_s1 + $0x58] sm:$0xff]  }
 0x176   : > { %6173 = vmatprep.subr.bf16.mxu1 %v6777_v1 }
 0x178   : > { %6154 = vmatpush3.bf16.msra.mxu0 %v6644_v22  ;;  %v6677_v22 = vld [vmem:[%s8114_s1 + $0x220] sm:$0xff]  }
 0x179   : > { %6174 = vmatpush3.bf16.msra.mxu1 %v6645_v23  ;;  %6155 = vmatprep.subr.bf16.mxu0 %v6777_v1  ;;  %v6678_v23 = vld [vmem:[%s8114_s1 + $0x60] sm:$0xff]  }
 0x17a   : > { %v1246_v28 = vpop.f32.mrb[16].mxu0  ;;  %6175 = vmatprep.subr.bf16.mxu1 %v6777_v1 }
 0x17b   : > { %v1252_v29 = vadd.f32 %v1246_v28, %v1135_v3  ;;  %v7649_v30 = vpop.f32.mrb[16].mxu1  ;;  %v5883_v31 = vpop.f32.mrb[17].mxu0 }
 0x17c   : > { %v5903_v33 = vpop.f32.mrb[17].mxu1  ;;  %v1249_v34 = vpop.f32.mrb[18].mxu0  ;;  %6156 = vmatpush3.bf16.msra.mxu0 %v6646_v25  ;;  %v6679_v25 = vld [vmem:[%s8114_s1 + $0x228] sm:$0xff]  }
 0x17d   : > { %v1259_v36 = vadd.f32 %v7646_v27, %v1252_v29  ;;  %v1390_v37 = vpop.f32.mrb[18].mxu1  ;;  %6176 = vmatpush3.bf16.msra.mxu1 %v6647_v26  ;;  %v5884_v38 = vpop.f32.mrb[19].mxu0  ;;  %6157 = vmatprep.subr.bf16.mxu0 %v6777_v1  ;;  %v6680_v26 = vld [vmem:[%s8114_s1 + $0x68] sm:$0xff]   ;;  %v3183_v29 = vshll.u32 %v5158_v24, 16 }
 0x17e   : > { %v5904_v40 = vpop.f32.mrb[19].mxu1  ;;  %6177 = vmatprep.subr.bf16.mxu1 %v6777_v1 }
 0x17f   : > { %v1260_v41 = vmax.f32 %v1259_v36, 0.0  ;;  %v3185_v42 = vrot.slane %v3183_v29, 1 }
 0x180   : > { %6158 = vmatpush3.bf16.msra.mxu0 %v6648_v35  ;;  %v6681_v35 = vld [vmem:[%s8114_s1 + $0x230] sm:$0xff]  }
 0x181   : > { %v1261_v45 = vpack.c.bf16 %v1260_v41, %v1260_v41  ;;  %6178 = vmatpush3.bf16.msra.mxu1 %v6649_v39  ;;  %6159 = vmatprep.subr.bf16.mxu0 %v6777_v1  ;;  %v6682_v39 = vld [vmem:[%s8114_s1 + $0x70] sm:$0xff]   ;;  %v3181_v41 = vshrl.u32 %v5158_v24, 16  ;;  %v6710_v24 = vld [vmem:[%s8114_s1 + $0xe0] sm:$0xff]  }
 0x182   : > { %6179 = vmatprep.subr.bf16.mxu1 %v6777_v1 }
 0x183   : > { %1262 = vst [vmem:[%s7664_s29] sm:$0x3] %v1261_v45  ;;  %v3186_v45 = vor.u32 %v3185_v42, %v3181_v41  ;;  %v6716_v42 = vld [vmem:[%s8114_s1 + $0xf8] sm:$0xff]  }
 0x184   : > { %6160 = vmatpush3.bf16.msra.mxu0 %v6650_v44  ;;  %v6684_v44 = vld [vmem:[%s8114_s1 + $0x78] sm:$0xff]  }
 0x185   : > { %6180 = vmatpush3.bf16.msra.mxu1 %v6651_v46  ;;  %6185 = vmatprep.subr.bf16.mxu0 %v6777_v1  ;;  %v6685_v46 = vld [vmem:[%s8114_s1] sm:$0xff]  }
 0x186   : > { %6205 = vmatprep.subr.bf16.mxu1 %v6777_v1 }
 0x187   : > { %6162 = vmatmul.mubr.bf16.vlgmr.msra.gmra.mrb[44].mxu0 %v5042_v47  ;;  %v5169_v47 = vld [vmem:[%s6887_s24 + $0x34] sm:$0x7] }
 0x188   : > { %6182 = vmatmul.mubr.bf16.vlgmr.msra.gmra.mrb[44].mxu1 %v2851_v48  ;;  %6186 = vmatpush3.bf16.msra.mxu0 %v6652_v49  ;;  %v6686_v48 = vld [vmem:[%s8114_s1 + $0x80] sm:$0xff]   ;;  %v6687_v49 = vld [vmem:[%s8114_s1 + $0x8] sm:$0xff]  }
 0x189   : > { %6206 = vmatpush3.bf16.msra.mxu1 %v6653_v50  ;;  %6187 = vmatprep.subr.bf16.mxu0 %v6777_v1  ;;  %v6688_v50 = vld [vmem:[%s8114_s1 + $0x88] sm:$0xff]  }
 0x18a   : > { %6207 = vmatprep.subr.bf16.mxu1 %v6777_v1  ;;  %6201 = vmatprep.mubr.msk.bf16.mxu0 %vm6778_vm0, %v6777_v1 }
 0x18b   : > { %6221 = vmatprep.mubr.msk.bf16.mxu1 %vm6778_vm0, %v6777_v1 }
 0x18c   : > { %6188 = vmatpush3.bf16.msra.mxu0 %v6654_v51  ;;  %v6689_v51 = vld [vmem:[%s8114_s1 + $0x10] sm:$0xff]  }
 0x18d   : > { %6208 = vmatpush3.bf16.msra.mxu1 %v6655_v52  ;;  %6189 = vmatprep.subr.bf16.mxu0 %v6777_v1  ;;  %v6690_v52 = vld [vmem:[%s8114_s1 + $0x90] sm:$0xff]  }
 0x18e   : > { %6209 = vmatprep.subr.bf16.mxu1 %v6777_v1 }
 0x190   : > { %6190 = vmatpush3.bf16.msra.mxu0 %v6656_v53  ;;  %v6691_v53 = vld [vmem:[%s8114_s1 + $0x18] sm:$0xff]  }
 0x191   : > { %6210 = vmatpush3.bf16.msra.mxu1 %v6657_v54  ;;  %6191 = vmatprep.subr.bf16.mxu0 %v6777_v1  ;;  %v6692_v54 = vld [vmem:[%s8114_s1 + $0x98] sm:$0xff]  }
 0x192   : > { %6211 = vmatprep.subr.bf16.mxu1 %v6777_v1 }
 0x194   : > { %6192 = vmatpush3.bf16.msra.mxu0 %v6658_v55  ;;  %v6693_v55 = vld [vmem:[%s8114_s1 + $0x20] sm:$0xff]  }
 0x195   : > { %6212 = vmatpush3.bf16.msra.mxu1 %v6659_v56  ;;  %6193 = vmatprep.subr.bf16.mxu0 %v6777_v1  ;;  %v6694_v56 = vld [vmem:[%s8114_s1 + $0xa0] sm:$0xff]  }
 0x196   : > { %6213 = vmatprep.subr.bf16.mxu1 %v6777_v1 }
 0x198   : > { %6194 = vmatpush3.bf16.msra.mxu0 %v6660_v57  ;;  %v5168_v57 = vld [vmem:[%s6887_s24 + $0x30] sm:$0x7] }
 0x199   : > { %6214 = vmatpush3.bf16.msra.mxu1 %v6661_v58  ;;  %6195 = vmatprep.subr.bf16.mxu0 %v6777_v1  ;;  %v6695_v58 = vld [vmem:[%s8114_s1 + $0x28] sm:$0xff]  }
 0x19a   : > { %v1475_v61 = vpop.f32.mrb[20].mxu0  ;;  %6215 = vmatprep.subr.bf16.mxu1 %v6777_v1 }
 0x19b   : > { %v1476_v62 = vadd.f32 %v1475_v61, %v7649_v30  ;;  %v1590_v63 = vpop.f32.mrb[20].mxu1  ;;  %v5923_v0 = vpop.f32.mrb[21].mxu0 }
 0x19c   : > { %v5943_v2 = vpop.f32.mrb[21].mxu1  ;;  %v1478_v3 = vpop.f32.mrb[22].mxu0  ;;  %6196 = vmatpush3.bf16.msra.mxu0 %v6662_v59  ;;  %v5218_v59 = vcombine.low %v5168_v57, %v5168_v57 }
 0x19d   : > { %v1596_v5 = vadd.f32 %v1590_v63, %v1476_v62  ;;  %v1593_v6 = vpop.f32.mrb[22].mxu1  ;;  %6216 = vmatpush3.bf16.msra.mxu1 %v6663_v60  ;;  %v5924_v7 = vpop.f32.mrb[23].mxu0  ;;  %6197 = vmatprep.subr.bf16.mxu0 %v6777_v1  ;;  %v6696_v60 = vld [vmem:[%s8114_s1 + $0xa8] sm:$0xff]  }
 0x19e   : > { %v5944_v9 = vpop.f32.mrb[23].mxu1  ;;  %6217 = vmatprep.subr.bf16.mxu1 %v6777_v1 }
 0x19f   : > { %v6698_v9 = vld [vmem:[%s8114_s1 + $0xb0] sm:$0xff]  }
 0x1a0   : > { %6198 = vmatpush3.bf16.msra.mxu0 %v6664_v4  ;;  %v6697_v4 = vld [vmem:[%s8114_s1 + $0x30] sm:$0xff]  }
 0x1a1   : > { %6218 = vmatpush3.bf16.msra.mxu1 %v6665_v8  ;;  %6199 = vmatprep.subr.bf16.mxu0 %v6777_v1 }
 0x1a2   : > { %6219 = vmatprep.subr.bf16.mxu1 %v6777_v1 }
 0x1a4   : > { %6200 = vmatpush3.bf16.msra.mxu0 %v6666_v10 }
 0x1a5   : > { %6220 = vmatpush3.bf16.msra.mxu1 %v6667_v11  ;;  %6225 = vmatprep.subr.bf16.mxu0 %v6777_v1  ;;  %v6699_v11 = vld [vmem:[%s8114_s1 + $0x38] sm:$0xff]  }
 0x1a6   : > { %6245 = vmatprep.subr.bf16.mxu1 %v6777_v1 }
 0x1a7   : > { %6202 = vmatmul.mubr.bf16.vlgmr.msra.gmra.mrb[48].mxu0 %v5092_v12  ;;  %v3519_v12 = vshrl.u32 %v5218_v59, 16 }
 0x1a8   : > { %6222 = vmatmul.mubr.bf16.vlgmr.msra.gmra.mrb[48].mxu1 %v5117_v14  ;;  %6226 = vmatpush3.bf16.msra.mxu0 %v6669_v13  ;;  %v6700_v14 = vld [vmem:[%s8114_s1 + $0xb8] sm:$0xff]  }
 0x1a9   : > { %6246 = vmatpush3.bf16.msra.mxu1 %v6670_v15  ;;  %6227 = vmatprep.subr.bf16.mxu0 %v6777_v1 }
 0x1aa   : > { %6247 = vmatprep.subr.bf16.mxu1 %v6777_v1  ;;  %6241 = vmatprep.mubr.msk.bf16.mxu0 %vm6778_vm0, %v6777_v1 }
 0x1ab   : > { %6261 = vmatprep.mubr.msk.bf16.mxu1 %vm6778_vm0, %v6777_v1 }
 0x1ac   : > { %6228 = vmatpush3.bf16.msra.mxu0 %v6671_v16  ;;  %v6702_v16 = vld [vmem:[%s8114_s1 + $0xc0] sm:$0xff]  }
 0x1ad   : > { %6248 = vmatpush3.bf16.msra.mxu1 %v6672_v17  ;;  %6229 = vmatprep.subr.bf16.mxu0 %v6777_v1  ;;  %v6703_v17 = vld [vmem:[%s8114_s1 + $0x100] sm:$0xff]  }
 0x1ae   : > { %6249 = vmatprep.subr.bf16.mxu1 %v6777_v1 }
 0x1b0   : > { %6230 = vmatpush3.bf16.msra.mxu0 %v6673_v18  ;;  %v6704_v18 = vld [vmem:[%s8114_s1 + $0xc8] sm:$0xff]  }
 0x1b1   : > { %6250 = vmatpush3.bf16.msra.mxu1 %v6674_v19  ;;  %6231 = vmatprep.subr.bf16.mxu0 %v6777_v1  ;;  %v6705_v19 = vld [vmem:[%s8114_s1 + $0x108] sm:$0xff]  }
 0x1b2   : > { %6251 = vmatprep.subr.bf16.mxu1 %v6777_v1 }
 0x1b4   : > { %6232 = vmatpush3.bf16.msra.mxu0 %v6675_v20  ;;  %v6706_v20 = vld [vmem:[%s8114_s1 + $0xd0] sm:$0xff]  }
 0x1b5   : > { %6252 = vmatpush3.bf16.msra.mxu1 %v6676_v21  ;;  %6233 = vmatprep.subr.bf16.mxu0 %v6777_v1  ;;  %v6707_v21 = vld [vmem:[%s8114_s1 + $0x110] sm:$0xff]  }
 0x1b6   : > { %6253 = vmatprep.subr.bf16.mxu1 %v6777_v1 }
 0x1b8   : > { %6234 = vmatpush3.bf16.msra.mxu0 %v6677_v22  ;;  %v6708_v22 = vld [vmem:[%s8114_s1 + $0xd8] sm:$0xff]  }
 0x1b9   : > { %6254 = vmatpush3.bf16.msra.mxu1 %v6678_v23  ;;  %6235 = vmatprep.subr.bf16.mxu0 %v6777_v1  ;;  %v6709_v23 = vld [vmem:[%s8114_s1 + $0x118] sm:$0xff]  }
 0x1ba   : > { %v1701_v28 = vpop.f32.mrb[24].mxu0  ;;  %6255 = vmatprep.subr.bf16.mxu1 %v6777_v1 }
 0x1bb   : > { %v1707_v30 = vadd.f32 %v1701_v28, %v1596_v5  ;;  %v1810_v31 = vpop.f32.mrb[24].mxu1  ;;  %v5963_v32 = vpop.f32.mrb[25].mxu0  ;;  %v3521_v5 = vshll.u32 %v5218_v59, 16  ;;  %v6713_v28 = vld [vmem:[%s8114_s1 + $0x128] sm:$0xff]  }
 0x1bc   : > { %v5983_v33 = vpop.f32.mrb[25].mxu1  ;;  %v1704_v34 = vpop.f32.mrb[26].mxu0  ;;  %6236 = vmatpush3.bf16.msra.mxu0 %v6679_v25  ;;  %v6711_v25 = vld [vmem:[%s8114_s1 + $0x120] sm:$0xff]   ;;  %v6729_v59 = vld [vmem:[%s8114_s1 + $0x168] sm:$0xff]  }
 0x1bd   : > { %v1816_v36 = vadd.f32 %v1810_v31, %v1707_v30  ;;  %v1813_v37 = vpop.f32.mrb[26].mxu1  ;;  %6256 = vmatpush3.bf16.msra.mxu1 %v6680_v26  ;;  %v5964_v38 = vpop.f32.mrb[27].mxu0  ;;  %6237 = vmatprep.subr.bf16.mxu0 %v6777_v1  ;;  %v3523_v13 = vrot.slane %v3521_v5, 1  ;;  %v6712_v26 = vld [vmem:[%s8114_s1 + $0xe8] sm:$0xff]   ;;  %v6731_v5 = vld [vmem:[%s8114_s1 + $0x170] sm:$0xff]  }
 0x1be   : > { %v5984_v40 = vpop.f32.mrb[27].mxu1  ;;  %6257 = vmatprep.subr.bf16.mxu1 %v6777_v1 }
 0x1bf   : > { %v3524_v15 = vor.u32 %v3523_v13, %v3519_v12  ;;  %v6733_v12 = vld [vmem:[%s8114_s1 + $0x178] sm:$0xff]  }
 0x1c0   : > { %6238 = vmatpush3.bf16.msra.mxu0 %v6681_v35  ;;  %v6714_v35 = vld [vmem:[%s8114_s1 + $0xf0] sm:$0xff]   ;;  %v6734_v13 = vld [vmem:[%s8114_s1 + $0x1b8] sm:$0xff]  }
 0x1c1   : > { %6258 = vmatpush3.bf16.msra.mxu1 %v6682_v39  ;;  %6239 = vmatprep.subr.bf16.mxu0 %v6777_v1  ;;  %v6715_v39 = vld [vmem:[%s8114_s1 + $0x130] sm:$0xff]  }
 0x1c2   : > { %6259 = vmatprep.subr.bf16.mxu1 %v6777_v1 }
 0x1c4   : > { %6240 = vmatpush3.bf16.msra.mxu0 %v6683_v43 }
 0x1c5   : > { %6260 = vmatpush3.bf16.msra.mxu1 %v6684_v44  ;;  %6265 = vmatprep.subr.bf16.mxu0 %v6777_v1  ;;  %v6717_v44 = vld [vmem:[%s8114_s1 + $0x138] sm:$0xff]  }
 0x1c6   : > { %6285 = vmatprep.subr.bf16.mxu1 %v6777_v1 }
 0x1c7   : > { %6242 = vmatmul.mubr.bf16.vlgmr.msra.gmra.mrb[52].mxu0 %v3186_v45 }
 0x1c8   : > { %6262 = vmatmul.mubr.bf16.vlgmr.msra.gmra.mrb[52].mxu1 %v5169_v47  ;;  %6266 = vmatpush3.bf16.msra.mxu0 %v6685_v46  ;;  %v5227_v46 = vld [vmem:[%s6887_s24 + $0x38] sm:$0x7]  ;;  %v6719_v47 = vld [vmem:[%s8114_s1 + $0x140] sm:$0xff]  }
 0x1c9   : > { %6286 = vmatpush3.bf16.msra.mxu1 %v6686_v48  ;;  %6267 = vmatprep.subr.bf16.mxu0 %v6777_v1  ;;  %v5252_v48 = vld [vmem:[%s6887_s24 + $0x3c] sm:$0x7] }
 0x1ca   : > { %6287 = vmatprep.subr.bf16.mxu1 %v6777_v1  ;;  %6281 = vmatprep.mubr.msk.bf16.mxu0 %vm6778_vm0, %v6777_v1 }
 0x1cb   : > { %6301 = vmatprep.mubr.msk.bf16.mxu1 %vm6778_vm0, %v6777_v1 }
 0x1cc   : > { %6268 = vmatpush3.bf16.msra.mxu0 %v6687_v49  ;;  %v6720_v49 = vld [vmem:[%s8114_s1 + $0x180] sm:$0xff]  }
 0x1cd   : > { %6288 = vmatpush3.bf16.msra.mxu1 %v6688_v50  ;;  %6269 = vmatprep.subr.bf16.mxu0 %v6777_v1  ;;  %v6721_v50 = vld [vmem:[%s8114_s1 + $0x148] sm:$0xff]  }
 0x1ce   : > { %6289 = vmatprep.subr.bf16.mxu1 %v6777_v1 }
 0x1d0   : > { %6270 = vmatpush3.bf16.msra.mxu0 %v6689_v51  ;;  %v6722_v51 = vld [vmem:[%s8114_s1 + $0x188] sm:$0xff]  }
 0x1d1   : > { %6290 = vmatpush3.bf16.msra.mxu1 %v6690_v52  ;;  %6271 = vmatprep.subr.bf16.mxu0 %v6777_v1  ;;  %v6723_v52 = vld [vmem:[%s8114_s1 + $0x150] sm:$0xff]  }
 0x1d2   : > { %6291 = vmatprep.subr.bf16.mxu1 %v6777_v1 }
 0x1d4   : > { %6272 = vmatpush3.bf16.msra.mxu0 %v6691_v53  ;;  %v6724_v53 = vld [vmem:[%s8114_s1 + $0x190] sm:$0xff]  }
 0x1d5   : > { %6292 = vmatpush3.bf16.msra.mxu1 %v6692_v54  ;;  %6273 = vmatprep.subr.bf16.mxu0 %v6777_v1  ;;  %v6725_v54 = vld [vmem:[%s8114_s1 + $0x158] sm:$0xff]  }
 0x1d6   : > { %6293 = vmatprep.subr.bf16.mxu1 %v6777_v1 }
 0x1d8   : > { %6274 = vmatpush3.bf16.msra.mxu0 %v6693_v55  ;;  %v6726_v55 = vld [vmem:[%s8114_s1 + $0x198] sm:$0xff]  }
 0x1d9   : > { %6294 = vmatpush3.bf16.msra.mxu1 %v6694_v56  ;;  %6275 = vmatprep.subr.bf16.mxu0 %v6777_v1  ;;  %v6727_v56 = vld [vmem:[%s8114_s1 + $0x160] sm:$0xff]  }
 0x1da   : > { %v1926_v61 = vpop.f32.mrb[28].mxu0  ;;  %6295 = vmatprep.subr.bf16.mxu1 %v6777_v1 }
 0x1db   : > { %v1932_v62 = vadd.f32 %v1926_v61, %v1816_v36  ;;  %v2036_v63 = vpop.f32.mrb[28].mxu1  ;;  %v6003_v0 = vpop.f32.mrb[29].mxu0 }
 0x1dc   : > { %v6023_v2 = vpop.f32.mrb[29].mxu1  ;;  %v1929_v3 = vpop.f32.mrb[30].mxu0  ;;  %6276 = vmatpush3.bf16.msra.mxu0 %v6695_v58  ;;  %v5293_v58 = vcombine.low %v5227_v46, %v5227_v46 }
 0x1dd   : > { %v2042_v6 = vadd.f32 %v2036_v63, %v1932_v62  ;;  %v2039_v7 = vpop.f32.mrb[30].mxu1  ;;  %6296 = vmatpush3.bf16.msra.mxu1 %v6696_v60  ;;  %v6004_v8 = vpop.f32.mrb[31].mxu0  ;;  %6277 = vmatprep.subr.bf16.mxu0 %v6777_v1  ;;  %v6730_v60 = vld [vmem:[%s8114_s1 + $0x1a8] sm:$0xff]  }
 0x1de   : > { %v6024_v10 = vpop.f32.mrb[31].mxu1  ;;  %6297 = vmatprep.subr.bf16.mxu1 %v6777_v1  ;;  %v3857_v62 = vshll.u32 %v5293_v58, 16  ;;  %v6732_v8 = vld [vmem:[%s8114_s1 + $0x1b0] sm:$0xff]  }
 0x1df   : > { %v3855_v10 = vshrl.u32 %v5293_v58, 16 }
 0x1e0   : > { %6278 = vmatpush3.bf16.msra.mxu0 %v6697_v4 }
 0x1e1   : > { %6298 = vmatpush3.bf16.msra.mxu1 %v6698_v9  ;;  %6279 = vmatprep.subr.bf16.mxu0 %v6777_v1 }
 0x1e2   : > { %6299 = vmatprep.subr.bf16.mxu1 %v6777_v1 }
 0x1e4   : > { %6280 = vmatpush3.bf16.msra.mxu0 %v6699_v11  ;;  %v3859_v11 = vrot.slane %v3857_v62, 1 }
 0x1e5   : > { %6300 = vmatpush3.bf16.msra.mxu1 %v6700_v14  ;;  %6305 = vmatprep.subr.bf16.mxu0 %v6777_v1 }
 0x1e6   : > { %6325 = vmatprep.subr.bf16.mxu1 %v6777_v1  ;;  %v3860_v14 = vor.u32 %v3859_v11, %v3855_v10 }
 0x1e7   : > { %6282 = vmatmul.mubr.bf16.vlgmr.msra.gmra.mrb[56].mxu0 %v5168_v57  ;;  %v6728_v57 = vld [vmem:[%s8114_s1 + $0x1a0] sm:$0xff]  }
 0x1e8   : > { %6302 = vmatmul.mubr.bf16.vlgmr.msra.gmra.mrb[56].mxu1 %v3524_v15  ;;  %6306 = vmatpush3.bf16.msra.mxu0 %v6702_v16  ;;  %v6736_v15 = vld [vmem:[%s8114_s1 + $0x1c0] sm:$0xff]  }
 0x1e9   : > { %6326 = vmatpush3.bf16.msra.mxu1 %v6703_v17  ;;  %6307 = vmatprep.subr.bf16.mxu0 %v6777_v1  ;;  %v5302_v16 = vld [vmem:[%s6887_s24 + $0x40] sm:$0x7] }
 0x1ea   : > { %6327 = vmatprep.subr.bf16.mxu1 %v6777_v1  ;;  %6321 = vmatprep.mubr.msk.bf16.mxu0 %vm6778_vm0, %v6777_v1  ;;  %v6737_v17 = vld [vmem:[%s8114_s1 + $0x200] sm:$0xff]  }
 0x1eb   : > { %6341 = vmatprep.mubr.msk.bf16.mxu1 %vm6778_vm0, %v6777_v1 }
 0x1ec   : > { %6308 = vmatpush3.bf16.msra.mxu0 %v6704_v18  ;;  %v6738_v18 = vld [vmem:[%s8114_s1 + $0x1c8] sm:$0xff]  }
 0x1ed   : > { %6328 = vmatpush3.bf16.msra.mxu1 %v6705_v19  ;;  %6309 = vmatprep.subr.bf16.mxu0 %v6777_v1  ;;  %v6739_v19 = vld [vmem:[%s8114_s1 + $0x208] sm:$0xff]  }
 0x1ee   : > { %6329 = vmatprep.subr.bf16.mxu1 %v6777_v1 }
 0x1f0   : > { %6310 = vmatpush3.bf16.msra.mxu0 %v6706_v20  ;;  %v6740_v20 = vld [vmem:[%s8114_s1 + $0x1d0] sm:$0xff]  }
 0x1f1   : > { %6330 = vmatpush3.bf16.msra.mxu1 %v6707_v21  ;;  %6311 = vmatprep.subr.bf16.mxu0 %v6777_v1  ;;  %v6741_v21 = vld [vmem:[%s8114_s1 + $0x210] sm:$0xff]  }
 0x1f2   : > { %6331 = vmatprep.subr.bf16.mxu1 %v6777_v1 }
 0x1f4   : > { %6312 = vmatpush3.bf16.msra.mxu0 %v6708_v22  ;;  %v6742_v22 = vld [vmem:[%s8114_s1 + $0x1d8] sm:$0xff]  }
 0x1f5   : > { %6332 = vmatpush3.bf16.msra.mxu1 %v6709_v23  ;;  %6313 = vmatprep.subr.bf16.mxu0 %v6777_v1  ;;  %v6743_v23 = vld [vmem:[%s8114_s1 + $0x218] sm:$0xff]  }
 0x1f6   : > { %6333 = vmatprep.subr.bf16.mxu1 %v6777_v1 }
 0x1f8   : > { %6314 = vmatpush3.bf16.msra.mxu0 %v6710_v24  ;;  %v6744_v24 = vld [vmem:[%s8114_s1 + $0x1e0] sm:$0xff]  }
 0x1f9   : > { %6334 = vmatpush3.bf16.msra.mxu1 %v6711_v25  ;;  %6315 = vmatprep.subr.bf16.mxu0 %v6777_v1  ;;  %v6745_v25 = vld [vmem:[%s8114_s1 + $0x220] sm:$0xff]  }
 0x1fa   : > { %v2145_v29 = vpop.f32.mrb[32].mxu0  ;;  %6335 = vmatprep.subr.bf16.mxu1 %v6777_v1 }
 0x1fb   : > { %v2151_v30 = vadd.f32 %v2145_v29, %v2042_v6  ;;  %v2261_v31 = vpop.f32.mrb[32].mxu1  ;;  %v6043_v32 = vpop.f32.mrb[33].mxu0  ;;  %v6747_v29 = vld [vmem:[%s8114_s1 + $0x228] sm:$0xff]  }
 0x1fc   : > { %v6063_v33 = vpop.f32.mrb[33].mxu1  ;;  %v2148_v34 = vpop.f32.mrb[34].mxu0  ;;  %6316 = vmatpush3.bf16.msra.mxu0 %v6712_v26  ;;  %v5368_v26 = vcombine.low %v5302_v16, %v5302_v16 }
 0x1fd   : > { %v2267_v36 = vadd.f32 %v2261_v31, %v2151_v30  ;;  %v2264_v37 = vpop.f32.mrb[34].mxu1  ;;  %6336 = vmatpush3.bf16.msra.mxu1 %v6713_v28  ;;  %v6044_v38 = vpop.f32.mrb[35].mxu0  ;;  %6317 = vmatprep.subr.bf16.mxu0 %v6777_v1  ;;  %v6746_v28 = vld [vmem:[%s8114_s1 + $0x1e8] sm:$0xff]  }
 0x1fe   : > { %v6064_v40 = vpop.f32.mrb[35].mxu1  ;;  %6337 = vmatprep.subr.bf16.mxu1 %v6777_v1  ;;  %v4192_v34 = vshll.u32 %v5368_v26, 16  ;;  %v6748_v37 = vld [vmem:[%s8114_s1 + $0x1f0] sm:$0xff]  }
 0x1ff   : > { %v2268_v41 = vadd.f32 %v7646_v27, %v2267_v36 }
 0x200   : > { %6318 = vmatpush3.bf16.msra.mxu0 %v6714_v35 }
 0x201   : > { %v2269_v43 = vmax.f32 %v2268_v41, 0.0  ;;  %6338 = vmatpush3.bf16.msra.mxu1 %v6715_v39  ;;  %6319 = vmatprep.subr.bf16.mxu0 %v6777_v1  ;;  %v6749_v41 = vld [vmem:[%s8114_s1 + $0x230] sm:$0xff]  }
 0x202   : > { %6339 = vmatprep.subr.bf16.mxu1 %v6777_v1 }
 0x203   : > { %v2270_v45 = vpack.c.bf16 %v2269_v43, %v2269_v43  ;;  %v4190_v43 = vshrl.u32 %v5368_v26, 16 }
 0x204   : > { %6320 = vmatpush3.bf16.msra.mxu0 %v6716_v42 }
 0x205   : > { %4957 = vst [vmem:[%s7664_s29 + $0x2] sm:$0x3] %v2270_v45  ;;  %6340 = vmatpush3.bf16.msra.mxu1 %v6717_v44  ;;  %6345 = vmatprep.subr.bf16.mxu0 %v6777_v1  ;;  %v4194_v44 = vrot.slane %v4192_v34, 1  ;;  %v6750_v45 = vld [vmem:[%s8114_s1 + $0x1f8] sm:$0xff]  }
 0x206   : > { %6365 = vmatprep.subr.bf16.mxu1 %v6777_v1 }
 0x207   : > { %6322 = vmatmul.mubr.bf16.vlgmr.msra.gmra.mrb[60].mxu0 %v5227_v46  ;;  %v6751_v46 = vld [vmem:[%s8114_s1 + $0x238] sm:$0xff]  }
 0x208   : > { %6342 = vmatmul.mubr.bf16.vlgmr.msra.gmra.mrb[60].mxu1 %v5252_v48  ;;  %6346 = vmatpush3.bf16.msra.mxu0 %v6719_v47  ;;  %v5327_v47 = vld [vmem:[%s6887_s24 + $0x44] sm:$0x7]  ;;  %v4195_v48 = vor.u32 %v4194_v44, %v4190_v43 }
 0x209   : > { %6366 = vmatpush3.bf16.msra.mxu1 %v6720_v49  ;;  %6347 = vmatprep.subr.bf16.mxu0 %v6777_v1 }
 0x20a   : > { %6367 = vmatprep.subr.bf16.mxu1 %v6777_v1  ;;  %6361 = vmatprep.mubr.msk.bf16.mxu0 %vm6778_vm0, %v6777_v1 }
 0x20b   : > { %6381 = vmatprep.mubr.msk.bf16.mxu1 %vm6778_vm0, %v6777_v1 }
 0x20c   : > { %6348 = vmatpush3.bf16.msra.mxu0 %v6721_v50 }
 0x20d   : > { %6368 = vmatpush3.bf16.msra.mxu1 %v6722_v51  ;;  %6349 = vmatprep.subr.bf16.mxu0 %v6777_v1 }
 0x20e   : > { %6369 = vmatprep.subr.bf16.mxu1 %v6777_v1 }
 0x210   : > { %6350 = vmatpush3.bf16.msra.mxu0 %v6723_v52 }
 0x211   : > { %6370 = vmatpush3.bf16.msra.mxu1 %v6724_v53  ;;  %6351 = vmatprep.subr.bf16.mxu0 %v6777_v1 }
 0x212   : > { %6371 = vmatprep.subr.bf16.mxu1 %v6777_v1 }
 0x214   : > { %6352 = vmatpush3.bf16.msra.mxu0 %v6725_v54 }
 0x215   : > { %6372 = vmatpush3.bf16.msra.mxu1 %v6726_v55  ;;  %6353 = vmatprep.subr.bf16.mxu0 %v6777_v1 }
 0x216   : > { %6373 = vmatprep.subr.bf16.mxu1 %v6777_v1 }
 0x218   : > { %6354 = vmatpush3.bf16.msra.mxu0 %v6727_v56 }
 0x219   : > { %6374 = vmatpush3.bf16.msra.mxu1 %v6728_v57  ;;  %6355 = vmatprep.subr.bf16.mxu0 %v6777_v1 }
 0x21a   : > { %v2396_v61 = vpop.f32.mrb[36].mxu0  ;;  %6375 = vmatprep.subr.bf16.mxu1 %v6777_v1 }
 0x21b   : > { %v2484_v63 = vpop.f32.mrb[36].mxu1  ;;  %v6083_v0 = vpop.f32.mrb[37].mxu0 }
 0x21c   : > { %v8009_v2 = vadd.f32 %v2484_v63, %v2396_v61  ;;  %v6103_v3 = vpop.f32.mrb[37].mxu1  ;;  %v2399_v4 = vpop.f32.mrb[38].mxu0  ;;  %6356 = vmatpush3.bf16.msra.mxu0 %v6729_v59 }
 0x21d   : > { %v2487_v6 = vpop.f32.mrb[38].mxu1  ;;  %6376 = vmatpush3.bf16.msra.mxu1 %v6730_v60  ;;  %v6084_v7 = vpop.f32.mrb[39].mxu0  ;;  %6357 = vmatprep.subr.bf16.mxu0 %v6777_v1 }
 0x21e   : > { %v6104_v9 = vpop.f32.mrb[39].mxu1  ;;  %6377 = vmatprep.subr.bf16.mxu1 %v6777_v1 }
 0x220   : > { %6358 = vmatpush3.bf16.msra.mxu0 %v6731_v5 }
 0x221   : > { %6378 = vmatpush3.bf16.msra.mxu1 %v6732_v8  ;;  %6359 = vmatprep.subr.bf16.mxu0 %v6777_v1 }
 0x222   : > { %6379 = vmatprep.subr.bf16.mxu1 %v6777_v1 }
 0x224   : > { %6360 = vmatpush3.bf16.msra.mxu0 %v6733_v12 }
 0x225   : > { %6380 = vmatpush3.bf16.msra.mxu1 %v6734_v13  ;;  %6385 = vmatprep.subr.bf16.mxu0 %v6777_v1 }
 0x226   : > { %6405 = vmatprep.subr.bf16.mxu1 %v6777_v1 }
 0x227   : > { %6362 = vmatmul.mubr.bf16.vlgmr.msra.gmra.mrb[64].mxu0 %v3860_v14 }
 0x228   : > { %6382 = vmatmul.mubr.bf16.vlgmr.msra.gmra.mrb[64].mxu1 %v5302_v16  ;;  %6386 = vmatpush3.bf16.msra.mxu0 %v6736_v15 }
 0x229   : > { %6406 = vmatpush3.bf16.msra.mxu1 %v6737_v17  ;;  %6387 = vmatprep.subr.bf16.mxu0 %v6777_v1 }
 0x22a   : > { %6407 = vmatprep.subr.bf16.mxu1 %v6777_v1  ;;  %6401 = vmatprep.mubr.msk.bf16.mxu0 %vm6778_vm0, %v6777_v1 }
 0x22b   : > { %6421 = vmatprep.mubr.msk.bf16.mxu1 %vm6778_vm0, %v6777_v1 }
 0x22c   : > { %6388 = vmatpush3.bf16.msra.mxu0 %v6738_v18 }
 0x22d   : > { %6408 = vmatpush3.bf16.msra.mxu1 %v6739_v19  ;;  %6389 = vmatprep.subr.bf16.mxu0 %v6777_v1 }
 0x22e   : > { %6409 = vmatprep.subr.bf16.mxu1 %v6777_v1 }
 0x230   : > { %6390 = vmatpush3.bf16.msra.mxu0 %v6740_v20 }
 0x231   : > { %6410 = vmatpush3.bf16.msra.mxu1 %v6741_v21  ;;  %6391 = vmatprep.subr.bf16.mxu0 %v6777_v1 }
 0x232   : > { %6411 = vmatprep.subr.bf16.mxu1 %v6777_v1 }
 0x234   : > { %6392 = vmatpush3.bf16.msra.mxu0 %v6742_v22 }
 0x235   : > { %6412 = vmatpush3.bf16.msra.mxu1 %v6743_v23  ;;  %6393 = vmatprep.subr.bf16.mxu0 %v6777_v1 }
 0x236   : > { %6413 = vmatprep.subr.bf16.mxu1 %v6777_v1 }
 0x238   : > { %6394 = vmatpush3.bf16.msra.mxu0 %v6744_v24 }
 0x239   : > { %6414 = vmatpush3.bf16.msra.mxu1 %v6745_v25  ;;  %6395 = vmatprep.subr.bf16.mxu0 %v6777_v1 }
 0x23a   : > { %v2599_v30 = vpop.f32.mrb[40].mxu0  ;;  %6415 = vmatprep.subr.bf16.mxu1 %v6777_v1 }
 0x23b   : > { %v2605_v31 = vadd.f32 %v2599_v30, %v8009_v2  ;;  %v2710_v32 = vpop.f32.mrb[40].mxu1  ;;  %v6123_v33 = vpop.f32.mrb[41].mxu0 }
 0x23c   : > { %v6143_v35 = vpop.f32.mrb[41].mxu1  ;;  %v2602_v36 = vpop.f32.mrb[42].mxu0  ;;  %6396 = vmatpush3.bf16.msra.mxu0 %v6746_v28 }
 0x23d   : > { %v2716_v38 = vadd.f32 %v2710_v32, %v2605_v31  ;;  %v2713_v39 = vpop.f32.mrb[42].mxu1  ;;  %6416 = vmatpush3.bf16.msra.mxu1 %v6747_v29  ;;  %v6124_v40 = vpop.f32.mrb[43].mxu0  ;;  %6397 = vmatprep.subr.bf16.mxu0 %v6777_v1 }
 0x23e   : > { %v6144_v42 = vpop.f32.mrb[43].mxu1  ;;  %6417 = vmatprep.subr.bf16.mxu1 %v6777_v1 }
 0x240   : > { %6398 = vmatpush3.bf16.msra.mxu0 %v6748_v37 }
 0x241   : > { %6418 = vmatpush3.bf16.msra.mxu1 %v6749_v41  ;;  %6399 = vmatprep.subr.bf16.mxu0 %v6777_v1 }
 0x242   : > { %6419 = vmatprep.subr.bf16.mxu1 %v6777_v1 }
 0x244   : > { %6400 = vmatpush3.bf16.msra.mxu0 %v6750_v45 }
 0x245   : > { %6420 = vmatpush3.bf16.msra.mxu1 %v6751_v46 }
 0x247   : > { %6402 = vmatmul.mubr.bf16.vlgmr.msra.gmra.mrb[68].mxu0 %v5327_v47 }
 0x248   : > { %6422 = vmatmul.mubr.bf16.vlgmr.msra.gmra.mrb[68].mxu1 %v4195_v48 }
 0x25a   : > { %v2819_v49 = vpop.f32.mrb[44].mxu0 }
 0x25b   : > { %v2825_v50 = vadd.f32 %v2819_v49, %v2716_v38  ;;  %v2935_v51 = vpop.f32.mrb[44].mxu1  ;;  %v6163_v52 = vpop.f32.mrb[45].mxu0 }
 0x25c   : > { %v6183_v53 = vpop.f32.mrb[45].mxu1  ;;  %v2822_v54 = vpop.f32.mrb[46].mxu0 }
 0x25d   : > { %v2941_v55 = vadd.f32 %v2935_v51, %v2825_v50  ;;  %v2938_v56 = vpop.f32.mrb[46].mxu1  ;;  %v6164_v57 = vpop.f32.mrb[47].mxu0 }
 0x25e   : > { %v6184_v58 = vpop.f32.mrb[47].mxu1  ;;  %v6752_v57 = vld [vmem:[%s8115_s2] ss:$0 sm:$0xff] }
 0x27a   : > { %v3045_v59 = vpop.f32.mrb[48].mxu0 }
 0x27b   : > { %v3051_v60 = vadd.f32 %v3045_v59, %v2941_v55  ;;  %v3154_v61 = vpop.f32.mrb[48].mxu1  ;;  %v6203_v1 = vpop.f32.mrb[49].mxu0 }
 0x27c   : > { %v6223_v62 = vpop.f32.mrb[49].mxu1  ;;  %v3048_v63 = vpop.f32.mrb[50].mxu0 }
 0x27d   : > { %v3160_v0 = vadd.f32 %v3154_v61, %v3051_v60  ;;  %v3157_v2 = vpop.f32.mrb[50].mxu1  ;;  %v6204_v3 = vpop.f32.mrb[51].mxu0 }
 0x27e   : > { %v6224_v4 = vpop.f32.mrb[51].mxu1 }
 0x29a   : > { %v3270_v5 = vpop.f32.mrb[52].mxu0 }
 0x29b   : > { %v3276_v6 = vadd.f32 %v3270_v5, %v3160_v0  ;;  %v3405_v7 = vpop.f32.mrb[52].mxu1  ;;  %v6243_v8 = vpop.f32.mrb[53].mxu0 }
 0x29c   : > { %v6263_v9 = vpop.f32.mrb[53].mxu1  ;;  %v3273_v10 = vpop.f32.mrb[54].mxu0 }
 0x29d   : > { %v3277_v11 = vadd.f32 %v7646_v27, %v3276_v6  ;;  %v3408_v12 = vpop.f32.mrb[54].mxu1  ;;  %v6244_v13 = vpop.f32.mrb[55].mxu0 }
 0x29e   : > { %v6264_v14 = vpop.f32.mrb[55].mxu1 }
 0x29f   : > { %v3278_v15 = vmax.f32 %v3277_v11, 0.0 }
 0x2a1   : > { %v3279_v16 = vpack.c.bf16 %v3278_v15, %v3278_v15 }
 0x2a3   : > { %5167 = vst [vmem:[%s7664_s29 + $0x4] sm:$0x3] %v3279_v16 }
 0x2ba   : > { %v3493_v17 = vpop.f32.mrb[56].mxu0 }
 0x2bb   : > { %v3494_v18 = vadd.f32 %v3493_v17, %v3405_v7  ;;  %v3608_v19 = vpop.f32.mrb[56].mxu1  ;;  %v6283_v20 = vpop.f32.mrb[57].mxu0 }
 0x2bc   : > { %v6303_v21 = vpop.f32.mrb[57].mxu1  ;;  %v3496_v22 = vpop.f32.mrb[58].mxu0 }
 0x2bd   : > { %v3614_v23 = vadd.f32 %v3608_v19, %v3494_v18  ;;  %v3611_v24 = vpop.f32.mrb[58].mxu1  ;;  %v6284_v25 = vpop.f32.mrb[59].mxu0 }
 0x2be   : > { %v6304_v26 = vpop.f32.mrb[59].mxu1 }
 0x2da   : > { %v3719_v28 = vpop.f32.mrb[60].mxu0 }
 0x2db   : > { %v3725_v29 = vadd.f32 %v3719_v28, %v3614_v23  ;;  %v3828_v30 = vpop.f32.mrb[60].mxu1  ;;  %v6323_v27 = vpop.f32.mrb[61].mxu0 }
 0x2dc   : > { %v6343_v31 = vpop.f32.mrb[61].mxu1  ;;  %v3722_v32 = vpop.f32.mrb[62].mxu0 }
 0x2dd   : > { %v3834_v33 = vadd.f32 %v3828_v30, %v3725_v29  ;;  %v3831_v34 = vpop.f32.mrb[62].mxu1  ;;  %v6324_v35 = vpop.f32.mrb[63].mxu0 }
 0x2de   : > { %v6344_v36 = vpop.f32.mrb[63].mxu1 }
 0x2fa   : > { %v3944_v37 = vpop.f32.mrb[64].mxu0 }
 0x2fb   : > { %v3950_v38 = vadd.f32 %v3944_v37, %v3834_v33  ;;  %v4054_v39 = vpop.f32.mrb[64].mxu1  ;;  %v6363_v40 = vpop.f32.mrb[65].mxu0 }
 0x2fc   : > { %v6383_v41 = vpop.f32.mrb[65].mxu1  ;;  %v3947_v42 = vpop.f32.mrb[66].mxu0 }
 0x2fd   : > { %v4060_v43 = vadd.f32 %v4054_v39, %v3950_v38  ;;  %v4057_v44 = vpop.f32.mrb[66].mxu1  ;;  %v6364_v45 = vpop.f32.mrb[67].mxu0 }
 0x2fe   : > { %v6384_v46 = vpop.f32.mrb[67].mxu1 }
 0x31a   : > { %v4163_v47 = vpop.f32.mrb[68].mxu0 }
 0x31b   : > { %v4169_v48 = vadd.f32 %v4163_v47, %v4060_v43  ;;  %v4279_v49 = vpop.f32.mrb[68].mxu1  ;;  %v6403_v50 = vpop.f32.mrb[69].mxu0 }
 0x31c   : > { %v6423_v51 = vpop.f32.mrb[69].mxu1  ;;  %v4166_v52 = vpop.f32.mrb[70].mxu0 }
 0x31d   : > { %v4285_v53 = vadd.f32 %v4279_v49, %v4169_v48  ;;  %v4282_v54 = vpop.f32.mrb[70].mxu1  ;;  %v6404_v55 = vpop.f32.mrb[71].mxu0 }
 0x31e   : > { %v6424_v56 = vpop.f32.mrb[71].mxu1 }
 0x31f   : > { %v4286_v58 = vadd.f32 %v6752_v57, %v4285_v53 }
 0x321   : > { %v4287_v59 = vmax.f32 %v4286_v58, 0.0 }
 0x323   : > { %v4288_v60 = vpack.c.bf16 %v4287_v59, %v4287_v59 }
 0x325   : > { %5377 = vst [vmem:[%s7664_s29 + $0x6] sm:$0x3] %v4288_v60 }
 0x326 PF: > { %s13_s14 = sadd.s32 1, %s6775_s14   ;;  %s8117_s12 = smov %s6771_s13 }
 0x327   : > { %p10_p5 = scmp.ge.s32.totalorder %s13_s14, 4   ;;  %s8118_s13 = smov %s8120_s15 }
 0x329   :  { %12 = sbr.rel (!%p10_p5) target bundleno = 2 (0x2), region = 103 }

</bundles_post_ra>
